<compile_context>
chip_gen: v7x
topology: tpu7x:2x2x1
jax: 0.10.0
libtpu: 0.0.40
codegen_flags: <defaults>
</compile_context>

<pallas_src>
import jax
import jax.numpy as jnp
from jax.experimental import pallas as pl
from jax.experimental.pallas import tpu as pltpu

BATCH_TILE = 256  # max samples per grid step (lane axis); tunable


# ---------------------------------------------------------------------------
# One-time weight preparation (hoisted out of the per-call path).
# ---------------------------------------------------------------------------
def prepare_params(params):
    f32, bf16 = jnp.float32, jnp.bfloat16
    c1o, c1i, k1 = params["conv1_w"].shape            # (32, state_dim, 3)
    c2o, c2i, k2 = params["conv2_w"].shape            # (64, 32, 3)
    # conv weights flattened tap-major: W[o, t*C_in + i] = w[o, i, t]
    # conv1 runs on the VPU -> keep f32; conv2 runs on the MXU -> bf16.
    w1f = jnp.transpose(params["conv1_w"], (0, 2, 1)).reshape(c1o, k1 * c1i).astype(f32)
    b1 = params["conv1_b"].reshape(c1o, 1).astype(f32)
    w2f = jnp.transpose(params["conv2_w"], (0, 2, 1)).reshape(c2o, k2 * c2i).astype(bf16)
    b2 = params["conv2_b"].reshape(c2o, 1).astype(f32)

    h1dim, feat = params["lin1_w"].shape               # (256, 64*L2)
    L2 = feat // c2o
    # In-kernel feature rows are (l2-major, channel-minor); permute the
    # PyTorch channel-major flatten (c*L2 + l2) once to match.
    wl1p = (params["lin1_w"].reshape(h1dim, c2o, L2).transpose(0, 2, 1)
            .reshape(h1dim, L2 * c2o))
    wl4 = params["lin4_w"]                              # (256, ad)
    ad = wl4.shape[1]
    # Fused block-diagonal head weight: [[lin1_perm, 0], [0, lin4]].
    wh = jnp.zeros((2 * h1dim, feat + ad), f32)
    wh = wh.at[:h1dim, :feat].set(wl1p)
    wh = wh.at[h1dim:, feat:].set(wl4)
    wh = wh.astype(bf16)
    bh = jnp.concatenate([params["lin1_b"], params["lin4_b"]]).reshape(2 * h1dim, 1).astype(f32)

    wl2 = params["lin2_w"].astype(bf16)
    bl2 = params["lin2_b"].reshape(-1, 1).astype(f32)
    wl5 = params["lin5_w"].astype(bf16)                  # (1, 256)
    bl5 = params["lin5_b"].reshape(1, 1).astype(f32)
    return (w1f, b1, w2f, b2, wh, bh, wl2, bl2, wl5, bl5)


# ---------------------------------------------------------------------------
# Forward pass.
# ---------------------------------------------------------------------------
def critic_forward(state, action_logits, prepared, shrink_dim, block_b=BATCH_TILE):
    """state: (B, state_dim, state_len) f32; action_logits: (B, action_dim*state_len)."""
    f32, bf16 = jnp.float32, jnp.bfloat16
    B, c_in, L = state.shape
    L1 = L // shrink_dim
    L2 = L1 // shrink_dim
    ad = action_logits.shape[1]

    (w1f, b1, w2f, b2, wh, bh, wl2, bl2, wl5, bl5) = prepared
    c1o = w1f.shape[0]
    c2o = w2f.shape[0]
    h1dim = wh.shape[0] // 2

    # Batch tile: big enough to amortize per-step overhead, capped so that
    # realistic batches produce >= 2 grid tiles (feeds both v7x TensorCores).
    half = -(-B // 2)
    Bt = max(128, min(block_b, -(-half // 128) * 128))
    G = -(-B // Bt)
    Bp = G * Bt

    x = state.astype(f32)
    a = action_logits.astype(f32)
    if Bp != B:                       # pad batch to a whole number of tiles
        x = jnp.pad(x, ((0, Bp - B), (0, 0), (0, 0)))
        a = jnp.pad(a, ((0, Bp - B), (0, 0)))

    # l-major lane layout: lane index = l*Bt + b.  conv1 im2col is built
    # in-kernel, so only the raw (c_in, L*Bt) state slab is shipped per tile.
    xg = x.reshape(G, Bt, c_in, L).transpose(0, 2, 3, 1).reshape(G, c_in, L * Bt)
    ag = a.reshape(G, Bt, ad).transpose(0, 2, 1)         # (G, ad, Bt)
    # TODO(synk): fuse these small relayout transposes into the upstream
    # producer (or do them in-kernel on the XLU) to drop the extra XLA pass.

    LBt = L * Bt

    def kernel(x_ref, act_ref,
               w1f_ref, b1_ref, w2f_ref, b2_ref,
               wh_ref, bh_ref, wl2_ref, bl2_ref, wl5_ref, bl5_ref,
               out_ref, stack2_scr, head_scr):
        # ---- conv1 on the VPU: unrolled broadcast-FMA over 3*c_in taps ----
        xc = x_ref[...]                                   # (c_in, L*Bt) f32
        zx = jnp.zeros((c_in, Bt), f32)
        x_prev = jnp.concatenate([zx, xc[:, :-Bt]], axis=1)   # value at l-1 (zero pad)
        x_next = jnp.concatenate([xc[:, Bt:], zx], axis=1)    # value at l+1 (zero pad)
        w1 = w1f_ref[...]                                 # (32, 3*c_in) f32
        h1 = None
        for t, xs in enumerate((x_prev, xc, x_next)):
            for i in range(c_in):
                col = t * c_in + i
                term = w1[:, col:col + 1] * xs[i:i + 1, :]     # (32,1)*(1,LBt)
                h1 = term if h1 is None else h1 + term
        h1 = jnp.maximum(h1 + b1_ref[...], 0.0)           # (32, L*Bt) f32

        inv_s = 1.0 / shrink_dim

        # ---- avg_pool1 + conv2 im2col written straight into VMEM scratch ----
        zb = jnp.zeros((c1o, Bt), bf16)
        stack2_scr[0:c1o, 0:Bt] = zb                              # zero pad, l1 = 0
        stack2_scr[2 * c1o:3 * c1o, (L1 - 1) * Bt:L1 * Bt] = zb   # zero pad, l1 = L1-1
        for j in range(L1):
            base = j * shrink_dim * Bt
            s = h1[:, base:base + Bt]
            for t in range(1, shrink_dim):
                s = s + h1[:, base + t * Bt: base + (t + 1) * Bt]
            s = (s * inv_s).astype(bf16)                  # pooled block j, (32, Bt)
            stack2_scr[c1o:2 * c1o, j * Bt:(j + 1) * Bt] = s          # centre tap
            if j + 1 < L1:
                stack2_scr[0:c1o, (j + 1) * Bt:(j + 2) * Bt] = s      # prev tap of j+1
            if j >= 1:
                stack2_scr[2 * c1o:3 * c1o, (j - 1) * Bt:j * Bt] = s  # next tap of j-1

        # ---- conv2: one bf16 im2col matmul (f32 accumulation) ----
        h2 = jnp.dot(w2f_ref[...], stack2_scr[...],
                     preferred_element_type=f32) + b2_ref[...]
        h2 = jnp.maximum(h2, 0.0)                          # (64, L1*Bt) f32

        # ---- avg_pool2 + flatten + action logits into the head scratch ----
        for j in range(L2):
            base = j * shrink_dim * Bt
            s = h2[:, base:base + Bt]
            for t in range(1, shrink_dim):
                s = s + h2[:, base + t * Bt: base + (t + 1) * Bt]
            head_scr[j * c2o:(j + 1) * c2o, :] = (s * inv_s).astype(bf16)
        head_scr[L2 * c2o:L2 * c2o + ad, :] = act_ref[...].astype(bf16)

        # ---- fused lin1/lin4 (block-diagonal), then lin2, lin5 ----
        h = jnp.dot(wh_ref[...], head_scr[...],
                    preferred_element_type=f32) + bh_ref[...]
        h = jnp.maximum(h, 0.0)                            # (512, Bt) f32
        o1 = h[0:h1dim, :]
        a4 = h[h1dim:2 * h1dim, :]
        o2 = jnp.maximum(
            jnp.dot(wl2_ref[...], o1.astype(bf16),
                    preferred_element_type=f32) + bl2_ref[...], 0.0)
        allo = (o2 + a4).astype(bf16)
        out_ref[...] = (jnp.dot(wl5_ref[...], allo, preferred_element_type=f32)
                        + bl5_ref[...])                    # (1, Bt) lane-dense

    weights = [w1f, b1, w2f, b2, wh, bh, wl2, bl2, wl5, bl5]

    def full_spec(arr):
        nd = arr.ndim
        return pl.BlockSpec(arr.shape, lambda g, _n=nd: (0,) * _n)

    out = pl.pallas_call(
        kernel,
        out_shape=jax.ShapeDtypeStruct((G, 1, Bt), f32),
        grid=(G,),
        in_specs=[pl.BlockSpec((None, c_in, LBt), lambda g: (g, 0, 0)),
                  pl.BlockSpec((None, ad, Bt), lambda g: (g, 0, 0))]
                 + [full_spec(w) for w in weights],
        out_specs=pl.BlockSpec((None, 1, Bt), lambda g: (g, 0, 0)),
        scratch_shapes=[pltpu.VMEM((3 * c1o, L1 * Bt), bf16),      # conv2 im2col
                        pltpu.VMEM((L2 * c2o + ad, Bt), bf16)],    # head input
        compiler_params=pltpu.CompilerParams(
            dimension_semantics=("parallel",)),
    )(xg, ag, *weights)

    return out.reshape(G * Bt, 1)[:B]


# ---------------- pure-JAX reference for verification ----------------
def critic_reference(state, action_logits, params, shrink_dim):
    def conv(x, w, b):
        y = jax.lax.conv_general_dilated(
            x, w, window_strides=(1,), padding=((1, 1),),
            dimension_numbers=("NCH", "OIH", "NCH"))
        return y + b[None, :, None]

    def pool(x):
        B, C, L = x.shape
        Lp = (L // shrink_dim) * shrink_dim
        return x[:, :, :Lp].reshape(B, C, Lp // shrink_dim, shrink_dim).mean(-1)

    h = pool(jax.nn.relu(conv(state, params["conv1_w"], params["conv1_b"])))
    h = pool(jax.nn.relu(conv(h, params["conv2_w"], params["conv2_b"])))
    B = state.shape[0]
    h = h.reshape(B, -1)
    o = jax.nn.relu(h @ params["lin1_w"].T + params["lin1_b"])
    o = jax.nn.relu(o @ params["lin2_w"].T + params["lin2_b"])
    a = jax.nn.relu(action_logits @ params["lin4_w"].T + params["lin4_b"])
    allo = o + a
    return allo @ params["lin5_w"].T + params["lin5_b"]


def init_params(key, state_dim, state_len, action_dim, shrink_dim):
    feat = state_len // shrink_dim // shrink_dim * 64
    ks = jax.random.split(key, 12)
    n = lambda k, s: (0.05 * jax.random.normal(k, s, jnp.float32))
    return {
        "conv1_w": n(ks[0], (32, state_dim, 3)),
        "conv1_b": n(ks[1], (32,)),
        "conv2_w": n(ks[2], (64, 32, 3)),
        "conv2_b": n(ks[3], (64,)),
        "lin1_w": n(ks[4], (256, feat)),
        "lin1_b": n(ks[5], (256,)),
        "lin2_w": n(ks[6], (256, 256)),
        "lin2_b": n(ks[7], (256,)),
        # linear3 exists in __init__ but is unused in forward() -> omitted.
        "lin4_w": n(ks[8], (256, action_dim * state_len)),
        "lin4_b": n(ks[9], (256,)),
        "lin5_w": n(ks[10], (1, 256)),
        "lin5_b": n(ks[11], (1,)),
    }


if __name__ == "__main__":
    state_dim, state_len, action_dim, shrink_dim = 2, 32, 2, 4

    key = jax.random.PRNGKey(0)
    k_p, k_s, k_a, k_s2, k_a2 = jax.random.split(key, 5)
    params = init_params(k_p, state_dim, state_len, action_dim, shrink_dim)
    prepared = prepare_params(params)

    # Small check: B=2 (single padded batch tile).
    B = 2
    state = jax.random.normal(k_s, (B, state_dim, state_len), jnp.float32)
    action_logits = jax.random.normal(k_a, (B, action_dim * state_len), jnp.float32)
    value = jax.block_until_ready(
        critic_forward(state, action_logits, prepared, shrink_dim))
    ref = critic_reference(state, action_logits, params, shrink_dim)
    assert value.shape == (B, 1), value.shape
    # bf16 MXU operands (f32 accumulation) -> modestly loosened tolerance.
    assert jnp.allclose(value, ref, atol=2e-2, rtol=2e-2), (value, ref)

    # Multi-tile check: B=130 (2 grid steps, batch padded to 256).
    B2 = 130
    state2 = jax.random.normal(k_s2, (B2, state_dim, state_len), jnp.float32)
    action2 = jax.random.normal(k_a2, (B2, action_dim * state_len), jnp.float32)
    value2 = jax.block_until_ready(
        critic_forward(state2, action2, prepared, shrink_dim))
    ref2 = critic_reference(state2, action2, params, shrink_dim)
    assert value2.shape == (B2, 1), value2.shape
    assert jnp.allclose(value2, ref2, atol=2e-2, rtol=2e-2)

    print("KERNEL_OK")
</pallas_src>

<mosaic_0001>
module attributes {stable_mosaic.version = 11 : i64} {
  func.func @kernel(%arg0: i32, %arg1: memref<1x2x4096xf32, #tpu.memory_space<vmem>>, %arg2: memref<1x64x128xf32, #tpu.memory_space<vmem>>, %arg3: memref<32x6xf32, #tpu.memory_space<vmem>>, %arg4: memref<32x1xf32, #tpu.memory_space<vmem>>, %arg5: memref<64x96xbf16, #tpu.memory_space<vmem>>, %arg6: memref<64x1xf32, #tpu.memory_space<vmem>>, %arg7: memref<512x192xbf16, #tpu.memory_space<vmem>>, %arg8: memref<512x1xf32, #tpu.memory_space<vmem>>, %arg9: memref<256x256xbf16, #tpu.memory_space<vmem>>, %arg10: memref<256x1xf32, #tpu.memory_space<vmem>>, %arg11: memref<1x256xbf16, #tpu.memory_space<vmem>>, %arg12: memref<1x1xf32, #tpu.memory_space<vmem>>, %arg13: memref<1x1x128xf32, #tpu.memory_space<vmem>>, %arg14: memref<96x1024xbf16, #tpu.memory_space<vmem>>, %arg15: memref<192x128xbf16, #tpu.memory_space<vmem>>) attributes {dimension_semantics = [#tpu.dimension_semantics<parallel>], iteration_bounds = array<i64: 1>, scalar_prefetch = 0 : i64, scratch_operands = 2 : i64, tpu.core_type = #tpu.core_type<tc>, window_params = [{transform_indices = @transform_0, window_bounds = array<i64: 1, 2, 4096>}, {transform_indices = @transform_1, window_bounds = array<i64: 1, 64, 128>}, {pipeline_mode = #tpu.pipeline_mode<synchronous>, transform_indices = @transform_2, window_bounds = array<i64: 32, 6>}, {pipeline_mode = #tpu.pipeline_mode<synchronous>, transform_indices = @transform_3, window_bounds = array<i64: 32, 1>}, {pipeline_mode = #tpu.pipeline_mode<synchronous>, transform_indices = @transform_4, window_bounds = array<i64: 64, 96>}, {pipeline_mode = #tpu.pipeline_mode<synchronous>, transform_indices = @transform_5, window_bounds = array<i64: 64, 1>}, {pipeline_mode = #tpu.pipeline_mode<synchronous>, transform_indices = @transform_6, window_bounds = array<i64: 512, 192>}, {pipeline_mode = #tpu.pipeline_mode<synchronous>, transform_indices = @transform_7, window_bounds = array<i64: 512, 1>}, {pipeline_mode = #tpu.pipeline_mode<synchronous>, transform_indices = @transform_8, window_bounds = array<i64: 256, 256>}, {pipeline_mode = #tpu.pipeline_mode<synchronous>, transform_indices = @transform_9, window_bounds = array<i64: 256, 1>}, {pipeline_mode = #tpu.pipeline_mode<synchronous>, transform_indices = @transform_10, window_bounds = array<i64: 1, 256>}, {pipeline_mode = #tpu.pipeline_mode<synchronous>, transform_indices = @transform_11, window_bounds = array<i64: 1, 1>}, {transform_indices = @transform_12, window_bounds = array<i64: 1, 1, 128>}]} {
    %c0 = arith.constant 0 : index
    %c0_0 = arith.constant 0 : index
    %c0_1 = arith.constant 0 : index
    %0 = vector.load %arg1[%c0, %c0_0, %c0_1] : memref<1x2x4096xf32, #tpu.memory_space<vmem>>, vector<1x2x4096xf32>
    %1 = vector.shape_cast %0 : vector<1x2x4096xf32> to vector<2x4096xf32>
    %cst = arith.constant 0.000000e+00 : f32
    %2 = vector.broadcast %cst : f32 to vector<2x128xf32>
    %3 = vector.extract_strided_slice %1 {offsets = [0, 0], sizes = [2, 3968], strides = [1, 1]} : vector<2x4096xf32> to vector<2x3968xf32>
    %4 = tpu.concatenate %2, %3 in 1 : vector<2x128xf32>, vector<2x3968xf32> -> vector<2x4096xf32>
    %5 = vector.extract_strided_slice %1 {offsets = [0, 128], sizes = [2, 3968], strides = [1, 1]} : vector<2x4096xf32> to vector<2x3968xf32>
    %6 = tpu.concatenate %5, %2 in 1 : vector<2x3968xf32>, vector<2x128xf32> -> vector<2x4096xf32>
    %c0_2 = arith.constant 0 : index
    %c0_3 = arith.constant 0 : index
    %7 = vector.load %arg3[%c0_2, %c0_3] : memref<32x6xf32, #tpu.memory_space<vmem>>, vector<32x6xf32>
    %8 = vector.extract_strided_slice %7 {offsets = [0, 0], sizes = [32, 1], strides = [1, 1]} : vector<32x6xf32> to vector<32x1xf32>
    %9 = vector.extract_strided_slice %4 {offsets = [0, 0], sizes = [1, 4096], strides = [1, 1]} : vector<2x4096xf32> to vector<1x4096xf32>
    %10 = vector.broadcast %8 : vector<32x1xf32> to vector<32x4096xf32>
    %11 = vector.broadcast %9 : vector<1x4096xf32> to vector<32x4096xf32>
    %12 = arith.mulf %10, %11 : vector<32x4096xf32>
    %13 = vector.extract_strided_slice %7 {offsets = [0, 1], sizes = [32, 1], strides = [1, 1]} : vector<32x6xf32> to vector<32x1xf32>
    %14 = vector.extract_strided_slice %4 {offsets = [1, 0], sizes = [1, 4096], strides = [1, 1]} : vector<2x4096xf32> to vector<1x4096xf32>
    %15 = vector.broadcast %13 : vector<32x1xf32> to vector<32x4096xf32>
    %16 = vector.broadcast %14 : vector<1x4096xf32> to vector<32x4096xf32>
    %17 = arith.mulf %15, %16 : vector<32x4096xf32>
    %18 = arith.addf %12, %17 : vector<32x4096xf32>
    %19 = vector.extract_strided_slice %7 {offsets = [0, 2], sizes = [32, 1], strides = [1, 1]} : vector<32x6xf32> to vector<32x1xf32>
    %20 = vector.extract_strided_slice %1 {offsets = [0, 0], sizes = [1, 4096], strides = [1, 1]} : vector<2x4096xf32> to vector<1x4096xf32>
    %21 = vector.broadcast %19 : vector<32x1xf32> to vector<32x4096xf32>
    %22 = vector.broadcast %20 : vector<1x4096xf32> to vector<32x4096xf32>
    %23 = arith.mulf %21, %22 : vector<32x4096xf32>
    %24 = arith.addf %18, %23 : vector<32x4096xf32>
    %25 = vector.extract_strided_slice %7 {offsets = [0, 3], sizes = [32, 1], strides = [1, 1]} : vector<32x6xf32> to vector<32x1xf32>
    %26 = vector.extract_strided_slice %1 {offsets = [1, 0], sizes = [1, 4096], strides = [1, 1]} : vector<2x4096xf32> to vector<1x4096xf32>
    %27 = vector.broadcast %25 : vector<32x1xf32> to vector<32x4096xf32>
    %28 = vector.broadcast %26 : vector<1x4096xf32> to vector<32x4096xf32>
    %29 = arith.mulf %27, %28 : vector<32x4096xf32>
    %30 = arith.addf %24, %29 : vector<32x4096xf32>
    %31 = vector.extract_strided_slice %7 {offsets = [0, 4], sizes = [32, 1], strides = [1, 1]} : vector<32x6xf32> to vector<32x1xf32>
    %32 = vector.extract_strided_slice %6 {offsets = [0, 0], sizes = [1, 4096], strides = [1, 1]} : vector<2x4096xf32> to vector<1x4096xf32>
    %33 = vector.broadcast %31 : vector<32x1xf32> to vector<32x4096xf32>
    %34 = vector.broadcast %32 : vector<1x4096xf32> to vector<32x4096xf32>
    %35 = arith.mulf %33, %34 : vector<32x4096xf32>
    %36 = arith.addf %30, %35 : vector<32x4096xf32>
    %37 = vector.extract_strided_slice %7 {offsets = [0, 5], sizes = [32, 1], strides = [1, 1]} : vector<32x6xf32> to vector<32x1xf32>
    %38 = vector.extract_strided_slice %6 {offsets = [1, 0], sizes = [1, 4096], strides = [1, 1]} : vector<2x4096xf32> to vector<1x4096xf32>
    %39 = vector.broadcast %37 : vector<32x1xf32> to vector<32x4096xf32>
    %40 = vector.broadcast %38 : vector<1x4096xf32> to vector<32x4096xf32>
    %41 = arith.mulf %39, %40 : vector<32x4096xf32>
    %42 = arith.addf %36, %41 : vector<32x4096xf32>
    %c0_4 = arith.constant 0 : index
    %c0_5 = arith.constant 0 : index
    %43 = vector.load %arg4[%c0_4, %c0_5] : memref<32x1xf32, #tpu.memory_space<vmem>>, vector<32x1xf32>
    %44 = vector.broadcast %43 : vector<32x1xf32> to vector<32x4096xf32>
    %45 = arith.addf %42, %44 : vector<32x4096xf32>
    %cst_6 = arith.constant 0.000000e+00 : f32
    %46 = vector.broadcast %cst_6 : f32 to vector<32x4096xf32>
    %47 = arith.maximumf %45, %46 : vector<32x4096xf32>
    %cst_7 = arith.constant 0.000000e+00 : bf16
    %48 = vector.broadcast %cst_7 : bf16 to vector<32x128xbf16>
    %c0_8 = arith.constant 0 : index
    %c0_9 = arith.constant 0 : index
    %49 = vector.load %arg14[%c0_8, %c0_9] : memref<96x1024xbf16, #tpu.memory_space<vmem>>, vector<32x128xbf16>
    tpu.vector_store %arg14[%c0_8, %c0_9], %48 {strides = array<i32>} : memref<96x1024xbf16, #tpu.memory_space<vmem>>, vector<32x128xbf16>,
    %c64 = arith.constant 64 : index
    %c896 = arith.constant 896 : index
    %50 = vector.load %arg14[%c64, %c896] : memref<96x1024xbf16, #tpu.memory_space<vmem>>, vector<32x128xbf16>
    tpu.vector_store %arg14[%c64, %c896], %48 {strides = array<i32>} : memref<96x1024xbf16, #tpu.memory_space<vmem>>, vector<32x128xbf16>,
    %51 = vector.extract_strided_slice %47 {offsets = [0, 0], sizes = [32, 128], strides = [1, 1]} : vector<32x4096xf32> to vector<32x128xf32>
    %52 = vector.extract_strided_slice %47 {offsets = [0, 128], sizes = [32, 128], strides = [1, 1]} : vector<32x4096xf32> to vector<32x128xf32>
    %53 = arith.addf %51, %52 : vector<32x128xf32>
    %54 = vector.extract_strided_slice %47 {offsets = [0, 256], sizes = [32, 128], strides = [1, 1]} : vector<32x4096xf32> to vector<32x128xf32>
    %55 = arith.addf %53, %54 : vector<32x128xf32>
    %56 = vector.extract_strided_slice %47 {offsets = [0, 384], sizes = [32, 128], strides = [1, 1]} : vector<32x4096xf32> to vector<32x128xf32>
    %57 = arith.addf %55, %56 : vector<32x128xf32>
    %cst_10 = arith.constant 2.500000e-01 : f32
    %58 = vector.broadcast %cst_10 : f32 to vector<32x128xf32>
    %59 = arith.mulf %57, %58 : vector<32x128xf32>
    %60 = arith.truncf %59 : vector<32x128xf32> to vector<32x128xbf16>
    %c32 = arith.constant 32 : index
    %c0_11 = arith.constant 0 : index
    %61 = vector.load %arg14[%c32, %c0_11] : memref<96x1024xbf16, #tpu.memory_space<vmem>>, vector<32x128xbf16>
    tpu.vector_store %arg14[%c32, %c0_11], %60 {strides = array<i32>} : memref<96x1024xbf16, #tpu.memory_space<vmem>>, vector<32x128xbf16>,
    %c0_12 = arith.constant 0 : index
    %c128 = arith.constant 128 : index
    %62 = vector.load %arg14[%c0_12, %c128] : memref<96x1024xbf16, #tpu.memory_space<vmem>>, vector<32x128xbf16>
    tpu.vector_store %arg14[%c0_12, %c128], %60 {strides = array<i32>} : memref<96x1024xbf16, #tpu.memory_space<vmem>>, vector<32x128xbf16>,
    %63 = vector.extract_strided_slice %47 {offsets = [0, 512], sizes = [32, 128], strides = [1, 1]} : vector<32x4096xf32> to vector<32x128xf32>
    %64 = vector.extract_strided_slice %47 {offsets = [0, 640], sizes = [32, 128], strides = [1, 1]} : vector<32x4096xf32> to vector<32x128xf32>
    %65 = arith.addf %63, %64 : vector<32x128xf32>
    %66 = vector.extract_strided_slice %47 {offsets = [0, 768], sizes = [32, 128], strides = [1, 1]} : vector<32x4096xf32> to vector<32x128xf32>
    %67 = arith.addf %65, %66 : vector<32x128xf32>
    %68 = vector.extract_strided_slice %47 {offsets = [0, 896], sizes = [32, 128], strides = [1, 1]} : vector<32x4096xf32> to vector<32x128xf32>
    %69 = arith.addf %67, %68 : vector<32x128xf32>
    %cst_13 = arith.constant 2.500000e-01 : f32
    %70 = vector.broadcast %cst_13 : f32 to vector<32x128xf32>
    %71 = arith.mulf %69, %70 : vector<32x128xf32>
    %72 = arith.truncf %71 : vector<32x128xf32> to vector<32x128xbf16>
    %c32_14 = arith.constant 32 : index
    %c128_15 = arith.constant 128 : index
    %73 = vector.load %arg14[%c32_14, %c128_15] : memref<96x1024xbf16, #tpu.memory_space<vmem>>, vector<32x128xbf16>
    tpu.vector_store %arg14[%c32_14, %c128_15], %72 {strides = array<i32>} : memref<96x1024xbf16, #tpu.memory_space<vmem>>, vector<32x128xbf16>,
    %c0_16 = arith.constant 0 : index
    %c256 = arith.constant 256 : index
    %74 = vector.load %arg14[%c0_16, %c256] : memref<96x1024xbf16, #tpu.memory_space<vmem>>, vector<32x128xbf16>
    tpu.vector_store %arg14[%c0_16, %c256], %72 {strides = array<i32>} : memref<96x1024xbf16, #tpu.memory_space<vmem>>, vector<32x128xbf16>,
    %c64_17 = arith.constant 64 : index
    %c0_18 = arith.constant 0 : index
    %75 = vector.load %arg14[%c64_17, %c0_18] : memref<96x1024xbf16, #tpu.memory_space<vmem>>, vector<32x128xbf16>
    tpu.vector_store %arg14[%c64_17, %c0_18], %72 {strides = array<i32>} : memref<96x1024xbf16, #tpu.memory_space<vmem>>, vector<32x128xbf16>,
    %76 = vector.extract_strided_slice %47 {offsets = [0, 1024], sizes = [32, 128], strides = [1, 1]} : vector<32x4096xf32> to vector<32x128xf32>
    %77 = vector.extract_strided_slice %47 {offsets = [0, 1152], sizes = [32, 128], strides = [1, 1]} : vector<32x4096xf32> to vector<32x128xf32>
    %78 = arith.addf %76, %77 : vector<32x128xf32>
    %79 = vector.extract_strided_slice %47 {offsets = [0, 1280], sizes = [32, 128], strides = [1, 1]} : vector<32x4096xf32> to vector<32x128xf32>
    %80 = arith.addf %78, %79 : vector<32x128xf32>
    %81 = vector.extract_strided_slice %47 {offsets = [0, 1408], sizes = [32, 128], strides = [1, 1]} : vector<32x4096xf32> to vector<32x128xf32>
    %82 = arith.addf %80, %81 : vector<32x128xf32>
    %cst_19 = arith.constant 2.500000e-01 : f32
    %83 = vector.broadcast %cst_19 : f32 to vector<32x128xf32>
    %84 = arith.mulf %82, %83 : vector<32x128xf32>
    %85 = arith.truncf %84 : vector<32x128xf32> to vector<32x128xbf16>
    %c32_20 = arith.constant 32 : index
    %c256_21 = arith.constant 256 : index
    %86 = vector.load %arg14[%c32_20, %c256_21] : memref<96x1024xbf16, #tpu.memory_space<vmem>>, vector<32x128xbf16>
    tpu.vector_store %arg14[%c32_20, %c256_21], %85 {strides = array<i32>} : memref<96x1024xbf16, #tpu.memory_space<vmem>>, vector<32x128xbf16>,
    %c0_22 = arith.constant 0 : index
    %c384 = arith.constant 384 : index
    %87 = vector.load %arg14[%c0_22, %c384] : memref<96x1024xbf16, #tpu.memory_space<vmem>>, vector<32x128xbf16>
    tpu.vector_store %arg14[%c0_22, %c384], %85 {strides = array<i32>} : memref<96x1024xbf16, #tpu.memory_space<vmem>>, vector<32x128xbf16>,
    %c64_23 = arith.constant 64 : index
    %c128_24 = arith.constant 128 : index
    %88 = vector.load %arg14[%c64_23, %c128_24] : memref<96x1024xbf16, #tpu.memory_space<vmem>>, vector<32x128xbf16>
    tpu.vector_store %arg14[%c64_23, %c128_24], %85 {strides = array<i32>} : memref<96x1024xbf16, #tpu.memory_space<vmem>>, vector<32x128xbf16>,
    %89 = vector.extract_strided_slice %47 {offsets = [0, 1536], sizes = [32, 128], strides = [1, 1]} : vector<32x4096xf32> to vector<32x128xf32>
    %90 = vector.extract_strided_slice %47 {offsets = [0, 1664], sizes = [32, 128], strides = [1, 1]} : vector<32x4096xf32> to vector<32x128xf32>
    %91 = arith.addf %89, %90 : vector<32x128xf32>
    %92 = vector.extract_strided_slice %47 {offsets = [0, 1792], sizes = [32, 128], strides = [1, 1]} : vector<32x4096xf32> to vector<32x128xf32>
    %93 = arith.addf %91, %92 : vector<32x128xf32>
    %94 = vector.extract_strided_slice %47 {offsets = [0, 1920], sizes = [32, 128], strides = [1, 1]} : vector<32x4096xf32> to vector<32x128xf32>
    %95 = arith.addf %93, %94 : vector<32x128xf32>
    %cst_25 = arith.constant 2.500000e-01 : f32
    %96 = vector.broadcast %cst_25 : f32 to vector<32x128xf32>
    %97 = arith.mulf %95, %96 : vector<32x128xf32>
    %98 = arith.truncf %97 : vector<32x128xf32> to vector<32x128xbf16>
    %c32_26 = arith.constant 32 : index
    %c384_27 = arith.constant 384 : index
    %99 = vector.load %arg14[%c32_26, %c384_27] : memref<96x1024xbf16, #tpu.memory_space<vmem>>, vector<32x128xbf16>
    tpu.vector_store %arg14[%c32_26, %c384_27], %98 {strides = array<i32>} : memref<96x1024xbf16, #tpu.memory_space<vmem>>, vector<32x128xbf16>,
    %c0_28 = arith.constant 0 : index
    %c512 = arith.constant 512 : index
    %100 = vector.load %arg14[%c0_28, %c512] : memref<96x1024xbf16, #tpu.memory_space<vmem>>, vector<32x128xbf16>
    tpu.vector_store %arg14[%c0_28, %c512], %98 {strides = array<i32>} : memref<96x1024xbf16, #tpu.memory_space<vmem>>, vector<32x128xbf16>,
    %c64_29 = arith.constant 64 : index
    %c256_30 = arith.constant 256 : index
    %101 = vector.load %arg14[%c64_29, %c256_30] : memref<96x1024xbf16, #tpu.memory_space<vmem>>, vector<32x128xbf16>
    tpu.vector_store %arg14[%c64_29, %c256_30], %98 {strides = array<i32>} : memref<96x1024xbf16, #tpu.memory_space<vmem>>, vector<32x128xbf16>,
    %102 = vector.extract_strided_slice %47 {offsets = [0, 2048], sizes = [32, 128], strides = [1, 1]} : vector<32x4096xf32> to vector<32x128xf32>
    %103 = vector.extract_strided_slice %47 {offsets = [0, 2176], sizes = [32, 128], strides = [1, 1]} : vector<32x4096xf32> to vector<32x128xf32>
    %104 = arith.addf %102, %103 : vector<32x128xf32>
    %105 = vector.extract_strided_slice %47 {offsets = [0, 2304], sizes = [32, 128], strides = [1, 1]} : vector<32x4096xf32> to vector<32x128xf32>
    %106 = arith.addf %104, %105 : vector<32x128xf32>
    %107 = vector.extract_strided_slice %47 {offsets = [0, 2432], sizes = [32, 128], strides = [1, 1]} : vector<32x4096xf32> to vector<32x128xf32>
    %108 = arith.addf %106, %107 : vector<32x128xf32>
    %cst_31 = arith.constant 2.500000e-01 : f32
    %109 = vector.broadcast %cst_31 : f32 to vector<32x128xf32>
    %110 = arith.mulf %108, %109 : vector<32x128xf32>
    %111 = arith.truncf %110 : vector<32x128xf32> to vector<32x128xbf16>
    %c32_32 = arith.constant 32 : index
    %c512_33 = arith.constant 512 : index
    %112 = vector.load %arg14[%c32_32, %c512_33] : memref<96x1024xbf16, #tpu.memory_space<vmem>>, vector<32x128xbf16>
    tpu.vector_store %arg14[%c32_32, %c512_33], %111 {strides = array<i32>} : memref<96x1024xbf16, #tpu.memory_space<vmem>>, vector<32x128xbf16>,
    %c0_34 = arith.constant 0 : index
    %c640 = arith.constant 640 : index
    %113 = vector.load %arg14[%c0_34, %c640] : memref<96x1024xbf16, #tpu.memory_space<vmem>>, vector<32x128xbf16>
    tpu.vector_store %arg14[%c0_34, %c640], %111 {strides = array<i32>} : memref<96x1024xbf16, #tpu.memory_space<vmem>>, vector<32x128xbf16>,
    %c64_35 = arith.constant 64 : index
    %c384_36 = arith.constant 384 : index
    %114 = vector.load %arg14[%c64_35, %c384_36] : memref<96x1024xbf16, #tpu.memory_space<vmem>>, vector<32x128xbf16>
    tpu.vector_store %arg14[%c64_35, %c384_36], %111 {strides = array<i32>} : memref<96x1024xbf16, #tpu.memory_space<vmem>>, vector<32x128xbf16>,
    %115 = vector.extract_strided_slice %47 {offsets = [0, 2560], sizes = [32, 128], strides = [1, 1]} : vector<32x4096xf32> to vector<32x128xf32>
    %116 = vector.extract_strided_slice %47 {offsets = [0, 2688], sizes = [32, 128], strides = [1, 1]} : vector<32x4096xf32> to vector<32x128xf32>
    %117 = arith.addf %115, %116 : vector<32x128xf32>
    %118 = vector.extract_strided_slice %47 {offsets = [0, 2816], sizes = [32, 128], strides = [1, 1]} : vector<32x4096xf32> to vector<32x128xf32>
    %119 = arith.addf %117, %118 : vector<32x128xf32>
    %120 = vector.extract_strided_slice %47 {offsets = [0, 2944], sizes = [32, 128], strides = [1, 1]} : vector<32x4096xf32> to vector<32x128xf32>
    %121 = arith.addf %119, %120 : vector<32x128xf32>
    %cst_37 = arith.constant 2.500000e-01 : f32
    %122 = vector.broadcast %cst_37 : f32 to vector<32x128xf32>
    %123 = arith.mulf %121, %122 : vector<32x128xf32>
    %124 = arith.truncf %123 : vector<32x128xf32> to vector<32x128xbf16>
    %c32_38 = arith.constant 32 : index
    %c640_39 = arith.constant 640 : index
    %125 = vector.load %arg14[%c32_38, %c640_39] : memref<96x1024xbf16, #tpu.memory_space<vmem>>, vector<32x128xbf16>
    tpu.vector_store %arg14[%c32_38, %c640_39], %124 {strides = array<i32>} : memref<96x1024xbf16, #tpu.memory_space<vmem>>, vector<32x128xbf16>,
    %c0_40 = arith.constant 0 : index
    %c768 = arith.constant 768 : index
    %126 = vector.load %arg14[%c0_40, %c768] : memref<96x1024xbf16, #tpu.memory_space<vmem>>, vector<32x128xbf16>
    tpu.vector_store %arg14[%c0_40, %c768], %124 {strides = array<i32>} : memref<96x1024xbf16, #tpu.memory_space<vmem>>, vector<32x128xbf16>,
    %c64_41 = arith.constant 64 : index
    %c512_42 = arith.constant 512 : index
    %127 = vector.load %arg14[%c64_41, %c512_42] : memref<96x1024xbf16, #tpu.memory_space<vmem>>, vector<32x128xbf16>
    tpu.vector_store %arg14[%c64_41, %c512_42], %124 {strides = array<i32>} : memref<96x1024xbf16, #tpu.memory_space<vmem>>, vector<32x128xbf16>,
    %128 = vector.extract_strided_slice %47 {offsets = [0, 3072], sizes = [32, 128], strides = [1, 1]} : vector<32x4096xf32> to vector<32x128xf32>
    %129 = vector.extract_strided_slice %47 {offsets = [0, 3200], sizes = [32, 128], strides = [1, 1]} : vector<32x4096xf32> to vector<32x128xf32>
    %130 = arith.addf %128, %129 : vector<32x128xf32>
    %131 = vector.extract_strided_slice %47 {offsets = [0, 3328], sizes = [32, 128], strides = [1, 1]} : vector<32x4096xf32> to vector<32x128xf32>
    %132 = arith.addf %130, %131 : vector<32x128xf32>
    %133 = vector.extract_strided_slice %47 {offsets = [0, 3456], sizes = [32, 128], strides = [1, 1]} : vector<32x4096xf32> to vector<32x128xf32>
    %134 = arith.addf %132, %133 : vector<32x128xf32>
    %cst_43 = arith.constant 2.500000e-01 : f32
    %135 = vector.broadcast %cst_43 : f32 to vector<32x128xf32>
    %136 = arith.mulf %134, %135 : vector<32x128xf32>
    %137 = arith.truncf %136 : vector<32x128xf32> to vector<32x128xbf16>
    %c32_44 = arith.constant 32 : index
    %c768_45 = arith.constant 768 : index
    %138 = vector.load %arg14[%c32_44, %c768_45] : memref<96x1024xbf16, #tpu.memory_space<vmem>>, vector<32x128xbf16>
    tpu.vector_store %arg14[%c32_44, %c768_45], %137 {strides = array<i32>} : memref<96x1024xbf16, #tpu.memory_space<vmem>>, vector<32x128xbf16>,
    %c0_46 = arith.constant 0 : index
    %c896_47 = arith.constant 896 : index
    %139 = vector.load %arg14[%c0_46, %c896_47] : memref<96x1024xbf16, #tpu.memory_space<vmem>>, vector<32x128xbf16>
    tpu.vector_store %arg14[%c0_46, %c896_47], %137 {strides = array<i32>} : memref<96x1024xbf16, #tpu.memory_space<vmem>>, vector<32x128xbf16>,
    %c64_48 = arith.constant 64 : index
    %c640_49 = arith.constant 640 : index
    %140 = vector.load %arg14[%c64_48, %c640_49] : memref<96x1024xbf16, #tpu.memory_space<vmem>>, vector<32x128xbf16>
    tpu.vector_store %arg14[%c64_48, %c640_49], %137 {strides = array<i32>} : memref<96x1024xbf16, #tpu.memory_space<vmem>>, vector<32x128xbf16>,
    %141 = vector.extract_strided_slice %47 {offsets = [0, 3584], sizes = [32, 128], strides = [1, 1]} : vector<32x4096xf32> to vector<32x128xf32>
    %142 = vector.extract_strided_slice %47 {offsets = [0, 3712], sizes = [32, 128], strides = [1, 1]} : vector<32x4096xf32> to vector<32x128xf32>
    %143 = arith.addf %141, %142 : vector<32x128xf32>
    %144 = vector.extract_strided_slice %47 {offsets = [0, 3840], sizes = [32, 128], strides = [1, 1]} : vector<32x4096xf32> to vector<32x128xf32>
    %145 = arith.addf %143, %144 : vector<32x128xf32>
    %146 = vector.extract_strided_slice %47 {offsets = [0, 3968], sizes = [32, 128], strides = [1, 1]} : vector<32x4096xf32> to vector<32x128xf32>
    %147 = arith.addf %145, %146 : vector<32x128xf32>
    %cst_50 = arith.constant 2.500000e-01 : f32
    %148 = vector.broadcast %cst_50 : f32 to vector<32x128xf32>
    %149 = arith.mulf %147, %148 : vector<32x128xf32>
    %150 = arith.truncf %149 : vector<32x128xf32> to vector<32x128xbf16>
    %c32_51 = arith.constant 32 : index
    %c896_52 = arith.constant 896 : index
    %151 = vector.load %arg14[%c32_51, %c896_52] : memref<96x1024xbf16, #tpu.memory_space<vmem>>, vector<32x128xbf16>
    tpu.vector_store %arg14[%c32_51, %c896_52], %150 {strides = array<i32>} : memref<96x1024xbf16, #tpu.memory_space<vmem>>, vector<32x128xbf16>,
    %c64_53 = arith.constant 64 : index
    %c768_54 = arith.constant 768 : index
    %152 = vector.load %arg14[%c64_53, %c768_54] : memref<96x1024xbf16, #tpu.memory_space<vmem>>, vector<32x128xbf16>
    tpu.vector_store %arg14[%c64_53, %c768_54], %150 {strides = array<i32>} : memref<96x1024xbf16, #tpu.memory_space<vmem>>, vector<32x128xbf16>,
    %c0_55 = arith.constant 0 : index
    %c0_56 = arith.constant 0 : index
    %153 = vector.load %arg5[%c0_55, %c0_56] : memref<64x96xbf16, #tpu.memory_space<vmem>>, vector<64x96xbf16>
    %c0_57 = arith.constant 0 : index
    %c0_58 = arith.constant 0 : index
    %154 = vector.load %arg14[%c0_57, %c0_58] : memref<96x1024xbf16, #tpu.memory_space<vmem>>, vector<96x1024xbf16>
    %cst_59 = arith.constant dense<0.000000e+00> : vector<64x1024xf32>
    %155 = tpu.matmul %153, %154, %cst_59 {dimension_numbers = #tpu.dot_dimension_numbers<[1], [0], [0], [1], [0, 0, 1, 1], [], []>} : vector<64x96xbf16>, vector<96x1024xbf16>, vector<64x1024xf32> -> vector<64x1024xf32>
    %c0_60 = arith.constant 0 : index
    %c0_61 = arith.constant 0 : index
    %156 = vector.load %arg6[%c0_60, %c0_61] : memref<64x1xf32, #tpu.memory_space<vmem>>, vector<64x1xf32>
    %157 = vector.broadcast %156 : vector<64x1xf32> to vector<64x1024xf32>
    %158 = arith.addf %155, %157 : vector<64x1024xf32>
    %cst_62 = arith.constant 0.000000e+00 : f32
    %159 = vector.broadcast %cst_62 : f32 to vector<64x1024xf32>
    %160 = arith.maximumf %158, %159 : vector<64x1024xf32>
    %161 = vector.extract_strided_slice %160 {offsets = [0, 0], sizes = [64, 128], strides = [1, 1]} : vector<64x1024xf32> to vector<64x128xf32>
    %162 = vector.extract_strided_slice %160 {offsets = [0, 128], sizes = [64, 128], strides = [1, 1]} : vector<64x1024xf32> to vector<64x128xf32>
    %163 = arith.addf %161, %162 : vector<64x128xf32>
    %164 = vector.extract_strided_slice %160 {offsets = [0, 256], sizes = [64, 128], strides = [1, 1]} : vector<64x1024xf32> to vector<64x128xf32>
    %165 = arith.addf %163, %164 : vector<64x128xf32>
    %166 = vector.extract_strided_slice %160 {offsets = [0, 384], sizes = [64, 128], strides = [1, 1]} : vector<64x1024xf32> to vector<64x128xf32>
    %167 = arith.addf %165, %166 : vector<64x128xf32>
    %cst_63 = arith.constant 2.500000e-01 : f32
    %168 = vector.broadcast %cst_63 : f32 to vector<64x128xf32>
    %169 = arith.mulf %167, %168 : vector<64x128xf32>
    %170 = arith.truncf %169 : vector<64x128xf32> to vector<64x128xbf16>
    %c0_64 = arith.constant 0 : index
    %c0_65 = arith.constant 0 : index
    %171 = vector.load %arg15[%c0_64, %c0_65] : memref<192x128xbf16, #tpu.memory_space<vmem>>, vector<64x128xbf16>
    tpu.vector_store %arg15[%c0_64, %c0_65], %170 {strides = array<i32>} : memref<192x128xbf16, #tpu.memory_space<vmem>>, vector<64x128xbf16>,
    %172 = vector.extract_strided_slice %160 {offsets = [0, 512], sizes = [64, 128], strides = [1, 1]} : vector<64x1024xf32> to vector<64x128xf32>
    %173 = vector.extract_strided_slice %160 {offsets = [0, 640], sizes = [64, 128], strides = [1, 1]} : vector<64x1024xf32> to vector<64x128xf32>
    %174 = arith.addf %172, %173 : vector<64x128xf32>
    %175 = vector.extract_strided_slice %160 {offsets = [0, 768], sizes = [64, 128], strides = [1, 1]} : vector<64x1024xf32> to vector<64x128xf32>
    %176 = arith.addf %174, %175 : vector<64x128xf32>
    %177 = vector.extract_strided_slice %160 {offsets = [0, 896], sizes = [64, 128], strides = [1, 1]} : vector<64x1024xf32> to vector<64x128xf32>
    %178 = arith.addf %176, %177 : vector<64x128xf32>
    %cst_66 = arith.constant 2.500000e-01 : f32
    %179 = vector.broadcast %cst_66 : f32 to vector<64x128xf32>
    %180 = arith.mulf %178, %179 : vector<64x128xf32>
    %181 = arith.truncf %180 : vector<64x128xf32> to vector<64x128xbf16>
    %c64_67 = arith.constant 64 : index
    %c0_68 = arith.constant 0 : index
    %182 = vector.load %arg15[%c64_67, %c0_68] : memref<192x128xbf16, #tpu.memory_space<vmem>>, vector<64x128xbf16>
    tpu.vector_store %arg15[%c64_67, %c0_68], %181 {strides = array<i32>} : memref<192x128xbf16, #tpu.memory_space<vmem>>, vector<64x128xbf16>,
    %c0_69 = arith.constant 0 : index
    %c0_70 = arith.constant 0 : index
    %c0_71 = arith.constant 0 : index
    %183 = vector.load %arg2[%c0_69, %c0_70, %c0_71] : memref<1x64x128xf32, #tpu.memory_space<vmem>>, vector<1x64x128xf32>
    %184 = vector.shape_cast %183 : vector<1x64x128xf32> to vector<64x128xf32>
    %185 = arith.truncf %184 : vector<64x128xf32> to vector<64x128xbf16>
    %c128_72 = arith.constant 128 : index
    %c0_73 = arith.constant 0 : index
    %186 = vector.load %arg15[%c128_72, %c0_73] : memref<192x128xbf16, #tpu.memory_space<vmem>>, vector<64x128xbf16>
    tpu.vector_store %arg15[%c128_72, %c0_73], %185 {strides = array<i32>} : memref<192x128xbf16, #tpu.memory_space<vmem>>, vector<64x128xbf16>,
    %c0_74 = arith.constant 0 : index
    %c0_75 = arith.constant 0 : index
    %187 = vector.load %arg7[%c0_74, %c0_75] : memref<512x192xbf16, #tpu.memory_space<vmem>>, vector<512x192xbf16>
    %c0_76 = arith.constant 0 : index
    %c0_77 = arith.constant 0 : index
    %188 = vector.load %arg15[%c0_76, %c0_77] : memref<192x128xbf16, #tpu.memory_space<vmem>>, vector<192x128xbf16>
    %cst_78 = arith.constant dense<0.000000e+00> : vector<512x128xf32>
    %189 = tpu.matmul %187, %188, %cst_78 {dimension_numbers = #tpu.dot_dimension_numbers<[1], [0], [0], [1], [0, 0, 1, 1], [], []>} : vector<512x192xbf16>, vector<192x128xbf16>, vector<512x128xf32> -> vector<512x128xf32>
    %c0_79 = arith.constant 0 : index
    %c0_80 = arith.constant 0 : index
    %190 = vector.load %arg8[%c0_79, %c0_80] : memref<512x1xf32, #tpu.memory_space<vmem>>, vector<512x1xf32>
    %191 = vector.broadcast %190 : vector<512x1xf32> to vector<512x128xf32>
    %192 = arith.addf %189, %191 : vector<512x128xf32>
    %cst_81 = arith.constant 0.000000e+00 : f32
    %193 = vector.broadcast %cst_81 : f32 to vector<512x128xf32>
    %194 = arith.maximumf %192, %193 : vector<512x128xf32>
    %195 = vector.extract_strided_slice %194 {offsets = [0, 0], sizes = [256, 128], strides = [1, 1]} : vector<512x128xf32> to vector<256x128xf32>
    %196 = vector.extract_strided_slice %194 {offsets = [256, 0], sizes = [256, 128], strides = [1, 1]} : vector<512x128xf32> to vector<256x128xf32>
    %c0_82 = arith.constant 0 : index
    %c0_83 = arith.constant 0 : index
    %197 = vector.load %arg9[%c0_82, %c0_83] : memref<256x256xbf16, #tpu.memory_space<vmem>>, vector<256x256xbf16>
    %198 = arith.truncf %195 : vector<256x128xf32> to vector<256x128xbf16>
    %cst_84 = arith.constant dense<0.000000e+00> : vector<256x128xf32>
    %199 = tpu.matmul %197, %198, %cst_84 {dimension_numbers = #tpu.dot_dimension_numbers<[1], [0], [0], [1], [0, 0, 1, 1], [], []>} : vector<256x256xbf16>, vector<256x128xbf16>, vector<256x128xf32> -> vector<256x128xf32>
    %c0_85 = arith.constant 0 : index
    %c0_86 = arith.constant 0 : index
    %200 = vector.load %arg10[%c0_85, %c0_86] : memref<256x1xf32, #tpu.memory_space<vmem>>, vector<256x1xf32>
    %201 = vector.broadcast %200 : vector<256x1xf32> to vector<256x128xf32>
    %202 = arith.addf %199, %201 : vector<256x128xf32>
    %cst_87 = arith.constant 0.000000e+00 : f32
    %203 = vector.broadcast %cst_87 : f32 to vector<256x128xf32>
    %204 = arith.maximumf %202, %203 : vector<256x128xf32>
    %205 = arith.addf %204, %196 : vector<256x128xf32>
    %206 = arith.truncf %205 : vector<256x128xf32> to vector<256x128xbf16>
    %c0_88 = arith.constant 0 : index
    %c0_89 = arith.constant 0 : index
    %207 = vector.load %arg11[%c0_88, %c0_89] : memref<1x256xbf16, #tpu.memory_space<vmem>>, vector<1x256xbf16>
    %cst_90 = arith.constant dense<0.000000e+00> : vector<1x128xf32>
    %208 = tpu.matmul %207, %206, %cst_90 {dimension_numbers = #tpu.dot_dimension_numbers<[1], [0], [0], [1], [0, 0, 1, 1], [], []>} : vector<1x256xbf16>, vector<256x128xbf16>, vector<1x128xf32> -> vector<1x128xf32>
    %c0_91 = arith.constant 0 : index
    %c0_92 = arith.constant 0 : index
    %209 = vector.load %arg12[%c0_91, %c0_92] : memref<1x1xf32, #tpu.memory_space<vmem>>, vector<1x1xf32>
    %210 = vector.broadcast %209 : vector<1x1xf32> to vector<1x128xf32>
    %211 = arith.addf %208, %210 : vector<1x128xf32>
    %c0_93 = arith.constant 0 : index
    %c0_94 = arith.constant 0 : index
    %c0_95 = arith.constant 0 : index
    %212 = vector.load %arg13[%c0_93, %c0_94, %c0_95] : memref<1x1x128xf32, #tpu.memory_space<vmem>>, vector<1x1x128xf32>
    %213 = vector.shape_cast %212 : vector<1x1x128xf32> to vector<1x128xf32>
    %214 = vector.shape_cast %211 : vector<1x128xf32> to vector<1x1x128xf32>
    tpu.vector_store %arg13[%c0_93, %c0_94, %c0_95], %214 {strides = array<i32>} : memref<1x1x128xf32, #tpu.memory_space<vmem>>, vector<1x1x128xf32>,
    return
  }
  func.func @transform_0(%arg0: i32) -> (i32, i32, i32) {
    %c0_i32 = arith.constant 0 : i32
    %c0_i32_0 = arith.constant 0 : i32
    %c0_i32_1 = arith.constant 0 : i32
    return %arg0, %c0_i32, %c0_i32_0 : i32, i32, i32
  }
  func.func @transform_1(%arg0: i32) -> (i32, i32, i32) {
    %c0_i32 = arith.constant 0 : i32
    %c0_i32_0 = arith.constant 0 : i32
    %c0_i32_1 = arith.constant 0 : i32
    return %arg0, %c0_i32, %c0_i32_0 : i32, i32, i32
  }
  func.func @transform_2(%arg0: i32) -> (i32, i32) {
    %c0_i32 = arith.constant 0 : i32
    %c0_i32_0 = arith.constant 0 : i32
    %c0_i32_1 = arith.constant 0 : i32
    return %c0_i32, %c0_i32_0 : i32, i32
  }
  func.func @transform_3(%arg0: i32) -> (i32, i32) {
    %c0_i32 = arith.constant 0 : i32
    %c0_i32_0 = arith.constant 0 : i32
    %c0_i32_1 = arith.constant 0 : i32
    return %c0_i32, %c0_i32_0 : i32, i32
  }
  func.func @transform_4(%arg0: i32) -> (i32, i32) {
    %c0_i32 = arith.constant 0 : i32
    %c0_i32_0 = arith.constant 0 : i32
    %c0_i32_1 = arith.constant 0 : i32
    return %c0_i32, %c0_i32_0 : i32, i32
  }
  func.func @transform_5(%arg0: i32) -> (i32, i32) {
    %c0_i32 = arith.constant 0 : i32
    %c0_i32_0 = arith.constant 0 : i32
    %c0_i32_1 = arith.constant 0 : i32
    return %c0_i32, %c0_i32_0 : i32, i32
  }
  func.func @transform_6(%arg0: i32) -> (i32, i32) {
    %c0_i32 = arith.constant 0 : i32
    %c0_i32_0 = arith.constant 0 : i32
    %c0_i32_1 = arith.constant 0 : i32
    return %c0_i32, %c0_i32_0 : i32, i32
  }
  func.func @transform_7(%arg0: i32) -> (i32, i32) {
    %c0_i32 = arith.constant 0 : i32
    %c0_i32_0 = arith.constant 0 : i32
    %c0_i32_1 = arith.constant 0 : i32
    return %c0_i32, %c0_i32_0 : i32, i32
  }
  func.func @transform_8(%arg0: i32) -> (i32, i32) {
    %c0_i32 = arith.constant 0 : i32
    %c0_i32_0 = arith.constant 0 : i32
    %c0_i32_1 = arith.constant 0 : i32
    return %c0_i32, %c0_i32_0 : i32, i32
  }
  func.func @transform_9(%arg0: i32) -> (i32, i32) {
    %c0_i32 = arith.constant 0 : i32
    %c0_i32_0 = arith.constant 0 : i32
    %c0_i32_1 = arith.constant 0 : i32
    return %c0_i32, %c0_i32_0 : i32, i32
  }
  func.func @transform_10(%arg0: i32) -> (i32, i32) {
    %c0_i32 = arith.constant 0 : i32
    %c0_i32_0 = arith.constant 0 : i32
    %c0_i32_1 = arith.constant 0 : i32
    return %c0_i32, %c0_i32_0 : i32, i32
  }
  func.func @transform_11(%arg0: i32) -> (i32, i32) {
    %c0_i32 = arith.constant 0 : i32
    %c0_i32_0 = arith.constant 0 : i32
    %c0_i32_1 = arith.constant 0 : i32
    return %c0_i32, %c0_i32_0 : i32, i32
  }
  func.func @transform_12(%arg0: i32) -> (i32, i32, i32) {
    %c0_i32 = arith.constant 0 : i32
    %c0_i32_0 = arith.constant 0 : i32
    %c0_i32_1 = arith.constant 0 : i32
    return %arg0, %c0_i32, %c0_i32_0 : i32, i32, i32
  }
}

</mosaic_0001>

<bundles_post_ra>
// kernel: tpu_custom_call.1
= control target key start
LH: loop header
LB: loop body
LE: loop exit
PB: predicated region body
PF: predicated region fallthrough
CT: control target
= control target key end

     0   :  { %s10151_s0 = inlined_call_operand.vmem [shape: f32[1,2,4096], index: 0, kind: input, shape index: {}]   ;;  %s10152_s1 = inlined_call_operand.vmem [shape: f32[1,64,128], index: 1, kind: input, shape index: {}]   ;;  %s10153_s2 = inlined_call_operand.vmem [shape: f32[32,6], index: 2, kind: input, shape index: {}]   ;;  %s10154_s3 = inlined_call_operand.vmem [shape: f32[32,1], index: 3, kind: input, shape index: {}]   ;;  %s10155_s4 = inlined_call_operand.vmem [shape: bf16[64,96], index: 4, kind: input, shape index: {}]   ;;  %s10156_s5 = inlined_call_operand.vmem [shape: f32[64,1], index: 5, kind: input, shape index: {}]   ;;  %s10157_s6 = inlined_call_operand.vmem [shape: bf16[512,192], index: 6, kind: input, shape index: {}]   ;;  %s10158_s7 = inlined_call_operand.vmem [shape: f32[512,1], index: 7, kind: input, shape index: {}]   ;;  %s10159_s8 = inlined_call_operand.vmem [shape: bf16[256,256], index: 8, kind: input, shape index: {}]   ;;  %s10160_s9 = inlined_call_operand.vmem [shape: f32[256,1], index: 9, kind: input, shape index: {}]   ;;  %s10161_s10 = inlined_call_operand.vmem [shape: bf16[1,256], index: 10, kind: input, shape index: {}]   ;;  %s10162_s11 = inlined_call_operand.<no memory space> [shape: f32[1,1], index: 11, kind: input, shape index: {}]   ;;  %s10163_s12 = inlined_call_operand.hbm [shape: f32[1,1,128], index: 12, kind: output, shape index: {}]  }
   0x1   :  { %v17_v0 = vstv %s10162_s11 }
   0x2   :  { %18 = vst [vmem:[#allocation4] sm:$0x1] %v17_v0 }
   0x3   :  { %v229_v1 = vld [vmem:[%s10153_s2] sm:$0xff]  ;;  %v6091_v2 = vmov 1   ;;  %v10164_v3 = vmov 0   ;;  %v230_v4 = vld [vmem:[%s10153_s2 + $0x8] sm:$0xff]  ;;  %v232_v5 = vld [vmem:[%s10153_s2 + $0x18] sm:$0xff]  ;;  %v6093_v6 = vmov 2  }
   0x4   :  { %5887 = vset.pattern.permute.xlu1 %v6091_v2  ;;  %5886 = vset.pattern.permute.xlu0 %v10164_v3  ;;  %v231_v7 = vld [vmem:[%s10153_s2 + $0x10] sm:$0xff]  ;;  %v6094_v8 = vmov 3   ;;  %v6095_v9 = vmov 5   ;;  %v6096_v10 = vmov 4   ;;  %v2579_v11 = vld [vmem:[%s10154_s3] sm:$0xff]  ;;  %v2582_v12 = vld [vmem:[%s10154_s3 + $0x18] sm:$0xff] }
   0x5   :  { %509 = vperm.xlu1 %5887, %v229_v1   ;;  %235 = vperm.xlu0 %5886, %v229_v1   ;;  %v3108_v13 = vld [vmem:[%s10156_s5 + $0x8] sm:$0xff]  ;;  %v3110_v14 = vld [vmem:[%s10156_s5 + $0x18] sm:$0xff] }
   0x6   :  { %3220 = vmatprep.mubr.bf16.mxu0 %v10164_v3  ;;  %3293 = vmatprep.mubr.bf16.mxu1 %v10164_v3  ;;  %v3112_v15 = vld [vmem:[%s10156_s5 + $0x28] sm:$0xff]  ;;  %v3114_v16 = vld [vmem:[%s10156_s5 + $0x38] sm:$0xff] }
   0x9   :  { %513 = vperm.xlu1 %5887, %v230_v4   ;;  %240 = vperm.xlu0 %5886, %v230_v4  }
   0xd   :  { %5888 = vset.pattern.permute.xlu1 %v6093_v6  ;;  %250 = vperm.xlu0 %5886, %v232_v5  }
   0xe   :  { %912 = vperm.xlu1 %5888, %v230_v4  }
  0x11   :  { %5890 = vset.pattern.permute.xlu0 %v6093_v6 }
  0x12   :  { %5889 = vset.pattern.permute.xlu1 %v10164_v3  ;;  %908 = vperm.xlu0 %5890, %v229_v1  }
  0x13   :  { %245 = vperm.xlu1 %5889, %v231_v7  }
  0x16   :  { %920 = vperm.xlu0 %5890, %v232_v5  }
  0x17   :  { %5891 = vset.pattern.permute.xlu1 %v6091_v2 }
  0x18   :  { %517 = vperm.xlu1 %5891, %v231_v7  }
  0x1a   :  { %5894 = vset.pattern.permute.xlu0 %v6094_v8 }
  0x1b   :  { %1468 = vperm.xlu0 %5894, %v229_v1  }
  0x1c   :  { %521 = vperm.xlu1 %5891, %v232_v5  }
  0x1f   :  { %1476 = vperm.xlu0 %5894, %v231_v7  }
  0x20   :  { %5892 = vset.pattern.permute.xlu1 %v6094_v8 }
  0x21   :  { %1472 = vperm.xlu1 %5892, %v230_v4  }
  0x23   :  { %5898 = vset.pattern.permute.xlu0 %v6095_v9 }
  0x24   :  { %2308 = vperm.xlu0 %5898, %v230_v4  }
  0x25   :  { %5893 = vset.pattern.permute.xlu1 %v6093_v6 }
  0x26   :  { %916 = vperm.xlu1 %5893, %v231_v7  }
  0x28   :  { %2312 = vperm.xlu0 %5898, %v231_v7  }
  0x2a   :  { %5895 = vset.pattern.permute.xlu1 %v6096_v10 }
  0x2b   :  { %2028 = vperm.xlu1 %5895, %v229_v1  }
  0x2c   :  { %5901 = vset.pattern.permute.xlu0 %v10164_v3 }
  0x2d   :  { %2585 = vperm.xlu0 %5901, %v2579_v11  }
  0x2f   :  { %2032 = vperm.xlu1 %5895, %v230_v4  }
  0x31   :  { %2600 = vperm.xlu0 %5901, %v2582_v12  }
  0x33   :  { %5896 = vset.pattern.permute.xlu1 %v6094_v8 }
  0x34   :  { %1480 = vperm.xlu1 %5896, %v232_v5  }
  0x35   :  { %3122 = vperm.xlu0 %5901, %v3108_v13  }
  0x38   :  { %5897 = vset.pattern.permute.xlu1 %v6095_v9 }
  0x39   :  { %2304 = vperm.xlu1 %5897, %v229_v1   ;;  %3132 = vperm.xlu0 %5901, %v3110_v14  }
  0x3d   :  { %5899 = vset.pattern.permute.xlu1 %v6096_v10  ;;  %3142 = vperm.xlu0 %5901, %v3112_v15  }
  0x3e   :  { %2036 = vperm.xlu1 %5899, %v231_v7  }
  0x3f   :  { %19 = vsyncpa [#allocation6], 0  ;;  %v3733_v17 = vld [vmem:[%s10158_s7 + $0x88] sm:$0xff]  ;;  %v3735_v20 = vld [vmem:[%s10158_s7 + $0x98] sm:$0xff]  ;;  %v6097_v30 = vmov 1983009808   ;;  %v65_v32 = vlaneseq }
  0x40   :  { %v3717_v18 = vld [vmem:[%s10158_s7 + $0x8] sm:$0xff]  ;;  %v2581_v21 = vld [vmem:[%s10154_s3 + $0x10] sm:$0xff]  ;;  %v3719_v22 = vld [vmem:[%s10158_s7 + $0x18] sm:$0xff]  ;;  %v63_v31 = vunpack.c.l.s4 %v6097_v30  ;;  %vm3175_vm0 = vcmask 785408   ;;  %vm4388_vm1 = vcmask 523264  }
  0x41   :  { %3152 = vperm.xlu0 %5901, %v3114_v16   ;;  %v2580_v19 = vld [vmem:[%s10154_s3 + $0x8] sm:$0xff]  ;;  %v3107_v23 = vld [vmem:[%s10156_s5] sm:$0xff]  ;;  %v3109_v25 = vld [vmem:[%s10156_s5 + $0x10] sm:$0xff]  ;;  %v6249_v36 = vshrl.u32 %v65_v32, 7 }
  0x42   :  { %2040 = vperm.xlu1 %5899, %v232_v5   ;;  %v3737_v24 = vld [vmem:[%s10158_s7 + $0xa8] sm:$0xff]  ;;  %v3111_v27 = vld [vmem:[%s10156_s5 + $0x20] sm:$0xff]  ;;  %v3739_v28 = vld [vmem:[%s10158_s7 + $0xb8] sm:$0xff]  ;;  %v64_v35 = vunpack.c.0.s8 %v63_v31 }
  0x43   :  { %v3721_v26 = vld [vmem:[%s10158_s7 + $0x28] sm:$0xff]  ;;  %v3113_v29 = vld [vmem:[%s10156_s5 + $0x30] sm:$0xff]  ;;  %v3723_v33 = vld [vmem:[%s10158_s7 + $0x38] sm:$0xff]  ;;  %10471 = vst [vmem:[#allocation8_spill] sm:$0xff] %v6249_v36  ;;  %v6281_v46 = vsub.s32 2, %v6249_v36  ;;  %v6284_v47 = vsub.s32 4, %v6249_v36 }
  0x44   :  { %v3732_v34 = vld [vmem:[%s10158_s7 + $0x80] sm:$0xff]  ;;  %v3741_v37 = vld [vmem:[%s10158_s7 + $0xc8] sm:$0xff]  ;;  %v6263_v40 = vsub.s32 %v64_v35, %v6249_v36  ;;  %v3734_v44 = vld [vmem:[%s10158_s7 + $0x90] sm:$0xff]  ;;  %v6290_v49 = vsub.s32 0, %v6249_v36  ;;  %v6293_v50 = vsub.s32 6, %v6249_v36  ;;  %v6308_v55 = vsub.s32 1, %v6249_v36 }
  0x45   :  { %3867 = vperm.xlu0 %5901, %v3733_v17   ;;  %v3716_v38 = vld [vmem:[%s10158_s7] sm:$0xff]  ;;  %v3725_v41 = vld [vmem:[%s10158_s7 + $0x48] sm:$0xff]  ;;  %10473 = vst [vmem:[#allocation10_spill] sm:$0xff] %v6281_v46  ;;  %10474 = vst [vmem:[#allocation11_spill] sm:$0xff] %v6284_v47  ;;  %v6327_v0 = vsub.s32 3, %v6249_v36  ;;  %v6330_v1 = vsub.s32 5, %v6249_v36 }
  0x46   :  { %5900 = vset.pattern.permute.xlu1 %v6095_v9  ;;  %v6260_v39 = vld [vmem:[%s10151_s0] sm:$0xff]  ;;  %10472 = vst [vmem:[#allocation9_spill] sm:$0xff] %v6263_v40  ;;  %v6271_v42 = vld [vmem:[%s10151_s0 + $0x8] sm:$0xff]  ;;  %v3743_v48 = vld [vmem:[%s10158_s7 + $0xd8] sm:$0xff]  ;;  %v6333_v2 = vsub.s32 7, %v6249_v36 }
  0x47   :  { %2316 = vperm.xlu1 %5900, %v232_v5   ;;  %v61_v43 = vcombine.high %v6260_v39, %v6260_v39  ;;  %v68_v45 = vrot.slane %v6260_v39, %v6263_v40  ;;  %10475 = vst [vmem:[#allocation12_spill] sm:$0xff] %v6290_v49  ;;  %10476 = vst [vmem:[#allocation13_spill] sm:$0xff] %v6293_v50  ;;  %v6298_v51 = vld [vmem:[%s10151_s0 + $0x10] sm:$0xff]  ;;  %v78_v52 = vcombine.high %v6271_v42, %v6271_v42  ;;  %v3727_v62 = vld [vmem:[%s10158_s7 + $0x58] sm:$0xff] }
  0x48   :  { %v6305_v54 = vrot.slane %v6271_v42, %v6263_v40  ;;  %10477 = vst [vmem:[#allocation14_spill] sm:$0xff] %v6308_v55  ;;  %v926_v56 = vrot.slane %v6260_v39, %v6290_v49  ;;  %v3718_v57 = vld [vmem:[%s10158_s7 + $0x10] sm:$0xff]  ;;  %v930_v59 = vrot.slane %v6260_v39, %v6281_v46  ;;  %v934_v60 = vrot.slane %v6260_v39, %v6284_v47  ;;  %v3736_v12 = vld [vmem:[%s10158_s7 + $0xa0] sm:$0xff]  ;;  %v3745_v17 = vld [vmem:[%s10158_s7 + $0xe8] sm:$0xff] }
  0x49   :  { %3787 = vperm.xlu0 %5901, %v3717_v18   ;;  %v75_v53 = vrot.slane %v61_v43, %v6263_v40  ;;  %v76_v58 = vcombine.high %v68_v45, %v68_v45  ;;  %v95_v61 = vcombine.high %v6298_v51, %v6298_v51  ;;  %v938_v63 = vrot.slane %v6260_v39, %v6293_v50  ;;  %v48_v30 = vld [vmem:[%s10151_s0 + $0x18] sm:$0xff]  ;;  %v3720_v31 = vld [vmem:[%s10158_s7 + $0x20] sm:$0xff] }
  0x4a   :  { %10478 = vst [vmem:[#allocation15_spill] sm:$0xff] %v6327_v0  ;;  %10479 = vst [vmem:[#allocation16_spill] sm:$0xff] %v6330_v1  ;;  %v6336_v4 = vrot.slane %v68_v45, %v6290_v49  ;;  %v6340_v5 = vrot.slane %v6305_v54, %v6290_v49  ;;  %v6343_v6 = vrot.slane %v78_v52, %v6263_v40 }
  0x4b   :  { %5902 = vset.pattern.permute.xlu1 %v10164_v3  ;;  %10480 = vst [vmem:[#allocation17_spill] sm:$0xff] %v6333_v2  ;;  %v102_v7 = vrot.slane %v6298_v51, %v6263_v40  ;;  %v77_v8 = vcombine.high %v75_v53, %v75_v53  ;;  %v6348_v9 = vrot.slane %v68_v45, %v6308_v55 }
  0x4c   :  { %2590 = vperm.xlu1 %5902, %v2580_v19   ;;  %10481 = vst [vmem:[#allocation18_spill] sm:$0xff] %v6336_v4  ;;  %v6352_v10 = vrot.slane %v6305_v54, %v6308_v55  ;;  %v6355_v11 = vrot.slane %v926_v56, %v6290_v49  ;;  %v6361_v13 = vrot.slane %v76_v58, %v6290_v49 }
  0x4d   :  { %3877 = vperm.xlu0 %5901, %v3735_v20   ;;  %10482 = vst [vmem:[#allocation19_spill] sm:$0xff] %v6348_v9  ;;  %v6364_v14 = vrot.slane %v930_v59, %v6290_v49  ;;  %v1486_v15 = vrot.slane %v6260_v39, %v6308_v55  ;;  %v109_v16 = vrot.slane %v95_v61, %v6263_v40  ;;  %v3738_v59 = vld [vmem:[%s10158_s7 + $0xb0] sm:$0xff] }
  0x4e   :  { %10483 = vst [vmem:[#allocation20_spill] sm:$0xff] %v6352_v10  ;;  %10484 = vst [vmem:[#allocation21_spill] sm:$0xff] %v6355_v11  ;;  %v6373_v18 = vrot.slane %v75_v53, %v6290_v49  ;;  %v1490_v19 = vrot.slane %v6260_v39, %v6327_v0  ;;  %v1494_v20 = vrot.slane %v6260_v39, %v6330_v1 }
  0x4f   :  { %10485 = vst [vmem:[#allocation22_spill] sm:$0xff] %v6361_v13  ;;  %10486 = vst [vmem:[#allocation23_spill] sm:$0xff] %v6364_v14  ;;  %v6408_v32 = vrot.slane %v1486_v15, %v6308_v55  ;;  %v958_v35 = vrot.slane %v6298_v51, %v6290_v49  ;;  %v6426_v43 = vrot.slane %v102_v7, %v6290_v49 }
  0x50   :  { %2595 = vperm.xlu1 %5902, %v2581_v21   ;;  %10487 = vst [vmem:[#allocation24_spill] sm:$0xff] %v6373_v18  ;;  %v1498_v21 = vrot.slane %v6260_v39, %v6333_v2  ;;  %v6420_v39 = vrot.slane %v1494_v20, %v6308_v55  ;;  %v962_v52 = vrot.slane %v6298_v51, %v6281_v46 }
  0x51   :  { %3797 = vperm.xlu0 %5901, %v3719_v22   ;;  %v6382_v22 = vrot.slane %v76_v58, %v6308_v55  ;;  %10493 = vst [vmem:[#allocation30_spill] sm:$0xff] %v6408_v32  ;;  %10497 = vst [vmem:[#allocation34_spill] sm:$0xff] %v6426_v43  ;;  %v966_v56 = vrot.slane %v6298_v51, %v6284_v47  ;;  %v1518_v58 = vrot.slane %v6298_v51, %v6308_v55 }
  0x52   :  { %10495 = vst [vmem:[#allocation32_spill] sm:$0xff] %v6420_v39  ;;  %v6469_v15 = vrot.slane %v109_v16, %v6308_v55  ;;  %v6480_v20 = vrot.slane %v958_v35, %v6290_v49  ;;  %v3722_v35 = vld [vmem:[%s10158_s7 + $0x30] sm:$0xff]  ;;  %v6534_v36 = vrot.slane %v6343_v6, %v6290_v49 }
  0x53   :  { %10488 = vst [vmem:[#allocation25_spill] sm:$0xff] %v6382_v22 }
  0x54   :  { %3117 = vperm.xlu1 %5902, %v3107_v23   ;;  %v6385_v23 = vrot.slane %v75_v53, %v6308_v55  ;;  %10506 = vst [vmem:[#allocation43_spill] sm:$0xff] %v6469_v15  ;;  %10509 = vst [vmem:[#allocation46_spill] sm:$0xff] %v6480_v20 }
  0x55   :  { %3887 = vperm.xlu0 %5901, %v3737_v24   ;;  %v94_v24 = vcombine.high %v6343_v6, %v6343_v6  ;;  %10518 = vst [vmem:[#allocation55_spill] sm:$0xff] %v6534_v36 }
  0x56   :  { %10489 = vst [vmem:[#allocation26_spill] sm:$0xff] %v6385_v23 }
  0x57   :  { %v6455_v61 = vrot.slane %v94_v24, %v6308_v55 }
  0x58   :  { %3127 = vperm.xlu1 %5902, %v3109_v25   ;;  %v110_v25 = vcombine.high %v102_v7, %v102_v7 }
  0x59   :  { %3807 = vperm.xlu0 %5901, %v3721_v26   ;;  %v6390_v26 = vrot.slane %v77_v8, %v6290_v49  ;;  %10503 = vst [vmem:[#allocation40_spill] sm:$0xff] %v6455_v61 }
  0x5a   :  { %v6432_v45 = vrot.slane %v110_v25, %v6290_v49 }
  0x5c   :  { %3137 = vperm.xlu1 %5902, %v3111_v27   ;;  %v6393_v27 = vrot.slane %v77_v8, %v6308_v55  ;;  %10499 = vst [vmem:[#allocation36_spill] sm:$0xff] %v6432_v45  ;;  %v3747_v8 = vld [vmem:[%s10158_s7 + $0xf8] sm:$0xff] }
  0x5d   :  { %3897 = vperm.xlu0 %5901, %v3739_v28   ;;  %v6396_v28 = vrot.slane %v934_v60, %v6290_v49 }
  0x5e   :  { %10490 = vst [vmem:[#allocation27_spill] sm:$0xff] %v6393_v27 }
  0x5f   :  { %10491 = vst [vmem:[#allocation28_spill] sm:$0xff] %v6396_v28 }
  0x60   :  { %3147 = vperm.xlu1 %5902, %v3113_v29   ;;  %v6399_v29 = vrot.slane %v938_v63, %v6290_v49  ;;  %v1522_v63 = vrot.slane %v6298_v51, %v6327_v0 }
  0x61   :  { %3817 = vperm.xlu0 %5901, %v3723_v33   ;;  %v111_v33 = vcombine.high %v109_v16, %v109_v16 }
  0x62   :  { %10492 = vst [vmem:[#allocation29_spill] sm:$0xff] %v6399_v29 }
  0x63   :  { %v6452_v60 = vrot.slane %v111_v33, %v6290_v49 }
  0x64   :  { %3862 = vperm.xlu1 %5902, %v3732_v34   ;;  %v119_v34 = vrot.slane %v48_v30, %v6263_v40 }
  0x65   :  { %3907 = vperm.xlu0 %5901, %v3741_v37   ;;  %v3729_v37 = vld [vmem:[%s10158_s7 + $0x68] sm:$0xff]  ;;  %10502 = vst [vmem:[#allocation39_spill] sm:$0xff] %v6452_v60 }
  0x66   :  { %v6440_v53 = vrot.slane %v119_v34, %v6290_v49 }
  0x68   :  { %3782 = vperm.xlu1 %5902, %v3716_v38   ;;  %v6417_v38 = vrot.slane %v1490_v19, %v6308_v55  ;;  %10501 = vst [vmem:[#allocation38_spill] sm:$0xff] %v6440_v53  ;;  %v6477_v19 = vrot.slane %v119_v34, %v6308_v55 }
  0x69   :  { %3827 = vperm.xlu0 %5901, %v3725_v41   ;;  %v6423_v41 = vrot.slane %v1498_v21, %v6308_v55  ;;  %v6483_v21 = vrot.slane %v962_v52, %v6290_v49  ;;  %v942_v52 = vrot.slane %v6271_v42, %v6290_v49 }
  0x6a   :  { %10494 = vst [vmem:[#allocation31_spill] sm:$0xff] %v6417_v38  ;;  %10508 = vst [vmem:[#allocation45_spill] sm:$0xff] %v6477_v19 }
  0x6b   :  { %10496 = vst [vmem:[#allocation33_spill] sm:$0xff] %v6423_v41  ;;  %10510 = vst [vmem:[#allocation47_spill] sm:$0xff] %v6483_v21 }
  0x6c   :  { %3872 = vperm.xlu1 %5902, %v3734_v44   ;;  %v6429_v44 = vrot.slane %v94_v24, %v6290_v49  ;;  %v112_v24 = vcombine.high %v48_v30, %v48_v30  ;;  %v6500_v30 = vrot.slane %v1522_v63, %v6308_v55  ;;  %v1502_v63 = vrot.slane %v6271_v42, %v6308_v55 }
  0x6d   :  { %3917 = vperm.xlu0 %5901, %v3743_v48   ;;  %v6435_v48 = vrot.slane %v109_v16, %v6290_v49  ;;  %v6486_v16 = vrot.slane %v966_v56, %v6290_v49 }
  0x6e   :  { %10498 = vst [vmem:[#allocation35_spill] sm:$0xff] %v6429_v44  ;;  %10514 = vst [vmem:[#allocation51_spill] sm:$0xff] %v6500_v30  ;;  %v6507_v56 = vrot.slane %v112_v24, %v6263_v40  ;;  %v1510_v24 = vrot.slane %v6271_v42, %v6330_v1  ;;  %v6536_v40 = vcombine.high %v119_v34, %v119_v34 }
  0x6f   :  { %10500 = vst [vmem:[#allocation37_spill] sm:$0xff] %v6435_v48  ;;  %10511 = vst [vmem:[#allocation48_spill] sm:$0xff] %v6486_v16  ;;  %v6556_v34 = vrot.slane %v942_v52, %v6290_v49  ;;  %v6576_v52 = vrot.slane %v1502_v63, %v6308_v55 }
  0x70   :  { %3792 = vperm.xlu1 %5902, %v3718_v57   ;;  %v970_v57 = vrot.slane %v6298_v51, %v6293_v50  ;;  %10515 = vst [vmem:[#allocation52_spill] sm:$0xff] %v6507_v56  ;;  %10519 = vst [vmem:[#allocation56_spill] sm:$0xff] %v6536_v40  ;;  %v6597_v63 = vrot.slane %v6507_v56, %v6290_v49 }
  0x71   :  { %3837 = vperm.xlu0 %5901, %v3727_v62   ;;  %v6458_v62 = vrot.slane %v102_v7, %v6308_v55  ;;  %v1526_v7 = vrot.slane %v6298_v51, %v6330_v1  ;;  %v3740_v1 = vld [vmem:[%s10158_s7 + $0xc0] sm:$0xff]  ;;  %10524 = vst [vmem:[#allocation61_spill] sm:$0xff] %v6556_v34  ;;  %10529 = vst [vmem:[#allocation66_spill] sm:$0xff] %v6576_v52 }
  0x72   :  { %10536 = vst [vmem:[#allocation73_spill] sm:$0xff] %v6597_v63 }
  0x73   :  { %10504 = vst [vmem:[#allocation41_spill] sm:$0xff] %v6458_v62 }
  0x74   :  { %3882 = vperm.xlu1 %5902, %v3736_v12   ;;  %v6466_v12 = vrot.slane %v110_v25, %v6308_v55  ;;  %v6489_v25 = vrot.slane %v970_v57, %v6290_v49  ;;  %v6513_v57 = vrot.slane %v1526_v7, %v6308_v55  ;;  %v1514_v7 = vrot.slane %v6271_v42, %v6333_v2 }
  0x75   :  { %3927 = vperm.xlu0 %5901, %v3745_v17   ;;  %v6472_v17 = vrot.slane %v111_v33, %v6308_v55  ;;  %v6494_v33 = vrot.slane %v1518_v58, %v6308_v55  ;;  %v946_v58 = vrot.slane %v6271_v42, %v6281_v46  ;;  %v6582_v46 = vrot.slane %v1510_v24, %v6308_v55 }
  0x76   :  { %10505 = vst [vmem:[#allocation42_spill] sm:$0xff] %v6466_v12  ;;  %10512 = vst [vmem:[#allocation49_spill] sm:$0xff] %v6489_v25  ;;  %v6585_v53 = vrot.slane %v1514_v7, %v6308_v55 }
  0x77   :  { %10507 = vst [vmem:[#allocation44_spill] sm:$0xff] %v6472_v17  ;;  %10513 = vst [vmem:[#allocation50_spill] sm:$0xff] %v6494_v33 }
  0x78   :  { %3802 = vperm.xlu1 %5902, %v3720_v31   ;;  %v1530_v31 = vrot.slane %v6298_v51, %v6333_v2  ;;  %v3731_v51 = vld [vmem:[%s10158_s7 + $0x78] sm:$0xff]  ;;  %10516 = vst [vmem:[#allocation53_spill] sm:$0xff] %v6513_v57  ;;  %v3765_v2 = vld [vmem:[%s10158_s7 + $0x188] sm:$0xff]  ;;  %10531 = vst [vmem:[#allocation68_spill] sm:$0xff] %v6582_v46 }
  0x79   :  { %3847 = vperm.xlu0 %5901, %v3729_v37   ;;  %v93_v37 = vcombine.high %v6305_v54, %v6305_v54  ;;  %v954_v54 = vrot.slane %v6271_v42, %v6293_v50  ;;  %v6540_v50 = vcombine.high %v6507_v56, %v6507_v56  ;;  %10532 = vst [vmem:[#allocation69_spill] sm:$0xff] %v6585_v53 }
  0x7a   :  { %v6530_v3 = vrot.slane %v1530_v31, %v6308_v55 }
  0x7b   :  { %10520 = vst [vmem:[#allocation57_spill] sm:$0xff] %v6540_v50  ;;  %v6549_v31 = vrot.slane %v93_v37, %v6308_v55 }
  0x7c   :  { %3892 = vperm.xlu1 %5902, %v3738_v59   ;;  %v950_v59 = vrot.slane %v6271_v42, %v6284_v47  ;;  %10517 = vst [vmem:[#allocation54_spill] sm:$0xff] %v6530_v3 }
  0x7d   :  { %3937 = vperm.xlu0 %5901, %v3747_v8   ;;  %v1506_v8 = vrot.slane %v6271_v42, %v6327_v0  ;;  %v6546_v42 = vrot.slane %v93_v37, %v6290_v49  ;;  %10522 = vst [vmem:[#allocation59_spill] sm:$0xff] %v6549_v31  ;;  %v6567_v0 = vrot.slane %v946_v58, %v6290_v49 }
  0x7e   :  { %v6570_v37 = vrot.slane %v950_v59, %v6290_v49 }
  0x7f   :  { %10521 = vst [vmem:[#allocation58_spill] sm:$0xff] %v6546_v42  ;;  %10526 = vst [vmem:[#allocation63_spill] sm:$0xff] %v6567_v0  ;;  %v6579_v47 = vrot.slane %v1506_v8, %v6308_v55  ;;  %v6601_v8 = vrot.slane %v6540_v50, %v6290_v49  ;;  %v3742_v0 = vld [vmem:[%s10158_s7 + $0xd0] sm:$0xff] }
  0x80   :  { %3812 = vperm.xlu1 %5902, %v3722_v35   ;;  %v6553_v35 = vrot.slane %v6343_v6, %v6308_v55  ;;  %10527 = vst [vmem:[#allocation64_spill] sm:$0xff] %v6570_v37  ;;  %v6573_v6 = vrot.slane %v954_v54, %v6290_v49  ;;  %v6593_v54 = vrot.slane %v6536_v40, %v6290_v49 }
  0x81   :  { %3857 = vperm.xlu0 %5901, %v3731_v51   ;;  %v6561_v51 = vld.sshfl [vmem:[%s10151_s0 + $0x20] sm:$0xff pattern:$0x76325410]  ;;  %10530 = vst [vmem:[#allocation67_spill] sm:$0xff] %v6579_v47  ;;  %10537 = vst [vmem:[#allocation74_spill] sm:$0xff] %v6601_v8 }
  0x82   :  { %10523 = vst [vmem:[#allocation60_spill] sm:$0xff] %v6553_v35  ;;  %10525 = vst [vmem:[#allocation62_spill] sm:$0xff] %v6561_v51  ;;  %v6605_v24 = vrot.slane %v6561_v51, %v6290_v49 }
  0x83   :  { %10528 = vst [vmem:[#allocation65_spill] sm:$0xff] %v6573_v6  ;;  %10535 = vst [vmem:[#allocation72_spill] sm:$0xff] %v6593_v54 }
  0x84   :  { %3902 = vperm.xlu1 %5902, %v3740_v1   ;;  %v6587_v58 = vpop.permute.xlu1 %509  ;;  %v6589_v59 = vpop.permute.xlu0 %235  ;;  %10538 = vst [vmem:[#allocation75_spill] sm:$0xff] %v6605_v24  ;;  %v3724_v1 = vld [vmem:[%s10158_s7 + $0x40] sm:$0xff]  ;;  %v4903_v24 = vld [vmem:[%s10160_s9 + $0x88] sm:$0xff] }
  0x85   :  { %10533 = vst [vmem:[#allocation70_spill] sm:$0xff] %v6587_v58  ;;  %10534 = vst [vmem:[#allocation71_spill] sm:$0xff] %v6589_v59  ;;  %4027 = vperm.xlu0 %5901, %v3765_v2   ;;  %v380_v7 = vmul.f32 0.0, %v6589_v59  ;;  %v381_v40 = vmul.f32 %v6336_v4, %v6589_v59  ;;  %v382_v56 = vmul.f32 %v6361_v13, %v6589_v59  ;;  %v651_v2 = vmul.f32 0.0, %v6587_v58 }
  0x86   :  { %v383_v8 = vmul.f32 %v6373_v18, %v6589_v59  ;;  %v652_v49 = vmul.f32 %v6348_v9, %v6587_v58  ;;  %v653_v51 = vmul.f32 %v6382_v22, %v6587_v58  ;;  %v654_v50 = vmul.f32 %v6385_v23, %v6587_v58 }
  0x87   :  { %v388_v55 = vmul.f32 %v6429_v44, %v6589_v59  ;;  %v389_v63 = vmul.f32 %v6426_v43, %v6589_v59  ;;  %v390_v54 = vmul.f32 %v6432_v45, %v6589_v59  ;;  %v391_v53 = vmul.f32 %v6435_v48, %v6589_v59 }
  0x88   :  { %3822 = vperm.xlu1 %5902, %v3724_v1   ;;  %v6635_v46 = vpop.permute.xlu1 %513  ;;  %v6637_v47 = vpop.permute.xlu0 %240  ;;  %v6639_v52 = vadd.f32 %v651_v2, %v380_v7  ;;  %v6641_v60 = vadd.f32 %v652_v49, %v381_v40  ;;  %v6643_v6 = vadd.f32 %v653_v51, %v382_v56  ;;  %v6645_v37 = vadd.f32 %v654_v50, %v383_v8  ;;  %v3749_v49 = vld [vmem:[%s10158_s7 + $0x108] sm:$0xff] }
  0x89   :  { %10539 = vst [vmem:[#allocation76_spill] sm:$0xff] %v6635_v46  ;;  %10540 = vst [vmem:[#allocation77_spill] sm:$0xff] %v6637_v47  ;;  %5005 = vperm.xlu0 %5901, %v4903_v24   ;;  %v412_v34 = vmul.f32 0.0, %v6637_v47  ;;  %v413_v1 = vmul.f32 %v6336_v4, %v6637_v47  ;;  %v414_v7 = vmul.f32 %v6361_v13, %v6637_v47  ;;  %v683_v50 = vmul.f32 0.0, %v6635_v46 }
  0x8a   :  { %v415_v40 = vmul.f32 %v6373_v18, %v6637_v47  ;;  %v684_v56 = vmul.f32 %v6348_v9, %v6635_v46  ;;  %v685_v51 = vmul.f32 %v6382_v22, %v6635_v46  ;;  %v686_v8 = vmul.f32 %v6385_v23, %v6635_v46 }
  0x8b   :  { %v420_v24 = vmul.f32 %v6429_v44, %v6637_v47  ;;  %v421_v2 = vmul.f32 %v6426_v43, %v6637_v47  ;;  %v422_v4 = vmul.f32 %v6432_v45, %v6637_v47  ;;  %v423_v18 = vmul.f32 %v6435_v48, %v6637_v47  ;;  %v3726_v43 = vld [vmem:[%s10158_s7 + $0x50] sm:$0xff] }
  0x8c   :  { %3912 = vperm.xlu1 %5902, %v3742_v0   ;;  %v6675_v9 = vpop.permute.xlu0 %250  ;;  %v811_v13 = vadd.f32 %v683_v50, %v412_v34  ;;  %v812_v19 = vadd.f32 %v684_v56, %v413_v1  ;;  %v813_v17 = vadd.f32 %v685_v51, %v414_v7  ;;  %v814_v22 = vadd.f32 %v686_v8, %v415_v40  ;;  %v4887_v1 = vld [vmem:[%s10160_s9 + $0x8] sm:$0xff] }
  0x8d   :  { %10541 = vst [vmem:[#allocation78_spill] sm:$0xff] %v6675_v9  ;;  %v6677_v23 = vpop.permute.xlu1 %912  ;;  %3947 = vperm.xlu0 %5901, %v3749_v49   ;;  %v659_v44 = vmul.f32 %v6455_v61, %v6587_v58  ;;  %v660_v48 = vmul.f32 %v6458_v62, %v6587_v58  ;;  %v661_v0 = vmul.f32 %v6466_v12, %v6587_v58 }
  0x8e   :  { %10542 = vst [vmem:[#allocation79_spill] sm:$0xff] %v6677_v23  ;;  %v662_v34 = vmul.f32 %v6469_v15, %v6587_v58  ;;  %v1243_v7 = vmul.f32 %v6355_v11, %v6677_v23  ;;  %v1244_v40 = vmul.f32 %v6364_v14, %v6677_v23  ;;  %v1245_v49 = vmul.f32 %v6396_v28, %v6677_v23 }
  0x8f   :  { %v1246_v50 = vmul.f32 %v6399_v29, %v6677_v23  ;;  %v691_v56 = vmul.f32 %v6455_v61, %v6635_v46  ;;  %v692_v51 = vmul.f32 %v6458_v62, %v6635_v46  ;;  %v693_v8 = vmul.f32 %v6466_v12, %v6635_v46  ;;  %v3744_v62 = vld [vmem:[%s10158_s7 + $0xe0] sm:$0xff] }
  0x90   :  { %v694_v9 = vmul.f32 %v6469_v15, %v6635_v46  ;;  %3832 = vperm.xlu1 %5902, %v3726_v43   ;;  %v6709_v45 = vadd.f32 %v1243_v7, %v811_v13  ;;  %v6711_v35 = vadd.f32 %v1244_v40, %v812_v19  ;;  %v6713_v31 = vadd.f32 %v1245_v49, %v813_v17  ;;  %v3767_v13 = vld [vmem:[%s10158_s7 + $0x198] sm:$0xff]  ;;  %v3728_v40 = vld [vmem:[%s10158_s7 + $0x60] sm:$0xff] }
  0x91   :  { %v6715_v10 = vadd.f32 %v1246_v50, %v814_v22  ;;  %4925 = vperm.xlu0 %5901, %v4887_v1   ;;  %v6717_v61 = vpop.permute.xlu0 %908  ;;  %v787_v12 = vadd.f32 %v659_v44, %v388_v55  ;;  %v788_v27 = vadd.f32 %v660_v48, %v389_v63  ;;  %v789_v58 = vadd.f32 %v661_v0, %v390_v54 }
  0x92   :  { %10543 = vst [vmem:[#allocation80_spill] sm:$0xff] %v6717_v61  ;;  %v790_v15 = vadd.f32 %v662_v34, %v391_v53  ;;  %v6722_v43 = vpop.permute.xlu1 %245  ;;  %v1211_v22 = vmul.f32 %v6355_v11, %v6717_v61  ;;  %v1212_v17 = vmul.f32 %v6364_v14, %v6717_v61  ;;  %v1213_v19 = vmul.f32 %v6396_v28, %v6717_v61 }
  0x93   :  { %10544 = vst [vmem:[#allocation81_spill] sm:$0xff] %v6722_v43  ;;  %v1214_v55 = vmul.f32 %v6399_v29, %v6717_v61  ;;  %v819_v44 = vadd.f32 %v691_v56, %v420_v24  ;;  %v820_v48 = vadd.f32 %v692_v51, %v421_v2  ;;  %v821_v53 = vadd.f32 %v693_v8, %v422_v4  ;;  %v10561_v43 = vld [vmem:[#allocation43_spill] sm:$0xff] }
  0x94   :  { %v822_v54 = vadd.f32 %v694_v9, %v423_v18  ;;  %3922 = vperm.xlu1 %5902, %v3744_v62   ;;  %v1339_v63 = vadd.f32 %v1211_v22, %v6639_v52  ;;  %v1340_v0 = vadd.f32 %v1212_v17, %v6641_v60  ;;  %v1341_v34 = vadd.f32 %v1213_v19, %v6643_v6  ;;  %v4905_v62 = vld [vmem:[%s10160_s9 + $0x98] sm:$0xff]  ;;  %v3746_v19 = vld [vmem:[%s10158_s7 + $0xf0] sm:$0xff] }
  0x95   :  { %v1342_v1 = vadd.f32 %v1214_v55, %v6645_v37  ;;  %4037 = vperm.xlu0 %5901, %v3767_v13   ;;  %v6739_v7 = vpop.permute.xlu0 %920  ;;  %v1219_v4 = vmul.f32 %v6480_v20, %v6717_v61  ;;  %v1220_v9 = vmul.f32 %v6483_v21, %v6717_v61  ;;  %v1221_v18 = vmul.f32 %v6486_v16, %v6717_v61 }
  0x96   :  { %10545 = vst [vmem:[#allocation82_spill] sm:$0xff] %v6739_v7  ;;  %v1222_v60 = vmul.f32 %v6489_v25, %v6717_v61  ;;  %v1251_v37 = vmul.f32 %v6480_v20, %v6677_v23  ;;  %v1252_v6 = vmul.f32 %v6483_v21, %v6677_v23  ;;  %v1253_v52 = vmul.f32 %v6486_v16, %v6677_v23  ;;  %v4889_v20 = vld [vmem:[%s10160_s9 + $0x18] sm:$0xff] }
  0x97   :  { %v1254_v24 = vmul.f32 %v6489_v25, %v6677_v23  ;;  %v6763_v2 = vpop.permute.xlu1 %517  ;;  %v1347_v49 = vadd.f32 %v1219_v4, %v787_v12  ;;  %v1348_v50 = vadd.f32 %v1220_v9, %v788_v27  ;;  %v1349_v56 = vadd.f32 %v1221_v18, %v789_v58 }
  0x98   :  { %10546 = vst [vmem:[#allocation83_spill] sm:$0xff] %v6763_v2  ;;  %v1350_v51 = vadd.f32 %v1222_v60, %v790_v15  ;;  %3842 = vperm.xlu1 %5902, %v3728_v40   ;;  %v6765_v8 = vadd.f32 %v1251_v37, %v819_v44  ;;  %v6767_v13 = vadd.f32 %v1252_v6, %v820_v48  ;;  %v3751_v44 = vld [vmem:[%s10158_s7 + $0x118] sm:$0xff] }
  0x99   :  { %v6769_v22 = vadd.f32 %v1253_v52, %v821_v53  ;;  %v6771_v17 = vadd.f32 %v1254_v24, %v822_v54  ;;  %5015 = vperm.xlu0 %5901, %v4905_v62   ;;  %v6778_v12 = vmul.f32 %v6390_v26, %v6589_v59  ;;  %v6782_v27 = vmul.f32 %v6340_v5, %v6589_v59 }
  0x9a   :  { %v6786_v15 = vmul.f32 %v6546_v42, %v6589_v59  ;;  %v6790_v58 = vmul.f32 %v6534_v36, %v6589_v59  ;;  %v6792_v55 = vpop.permute.xlu0 %1468  ;;  %v6799_v48 = vmul.f32 %v6390_v26, %v6637_v47  ;;  %v6803_v53 = vmul.f32 %v6340_v5, %v6637_v47 }
  0x9b   :  { %10547 = vst [vmem:[#allocation84_spill] sm:$0xff] %v6792_v55  ;;  %v6807_v54 = vmul.f32 %v6546_v42, %v6637_v47  ;;  %v6811_v40 = vmul.f32 %v6534_v36, %v6637_v47  ;;  %v6813_v4 = vpop.permute.xlu1 %521  ;;  %v1771_v9 = vmul.f32 %v6408_v32, %v6792_v55  ;;  %v1772_v18 = vmul.f32 %v6417_v38, %v6792_v55  ;;  %v3730_v47 = vld [vmem:[%s10158_s7 + $0x70] sm:$0xff] }
  0x9c   :  { %10548 = vst [vmem:[#allocation85_spill] sm:$0xff] %v6813_v4  ;;  %v1773_v60 = vmul.f32 %v6420_v39, %v6792_v55  ;;  %v1774_v62 = vmul.f32 %v6423_v41, %v6792_v55  ;;  %3932 = vperm.xlu1 %5902, %v3746_v19   ;;  %v1779_v37 = vmul.f32 %v6494_v33, %v6792_v55 }
  0x9d   :  { %v1780_v6 = vmul.f32 %v6500_v30, %v6792_v55  ;;  %v1781_v52 = vmul.f32 %v6513_v57, %v6792_v55  ;;  %v1782_v24 = vmul.f32 %v6530_v3, %v6792_v55  ;;  %3957 = vperm.xlu0 %5901, %v3751_v44   ;;  %v6834_v59 = vadd.f32 %v1771_v9, %v1339_v63  ;;  %v10551_v9 = vld [vmem:[#allocation27_spill] sm:$0xff] }
  0x9e   :  { %v6836_v19 = vadd.f32 %v1772_v18, %v1340_v0  ;;  %v6838_v25 = vadd.f32 %v1773_v60, %v1341_v34  ;;  %v6840_v16 = vadd.f32 %v1774_v62, %v1342_v1  ;;  %v6842_v21 = vpop.permute.xlu0 %1476  ;;  %v6847_v7 = vadd.f32 %v1779_v37, %v1347_v49  ;;  %v10550_v0 = vld [vmem:[#allocation70_spill] sm:$0xff]  ;;  %v10552_v1 = vld [vmem:[#allocation20_spill] sm:$0xff]  ;;  %v10553_v60 = vld [vmem:[#allocation59_spill] sm:$0xff] }
  0x9f   :  { %10549 = vst [vmem:[#allocation86_spill] sm:$0xff] %v6842_v21  ;;  %v6849_v44 = vadd.f32 %v1780_v6, %v1348_v50  ;;  %v6851_v29 = vadd.f32 %v1781_v52, %v1349_v56  ;;  %v6853_v63 = vadd.f32 %v1782_v24, %v1350_v51  ;;  %v655_v34 = vmul.f32 %v10551_v9, %v10550_v0  ;;  %v10554_v21 = vld [vmem:[#allocation60_spill] sm:$0xff] }
  0xa0   :  { %v656_v18 = vmul.f32 %v10552_v1, %v10550_v0  ;;  %v657_v62 = vmul.f32 %v10553_v60, %v10550_v0  ;;  %v658_v28 = vmul.f32 %v10554_v21, %v10550_v0  ;;  %3852 = vperm.xlu1 %5902, %v3730_v47   ;;  %v6863_v49 = vpop.permute.xlu1 %1472  ;;  %v687_v50 = vmul.f32 %v10551_v9, %v6635_v46  ;;  %v3764_v6 = vld [vmem:[%s10158_s7 + $0x180] sm:$0xff] }
  0xa1   :  { %10555 = vst [vmem:[#allocation87_spill] sm:$0xff] %v6863_v49  ;;  %v688_v56 = vmul.f32 %v10552_v1, %v6635_v46  ;;  %v689_v51 = vmul.f32 %v10553_v60, %v6635_v46  ;;  %v690_v37 = vmul.f32 %v10554_v21, %v6635_v46  ;;  %4935 = vperm.xlu0 %5901, %v4889_v20   ;;  %v3769_v20 = vld [vmem:[%s10158_s7 + $0x1a8] sm:$0xff] }
  0xa2   :  { %v1803_v47 = vmul.f32 %v6408_v32, %v6863_v49  ;;  %v1804_v52 = vmul.f32 %v6417_v38, %v6863_v49  ;;  %v1805_v24 = vmul.f32 %v6420_v39, %v6863_v49  ;;  %v1806_v0 = vmul.f32 %v6423_v41, %v6863_v49 }
  0xa3   :  { %v1811_v46 = vmul.f32 %v6494_v33, %v6863_v49  ;;  %v1812_v14 = vmul.f32 %v6500_v30, %v6863_v49  ;;  %v1813_v32 = vmul.f32 %v6513_v57, %v6863_v49  ;;  %v1814_v38 = vmul.f32 %v6530_v3, %v6863_v49  ;;  %v6895_v39 = vpop.permute.xlu0 %2308  ;;  %v10557_v30 = vld [vmem:[#allocation25_spill] sm:$0xff]  ;;  %v10558_v3 = vld [vmem:[#allocation26_spill] sm:$0xff] }
  0xa4   :  { %10556 = vst [vmem:[#allocation88_spill] sm:$0xff] %v6895_v39  ;;  %v6898_v41 = vadd.f32 %v1803_v47, %v6709_v45  ;;  %v6901_v11 = vadd.f32 %v1804_v52, %v6711_v35  ;;  %v6904_v4 = vadd.f32 %v1805_v24, %v6713_v31  ;;  %v6907_v33 = vadd.f32 %v1806_v0, %v6715_v10  ;;  %v4902_v10 = vld [vmem:[%s10160_s9 + $0x80] sm:$0xff]  ;;  %v4907_v24 = vld [vmem:[%s10160_s9 + $0xa8] sm:$0xff] }
  0xa5   :  { %4022 = vperm.xlu1 %5902, %v3764_v6   ;;  %v6911_v57 = vmul.f32 %v6895_v39, %v10557_v30  ;;  %v6915_v2 = vmul.f32 %v6895_v39, %v10558_v3  ;;  %v6919_v45 = vmul.f32 %v6895_v39, %v10551_v9  ;;  %v6923_v31 = vmul.f32 %v6895_v39, %v10552_v1  ;;  %v6925_v35 = vpop.permute.xlu1 %916  ;;  %v4886_v9 = vld [vmem:[%s10160_s9] sm:$0xff] }
  0xa6   :  { %10559 = vst [vmem:[#allocation89_spill] sm:$0xff] %v6925_v35  ;;  %4047 = vperm.xlu0 %5901, %v3769_v20   ;;  %v6931_v0 = vadd.f32 %v1811_v46, %v6765_v8  ;;  %v6934_v6 = vadd.f32 %v1812_v14, %v6767_v13  ;;  %v6937_v47 = vadd.f32 %v1813_v32, %v6769_v22  ;;  %v10560_v20 = vld [vmem:[#allocation42_spill] sm:$0xff]  ;;  %v10562_v14 = vld [vmem:[#allocation44_spill] sm:$0xff]  ;;  %v10563_v32 = vld [vmem:[#allocation45_spill] sm:$0xff] }
  0xa7   :  { %v6940_v52 = vadd.f32 %v1814_v38, %v6771_v17  ;;  %v6947_v35 = vmul.f32 %v6895_v39, %v10560_v20  ;;  %v6951_v46 = vmul.f32 %v6895_v39, %v10561_v43  ;;  %v6955_v8 = vmul.f32 %v6895_v39, %v10562_v14  ;;  %v10572_v14 = vld [vmem:[#allocation37_spill] sm:$0xff]  ;;  %v10574_v20 = vld [vmem:[#allocation38_spill] sm:$0xff] }
  0xa8   :  { %v6959_v38 = vmul.f32 %v6895_v39, %v10563_v32  ;;  %v6962_v13 = vadd.f32 %v655_v34, %v6778_v12  ;;  %v6965_v22 = vadd.f32 %v656_v18, %v6782_v27  ;;  %v6968_v17 = vadd.f32 %v657_v62, %v6786_v15  ;;  %v3748_v27 = vld [vmem:[%s10158_s7 + $0x100] sm:$0xff]  ;;  %v3753_v62 = vld [vmem:[%s10158_s7 + $0x128] sm:$0xff] }
  0xa9   :  { %v6971_v21 = vadd.f32 %v658_v28, %v6790_v58  ;;  %5000 = vperm.xlu1 %5902, %v4902_v10   ;;  %v6974_v60 = vadd.f32 %v687_v50, %v6799_v48  ;;  %v6977_v36 = vadd.f32 %v688_v56, %v6803_v53  ;;  %v6980_v39 = vadd.f32 %v689_v51, %v6807_v54  ;;  %v10564_v28 = vld [vmem:[#allocation61_spill] sm:$0xff]  ;;  %v10565_v58 = vld [vmem:[#allocation63_spill] sm:$0xff]  ;;  %v10566_v53 = vld [vmem:[#allocation64_spill] sm:$0xff] }
  0xaa   :  { %v6983_v12 = vadd.f32 %v690_v37, %v6811_v40  ;;  %5025 = vperm.xlu0 %5901, %v4907_v24   ;;  %v6990_v15 = vmul.f32 %v10564_v28, %v6717_v61  ;;  %v6994_v48 = vmul.f32 %v10565_v58, %v6717_v61  ;;  %v6998_v54 = vmul.f32 %v10566_v53, %v6717_v61  ;;  %v10567_v40 = vld [vmem:[#allocation65_spill] sm:$0xff]  ;;  %v7004_v18 = vpop.permute.xlu1 %2028  ;;  %v10569_v10 = vld [vmem:[#allocation22_spill] sm:$0xff]  ;;  %v10571_v32 = vld [vmem:[#allocation36_spill] sm:$0xff] }
  0xab   :  { %v7002_v34 = vmul.f32 %v10567_v40, %v6717_v61  ;;  %10568 = vst [vmem:[#allocation90_spill] sm:$0xff] %v7004_v18  ;;  %v7011_v50 = vmul.f32 %v10564_v28, %v6677_v23  ;;  %v7015_v56 = vmul.f32 %v10565_v58, %v6677_v23  ;;  %v7019_v51 = vmul.f32 %v10566_v53, %v6677_v23  ;;  %v10570_v61 = vld [vmem:[#allocation24_spill] sm:$0xff] }
  0xac   :  { %v7023_v37 = vmul.f32 %v10567_v40, %v6677_v23  ;;  %v2047_v24 = vmul.f32 %v7004_v18, %v10569_v10  ;;  %v2048_v42 = vmul.f32 %v7004_v18, %v10570_v61  ;;  %v2049_v28 = vmul.f32 %v7004_v18, %v6390_v26  ;;  %v10573_v40 = vld [vmem:[#allocation39_spill] sm:$0xff] }
  0xad   :  { %v2050_v58 = vmul.f32 %v7004_v18, %v6340_v5  ;;  %3942 = vperm.xlu1 %5902, %v3748_v27   ;;  %v2055_v53 = vmul.f32 %v7004_v18, %v10571_v32  ;;  %v2056_v23 = vmul.f32 %v7004_v18, %v10572_v14  ;;  %v2057_v43 = vmul.f32 %v7004_v18, %v10573_v40 }
  0xae   :  { %v2058_v1 = vmul.f32 %v7004_v18, %v10574_v20  ;;  %3967 = vperm.xlu0 %5901, %v3753_v62   ;;  %v7045_v3 = vadd.f32 %v2047_v24, %v6834_v59  ;;  %v7048_v27 = vadd.f32 %v2048_v42, %v6836_v19  ;;  %v7051_v30 = vadd.f32 %v2049_v28, %v6838_v25  ;;  %v7056_v55 = vpop.permute.xlu1 %2032  ;;  %v4891_v62 = vld [vmem:[%s10160_s9 + $0x28] sm:$0xff]  ;;  %v3771_v24 = vld [vmem:[%s10158_s7 + $0x1b8] sm:$0xff] }
  0xaf   :  { %v7054_v49 = vadd.f32 %v2050_v58, %v6840_v16  ;;  %10575 = vst [vmem:[#allocation22_spill] sm:$0xff] %v7056_v55  ;;  %v7062_v18 = vadd.f32 %v2055_v53, %v6847_v7  ;;  %v7065_v59 = vadd.f32 %v2056_v23, %v6849_v44  ;;  %v7068_v42 = vadd.f32 %v2057_v43, %v6851_v29 }
  0xb0   :  { %v7071_v25 = vadd.f32 %v2058_v1, %v6853_v63  ;;  %v2079_v16 = vmul.f32 %v7056_v55, %v10569_v10  ;;  %v2080_v19 = vmul.f32 %v7056_v55, %v10570_v61  ;;  %v2081_v28 = vmul.f32 %v7056_v55, %v6390_v26  ;;  %v3766_v63 = vld [vmem:[%s10158_s7 + $0x190] sm:$0xff] }
  0xb1   :  { %v2082_v7 = vmul.f32 %v7056_v55, %v6340_v5  ;;  %4920 = vperm.xlu1 %5902, %v4886_v9   ;;  %v2087_v23 = vmul.f32 %v7056_v55, %v10571_v32  ;;  %v2088_v29 = vmul.f32 %v7056_v55, %v10572_v14  ;;  %v2089_v43 = vmul.f32 %v7056_v55, %v10573_v40 }
  0xb2   :  { %v2090_v44 = vmul.f32 %v7056_v55, %v10574_v20  ;;  %4945 = vperm.xlu0 %5901, %v4891_v62   ;;  %v2207_v1 = vadd.f32 %v2079_v16, %v6898_v41  ;;  %v2208_v9 = vadd.f32 %v2080_v19, %v6901_v11  ;;  %v2209_v58 = vadd.f32 %v2081_v28, %v6904_v4  ;;  %v10585_v16 = vld [vmem:[#allocation25_spill] sm:$0xff]  ;;  %v10586_v28 = vld [vmem:[#allocation26_spill] sm:$0xff] }
  0xb3   :  { %v2210_v53 = vadd.f32 %v2082_v7, %v6907_v33  ;;  %v2215_v40 = vadd.f32 %v2087_v23, %v6931_v0  ;;  %v2216_v62 = vadd.f32 %v2088_v29, %v6934_v6  ;;  %v2217_v20 = vadd.f32 %v2089_v43, %v6937_v47  ;;  %v7103_v32 = vpop.permute.xlu1 %1480  ;;  %v10587_v23 = vld [vmem:[#allocation27_spill] sm:$0xff]  ;;  %v10588_v43 = vld [vmem:[#allocation20_spill] sm:$0xff] }
  0xb4   :  { %v2218_v14 = vadd.f32 %v2090_v44, %v6940_v52  ;;  %10576 = vst [vmem:[#allocation24_spill] sm:$0xff] %v7103_v32  ;;  %v7106_v11 = vadd.f32 %v6911_v57, %v2207_v1  ;;  %v7109_v41 = vadd.f32 %v6915_v2, %v2208_v9  ;;  %v7112_v33 = vadd.f32 %v6919_v45, %v2209_v58  ;;  %v4904_v2 = vld [vmem:[%s10160_s9 + $0x90] sm:$0xff]  ;;  %v10590_v58 = vld [vmem:[#allocation43_spill] sm:$0xff] }
  0xb5   :  { %v7115_v4 = vadd.f32 %v6923_v31, %v2210_v53  ;;  %4032 = vperm.xlu1 %5902, %v3766_v63   ;;  %v7118_v0 = vadd.f32 %v6947_v35, %v2215_v40  ;;  %v7121_v6 = vadd.f32 %v6951_v46, %v2216_v62  ;;  %v7124_v47 = vadd.f32 %v6955_v8, %v2217_v20  ;;  %v7148_v20 = vpop.permute.xlu0 %2312  ;;  %v4909_v46 = vld [vmem:[%s10160_s9 + $0xb8] sm:$0xff] }
  0xb6   :  { %v7127_v57 = vadd.f32 %v6959_v38, %v2218_v14  ;;  %4057 = vperm.xlu0 %5901, %v3771_v24   ;;  %v7134_v45 = vadd.f32 %v6990_v15, %v6962_v13  ;;  %v7138_v31 = vadd.f32 %v6994_v48, %v6965_v22  ;;  %v7142_v35 = vadd.f32 %v6998_v54, %v6968_v17  ;;  %v10578_v13 = vld [vmem:[#allocation84_spill] sm:$0xff]  ;;  %v10579_v22 = vld [vmem:[#allocation66_spill] sm:$0xff]  ;;  %v10580_v15 = vld [vmem:[#allocation67_spill] sm:$0xff] }
  0xb7   :  { %v7146_v52 = vadd.f32 %v7002_v34, %v6971_v21  ;;  %10577 = vst [vmem:[#allocation91_spill] sm:$0xff] %v7148_v20  ;;  %v7155_v14 = vadd.f32 %v7011_v50, %v6974_v60  ;;  %v7159_v8 = vadd.f32 %v7015_v56, %v6977_v36  ;;  %v7163_v38 = vadd.f32 %v7019_v51, %v6980_v39  ;;  %v10581_v60 = vld [vmem:[#allocation68_spill] sm:$0xff]  ;;  %v10582_v36 = vld [vmem:[#allocation69_spill] sm:$0xff]  ;;  %v10584_v39 = vld [vmem:[#allocation87_spill] sm:$0xff] }
  0xb8   :  { %v7167_v21 = vadd.f32 %v7023_v37, %v6983_v12  ;;  %v1775_v17 = vmul.f32 %v10579_v22, %v10578_v13  ;;  %v1776_v48 = vmul.f32 %v10580_v15, %v10578_v13  ;;  %v1777_v54 = vmul.f32 %v10581_v60, %v10578_v13  ;;  %v7177_v34 = vpop.permute.xlu1 %2304  ;;  %v3750_v37 = vld [vmem:[%s10158_s7 + $0x110] sm:$0xff]  ;;  %v3755_v63 = vld [vmem:[%s10158_s7 + $0x138] sm:$0xff]  ;;  %v10591_v24 = vld [vmem:[#allocation44_spill] sm:$0xff] }
  0xb9   :  { %v1778_v40 = vmul.f32 %v10582_v36, %v10578_v13  ;;  %5010 = vperm.xlu1 %5902, %v4904_v2   ;;  %10583 = vst [vmem:[#allocation92_spill] sm:$0xff] %v7177_v34  ;;  %v1807_v50 = vmul.f32 %v10579_v22, %v10584_v39  ;;  %v1808_v12 = vmul.f32 %v10580_v15, %v10584_v39  ;;  %v10589_v1 = vld [vmem:[#allocation42_spill] sm:$0xff]  ;;  %v10592_v2 = vld [vmem:[#allocation45_spill] sm:$0xff]  ;;  %v7213_v15 = vpop.permute.xlu0 %2585 }
  0xba   :  { %v1809_v56 = vmul.f32 %v10581_v60, %v10584_v39  ;;  %v1810_v51 = vmul.f32 %v10582_v36, %v10584_v39  ;;  %5035 = vperm.xlu0 %5901, %v4909_v46   ;;  %v2323_v19 = vmul.f32 %v7177_v34, %v10585_v16  ;;  %v2324_v7 = vmul.f32 %v7177_v34, %v10586_v28 }
  0xbb   :  { %v2325_v29 = vmul.f32 %v7177_v34, %v10587_v23  ;;  %v2326_v44 = vmul.f32 %v7177_v34, %v10588_v43  ;;  %v2331_v9 = vmul.f32 %v7177_v34, %v10589_v1  ;;  %v2332_v53 = vmul.f32 %v7177_v34, %v10590_v58  ;;  %10593 = vst [vmem:[#allocation25_spill] sm:$0xff] %v7213_v15 }
  0xbc   :  { %v2333_v62 = vmul.f32 %v7177_v34, %v10591_v24  ;;  %v2334_v46 = vmul.f32 %v7177_v34, %v10592_v2  ;;  %v2451_v39 = vadd.f32 %v2323_v19, %v7045_v3  ;;  %v2452_v13 = vadd.f32 %v2324_v7, %v7048_v27  ;;  %v4888_v3 = vld [vmem:[%s10160_s9 + $0x10] sm:$0xff] }
  0xbd   :  { %v2453_v36 = vadd.f32 %v2325_v29, %v7051_v30  ;;  %v2454_v60 = vadd.f32 %v2326_v44, %v7054_v49  ;;  %3952 = vperm.xlu1 %5902, %v3750_v37   ;;  %v2459_v22 = vadd.f32 %v2331_v9, %v7062_v18  ;;  %v2460_v58 = vadd.f32 %v2332_v53, %v7065_v59  ;;  %v7219_v2 = vpop.permute.xlu1 %2036  ;;  %v4893_v59 = vld [vmem:[%s10160_s9 + $0x38] sm:$0xff] }
  0xbe   :  { %v2461_v24 = vadd.f32 %v2333_v62, %v7068_v42  ;;  %v2462_v1 = vadd.f32 %v2334_v46, %v7071_v25  ;;  %10594 = vst [vmem:[#allocation26_spill] sm:$0xff] %v7219_v2  ;;  %3977 = vperm.xlu0 %5901, %v3755_v63   ;;  %v2603_v30 = vadd.f32 %v7213_v15, %v2451_v39  ;;  %v3773_v62 = vld [vmem:[%s10158_s7 + $0x1c8] sm:$0xff] }
  0xbf   :  { %v2604_v49 = vadd.f32 %v7213_v15, %v2452_v13  ;;  %v2605_v27 = vadd.f32 %v7213_v15, %v2453_v36  ;;  %v2606_v18 = vadd.f32 %v7213_v15, %v2454_v60  ;;  %v2611_v42 = vadd.f32 %v7213_v15, %v2459_v22  ;;  %v3768_v22 = vld [vmem:[%s10158_s7 + $0x1a0] sm:$0xff] }
  0xc0   :  { %v2612_v25 = vadd.f32 %v7213_v15, %v2460_v58  ;;  %v2613_v37 = vadd.f32 %v7213_v15, %v2461_v24  ;;  %v2614_v19 = vadd.f32 %v7213_v15, %v2462_v1  ;;  %v2731_v7 = vmax.f32 %v2603_v30, 0.0 }
  0xc1   :  { %v2732_v39 = vmax.f32 %v2604_v49, 0.0  ;;  %v2733_v29 = vmax.f32 %v2605_v27, 0.0  ;;  %v2734_v13 = vmax.f32 %v2606_v18, 0.0  ;;  %4930 = vperm.xlu1 %5902, %v4888_v3   ;;  %v2739_v36 = vmax.f32 %v2611_v42, 0.0  ;;  %v7235_v9 = vpop.permute.xlu1 %2040  ;;  %v10599_v42 = vld [vmem:[#allocation35_spill] sm:$0xff] }
  0xc2   :  { %v2740_v44 = vmax.f32 %v2612_v25, 0.0  ;;  %v2741_v60 = vmax.f32 %v2613_v37, 0.0  ;;  %v2742_v63 = vmax.f32 %v2614_v19, 0.0  ;;  %10595 = vst [vmem:[#allocation27_spill] sm:$0xff] %v7235_v9  ;;  %4955 = vperm.xlu0 %5901, %v4893_v59   ;;  %v1903_v53 = vadd.f32 %v1775_v17, %v7134_v45  ;;  %v10596_v17 = vld [vmem:[#allocation58_spill] sm:$0xff] }
  0xc3   :  { %v2863_v58 = vadd.f32 %v2732_v39, %v2731_v7  ;;  %v1904_v1 = vadd.f32 %v1776_v48, %v7138_v31  ;;  %v1905_v24 = vadd.f32 %v1777_v54, %v7142_v35  ;;  %v1906_v3 = vadd.f32 %v1778_v40, %v7146_v52  ;;  %v10597_v31 = vld [vmem:[#allocation90_spill] sm:$0xff]  ;;  %v10598_v54 = vld [vmem:[#allocation55_spill] sm:$0xff] }
  0xc4   :  { %v2909_v46 = vadd.f32 %v2740_v44, %v2739_v36  ;;  %v1935_v30 = vadd.f32 %v1807_v50, %v7155_v14  ;;  %v1936_v49 = vadd.f32 %v1808_v12, %v7159_v8  ;;  %v1937_v18 = vadd.f32 %v1809_v56, %v7163_v38  ;;  %v10600_v40 = vld [vmem:[#allocation34_spill] sm:$0xff]  ;;  %v4906_v8 = vld [vmem:[%s10160_s9 + $0xa0] sm:$0xff] }
  0xc5   :  { %v2867_v27 = vadd.f32 %v2863_v58, %v2733_v29  ;;  %v1938_v45 = vadd.f32 %v1810_v51, %v7167_v21  ;;  %v2051_v48 = vmul.f32 %v10597_v31, %v10596_v17  ;;  %4042 = vperm.xlu1 %5902, %v3768_v22   ;;  %v2052_v59 = vmul.f32 %v10597_v31, %v10598_v54  ;;  %v4911_v51 = vld [vmem:[%s10160_s9 + $0xc8] sm:$0xff] }
  0xc6   :  { %v2913_v35 = vadd.f32 %v2909_v46, %v2741_v60  ;;  %v2053_v52 = vmul.f32 %v10597_v31, %v10599_v42  ;;  %v2054_v14 = vmul.f32 %v10597_v31, %v10600_v40  ;;  %4067 = vperm.xlu0 %5901, %v3773_v62   ;;  %v2083_v21 = vmul.f32 %v7056_v55, %v10596_v17  ;;  %v7268_v56 = vpop.permute.xlu1 %2316  ;;  %v10602_v62 = vld [vmem:[#allocation59_spill] sm:$0xff] }
  0xc7   :  { %v2871_v38 = vadd.f32 %v2867_v27, %v2734_v13  ;;  %v2084_v50 = vmul.f32 %v7056_v55, %v10598_v54  ;;  %v2085_v12 = vmul.f32 %v7056_v55, %v10599_v42  ;;  %10601 = vst [vmem:[#allocation20_spill] sm:$0xff] %v7268_v56  ;;  %v2086_v37 = vmul.f32 %v7056_v55, %v10600_v40 }
  0xc8   :  { %v2917_v25 = vadd.f32 %v2913_v35, %v2742_v63  ;;  %v2179_v19 = vadd.f32 %v2051_v48, %v1903_v53  ;;  %v2180_v7 = vadd.f32 %v2052_v59, %v1904_v1  ;;  %v2181_v29 = vadd.f32 %v2053_v52, %v1905_v24  ;;  %v3752_v63 = vld [vmem:[%s10158_s7 + $0x120] sm:$0xff] }
  0xc9   :  { %v7275_v39 = vmul.f32 0.25, %v2871_v38  ;;  %v2182_v13 = vadd.f32 %v2054_v14, %v1906_v3  ;;  %v2211_v36 = vadd.f32 %v2083_v21, %v1935_v30  ;;  %5020 = vperm.xlu1 %5902, %v4906_v8   ;;  %v2212_v60 = vadd.f32 %v2084_v50, %v1936_v49  ;;  %v10603_v1 = vld [vmem:[#allocation60_spill] sm:$0xff]  ;;  %v10605_v30 = vld [vmem:[#allocation41_spill] sm:$0xff] }
  0xca   :  { %v7277_v44 = vmul.f32 0.25, %v2917_v25  ;;  %v2213_v22 = vadd.f32 %v2085_v12, %v1937_v18  ;;  %v2214_v58 = vadd.f32 %v2086_v37, %v1938_v45  ;;  %5045 = vperm.xlu0 %5901, %v4911_v51   ;;  %v2327_v53 = vmul.f32 %v7177_v34, %v10602_v62  ;;  %v10604_v24 = vld [vmem:[#allocation40_spill] sm:$0xff] }
  0xcb   :  { %v2328_v46 = vmul.f32 %v7177_v34, %v10603_v1  ;;  %v2329_v3 = vmul.f32 %v7177_v34, %v10604_v24  ;;  %v2330_v27 = vmul.f32 %v7177_v34, %v10605_v30  ;;  %v3757_v49 = vld [vmem:[%s10158_s7 + $0x148] sm:$0xff]  ;;  %v7301_v52 = vpop.permute.xlu1 %2590  ;;  %v4890_v37 = vld [vmem:[%s10160_s9 + $0x20] sm:$0xff] }
  0xcc   :  { %v10606_v18 = vld [vmem:[#allocation88_spill] sm:$0xff]  ;;  %10607 = vst [vmem:[#allocation58_spill] sm:$0xff] %v7301_v52  ;;  %v2455_v14 = vadd.f32 %v2327_v53, %v2179_v19  ;;  %v2635_v50 = vadd.f32 %v7301_v52, %v7106_v11  ;;  %v2636_v12 = vadd.f32 %v7301_v52, %v7109_v41  ;;  %v2637_v51 = vadd.f32 %v7301_v52, %v7112_v33 }
  0xcd   :  { %v2359_v45 = vmul.f32 %v10606_v18, %v10602_v62  ;;  %v2360_v48 = vmul.f32 %v10606_v18, %v10603_v1  ;;  %v2361_v35 = vmul.f32 %v10606_v18, %v10604_v24  ;;  %v2362_v59 = vmul.f32 %v10606_v18, %v10605_v30  ;;  %3962 = vperm.xlu1 %5902, %v3752_v63  }
  0xce   :  { %v2456_v8 = vadd.f32 %v2328_v46, %v2180_v7  ;;  %v2457_v38 = vadd.f32 %v2329_v3, %v2181_v29  ;;  %v2458_v21 = vadd.f32 %v2330_v27, %v2182_v13  ;;  %v2638_v25 = vadd.f32 %v7301_v52, %v7115_v4  ;;  %3987 = vperm.xlu0 %5901, %v3757_v49   ;;  %v4895_v4 = vld [vmem:[%s10160_s9 + $0x48] sm:$0xff] }
  0xcf   :  { %v2643_v19 = vadd.f32 %v7301_v52, %v7118_v0  ;;  %v2644_v11 = vadd.f32 %v7301_v52, %v7121_v6  ;;  %v2645_v41 = vadd.f32 %v7301_v52, %v7124_v47  ;;  %v2646_v33 = vadd.f32 %v7301_v52, %v7127_v57  ;;  %v3770_v57 = vld [vmem:[%s10158_s7 + $0x1b0] sm:$0xff] }
  0xd0   :  { %v2763_v7 = vmax.f32 %v2635_v50, 0.0  ;;  %v2764_v29 = vmax.f32 %v2636_v12, 0.0  ;;  %v2765_v13 = vmax.f32 %v2637_v51, 0.0  ;;  %v2766_v63 = vmax.f32 %v2638_v25, 0.0  ;;  %v3775_v51 = vld [vmem:[%s10158_s7 + $0x1d8] sm:$0xff] }
  0xd1   :  { %v2771_v53 = vmax.f32 %v2643_v19, 0.0  ;;  %v2772_v46 = vmax.f32 %v2644_v11, 0.0  ;;  %v2773_v0 = vmax.f32 %v2645_v41, 0.0  ;;  %v2774_v3 = vmax.f32 %v2646_v33, 0.0  ;;  %4940 = vperm.xlu1 %5902, %v4890_v37   ;;  %v4913_v41 = vld [vmem:[%s10160_s9 + $0xd8] sm:$0xff] }
  0xd2   :  { %v2864_v6 = vadd.f32 %v2764_v29, %v2763_v7  ;;  %v2487_v27 = vadd.f32 %v2359_v45, %v2211_v36  ;;  %v2488_v49 = vadd.f32 %v2360_v48, %v2212_v60  ;;  %v2489_v47 = vadd.f32 %v2361_v35, %v2213_v22  ;;  %4965 = vperm.xlu0 %5901, %v4895_v4  }
  0xd3   :  { %v2910_v18 = vadd.f32 %v2772_v46, %v2771_v53  ;;  %v2490_v34 = vadd.f32 %v2362_v59, %v2214_v58  ;;  %v2607_v50 = vadd.f32 %v7213_v15, %v2455_v14  ;;  %v2608_v12 = vadd.f32 %v7213_v15, %v2456_v8  ;;  %v10609_v46 = vld [vmem:[#allocation18_spill] sm:$0xff] }
  0xd4   :  { %v2868_v25 = vadd.f32 %v2864_v6, %v2765_v13  ;;  %v2609_v36 = vadd.f32 %v7213_v15, %v2457_v38  ;;  %v2610_v60 = vadd.f32 %v7213_v15, %v2458_v21  ;;  %v2639_v22 = vadd.f32 %v7301_v52, %v2487_v27  ;;  %v4908_v38 = vld [vmem:[%s10160_s9 + $0xb0] sm:$0xff] }
  0xd5   :  { %v2914_v45 = vadd.f32 %v2910_v18, %v2773_v0  ;;  %v2640_v48 = vadd.f32 %v7301_v52, %v2488_v49  ;;  %v2641_v58 = vadd.f32 %v7301_v52, %v2489_v47  ;;  %v2642_v35 = vadd.f32 %v7301_v52, %v2490_v34  ;;  %4052 = vperm.xlu1 %5902, %v3770_v57   ;;  %v10623_v52 = vld [vmem:[#allocation30_spill] sm:$0xff] }
  0xd6   :  { %v2872_v59 = vadd.f32 %v2868_v25, %v2766_v63  ;;  %v2735_v14 = vmax.f32 %v2607_v50, 0.0  ;;  %v2736_v8 = vmax.f32 %v2608_v12, 0.0  ;;  %v2737_v37 = vmax.f32 %v2609_v36, 0.0  ;;  %4077 = vperm.xlu0 %5901, %v3775_v51   ;;  %v10608_v63 = vld [vmem:[#allocation81_spill] sm:$0xff]  ;;  %v10611_v12 = vld [vmem:[#allocation78_spill] sm:$0xff] }
  0xd7   :  { %v2918_v21 = vadd.f32 %v2914_v45, %v2774_v3  ;;  %v2738_v19 = vmax.f32 %v2610_v60, 0.0  ;;  %v2767_v11 = vmax.f32 %v2639_v22, 0.0  ;;  %v2768_v18 = vmax.f32 %v2640_v48, 0.0  ;;  %v3754_v50 = vld [vmem:[%s10158_s7 + $0x130] sm:$0xff]  ;;  %v3759_v36 = vld [vmem:[%s10158_s7 + $0x158] sm:$0xff] }
  0xd8   :  { %v2876_v33 = vmul.f32 0.25, %v2872_v59  ;;  %v2769_v34 = vmax.f32 %v2641_v58, 0.0  ;;  %v2770_v4 = vmax.f32 %v2642_v35, 0.0  ;;  %v2885_v7 = vadd.f32 %v2736_v8, %v2735_v14  ;;  %v10612_v22 = vld [vmem:[#allocation83_spill] sm:$0xff]  ;;  %v10615_v8 = vld [vmem:[#allocation85_spill] sm:$0xff] }
  0xd9   :  { %v2922_v29 = vmul.f32 0.25, %v2918_v21  ;;  %v2886_v13 = vadd.f32 %v2768_v18, %v2767_v11  ;;  %v444_v53 = vmul.f32 0.0, %v10608_v63  ;;  %v445_v0 = vmul.f32 %v10609_v46, %v10608_v63  ;;  %5030 = vperm.xlu1 %5902, %v4908_v38   ;;  %v10614_v35 = vld [vmem:[#allocation19_spill] sm:$0xff] }
  0xda   :  { %v7349_v3 = vpack.c.bf16 %v2876_v33, %v7275_v39  ;;  %v2889_v6 = vadd.f32 %v2885_v7, %v2737_v37  ;;  %v446_v27 = vmul.f32 %v10569_v10, %v10608_v63  ;;  %v447_v49 = vmul.f32 %v10570_v61, %v10608_v63  ;;  %5055 = vperm.xlu0 %5901, %v4913_v41  }
  0xdb   :  { %v7356_v47 = vpack.c.bf16 %v2922_v29, %v7277_v44  ;;  %v2890_v57 = vadd.f32 %v2886_v13, %v2769_v34  ;;  %v476_v51 = vmul.f32 0.0, %v10611_v12  ;;  %v477_v39 = vmul.f32 %v10609_v46, %v10611_v12 }
  0xdc   :  { %3188 = vmatprep.subr.bf16.mxu0 %v7349_v3  ;;  %v2893_v25 = vadd.f32 %v2889_v6, %v2738_v19  ;;  %v478_v44 = vmul.f32 %v10569_v10, %v10611_v12  ;;  %v479_v60 = vmul.f32 %v10570_v61, %v10611_v12  ;;  %v715_v45 = vmul.f32 0.0, %v10612_v22 }
  0xdd   :  { %10610 = vst [vmem:[#allocation55_spill] sm:$0xff] %v7356_v47  ;;  %3261 = vmatprep.subr.bf16.mxu1 %v7356_v47  ;;  %v10613_v48 = vmov 0   ;;  %v2894_v58 = vadd.f32 %v2890_v57, %v2770_v4  ;;  %v716_v59 = vmul.f32 %v10614_v35, %v10612_v22  ;;  %v717_v14 = vmul.f32 %v10585_v16, %v10612_v22  ;;  %v4892_v4 = vld [vmem:[%s10160_s9 + $0x30] sm:$0xff] }
  0xde   :  { %3189 = vmatpush1.bf16.msra.mxu0 %v10613_v48  ;;  %v747_v37 = vmul.f32 0.0, %v10615_v8  ;;  %v2897_v38 = vmul.f32 0.25, %v2893_v25  ;;  %3972 = vperm.xlu1 %5902, %v3754_v50   ;;  %v718_v21 = vmul.f32 %v10586_v28, %v10612_v22  ;;  %v748_v19 = vmul.f32 %v10614_v35, %v10615_v8  ;;  %v10616_v25 = vld [vmem:[#allocation89_spill] sm:$0xff]  ;;  %v10619_v35 = vld [vmem:[#allocation28_spill] sm:$0xff] }
  0xdf   :  { %v749_v11 = vmul.f32 %v10585_v16, %v10615_v8  ;;  %v2898_v18 = vmul.f32 0.25, %v2894_v58  ;;  %3997 = vperm.xlu0 %5901, %v3759_v36   ;;  %v750_v41 = vmul.f32 %v10586_v28, %v10615_v8  ;;  %v843_v33 = vadd.f32 %v715_v45, %v444_v53  ;;  %v10617_v58 = vld [vmem:[#allocation21_spill] sm:$0xff]  ;;  %v4897_v53 = vld [vmem:[%s10160_s9 + $0x58] sm:$0xff] }
  0xe0   :  { %v844_v34 = vadd.f32 %v716_v59, %v445_v0  ;;  %v845_v7 = vadd.f32 %v717_v14, %v446_v27  ;;  %v846_v29 = vadd.f32 %v718_v21, %v447_v49  ;;  %v875_v13 = vadd.f32 %v747_v37, %v476_v51  ;;  %v10618_v0 = vld [vmem:[#allocation23_spill] sm:$0xff]  ;;  %v10620_v49 = vld [vmem:[#allocation29_spill] sm:$0xff] }
  0xe1   :  { %v876_v46 = vadd.f32 %v748_v19, %v477_v39  ;;  %v7391_v6 = vpack.c.bf16 %v2898_v18, %v2897_v38  ;;  %v877_v57 = vadd.f32 %v749_v11, %v478_v44  ;;  %v878_v50 = vadd.f32 %v750_v41, %v479_v60  ;;  %v10621_v39 = vld [vmem:[#allocation82_spill] sm:$0xff]  ;;  %v3772_v38 = vld [vmem:[%s10158_s7 + $0x1c0] sm:$0xff] }
  0xe2   :  { %v1275_v36 = vmul.f32 %v10617_v58, %v10616_v25  ;;  %v1276_v45 = vmul.f32 %v10618_v0, %v10616_v25  ;;  %v1277_v27 = vmul.f32 %v10619_v35, %v10616_v25  ;;  %v1278_v51 = vmul.f32 %v10620_v49, %v10616_v25  ;;  %4950 = vperm.xlu1 %5902, %v4892_v4  }
  0xe3   :  { %v1307_v44 = vmul.f32 %v10617_v58, %v10621_v39  ;;  %3262 = vmatpush1.bf16.msra.mxu1 %v7391_v6  ;;  %v1308_v60 = vmul.f32 %v10618_v0, %v10621_v39  ;;  %v1309_v59 = vmul.f32 %v10619_v35, %v10621_v39  ;;  %v1310_v14 = vmul.f32 %v10620_v49, %v10621_v39  ;;  %v10622_v0 = vld [vmem:[#allocation86_spill] sm:$0xff]  ;;  %v10624_v35 = vld [vmem:[#allocation31_spill] sm:$0xff]  ;;  %v10626_v49 = vld [vmem:[#allocation33_spill] sm:$0xff] }
  0xe4   :  { %v1403_v37 = vadd.f32 %v1275_v36, %v843_v33  ;;  %v1404_v21 = vadd.f32 %v1276_v45, %v844_v34  ;;  %v1405_v19 = vadd.f32 %v1277_v27, %v845_v7  ;;  %v1406_v11 = vadd.f32 %v1278_v51, %v846_v29  ;;  %4975 = vperm.xlu0 %5901, %v4897_v53   ;;  %v10625_v33 = vld [vmem:[#allocation32_spill] sm:$0xff] }
  0xe5   :  { %v1435_v18 = vadd.f32 %v1307_v44, %v875_v13  ;;  %v1436_v41 = vadd.f32 %v1308_v60, %v876_v46  ;;  %v1437_v4 = vadd.f32 %v1309_v59, %v877_v57  ;;  %v1438_v58 = vadd.f32 %v1310_v14, %v878_v50 }
  0xe6   :  { %v1835_v15 = vmul.f32 %v10623_v52, %v10622_v0  ;;  %v1836_v55 = vmul.f32 %v10624_v35, %v10622_v0  ;;  %v1837_v36 = vmul.f32 %v10625_v33, %v10622_v0  ;;  %v1838_v31 = vmul.f32 %v10626_v49, %v10622_v0  ;;  %4062 = vperm.xlu1 %5902, %v3772_v38  }
  0xe7   :  { %v1867_v34 = vmul.f32 %v10623_v52, %v7103_v32  ;;  %v1868_v7 = vmul.f32 %v10624_v35, %v7103_v32  ;;  %v1869_v29 = vmul.f32 %v10625_v33, %v7103_v32  ;;  %v1870_v13 = vmul.f32 %v10626_v49, %v7103_v32  ;;  %v7450_v35 = vpop.permute.xlu1 %2595 }
  0xe8   :  { %v1963_v46 = vadd.f32 %v1835_v15, %v1403_v37  ;;  %v1964_v57 = vadd.f32 %v1836_v55, %v1404_v21  ;;  %v1965_v50 = vadd.f32 %v1837_v36, %v1405_v19  ;;  %v1966_v53 = vadd.f32 %v1838_v31, %v1406_v11  ;;  %10627 = vst [vmem:[#allocation59_spill] sm:$0xff] %v7450_v35 }
  0xe9   :  { %v1995_v45 = vadd.f32 %v1867_v34, %v1435_v18  ;;  %v1996_v27 = vadd.f32 %v1868_v7, %v1436_v41  ;;  %v1997_v51 = vadd.f32 %v1869_v29, %v1437_v4  ;;  %v1998_v44 = vadd.f32 %v1870_v13, %v1438_v58 }
  0xea   :  { %v2111_v52 = vmul.f32 %v7219_v2, %v10569_v10  ;;  %v2112_v60 = vmul.f32 %v7219_v2, %v10570_v61  ;;  %v2113_v59 = vmul.f32 %v7219_v2, %v6390_v26  ;;  %v2114_v14 = vmul.f32 %v7219_v2, %v6340_v5 }
  0xeb   :  { %v2143_v55 = vmul.f32 %v7235_v9, %v10569_v10  ;;  %v2144_v15 = vmul.f32 %v7235_v9, %v10570_v61  ;;  %v2145_v31 = vmul.f32 %v7235_v9, %v6390_v26  ;;  %v2146_v37 = vmul.f32 %v7235_v9, %v6340_v5 }
  0xec   :  { %v2239_v38 = vadd.f32 %v2111_v52, %v1963_v46  ;;  %v2240_v21 = vadd.f32 %v2112_v60, %v1964_v57  ;;  %v2241_v19 = vadd.f32 %v2113_v59, %v1965_v50  ;;  %v2242_v11 = vadd.f32 %v2114_v14, %v1966_v53 }
  0xed   :  { %v2271_v18 = vadd.f32 %v2143_v55, %v1995_v45  ;;  %v2272_v41 = vadd.f32 %v2144_v15, %v1996_v27  ;;  %v2273_v4 = vadd.f32 %v2145_v31, %v1997_v51  ;;  %v2274_v58 = vadd.f32 %v2146_v37, %v1998_v44  ;;  %v7466_v45 = vpop.permute.xlu0 %2600 }
  0xee   :  { %v2387_v10 = vmul.f32 %v7148_v20, %v10585_v16  ;;  %v2388_v61 = vmul.f32 %v7148_v20, %v10586_v28  ;;  %v2389_v33 = vmul.f32 %v7148_v20, %v10587_v23  ;;  %v2390_v36 = vmul.f32 %v7148_v20, %v10588_v43  ;;  %10628 = vst [vmem:[#allocation60_spill] sm:$0xff] %v7466_v45 }
  0xef   :  { %v2419_v49 = vmul.f32 %v7268_v56, %v10585_v16  ;;  %v2420_v34 = vmul.f32 %v7268_v56, %v10586_v28  ;;  %v2421_v7 = vmul.f32 %v7268_v56, %v10587_v23  ;;  %v2422_v29 = vmul.f32 %v7268_v56, %v10588_v43 }
  0xf0   :  { %v2515_v13 = vadd.f32 %v2387_v10, %v2239_v38  ;;  %v2516_v46 = vadd.f32 %v2388_v61, %v2240_v21  ;;  %v2517_v57 = vadd.f32 %v2389_v33, %v2241_v19  ;;  %v2518_v50 = vadd.f32 %v2390_v36, %v2242_v11  ;;  %v10629_v61 = vld [vmem:[#allocation36_spill] sm:$0xff]  ;;  %v10630_v36 = vld [vmem:[#allocation37_spill] sm:$0xff] }
  0xf1   :  { %v2547_v53 = vadd.f32 %v2419_v49, %v2271_v18  ;;  %v2548_v27 = vadd.f32 %v2420_v34, %v2272_v41  ;;  %v2549_v51 = vadd.f32 %v2421_v7, %v2273_v4  ;;  %v2550_v44 = vadd.f32 %v2422_v29, %v2274_v58 }
  0xf2   :  { %v2667_v16 = vadd.f32 %v7450_v35, %v2515_v13  ;;  %v2668_v28 = vadd.f32 %v7450_v35, %v2516_v46  ;;  %v2669_v52 = vadd.f32 %v7450_v35, %v2517_v57  ;;  %v2670_v60 = vadd.f32 %v7450_v35, %v2518_v50  ;;  %v3777_v46 = vld [vmem:[%s10158_s7 + $0x1e8] sm:$0xff] }
  0xf3   :  { %v2699_v59 = vadd.f32 %v7466_v45, %v2547_v53  ;;  %v2700_v14 = vadd.f32 %v7466_v45, %v2548_v27  ;;  %v2701_v55 = vadd.f32 %v7466_v45, %v2549_v51  ;;  %v2702_v15 = vadd.f32 %v7466_v45, %v2550_v44  ;;  %4087 = vperm.xlu0 %5901, %v3777_v46   ;;  %v4910_v51 = vld [vmem:[%s10160_s9 + $0xc0] sm:$0xff] }
  0xf4   :  { %v2795_v31 = vmax.f32 %v2667_v16, 0.0  ;;  %v2796_v37 = vmax.f32 %v2668_v28, 0.0  ;;  %v2797_v38 = vmax.f32 %v2669_v52, 0.0  ;;  %v2798_v21 = vmax.f32 %v2670_v60, 0.0  ;;  %v10631_v16 = vld [vmem:[#allocation42_spill] sm:$0xff]  ;;  %v10632_v52 = vld [vmem:[#allocation43_spill] sm:$0xff]  ;;  %5040 = vperm.xlu1 %5902, %v4910_v51  }
  0xf5   :  { %v2827_v19 = vmax.f32 %v2699_v59, 0.0  ;;  %v2828_v11 = vmax.f32 %v2700_v14, 0.0  ;;  %v2829_v18 = vmax.f32 %v2701_v55, 0.0  ;;  %v2830_v41 = vmax.f32 %v2702_v15, 0.0 }
  0xf6   :  { %v452_v4 = vmul.f32 %v10599_v42, %v10608_v63  ;;  %v2865_v58 = vadd.f32 %v2796_v37, %v2795_v31  ;;  %v453_v10 = vmul.f32 %v10600_v40, %v10608_v63  ;;  %v454_v33 = vmul.f32 %v10629_v61, %v10608_v63 }
  0xf7   :  { %v455_v49 = vmul.f32 %v10630_v36, %v10608_v63  ;;  %v2866_v34 = vadd.f32 %v2828_v11, %v2827_v19  ;;  %v484_v7 = vmul.f32 %v10599_v42, %v10611_v12  ;;  %v485_v29 = vmul.f32 %v10600_v40, %v10611_v12  ;;  %v10635_v42 = vld [vmem:[#allocation48_spill] sm:$0xff] }
  0xf8   :  { %v486_v13 = vmul.f32 %v10629_v61, %v10611_v12  ;;  %v2869_v57 = vadd.f32 %v2865_v58, %v2797_v38  ;;  %v487_v50 = vmul.f32 %v10630_v36, %v10611_v12  ;;  %v723_v53 = vmul.f32 %v10604_v24, %v10612_v22 }
  0xf9   :  { %v724_v27 = vmul.f32 %v10605_v30, %v10612_v22  ;;  %v2870_v44 = vadd.f32 %v2866_v34, %v2829_v18  ;;  %v725_v28 = vmul.f32 %v10631_v16, %v10612_v22  ;;  %v726_v60 = vmul.f32 %v10632_v52, %v10612_v22 }
  0xfa   :  { %v755_v59 = vmul.f32 %v10604_v24, %v10615_v8  ;;  %v2873_v14 = vadd.f32 %v2869_v57, %v2798_v21  ;;  %v756_v55 = vmul.f32 %v10605_v30, %v10615_v8  ;;  %v757_v15 = vmul.f32 %v10631_v16, %v10615_v8  ;;  %v10633_v57 = vld [vmem:[#allocation46_spill] sm:$0xff]  ;;  %v10634_v24 = vld [vmem:[#allocation47_spill] sm:$0xff] }
  0xfb   :  { %v758_v31 = vmul.f32 %v10632_v52, %v10615_v8  ;;  %v2874_v37 = vadd.f32 %v2870_v44, %v2830_v41  ;;  %v851_v38 = vadd.f32 %v723_v53, %v452_v4  ;;  %v852_v19 = vadd.f32 %v724_v27, %v453_v10  ;;  %v10636_v41 = vld [vmem:[#allocation49_spill] sm:$0xff] }
  0xfc   :  { %v853_v11 = vadd.f32 %v725_v28, %v454_v33  ;;  %v2877_v18 = vmul.f32 0.25, %v2873_v14  ;;  %v854_v58 = vadd.f32 %v726_v60, %v455_v49  ;;  %v883_v34 = vadd.f32 %v755_v59, %v484_v7  ;;  %v10637_v59 = vld [vmem:[#allocation50_spill] sm:$0xff] }
  0xfd   :  { %v884_v46 = vadd.f32 %v756_v55, %v485_v29  ;;  %v2878_v47 = vmul.f32 0.25, %v2874_v37  ;;  %v885_v51 = vadd.f32 %v757_v15, %v486_v13  ;;  %v886_v21 = vadd.f32 %v758_v31, %v487_v50 }
  0xfe   :  { %v1283_v30 = vmul.f32 %v10633_v57, %v10616_v25  ;;  %v1284_v40 = vmul.f32 %v10634_v24, %v10616_v25  ;;  %v1285_v8 = vmul.f32 %v10635_v42, %v10616_v25  ;;  %v1286_v4 = vmul.f32 %v10636_v41, %v10616_v25 }
  0xff   :  { %v1315_v10 = vmul.f32 %v10633_v57, %v10621_v39  ;;  %v7524_v33 = vpack.c.bf16 %v2878_v47, %v2877_v18  ;;  %v1316_v49 = vmul.f32 %v10634_v24, %v10621_v39  ;;  %v1317_v7 = vmul.f32 %v10635_v42, %v10621_v39  ;;  %v10638_v24 = vld [vmem:[#allocation51_spill] sm:$0xff]  ;;  %v10639_v42 = vld [vmem:[#allocation53_spill] sm:$0xff] }
 0x100   :  { %v1318_v29 = vmul.f32 %v10636_v41, %v10621_v39  ;;  %v1411_v13 = vadd.f32 %v1283_v30, %v851_v38  ;;  %v1412_v50 = vadd.f32 %v1284_v40, %v852_v19  ;;  %v1413_v53 = vadd.f32 %v1285_v8, %v853_v11  ;;  %v10640_v30 = vld [vmem:[#allocation54_spill] sm:$0xff] }
 0x101   :  { %v1414_v27 = vadd.f32 %v1286_v4, %v854_v58  ;;  %3190 = vmatprep.subr.bf16.mxu0 %v7524_v33  ;;  %v1443_v44 = vadd.f32 %v1315_v10, %v883_v34  ;;  %v1444_v28 = vadd.f32 %v1316_v49, %v884_v46  ;;  %v1445_v60 = vadd.f32 %v1317_v7, %v885_v51  ;;  %v10641_v4 = vld [vmem:[#allocation39_spill] sm:$0xff]  ;;  %v10642_v49 = vld [vmem:[#allocation38_spill] sm:$0xff] }
 0x102   :  { %v1446_v47 = vadd.f32 %v1318_v29, %v886_v21  ;;  %v1843_v14 = vmul.f32 %v10637_v59, %v10622_v0  ;;  %v1844_v55 = vmul.f32 %v10638_v24, %v10622_v0  ;;  %v1845_v15 = vmul.f32 %v10639_v42, %v10622_v0  ;;  %3191 = vmatpush1.bf16.msra.mxu0 %v10613_v48 }
 0x103   :  { %v1846_v40 = vmul.f32 %v10640_v30, %v10622_v0  ;;  %v1875_v8 = vmul.f32 %v10637_v59, %v7103_v32  ;;  %v1876_v31 = vmul.f32 %v10638_v24, %v7103_v32  ;;  %v1877_v37 = vmul.f32 %v10639_v42, %v7103_v32  ;;  %3192 = vmatprep.subr.bf16.mxu0 %v7391_v6  ;;  %v10643_v24 = vld [vmem:[#allocation44_spill] sm:$0xff]  ;;  %v10644_v42 = vld [vmem:[#allocation45_spill] sm:$0xff] }
 0x104   :  { %v1878_v38 = vmul.f32 %v10640_v30, %v7103_v32  ;;  %v1971_v19 = vadd.f32 %v1843_v14, %v1411_v13  ;;  %v1972_v11 = vadd.f32 %v1844_v55, %v1412_v50  ;;  %v1973_v18 = vadd.f32 %v1845_v15, %v1413_v53 }
 0x105   :  { %v1974_v58 = vadd.f32 %v1846_v40, %v1414_v27  ;;  %v2003_v34 = vadd.f32 %v1875_v8, %v1443_v44  ;;  %v2004_v46 = vadd.f32 %v1876_v31, %v1444_v28  ;;  %v2005_v51 = vadd.f32 %v1877_v37, %v1445_v60 }
 0x106   :  { %v2006_v21 = vadd.f32 %v1878_v38, %v1446_v47  ;;  %v2119_v57 = vmul.f32 %v7219_v2, %v10629_v61  ;;  %v2120_v41 = vmul.f32 %v7219_v2, %v10630_v36  ;;  %v2121_v10 = vmul.f32 %v7219_v2, %v10641_v4  ;;  %3193 = vmatpush1.bf16.msra.mxu0 %v7349_v3 }
 0x107   :  { %v2122_v7 = vmul.f32 %v7219_v2, %v10642_v49  ;;  %v2151_v29 = vmul.f32 %v7235_v9, %v10629_v61  ;;  %v2152_v13 = vmul.f32 %v7235_v9, %v10630_v36  ;;  %v2153_v50 = vmul.f32 %v7235_v9, %v10641_v4 }
 0x108   :  { %v2154_v53 = vmul.f32 %v7235_v9, %v10642_v49  ;;  %v2247_v27 = vadd.f32 %v2119_v57, %v1971_v19  ;;  %v2248_v44 = vadd.f32 %v2120_v41, %v1972_v11  ;;  %v2249_v28 = vadd.f32 %v2121_v10, %v1973_v18 }
 0x109   :  { %v2250_v60 = vadd.f32 %v2122_v7, %v1974_v58  ;;  %v2279_v47 = vadd.f32 %v2151_v29, %v2003_v34  ;;  %v2280_v59 = vadd.f32 %v2152_v13, %v2004_v46  ;;  %v2281_v14 = vadd.f32 %v2153_v50, %v2005_v51 }
 0x10a   :  { %v2282_v3 = vadd.f32 %v2154_v53, %v2006_v21  ;;  %v2395_v61 = vmul.f32 %v7148_v20, %v10631_v16  ;;  %v2396_v36 = vmul.f32 %v7148_v20, %v10632_v52  ;;  %v2397_v55 = vmul.f32 %v7148_v20, %v10643_v24 }
 0x10b   :  { %v2398_v15 = vmul.f32 %v7148_v20, %v10644_v42  ;;  %v2427_v30 = vmul.f32 %v7268_v56, %v10631_v16  ;;  %v2428_v40 = vmul.f32 %v7268_v56, %v10632_v52  ;;  %v2429_v8 = vmul.f32 %v7268_v56, %v10643_v24 }
 0x10c   :  { %v2430_v31 = vmul.f32 %v7268_v56, %v10644_v42  ;;  %v2523_v37 = vadd.f32 %v2395_v61, %v2247_v27  ;;  %v2524_v38 = vadd.f32 %v2396_v36, %v2248_v44  ;;  %v2525_v19 = vadd.f32 %v2397_v55, %v2249_v28 }
 0x10d   :  { %v2526_v11 = vadd.f32 %v2398_v15, %v2250_v60  ;;  %v2555_v18 = vadd.f32 %v2427_v30, %v2279_v47  ;;  %v2556_v58 = vadd.f32 %v2428_v40, %v2280_v59  ;;  %v2557_v34 = vadd.f32 %v2429_v8, %v2281_v14 }
 0x10e   :  { %v2558_v46 = vadd.f32 %v2430_v31, %v2282_v3  ;;  %v2675_v51 = vadd.f32 %v7450_v35, %v2523_v37  ;;  %v2676_v16 = vadd.f32 %v7450_v35, %v2524_v38  ;;  %v2677_v52 = vadd.f32 %v7450_v35, %v2525_v19 }
 0x10f   :  { %v2678_v21 = vadd.f32 %v7450_v35, %v2526_v11  ;;  %v2707_v57 = vadd.f32 %v7466_v45, %v2555_v18  ;;  %v2708_v41 = vadd.f32 %v7466_v45, %v2556_v58  ;;  %v2709_v10 = vadd.f32 %v7466_v45, %v2557_v34  ;;  %v10645_v11 = vld [vmem:[#allocation85_spill] sm:$0xff] }
 0x110   :  { %v2710_v7 = vadd.f32 %v7466_v45, %v2558_v46  ;;  %v2803_v29 = vmax.f32 %v2675_v51, 0.0  ;;  %v2804_v13 = vmax.f32 %v2676_v16, 0.0  ;;  %v2805_v50 = vmax.f32 %v2677_v52, 0.0 }
 0x111   :  { %v2806_v53 = vmax.f32 %v2678_v21, 0.0  ;;  %v2835_v27 = vmax.f32 %v2707_v57, 0.0  ;;  %v2836_v44 = vmax.f32 %v2708_v41, 0.0  ;;  %v2837_v28 = vmax.f32 %v2709_v10, 0.0 }
 0x112   :  { %v2838_v60 = vmax.f32 %v2710_v7, 0.0  ;;  %v2911_v47 = vadd.f32 %v2804_v13, %v2803_v29  ;;  %v448_v59 = vmul.f32 %v6390_v26, %v10608_v63  ;;  %v449_v14 = vmul.f32 %v6340_v5, %v10608_v63 }
 0x113   :  { %v450_v3 = vmul.f32 %v10596_v17, %v10608_v63  ;;  %v2912_v61 = vadd.f32 %v2836_v44, %v2835_v27  ;;  %v451_v36 = vmul.f32 %v10598_v54, %v10608_v63  ;;  %v480_v55 = vmul.f32 %v6390_v26, %v10611_v12  ;;  %v10648_v44 = vld [vmem:[#allocation64_spill] sm:$0xff] }
 0x114   :  { %v481_v15 = vmul.f32 %v6340_v5, %v10611_v12  ;;  %v2915_v30 = vadd.f32 %v2911_v47, %v2805_v50  ;;  %v482_v40 = vmul.f32 %v10596_v17, %v10611_v12  ;;  %v483_v8 = vmul.f32 %v10598_v54, %v10611_v12  ;;  %v10646_v50 = vld [vmem:[#allocation61_spill] sm:$0xff] }
 0x115   :  { %v719_v31 = vmul.f32 %v10587_v23, %v10612_v22  ;;  %v2916_v37 = vadd.f32 %v2912_v61, %v2837_v28  ;;  %v720_v38 = vmul.f32 %v10588_v43, %v10612_v22  ;;  %v721_v26 = vmul.f32 %v10602_v62, %v10612_v22 }
 0x116   :  { %v722_v5 = vmul.f32 %v10603_v1, %v10612_v22  ;;  %v2919_v19 = vadd.f32 %v2915_v30, %v2806_v53  ;;  %v751_v18 = vmul.f32 %v10587_v23, %v10645_v11  ;;  %v752_v58 = vmul.f32 %v10588_v43, %v10645_v11  ;;  %v10647_v53 = vld [vmem:[#allocation63_spill] sm:$0xff] }
 0x117   :  { %v753_v34 = vmul.f32 %v10602_v62, %v10645_v11  ;;  %v2920_v46 = vadd.f32 %v2916_v37, %v2838_v60  ;;  %v754_v51 = vmul.f32 %v10603_v1, %v10645_v11  ;;  %v847_v16 = vadd.f32 %v719_v31, %v448_v59  ;;  %v10649_v60 = vld [vmem:[#allocation65_spill] sm:$0xff] }
 0x118   :  { %v848_v52 = vadd.f32 %v720_v38, %v449_v14  ;;  %v2923_v21 = vmul.f32 0.25, %v2919_v19  ;;  %v849_v57 = vadd.f32 %v721_v26, %v450_v3  ;;  %v850_v41 = vadd.f32 %v722_v5, %v451_v36  ;;  %v4915_v59 = vld [vmem:[%s10160_s9 + $0xe8] sm:$0xff]  ;;  %v10651_v19 = vld [vmem:[#allocation66_spill] sm:$0xff] }
 0x119   :  { %v879_v10 = vadd.f32 %v751_v18, %v480_v55  ;;  %v2924_v7 = vmul.f32 0.25, %v2920_v46  ;;  %v880_v29 = vadd.f32 %v752_v58, %v481_v15  ;;  %v881_v13 = vadd.f32 %v753_v34, %v482_v40  ;;  %5065 = vperm.xlu0 %5901, %v4915_v59   ;;  %v3756_v55 = vld [vmem:[%s10158_s7 + $0x140] sm:$0xff]  ;;  %v10656_v59 = vld [vmem:[#allocation34_spill] sm:$0xff] }
 0x11a   :  { %v882_v23 = vadd.f32 %v754_v51, %v483_v8  ;;  %v1279_v43 = vmul.f32 %v10646_v50, %v10616_v25  ;;  %v1280_v27 = vmul.f32 %v10647_v53, %v10616_v25  ;;  %v1281_v28 = vmul.f32 %v10648_v44, %v10616_v25  ;;  %3982 = vperm.xlu1 %5902, %v3756_v55   ;;  %v10652_v58 = vld [vmem:[#allocation67_spill] sm:$0xff]  ;;  %v10653_v46 = vld [vmem:[#allocation68_spill] sm:$0xff] }
 0x11b   :  { %v1282_v47 = vmul.f32 %v10649_v60, %v10616_v25  ;;  %v7635_v14 = vpack.c.bf16 %v2924_v7, %v2923_v21  ;;  %v1311_v3 = vmul.f32 %v10646_v50, %v10621_v39  ;;  %v1312_v61 = vmul.f32 %v10647_v53, %v10621_v39 }
 0x11c   :  { %v1313_v36 = vmul.f32 %v10648_v44, %v10621_v39  ;;  %v1314_v15 = vmul.f32 %v10649_v60, %v10621_v39  ;;  %v1407_v30 = vadd.f32 %v1279_v43, %v847_v16  ;;  %v1408_v40 = vadd.f32 %v1280_v27, %v848_v52  ;;  %v10654_v16 = vld [vmem:[#allocation69_spill] sm:$0xff]  ;;  %v10655_v60 = vld [vmem:[#allocation35_spill] sm:$0xff] }
 0x11d   :  { %10650 = vst [vmem:[#allocation18_spill] sm:$0xff] %v7635_v14  ;;  %v1409_v8 = vadd.f32 %v1281_v28, %v849_v57  ;;  %3263 = vmatprep.subr.bf16.mxu1 %v7635_v14  ;;  %v1410_v31 = vadd.f32 %v1282_v47, %v850_v41  ;;  %v1439_v37 = vadd.f32 %v1311_v3, %v879_v10 }
 0x11e   :  { %v1440_v38 = vadd.f32 %v1312_v61, %v880_v29  ;;  %v1441_v26 = vadd.f32 %v1313_v36, %v881_v13  ;;  %v1442_v5 = vadd.f32 %v1314_v15, %v882_v23  ;;  %v1839_v18 = vmul.f32 %v10651_v19, %v10622_v0 }
 0x11f   :  { %v1840_v34 = vmul.f32 %v10652_v58, %v10622_v0  ;;  %v1841_v51 = vmul.f32 %v10653_v46, %v10622_v0  ;;  %v1842_v52 = vmul.f32 %v10654_v16, %v10622_v0  ;;  %v1871_v21 = vmul.f32 %v10651_v19, %v7103_v32  ;;  %v10657_v19 = vld [vmem:[#allocation40_spill] sm:$0xff] }
 0x120   :  { %v1872_v57 = vmul.f32 %v10652_v58, %v7103_v32  ;;  %v1873_v41 = vmul.f32 %v10653_v46, %v7103_v32  ;;  %v1874_v10 = vmul.f32 %v10654_v16, %v7103_v32  ;;  %v1967_v7 = vadd.f32 %v1839_v18, %v1407_v30  ;;  %v10658_v58 = vld [vmem:[#allocation41_spill] sm:$0xff] }
 0x121   :  { %v1968_v29 = vadd.f32 %v1840_v34, %v1408_v40  ;;  %v1969_v13 = vadd.f32 %v1841_v51, %v1409_v8  ;;  %v1970_v23 = vadd.f32 %v1842_v52, %v1410_v31  ;;  %v1999_v50 = vadd.f32 %v1871_v21, %v1439_v37 }
 0x122   :  { %v2000_v43 = vadd.f32 %v1872_v57, %v1440_v38  ;;  %v2001_v53 = vadd.f32 %v1873_v41, %v1441_v26  ;;  %v2002_v27 = vadd.f32 %v1874_v10, %v1442_v5  ;;  %v2115_v44 = vmul.f32 %v7219_v2, %v10596_v17 }
 0x123   :  { %v2116_v28 = vmul.f32 %v7219_v2, %v10598_v54  ;;  %v2117_v47 = vmul.f32 %v7219_v2, %v10655_v60  ;;  %v2118_v3 = vmul.f32 %v7219_v2, %v10656_v59  ;;  %v2147_v61 = vmul.f32 %v7235_v9, %v10596_v17 }
 0x124   :  { %v2148_v36 = vmul.f32 %v7235_v9, %v10598_v54  ;;  %v2149_v55 = vmul.f32 %v7235_v9, %v10655_v60  ;;  %v2150_v15 = vmul.f32 %v7235_v9, %v10656_v59  ;;  %v2243_v30 = vadd.f32 %v2115_v44, %v1967_v7 }
 0x125   :  { %v2244_v40 = vadd.f32 %v2116_v28, %v1968_v29  ;;  %v2245_v8 = vadd.f32 %v2117_v47, %v1969_v13  ;;  %v2246_v31 = vadd.f32 %v2118_v3, %v1970_v23  ;;  %v2275_v37 = vadd.f32 %v2147_v61, %v1999_v50 }
 0x126   :  { %v2276_v38 = vadd.f32 %v2148_v36, %v2000_v43  ;;  %v2277_v26 = vadd.f32 %v2149_v55, %v2001_v53  ;;  %v2278_v5 = vadd.f32 %v2150_v15, %v2002_v27  ;;  %v2391_v17 = vmul.f32 %v7148_v20, %v10602_v62 }
 0x127   :  { %v2392_v54 = vmul.f32 %v7148_v20, %v10603_v1  ;;  %v2393_v18 = vmul.f32 %v7148_v20, %v10657_v19  ;;  %v2394_v34 = vmul.f32 %v7148_v20, %v10658_v58  ;;  %v2423_v46 = vmul.f32 %v7268_v56, %v10602_v62 }
 0x128   :  { %v2424_v51 = vmul.f32 %v7268_v56, %v10603_v1  ;;  %v2425_v16 = vmul.f32 %v7268_v56, %v10657_v19  ;;  %v2426_v52 = vmul.f32 %v7268_v56, %v10658_v58  ;;  %v2519_v21 = vadd.f32 %v2391_v17, %v2243_v30  ;;  %v10685_v56 = vld [vmem:[#allocation22_spill] sm:$0xff] }
 0x129   :  { %v2520_v57 = vadd.f32 %v2392_v54, %v2244_v40  ;;  %v2521_v41 = vadd.f32 %v2393_v18, %v2245_v8  ;;  %v2522_v10 = vadd.f32 %v2394_v34, %v2246_v31  ;;  %v2551_v7 = vadd.f32 %v2423_v46, %v2275_v37  ;;  %v10659_v40 = vld [vmem:[#allocation71_spill] sm:$0xff]  ;;  %v10662_v54 = vld [vmem:[#allocation77_spill] sm:$0xff] }
 0x12a   :  { %v2552_v29 = vadd.f32 %v2424_v51, %v2276_v38  ;;  %v2553_v13 = vadd.f32 %v2425_v16, %v2277_v26  ;;  %v2554_v23 = vadd.f32 %v2426_v52, %v2278_v5  ;;  %v2671_v50 = vadd.f32 %v7450_v35, %v2519_v21  ;;  %v10660_v38 = vld [vmem:[#allocation72_spill] sm:$0xff]  ;;  %v10661_v5 = vld [vmem:[#allocation73_spill] sm:$0xff]  ;;  %v10663_v16 = vld [vmem:[#allocation14_spill] sm:$0xff] }
 0x12b   :  { %v2672_v62 = vadd.f32 %v7450_v35, %v2520_v57  ;;  %v2673_v1 = vadd.f32 %v7450_v35, %v2521_v41  ;;  %v2674_v43 = vadd.f32 %v7450_v35, %v2522_v10  ;;  %v2703_v53 = vadd.f32 %v7466_v45, %v2551_v7  ;;  %v10664_v52 = vld [vmem:[#allocation56_spill] sm:$0xff]  ;;  %v10666_v10 = vld [vmem:[#allocation57_spill] sm:$0xff] }
 0x12c   :  { %v2704_v27 = vadd.f32 %v7466_v45, %v2552_v29  ;;  %v2705_v44 = vadd.f32 %v7466_v45, %v2553_v13  ;;  %v2706_v28 = vadd.f32 %v7466_v45, %v2554_v23  ;;  %v2799_v60 = vmax.f32 %v2671_v50, 0.0  ;;  %v10665_v57 = vld [vmem:[#allocation52_spill] sm:$0xff]  ;;  %v10667_v13 = vld [vmem:[#allocation62_spill] sm:$0xff] }
 0x12d   :  { %v2800_v47 = vmax.f32 %v2672_v62, 0.0  ;;  %v2801_v59 = vmax.f32 %v2673_v1, 0.0  ;;  %v2802_v3 = vmax.f32 %v2674_v43, 0.0  ;;  %v2831_v61 = vmax.f32 %v2703_v53, 0.0  ;;  %v10668_v50 = vld [vmem:[#allocation70_spill] sm:$0xff]  ;;  %v10680_v35 = vld [vmem:[#allocation84_spill] sm:$0xff] }
 0x12e   :  { %v2832_v36 = vmax.f32 %v2704_v27, 0.0  ;;  %v2833_v55 = vmax.f32 %v2705_v44, 0.0  ;;  %v2834_v15 = vmax.f32 %v2706_v28, 0.0  ;;  %v392_v8 = vmul.f32 %v10641_v4, %v10659_v40  ;;  %v10669_v44 = vld [vmem:[#allocation76_spill] sm:$0xff] }
 0x12f   :  { %v2887_v30 = vadd.f32 %v2800_v47, %v2799_v60  ;;  %v393_v31 = vmul.f32 %v10642_v49, %v10659_v40  ;;  %v394_v26 = vmul.f32 %v10660_v38, %v10659_v40  ;;  %v395_v17 = vmul.f32 %v10661_v5, %v10659_v40 }
 0x130   :  { %v2888_v37 = vadd.f32 %v2832_v36, %v2831_v61  ;;  %v424_v19 = vmul.f32 %v10641_v4, %v10662_v54  ;;  %v425_v58 = vmul.f32 %v10642_v49, %v10662_v54  ;;  %v426_v34 = vmul.f32 %v10660_v38, %v10662_v54 }
 0x131   :  { %v2891_v18 = vadd.f32 %v2887_v30, %v2801_v59  ;;  %v427_v46 = vmul.f32 %v10661_v5, %v10662_v54  ;;  %v7723_v21 = vrot.slane %v10664_v52, %v10663_v16  ;;  %v7727_v41 = vrot.slane %v10665_v57, %v10663_v16 }
 0x132   :  { %v2892_v51 = vadd.f32 %v2888_v37, %v2833_v55  ;;  %v7731_v7 = vrot.slane %v10666_v10, %v10663_v16  ;;  %v7735_v23 = vrot.slane %v10667_v13, %v10663_v16  ;;  %v663_v62 = vmul.f32 %v10643_v24, %v10668_v50  ;;  %v6059_v10 = vld [vmem:[%s10151_s0 + $0x18] sm:$0xff] }
 0x133   :  { %v2895_v29 = vadd.f32 %v2891_v18, %v2802_v3  ;;  %v664_v1 = vmul.f32 %v10644_v42, %v10668_v50  ;;  %v665_v53 = vmul.f32 %v7723_v21, %v10668_v50  ;;  %v666_v27 = vmul.f32 %v7727_v41, %v10668_v50  ;;  %v10671_v50 = vld [vmem:[#allocation10_spill] sm:$0xff] }
 0x134   :  { %v2896_v43 = vadd.f32 %v2892_v51, %v2834_v15  ;;  %v695_v28 = vmul.f32 %v10643_v24, %v10669_v44  ;;  %v696_v47 = vmul.f32 %v10644_v42, %v10669_v44  ;;  %v697_v59 = vmul.f32 %v7723_v21, %v10669_v44 }
 0x135   :  { %v2899_v60 = vmul.f32 0.25, %v2895_v29  ;;  %v698_v3 = vmul.f32 %v7727_v41, %v10669_v44  ;;  %v791_v36 = vadd.f32 %v663_v62, %v392_v8  ;;  %v792_v55 = vadd.f32 %v664_v1, %v393_v31  ;;  %v10670_v29 = vld [vmem:[#allocation12_spill] sm:$0xff]  ;;  %v10672_v31 = vld [vmem:[#allocation11_spill] sm:$0xff] }
 0x136   :  { %v2900_v61 = vmul.f32 0.25, %v2896_v43  ;;  %v793_v15 = vadd.f32 %v665_v53, %v394_v26  ;;  %v794_v30 = vadd.f32 %v666_v27, %v395_v17  ;;  %v823_v37 = vadd.f32 %v695_v28, %v424_v19  ;;  %v3761_v8 = vld [vmem:[%s10158_s7 + $0x168] sm:$0xff] }
 0x137   :  { %v824_v18 = vadd.f32 %v696_v47, %v425_v58  ;;  %v825_v51 = vadd.f32 %v697_v59, %v426_v34  ;;  %v826_v57 = vadd.f32 %v698_v3, %v427_v46  ;;  %v974_v48 = vrot.slane %v6059_v10, %v10670_v29  ;;  %v10673_v17 = vld [vmem:[#allocation13_spill] sm:$0xff]  ;;  %v10674_v34 = vld [vmem:[#allocation15_spill] sm:$0xff]  ;;  %4007 = vperm.xlu0 %5901, %v3761_v8   ;;  %v10675_v43 = vld [vmem:[#allocation16_spill] sm:$0xff] }
 0x138   :  { %v7753_v52 = vpack.c.bf16 %v2900_v61, %v2899_v60  ;;  %v978_v54 = vrot.slane %v6059_v10, %v10671_v50  ;;  %v982_v26 = vrot.slane %v6059_v10, %v10672_v31  ;;  %v986_v19 = vrot.slane %v6059_v10, %v10673_v17  ;;  %v10676_v27 = vld [vmem:[#allocation17_spill] sm:$0xff]  ;;  %v10678_v8 = vld [vmem:[#allocation79_spill] sm:$0xff] }
 0x139   :  { %v1534_v58 = vrot.slane %v6059_v10, %v10663_v16  ;;  %v1538_v46 = vrot.slane %v6059_v10, %v10674_v34  ;;  %v7769_v62 = vrot.slane %v974_v48, %v10670_v29  ;;  %v1542_v53 = vrot.slane %v6059_v10, %v10675_v43  ;;  %v4894_v48 = vld [vmem:[%s10160_s9 + $0x40] sm:$0xff] }
 0x13a   :  { %3264 = vmatpush1.bf16.msra.mxu1 %v7753_v52  ;;  %v7772_v1 = vrot.slane %v978_v54, %v10670_v29  ;;  %v1546_v28 = vrot.slane %v6059_v10, %v10676_v27  ;;  %v7777_v60 = vrot.slane %v982_v26, %v10670_v29  ;;  %v7780_v47 = vrot.slane %v986_v19, %v10670_v29  ;;  %v10677_v54 = vld [vmem:[#allocation80_spill] sm:$0xff]  ;;  %v10679_v34 = vld [vmem:[#allocation55_spill] sm:$0xff] }
 0x13b   :  { %v7783_v59 = vrot.slane %v1534_v58, %v10663_v16  ;;  %v7786_v3 = vrot.slane %v1538_v46, %v10663_v16  ;;  %3194 = vmatprep.subr.bf16.mxu0 %v7753_v52  ;;  %v1223_v61 = vmul.f32 %v7769_v62, %v10677_v54  ;;  %v1255_v26 = vmul.f32 %v7769_v62, %v10678_v8 }
 0x13c   :  { %v1224_v10 = vmul.f32 %v7772_v1, %v10677_v54  ;;  %v1256_v19 = vmul.f32 %v7772_v1, %v10678_v8  ;;  %3195 = vmatpush1.bf16.msra.mxu0 %v7524_v33  ;;  %v1225_v58 = vmul.f32 %v7777_v60, %v10677_v54  ;;  %v1226_v46 = vmul.f32 %v7780_v47, %v10677_v54 }
 0x13d   :  { %v1257_v27 = vmul.f32 %v7777_v60, %v10678_v8  ;;  %v1258_v43 = vmul.f32 %v7780_v47, %v10678_v8  ;;  %3196 = vmatprep.subr.bf16.mxu0 %v10679_v34  ;;  %v1351_v17 = vadd.f32 %v1223_v61, %v791_v36  ;;  %v1383_v50 = vadd.f32 %v1255_v26, %v823_v37  ;;  %v10682_v37 = vld [vmem:[#allocation90_spill] sm:$0xff] }
 0x13e   :  { %v1352_v31 = vadd.f32 %v1224_v10, %v792_v55  ;;  %v1384_v44 = vadd.f32 %v1256_v19, %v824_v18  ;;  %4960 = vperm.xlu1 %5902, %v4894_v48   ;;  %v1353_v33 = vadd.f32 %v1225_v58, %v793_v15  ;;  %v1354_v29 = vadd.f32 %v1226_v46, %v794_v30  ;;  %v10681_v55 = vld [vmem:[#allocation87_spill] sm:$0xff]  ;;  %v10683_v46 = vld [vmem:[#allocation74_spill] sm:$0xff] }
 0x13f   :  { %v1385_v40 = vadd.f32 %v1257_v27, %v825_v51  ;;  %v1386_v13 = vadd.f32 %v1258_v43, %v826_v57  ;;  %v7811_v45 = vrot.slane %v1542_v53, %v10663_v16  ;;  %v7814_v54 = vrot.slane %v1546_v28, %v10663_v16 }
 0x140   :  { %v1783_v8 = vmul.f32 %v7783_v59, %v10680_v35  ;;  %v1784_v36 = vmul.f32 %v7786_v3, %v10680_v35  ;;  %3197 = vmatpush1.bf16.msra.mxu0 %v7391_v6  ;;  %v1815_v15 = vmul.f32 %v7783_v59, %v10681_v55  ;;  %v1816_v30 = vmul.f32 %v7786_v3, %v10681_v55 }
 0x141   :  { %v2059_v18 = vmul.f32 %v10682_v37, %v10660_v38  ;;  %v2060_v51 = vmul.f32 %v10682_v37, %v10661_v5  ;;  %3198 = vmatprep.subr.bf16.mxu0 %v7635_v14  ;;  %v1785_v57 = vmul.f32 %v7811_v45, %v10680_v35  ;;  %v1786_v6 = vmul.f32 %v7814_v54, %v10680_v35  ;;  %v10684_v35 = vld [vmem:[#allocation75_spill] sm:$0xff] }
 0x142   :  { %v1817_v43 = vmul.f32 %v7811_v45, %v10681_v55  ;;  %v1818_v53 = vmul.f32 %v7814_v54, %v10681_v55  ;;  %v1911_v27 = vadd.f32 %v1783_v8, %v1351_v17  ;;  %v1912_v28 = vadd.f32 %v1784_v36, %v1352_v31 }
 0x143   :  { %v1943_v48 = vadd.f32 %v1815_v15, %v1383_v50  ;;  %v1944_v61 = vadd.f32 %v1816_v30, %v1384_v44  ;;  %v1913_v10 = vadd.f32 %v1785_v57, %v1353_v33  ;;  %v1914_v26 = vadd.f32 %v1786_v6, %v1354_v29  ;;  %v10686_v15 = vld [vmem:[#allocation92_spill] sm:$0xff] }
 0x144   :  { %v1945_v19 = vadd.f32 %v1817_v43, %v1385_v40  ;;  %v1946_v58 = vadd.f32 %v1818_v53, %v1386_v13  ;;  %3199 = vmatpush1.bf16.msra.mxu0 %v7753_v52  ;;  %v2061_v14 = vmul.f32 %v10682_v37, %v10683_v46  ;;  %v2062_v16 = vmul.f32 %v10682_v37, %v10684_v35 }
 0x145   :  { %v2091_v20 = vmul.f32 %v10685_v56, %v10660_v38  ;;  %v2092_v31 = vmul.f32 %v10685_v56, %v10661_v5  ;;  %v2093_v50 = vmul.f32 %v10685_v56, %v10683_v46  ;;  %v2094_v40 = vmul.f32 %v10685_v56, %v10684_v35  ;;  %v10689_v56 = vld [vmem:[#allocation58_spill] sm:$0xff] }
 0x146   :  { %v2187_v13 = vadd.f32 %v2059_v18, %v1911_v27  ;;  %v2188_v44 = vadd.f32 %v2060_v51, %v1912_v28  ;;  %v2189_v52 = vadd.f32 %v2061_v14, %v1913_v10  ;;  %v2190_v29 = vadd.f32 %v2062_v16, %v1914_v26  ;;  %v10687_v18 = vld [vmem:[#allocation88_spill] sm:$0xff] }
 0x147   :  { %v2219_v17 = vadd.f32 %v2091_v20, %v1943_v48  ;;  %v2220_v8 = vadd.f32 %v2092_v31, %v1944_v61  ;;  %v2221_v33 = vadd.f32 %v2093_v50, %v1945_v19  ;;  %v2222_v36 = vadd.f32 %v2094_v40, %v1946_v58  ;;  %v10688_v58 = vld [vmem:[#allocation25_spill] sm:$0xff] }
 0x148   :  { %v2335_v30 = vmul.f32 %v10686_v15, %v7723_v21  ;;  %v2336_v57 = vmul.f32 %v10686_v15, %v7727_v41  ;;  %v2337_v6 = vmul.f32 %v10686_v15, %v7731_v7  ;;  %v2338_v43 = vmul.f32 %v10686_v15, %v7735_v23 }
 0x149   :  { %v2367_v14 = vmul.f32 %v10687_v18, %v7723_v21  ;;  %v2368_v20 = vmul.f32 %v10687_v18, %v7727_v41  ;;  %v2369_v16 = vmul.f32 %v10687_v18, %v7731_v7  ;;  %v2370_v51 = vmul.f32 %v10687_v18, %v7735_v23 }
 0x14a   :  { %v2463_v53 = vadd.f32 %v2335_v30, %v2187_v13  ;;  %v2464_v27 = vadd.f32 %v2336_v57, %v2188_v44  ;;  %v2465_v28 = vadd.f32 %v2337_v6, %v2189_v52  ;;  %v2466_v48 = vadd.f32 %v2338_v43, %v2190_v29 }
 0x14b   :  { %v2495_v61 = vadd.f32 %v2367_v14, %v2219_v17  ;;  %v2496_v10 = vadd.f32 %v2368_v20, %v2220_v8  ;;  %v2497_v26 = vadd.f32 %v2369_v16, %v2221_v33  ;;  %v2498_v19 = vadd.f32 %v2370_v51, %v2222_v36 }
 0x14c   :  { %v2615_v31 = vadd.f32 %v10688_v58, %v2463_v53  ;;  %v2616_v50 = vadd.f32 %v10688_v58, %v2464_v27  ;;  %v2617_v40 = vadd.f32 %v10688_v58, %v2465_v28  ;;  %v2618_v15 = vadd.f32 %v10688_v58, %v2466_v48 }
 0x14d   :  { %v2647_v37 = vadd.f32 %v10689_v56, %v2495_v61  ;;  %v2648_v18 = vadd.f32 %v10689_v56, %v2496_v10  ;;  %v2649_v13 = vadd.f32 %v10689_v56, %v2497_v26  ;;  %v2650_v44 = vadd.f32 %v10689_v56, %v2498_v19 }
 0x14e   :  { %v2743_v52 = vmax.f32 %v2615_v31, 0.0  ;;  %v2744_v29 = vmax.f32 %v2616_v50, 0.0  ;;  %v2745_v17 = vmax.f32 %v2617_v40, 0.0  ;;  %v2746_v8 = vmax.f32 %v2618_v15, 0.0 }
 0x14f   :  { %v2775_v33 = vmax.f32 %v2647_v37, 0.0  ;;  %v2776_v36 = vmax.f32 %v2648_v18, 0.0  ;;  %v2777_v30 = vmax.f32 %v2649_v13, 0.0  ;;  %v2778_v57 = vmax.f32 %v2650_v44, 0.0 }
 0x150   :  { %v2933_v6 = vadd.f32 %v2744_v29, %v2743_v52  ;;  %v456_v43 = vmul.f32 %v10641_v4, %v10608_v63  ;;  %v457_v20 = vmul.f32 %v10642_v49, %v10608_v63  ;;  %v458_v16 = vmul.f32 %v10660_v38, %v10608_v63 }
 0x151   :  { %v2934_v14 = vadd.f32 %v2776_v36, %v2775_v33  ;;  %v459_v51 = vmul.f32 %v10661_v5, %v10608_v63  ;;  %v488_v37 = vmul.f32 %v10641_v4, %v10611_v12  ;;  %v489_v15 = vmul.f32 %v10642_v49, %v10611_v12 }
 0x152   :  { %v2937_v53 = vadd.f32 %v2933_v6, %v2745_v17  ;;  %v490_v18 = vmul.f32 %v10660_v38, %v10611_v12  ;;  %v491_v28 = vmul.f32 %v10661_v5, %v10611_v12  ;;  %v727_v48 = vmul.f32 %v10643_v24, %v10612_v22 }
 0x153   :  { %v2938_v27 = vadd.f32 %v2934_v14, %v2777_v30  ;;  %v728_v61 = vmul.f32 %v10644_v42, %v10612_v22  ;;  %v729_v4 = vmul.f32 %v7723_v21, %v10612_v22  ;;  %v730_v49 = vmul.f32 %v7727_v41, %v10612_v22 }
 0x154   :  { %v2941_v10 = vadd.f32 %v2937_v53, %v2746_v8  ;;  %v759_v26 = vmul.f32 %v10643_v24, %v10645_v11  ;;  %v760_v31 = vmul.f32 %v10644_v42, %v10645_v11  ;;  %v761_v50 = vmul.f32 %v7723_v21, %v10645_v11 }
 0x155   :  { %v2942_v19 = vadd.f32 %v2938_v27, %v2778_v57  ;;  %v762_v40 = vmul.f32 %v7727_v41, %v10645_v11  ;;  %v855_v44 = vadd.f32 %v727_v48, %v456_v43  ;;  %v856_v52 = vadd.f32 %v728_v61, %v457_v20 }
 0x156   :  { %v2945_v13 = vmul.f32 0.25, %v2941_v10  ;;  %v857_v29 = vadd.f32 %v729_v4, %v458_v16  ;;  %v858_v8 = vadd.f32 %v730_v49, %v459_v51  ;;  %v887_v33 = vadd.f32 %v759_v26, %v488_v37 }
 0x157   :  { %v2946_v17 = vmul.f32 0.25, %v2942_v19  ;;  %v888_v36 = vadd.f32 %v760_v31, %v489_v15  ;;  %v889_v30 = vadd.f32 %v761_v50, %v490_v18  ;;  %v890_v24 = vadd.f32 %v762_v40, %v491_v28 }
 0x158   :  { %v1287_v57 = vmul.f32 %v7769_v62, %v10616_v25  ;;  %v1288_v42 = vmul.f32 %v7772_v1, %v10616_v25  ;;  %v1289_v14 = vmul.f32 %v7777_v60, %v10616_v25  ;;  %v1290_v43 = vmul.f32 %v7780_v47, %v10616_v25 }
 0x159   :  { %v7911_v6 = vpack.c.bf16 %v2946_v17, %v2945_v13  ;;  %v1319_v20 = vmul.f32 %v7769_v62, %v10621_v39  ;;  %v1320_v16 = vmul.f32 %v7772_v1, %v10621_v39  ;;  %v1321_v51 = vmul.f32 %v7777_v60, %v10621_v39 }
 0x15a   :  { %v1322_v53 = vmul.f32 %v7780_v47, %v10621_v39  ;;  %v1415_v37 = vadd.f32 %v1287_v57, %v855_v44  ;;  %v1416_v15 = vadd.f32 %v1288_v42, %v856_v52  ;;  %v1417_v18 = vadd.f32 %v1289_v14, %v857_v29 }
 0x15b   :  { %3265 = vmatprep.subr.bf16.mxu1 %v7911_v6  ;;  %v1418_v27 = vadd.f32 %v1290_v43, %v858_v8  ;;  %v1447_v28 = vadd.f32 %v1319_v20, %v887_v33  ;;  %v1448_v48 = vadd.f32 %v1320_v16, %v888_v36  ;;  %v1449_v62 = vadd.f32 %v1321_v51, %v889_v30 }
 0x15c   :  { %3266 = vmatpush1.bf16.msra.mxu1 %v10679_v34  ;;  %v1450_v61 = vadd.f32 %v1322_v53, %v890_v24  ;;  %v1847_v1 = vmul.f32 %v7783_v59, %v10622_v0  ;;  %v1848_v60 = vmul.f32 %v7786_v3, %v10622_v0  ;;  %v1849_v47 = vmul.f32 %v7811_v45, %v10622_v0  ;;  %v4899_v34 = vld [vmem:[%s10160_s9 + $0x68] sm:$0xff]  ;;  %v10690_v53 = vld [vmem:[#allocation91_spill] sm:$0xff] }
 0x15d   :  { %v1850_v10 = vmul.f32 %v7814_v54, %v10622_v0  ;;  %v1879_v4 = vmul.f32 %v7783_v59, %v7103_v32  ;;  %v1880_v49 = vmul.f32 %v7786_v3, %v7103_v32  ;;  %v1881_v26 = vmul.f32 %v7811_v45, %v7103_v32  ;;  %4985 = vperm.xlu0 %5901, %v4899_v34  }
 0x15e   :  { %v1882_v19 = vmul.f32 %v7814_v54, %v7103_v32  ;;  %v1975_v31 = vadd.f32 %v1847_v1, %v1415_v37  ;;  %v1976_v50 = vadd.f32 %v1848_v60, %v1416_v15  ;;  %v1977_v40 = vadd.f32 %v1849_v47, %v1417_v18  ;;  %v10691_v18 = vld [vmem:[#allocation20_spill] sm:$0xff] }
 0x15f   :  { %v1978_v13 = vadd.f32 %v1850_v10, %v1418_v27  ;;  %v2007_v44 = vadd.f32 %v1879_v4, %v1447_v28  ;;  %v2008_v59 = vadd.f32 %v1880_v49, %v1448_v48  ;;  %v2009_v52 = vadd.f32 %v1881_v26, %v1449_v62  ;;  %v10692_v26 = vld [vmem:[#allocation59_spill] sm:$0xff] }
 0x160   :  { %v2010_v29 = vadd.f32 %v1882_v19, %v1450_v61  ;;  %v2123_v17 = vmul.f32 %v7219_v2, %v10660_v38  ;;  %v2124_v3 = vmul.f32 %v7219_v2, %v10661_v5  ;;  %v2125_v45 = vmul.f32 %v7219_v2, %v10683_v46 }
 0x161   :  { %v2126_v54 = vmul.f32 %v7219_v2, %v10684_v35  ;;  %v2155_v8 = vmul.f32 %v7235_v9, %v10660_v38  ;;  %v2156_v33 = vmul.f32 %v7235_v9, %v10661_v5  ;;  %v2157_v36 = vmul.f32 %v7235_v9, %v10683_v46 }
 0x162   :  { %v2158_v30 = vmul.f32 %v7235_v9, %v10684_v35  ;;  %v2251_v24 = vadd.f32 %v2123_v17, %v1975_v31  ;;  %v2252_v57 = vadd.f32 %v2124_v3, %v1976_v50  ;;  %v2253_v42 = vadd.f32 %v2125_v45, %v1977_v40  ;;  %v10693_v50 = vld [vmem:[#allocation60_spill] sm:$0xff] }
 0x163   :  { %v2254_v14 = vadd.f32 %v2126_v54, %v1978_v13  ;;  %v2283_v43 = vadd.f32 %v2155_v8, %v2007_v44  ;;  %v2284_v20 = vadd.f32 %v2156_v33, %v2008_v59  ;;  %v2285_v16 = vadd.f32 %v2157_v36, %v2009_v52  ;;  %v7989_v36 = vld [vmem:[%s10151_s0 + $0x28] sm:$0xff] }
 0x164   :  { %v2286_v51 = vadd.f32 %v2158_v30, %v2010_v29  ;;  %v2399_v38 = vmul.f32 %v10690_v53, %v7723_v21  ;;  %v2400_v5 = vmul.f32 %v10690_v53, %v7727_v41  ;;  %v2401_v37 = vmul.f32 %v10690_v53, %v7731_v7  ;;  %10694 = vst [vmem:[#allocation19_spill] sm:$0xff] %v7989_v36  ;;  %v7994_v30 = vld [vmem:[%s10151_s0 + $0x20] sm:$0xff] }
 0x165   :  { %v2402_v15 = vmul.f32 %v10690_v53, %v7735_v23  ;;  %v2431_v27 = vmul.f32 %v10691_v18, %v7723_v21  ;;  %v2432_v28 = vmul.f32 %v10691_v18, %v7727_v41  ;;  %v2433_v48 = vmul.f32 %v10691_v18, %v7731_v7  ;;  %v10714_v53 = vld [vmem:[#allocation84_spill] sm:$0xff] }
 0x166   :  { %v2434_v62 = vmul.f32 %v10691_v18, %v7735_v23  ;;  %v2527_v61 = vadd.f32 %v2399_v38, %v2251_v24  ;;  %v2528_v1 = vadd.f32 %v2400_v5, %v2252_v57  ;;  %v2529_v60 = vadd.f32 %v2401_v37, %v2253_v42  ;;  %v10695_v42 = vld [vmem:[#allocation62_spill] sm:$0xff] }
 0x167   :  { %v2530_v47 = vadd.f32 %v2402_v15, %v2254_v14  ;;  %v2559_v10 = vadd.f32 %v2431_v27, %v2283_v43  ;;  %v2560_v4 = vadd.f32 %v2432_v28, %v2284_v20  ;;  %v2561_v34 = vadd.f32 %v2433_v48, %v2285_v16  ;;  %v10696_v43 = vld [vmem:[#allocation9_spill] sm:$0xff]  ;;  %v10697_v16 = vld [vmem:[#allocation71_spill] sm:$0xff] }
 0x168   :  { %v2562_v49 = vadd.f32 %v2434_v62, %v2286_v51  ;;  %v2679_v19 = vadd.f32 %v10692_v26, %v2527_v61  ;;  %v2680_v21 = vadd.f32 %v10692_v26, %v2528_v1  ;;  %v2681_v41 = vadd.f32 %v10692_v26, %v2529_v60  ;;  %v10698_v15 = vld [vmem:[#allocation77_spill] sm:$0xff]  ;;  %v10700_v62 = vld [vmem:[#allocation12_spill] sm:$0xff] }
 0x169   :  { %v2682_v31 = vadd.f32 %v10692_v26, %v2530_v47  ;;  %v2711_v40 = vadd.f32 %v10693_v50, %v2559_v10  ;;  %v2712_v13 = vadd.f32 %v10693_v50, %v2560_v4  ;;  %v2713_v44 = vadd.f32 %v10693_v50, %v2561_v34  ;;  %v3774_v26 = vld [vmem:[%s10158_s7 + $0x1d0] sm:$0xff] }
 0x16a   :  { %v2714_v59 = vadd.f32 %v10693_v50, %v2562_v49  ;;  %v2807_v52 = vmax.f32 %v2679_v19, 0.0  ;;  %v2808_v29 = vmax.f32 %v2680_v21, 0.0  ;;  %v2809_v17 = vmax.f32 %v2681_v41, 0.0  ;;  %v10701_v21 = vld [vmem:[#allocation14_spill] sm:$0xff]  ;;  %4072 = vperm.xlu1 %5902, %v3774_v26  }
 0x16b   :  { %v2810_v3 = vmax.f32 %v2682_v31, 0.0  ;;  %v2839_v45 = vmax.f32 %v2711_v40, 0.0  ;;  %v2840_v54 = vmax.f32 %v2712_v13, 0.0  ;;  %v2841_v8 = vmax.f32 %v2713_v44, 0.0 }
 0x16c   :  { %v2842_v33 = vmax.f32 %v2714_v59, 0.0  ;;  %v129_v24 = vcombine.high %v7994_v30, %v7994_v30  ;;  %v2935_v57 = vadd.f32 %v2808_v29, %v2807_v52  ;;  %v144_v14 = vcombine.high %v10695_v42, %v10695_v42 }
 0x16d   :  { %v153_v20 = vrot.slane %v7989_v36, %v10696_v43  ;;  %v396_v51 = vmul.f32 %v10683_v46, %v10697_v16  ;;  %v2936_v38 = vadd.f32 %v2840_v54, %v2839_v45  ;;  %v397_v37 = vmul.f32 %v10684_v35, %v10697_v16  ;;  %v10702_v45 = vld [vmem:[#allocation70_spill] sm:$0xff]  ;;  %v10707_v36 = vld [vmem:[#allocation11_spill] sm:$0xff] }
 0x16e   :  { %v143_v5 = vrot.slane %v129_v24, %v10696_v43  ;;  %v428_v27 = vmul.f32 %v10683_v46, %v10698_v15  ;;  %v2939_v28 = vadd.f32 %v2935_v57, %v2809_v17  ;;  %v8012_v61 = vrot.slane %v144_v14, %v10700_v62  ;;  %v10703_v57 = vld [vmem:[#allocation76_spill] sm:$0xff]  ;;  %v10705_v43 = vld [vmem:[#allocation10_spill] sm:$0xff] }
 0x16f   :  { %v8009_v48 = vcombine.high %v153_v20, %v153_v20  ;;  %v8015_v1 = vrot.slane %v153_v20, %v10700_v62  ;;  %v2940_v60 = vadd.f32 %v2936_v38, %v2841_v8  ;;  %v429_v4 = vmul.f32 %v10684_v35, %v10698_v15 }
 0x170   :  { %v145_v47 = vcombine.high %v143_v5, %v143_v5  ;;  %v8018_v10 = vrot.slane %v143_v5, %v10700_v62  ;;  %v2943_v34 = vadd.f32 %v2939_v28, %v2810_v3  ;;  %v398_v49 = vmul.f32 %v8012_v61, %v10697_v16 }
 0x171   :  { %10699 = vst [vmem:[#allocation21_spill] sm:$0xff] %v8009_v48  ;;  %v430_v19 = vmul.f32 %v8012_v61, %v10698_v15  ;;  %v8027_v41 = vrot.slane %v144_v14, %v10701_v21  ;;  %v2944_v31 = vadd.f32 %v2940_v60, %v2842_v33  ;;  %v8037_v52 = vrot.slane %v143_v5, %v10701_v21 }
 0x172   :  { %v8030_v40 = vrot.slane %v145_v47, %v10700_v62  ;;  %v399_v13 = vmul.f32 %v8018_v10, %v10697_v16  ;;  %v431_v44 = vmul.f32 %v8018_v10, %v10698_v15  ;;  %v2947_v59 = vmul.f32 0.25, %v2943_v34 }
 0x173   :  { %v8040_v29 = vrot.slane %v145_v47, %v10701_v21  ;;  %v8043_v17 = vrot.slane %v153_v20, %v10701_v21  ;;  %v2948_v3 = vmul.f32 0.25, %v2944_v31  ;;  %v667_v54 = vmul.f32 %v7731_v7, %v10702_v45 }
 0x174   :  { %v668_v8 = vmul.f32 %v7735_v23, %v10702_v45  ;;  %v669_v33 = vmul.f32 %v8027_v41, %v10702_v45  ;;  %v670_v24 = vmul.f32 %v8037_v52, %v10702_v45  ;;  %v699_v42 = vmul.f32 %v7731_v7, %v10703_v57 }
 0x175   :  { %v700_v14 = vmul.f32 %v7735_v23, %v10703_v57  ;;  %v701_v20 = vmul.f32 %v8027_v41, %v10703_v57  ;;  %v8059_v38 = vpack.c.bf16 %v2948_v3, %v2947_v59  ;;  %v702_v5 = vmul.f32 %v8037_v52, %v10703_v57  ;;  %v10706_v3 = vld [vmem:[#allocation18_spill] sm:$0xff] }
 0x176   :  { %v795_v28 = vadd.f32 %v667_v54, %v396_v51  ;;  %v796_v60 = vadd.f32 %v668_v8, %v397_v37  ;;  %v797_v47 = vadd.f32 %v669_v33, %v398_v49  ;;  %v798_v34 = vadd.f32 %v670_v24, %v399_v13  ;;  %v10708_v37 = vld [vmem:[#allocation13_spill] sm:$0xff]  ;;  %v10710_v54 = vld [vmem:[#allocation16_spill] sm:$0xff] }
 0x177   :  { %10704 = vst [vmem:[#allocation23_spill] sm:$0xff] %v8059_v38  ;;  %v827_v31 = vadd.f32 %v699_v42, %v428_v27  ;;  %v828_v48 = vadd.f32 %v700_v14, %v429_v4  ;;  %3267 = vmatprep.subr.bf16.mxu1 %v8059_v38  ;;  %v829_v45 = vadd.f32 %v701_v20, %v430_v19  ;;  %v10709_v4 = vld [vmem:[#allocation15_spill] sm:$0xff]  ;;  %v10711_v33 = vld [vmem:[#allocation17_spill] sm:$0xff] }
 0x178   :  { %v830_v15 = vadd.f32 %v702_v5, %v431_v44  ;;  %v990_v16 = vrot.slane %v7994_v30, %v10700_v62  ;;  %v994_v59 = vrot.slane %v7994_v30, %v10705_v43  ;;  %3268 = vmatpush1.bf16.msra.mxu1 %v10706_v3  ;;  %v998_v51 = vrot.slane %v7994_v30, %v10707_v36  ;;  %v10712_v5 = vld [vmem:[#allocation80_spill] sm:$0xff] }
 0x179   :  { %v1002_v49 = vrot.slane %v7994_v30, %v10708_v37  ;;  %v1550_v27 = vrot.slane %v7994_v30, %v10701_v21  ;;  %v1554_v19 = vrot.slane %v7994_v30, %v10709_v4  ;;  %v1558_v8 = vrot.slane %v7994_v30, %v10710_v54  ;;  %v10713_v54 = vld [vmem:[#allocation79_spill] sm:$0xff] }
 0x17a   :  { %v8078_v13 = vrot.slane %v990_v16, %v10700_v62  ;;  %v8081_v44 = vrot.slane %v994_v59, %v10700_v62  ;;  %v1562_v24 = vrot.slane %v7994_v30, %v10711_v33  ;;  %v8088_v42 = vrot.slane %v998_v51, %v10700_v62 }
 0x17b   :  { %v8091_v14 = vrot.slane %v1002_v49, %v10700_v62  ;;  %v8094_v20 = vrot.slane %v1550_v27, %v10701_v21  ;;  %v8097_v16 = vrot.slane %v1554_v19, %v10701_v21 }
 0x17c   :  { %v1227_v59 = vmul.f32 %v8078_v13, %v10712_v5  ;;  %v1228_v3 = vmul.f32 %v8081_v44, %v10712_v5  ;;  %v1259_v30 = vmul.f32 %v8078_v13, %v10713_v54  ;;  %v1260_v51 = vmul.f32 %v8081_v44, %v10713_v54 }
 0x17d   :  { %v1229_v49 = vmul.f32 %v8088_v42, %v10712_v5  ;;  %v1230_v27 = vmul.f32 %v8091_v14, %v10712_v5  ;;  %v1261_v19 = vmul.f32 %v8088_v42, %v10713_v54  ;;  %v1262_v33 = vmul.f32 %v8091_v14, %v10713_v54 }
 0x17e   :  { %v1355_v4 = vadd.f32 %v1227_v59, %v795_v28  ;;  %v1356_v37 = vadd.f32 %v1228_v3, %v796_v60  ;;  %v1387_v36 = vadd.f32 %v1259_v30, %v827_v31  ;;  %v1388_v38 = vadd.f32 %v1260_v51, %v828_v48  ;;  %v10715_v60 = vld [vmem:[#allocation90_spill] sm:$0xff] }
 0x17f   :  { %v1357_v57 = vadd.f32 %v1229_v49, %v797_v47  ;;  %v1358_v43 = vadd.f32 %v1230_v27, %v798_v34  ;;  %v1389_v62 = vadd.f32 %v1261_v19, %v829_v45  ;;  %v1390_v50 = vadd.f32 %v1262_v33, %v830_v15 }
 0x180   :  { %v8119_v5 = vrot.slane %v1558_v8, %v10701_v21  ;;  %v8122_v18 = vrot.slane %v1562_v24, %v10701_v21  ;;  %v1787_v28 = vmul.f32 %v8094_v20, %v10714_v53  ;;  %v1788_v48 = vmul.f32 %v8097_v16, %v10714_v53  ;;  %v10716_v21 = vld [vmem:[#allocation22_spill] sm:$0xff] }
 0x181   :  { %v1819_v15 = vmul.f32 %v8094_v20, %v10681_v55  ;;  %v1820_v45 = vmul.f32 %v8097_v16, %v10681_v55  ;;  %v2063_v47 = vmul.f32 %v10715_v60, %v8012_v61  ;;  %v2064_v34 = vmul.f32 %v10715_v60, %v8018_v10 }
 0x182   :  { %v1789_v31 = vmul.f32 %v8119_v5, %v10714_v53  ;;  %v1790_v8 = vmul.f32 %v8122_v18, %v10714_v53  ;;  %v1821_v26 = vmul.f32 %v8119_v5, %v10681_v55  ;;  %v1822_v33 = vmul.f32 %v8122_v18, %v10681_v55 }
 0x183   :  { %v1915_v24 = vadd.f32 %v1787_v28, %v1355_v4  ;;  %v1916_v59 = vadd.f32 %v1788_v48, %v1356_v37  ;;  %v1947_v3 = vadd.f32 %v1819_v15, %v1387_v36  ;;  %v1948_v30 = vadd.f32 %v1820_v45, %v1388_v38  ;;  %v10717_v15 = vld [vmem:[#allocation92_spill] sm:$0xff] }
 0x184   :  { %v1917_v51 = vadd.f32 %v1789_v31, %v1357_v57  ;;  %v1918_v49 = vadd.f32 %v1790_v8, %v1358_v43  ;;  %v1949_v27 = vadd.f32 %v1821_v26, %v1389_v62  ;;  %v1950_v19 = vadd.f32 %v1822_v33, %v1390_v50 }
 0x185   :  { %v2065_v54 = vmul.f32 %v10715_v60, %v8030_v40  ;;  %v2066_v53 = vmul.f32 %v10715_v60, %v8015_v1  ;;  %v2095_v9 = vmul.f32 %v10716_v21, %v8012_v61  ;;  %v2096_v55 = vmul.f32 %v10716_v21, %v8018_v10 }
 0x186   :  { %v2097_v36 = vmul.f32 %v10716_v21, %v8030_v40  ;;  %v2098_v43 = vmul.f32 %v10716_v21, %v8015_v1  ;;  %v2191_v62 = vadd.f32 %v2063_v47, %v1915_v24  ;;  %v2192_v50 = vadd.f32 %v2064_v34, %v1916_v59  ;;  %v10718_v47 = vld [vmem:[#allocation88_spill] sm:$0xff] }
 0x187   :  { %v2193_v57 = vadd.f32 %v2065_v54, %v1917_v51  ;;  %v2194_v38 = vadd.f32 %v2066_v53, %v1918_v49  ;;  %v2223_v37 = vadd.f32 %v2095_v9, %v1947_v3  ;;  %v2224_v4 = vadd.f32 %v2096_v55, %v1948_v30 }
 0x188   :  { %v2225_v28 = vadd.f32 %v2097_v36, %v1949_v27  ;;  %v2226_v48 = vadd.f32 %v2098_v43, %v1950_v19  ;;  %v2339_v45 = vmul.f32 %v10717_v15, %v8027_v41  ;;  %v2340_v31 = vmul.f32 %v10717_v15, %v8037_v52 }
 0x189   :  { %v2341_v8 = vmul.f32 %v10717_v15, %v8040_v29  ;;  %v2342_v26 = vmul.f32 %v10717_v15, %v8043_v17  ;;  %v2371_v54 = vmul.f32 %v10718_v47, %v8027_v41  ;;  %v2372_v9 = vmul.f32 %v10718_v47, %v8037_v52 }
 0x18a   :  { %v2373_v55 = vmul.f32 %v10718_v47, %v8040_v29  ;;  %v2374_v53 = vmul.f32 %v10718_v47, %v8043_v17  ;;  %v2467_v34 = vadd.f32 %v2339_v45, %v2191_v62  ;;  %v2468_v33 = vadd.f32 %v2340_v31, %v2192_v50 }
 0x18b   :  { %v2469_v24 = vadd.f32 %v2341_v8, %v2193_v57  ;;  %v2470_v59 = vadd.f32 %v2342_v26, %v2194_v38  ;;  %v2499_v3 = vadd.f32 %v2371_v54, %v2223_v37  ;;  %v2500_v30 = vadd.f32 %v2372_v9, %v2224_v4 }
 0x18c   :  { %v2501_v51 = vadd.f32 %v2373_v55, %v2225_v28  ;;  %v2502_v49 = vadd.f32 %v2374_v53, %v2226_v48  ;;  %v2619_v27 = vadd.f32 %v10688_v58, %v2467_v34  ;;  %v2620_v19 = vadd.f32 %v10688_v58, %v2468_v33 }
 0x18d   :  { %v2621_v36 = vadd.f32 %v10688_v58, %v2469_v24  ;;  %v2622_v43 = vadd.f32 %v10688_v58, %v2470_v59  ;;  %v2651_v15 = vadd.f32 %v10689_v56, %v2499_v3  ;;  %v2652_v47 = vadd.f32 %v10689_v56, %v2500_v30 }
 0x18e   :  { %v2653_v62 = vadd.f32 %v10689_v56, %v2501_v51  ;;  %v2654_v50 = vadd.f32 %v10689_v56, %v2502_v49  ;;  %v2747_v57 = vmax.f32 %v2619_v27, 0.0  ;;  %v2748_v38 = vmax.f32 %v2620_v19, 0.0 }
 0x18f   :  { %v2749_v37 = vmax.f32 %v2621_v36, 0.0  ;;  %v2750_v4 = vmax.f32 %v2622_v43, 0.0  ;;  %v2779_v28 = vmax.f32 %v2651_v15, 0.0  ;;  %v2780_v48 = vmax.f32 %v2652_v47, 0.0 }
 0x190   :  { %v2781_v45 = vmax.f32 %v2653_v62, 0.0  ;;  %v2782_v31 = vmax.f32 %v2654_v50, 0.0  ;;  %v2957_v8 = vadd.f32 %v2748_v38, %v2747_v57  ;;  %v460_v26 = vmul.f32 %v10683_v46, %v10608_v63 }
 0x191   :  { %v2958_v54 = vadd.f32 %v2780_v48, %v2779_v28  ;;  %v461_v9 = vmul.f32 %v10684_v35, %v10608_v63  ;;  %v462_v55 = vmul.f32 %v8012_v61, %v10608_v63  ;;  %v463_v53 = vmul.f32 %v8018_v10, %v10608_v63 }
 0x192   :  { %v2961_v34 = vadd.f32 %v2957_v8, %v2749_v37  ;;  %v492_v15 = vmul.f32 %v10683_v46, %v10611_v12  ;;  %v493_v47 = vmul.f32 %v10684_v35, %v10611_v12  ;;  %v494_v33 = vmul.f32 %v8012_v61, %v10611_v12 }
 0x193   :  { %v2962_v24 = vadd.f32 %v2958_v54, %v2781_v45  ;;  %v495_v59 = vmul.f32 %v8018_v10, %v10611_v12  ;;  %v731_v3 = vmul.f32 %v7731_v7, %v10612_v22  ;;  %v732_v30 = vmul.f32 %v7735_v23, %v10612_v22  ;;  %v10745_v12 = vld [vmem:[#allocation13_spill] sm:$0xff] }
 0x194   :  { %v2965_v51 = vadd.f32 %v2961_v34, %v2750_v4  ;;  %v733_v46 = vmul.f32 %v8027_v41, %v10612_v22  ;;  %v734_v35 = vmul.f32 %v8037_v52, %v10612_v22  ;;  %v763_v49 = vmul.f32 %v7731_v7, %v10645_v11 }
 0x195   :  { %v2966_v27 = vadd.f32 %v2962_v24, %v2782_v31  ;;  %v764_v19 = vmul.f32 %v7735_v23, %v10645_v11  ;;  %v765_v36 = vmul.f32 %v8027_v41, %v10645_v11  ;;  %v766_v43 = vmul.f32 %v8037_v52, %v10645_v11  ;;  %v10744_v11 = vld [vmem:[#allocation11_spill] sm:$0xff] }
 0x196   :  { %v2969_v62 = vmul.f32 0.25, %v2965_v51  ;;  %v859_v50 = vadd.f32 %v731_v3, %v460_v26  ;;  %v860_v57 = vadd.f32 %v732_v30, %v461_v9  ;;  %v861_v38 = vadd.f32 %v733_v46, %v462_v55 }
 0x197   :  { %v2970_v37 = vmul.f32 0.25, %v2966_v27  ;;  %v862_v4 = vadd.f32 %v734_v35, %v463_v53  ;;  %v891_v28 = vadd.f32 %v763_v49, %v492_v15  ;;  %v892_v48 = vadd.f32 %v764_v19, %v493_v47 }
 0x198   :  { %v893_v45 = vadd.f32 %v765_v36, %v494_v33  ;;  %v894_v7 = vadd.f32 %v766_v43, %v495_v59  ;;  %v1291_v31 = vmul.f32 %v8078_v13, %v10616_v25  ;;  %v1292_v23 = vmul.f32 %v8081_v44, %v10616_v25 }
 0x199   :  { %v8216_v8 = vpack.c.bf16 %v2970_v37, %v2969_v62  ;;  %v1293_v54 = vmul.f32 %v8088_v42, %v10616_v25  ;;  %v1294_v26 = vmul.f32 %v8091_v14, %v10616_v25  ;;  %v1323_v9 = vmul.f32 %v8078_v13, %v10621_v39  ;;  %v3779_v13 = vld [vmem:[%s10158_s7 + $0x1f8] sm:$0xff] }
 0x19a   :  { %v1324_v55 = vmul.f32 %v8081_v44, %v10621_v39  ;;  %v1325_v53 = vmul.f32 %v8088_v42, %v10621_v39  ;;  %v1326_v34 = vmul.f32 %v8091_v14, %v10621_v39  ;;  %v1419_v15 = vadd.f32 %v1291_v31, %v859_v50  ;;  %4097 = vperm.xlu0 %5901, %v3779_v13  }
 0x19b   :  { %10719 = vst [vmem:[#allocation28_spill] sm:$0xff] %v8216_v8  ;;  %3269 = vmatprep.subr.bf16.mxu1 %v8216_v8  ;;  %v1420_v47 = vadd.f32 %v1292_v23, %v860_v57  ;;  %v1421_v33 = vadd.f32 %v1293_v54, %v861_v38  ;;  %v1422_v24 = vadd.f32 %v1294_v26, %v862_v4 }
 0x19c   :  { %v1451_v59 = vadd.f32 %v1323_v9, %v891_v28  ;;  %3270 = vmatpush1.bf16.msra.mxu1 %v7911_v6  ;;  %v1452_v44 = vadd.f32 %v1324_v55, %v892_v48  ;;  %v1453_v3 = vadd.f32 %v1325_v53, %v893_v45  ;;  %v1454_v30 = vadd.f32 %v1326_v34, %v894_v7  ;;  %v10720_v28 = vld [vmem:[#allocation27_spill] sm:$0xff] }
 0x19d   :  { %v1851_v42 = vmul.f32 %v8094_v20, %v10622_v0  ;;  %v1852_v14 = vmul.f32 %v8097_v16, %v10622_v0  ;;  %v1853_v51 = vmul.f32 %v8119_v5, %v10622_v0  ;;  %v1854_v46 = vmul.f32 %v8122_v18, %v10622_v0  ;;  %3334 = vmatprep.subr.bf16.mxu0 %v8216_v8 }
 0x19e   :  { %v1883_v35 = vmul.f32 %v8094_v20, %v7103_v32  ;;  %v1884_v49 = vmul.f32 %v8097_v16, %v7103_v32  ;;  %v1885_v27 = vmul.f32 %v8119_v5, %v7103_v32  ;;  %v1886_v19 = vmul.f32 %v8122_v18, %v7103_v32 }
 0x19f   :  { %v1979_v36 = vadd.f32 %v1851_v42, %v1419_v15  ;;  %v1980_v43 = vadd.f32 %v1852_v14, %v1420_v47  ;;  %v1981_v62 = vadd.f32 %v1853_v51, %v1421_v33  ;;  %v1982_v50 = vadd.f32 %v1854_v46, %v1422_v24  ;;  %v10721_v47 = vld [vmem:[#allocation91_spill] sm:$0xff] }
 0x1a0   :  { %v2011_v57 = vadd.f32 %v1883_v35, %v1451_v59  ;;  %v2012_v38 = vadd.f32 %v1884_v49, %v1452_v44  ;;  %v2013_v37 = vadd.f32 %v1885_v27, %v1453_v3  ;;  %v2014_v20 = vadd.f32 %v1886_v19, %v1454_v30  ;;  %v10722_v59 = vld [vmem:[#allocation20_spill] sm:$0xff] }
 0x1a1   :  { %v2127_v4 = vmul.f32 %v7219_v2, %v8012_v61  ;;  %v2128_v16 = vmul.f32 %v7219_v2, %v8018_v10  ;;  %v2129_v5 = vmul.f32 %v7219_v2, %v8030_v40  ;;  %v2130_v18 = vmul.f32 %v7219_v2, %v8015_v1 }
 0x1a2   :  { %v2159_v48 = vmul.f32 %v10720_v28, %v8012_v61  ;;  %v2160_v45 = vmul.f32 %v10720_v28, %v8018_v10  ;;  %v2161_v7 = vmul.f32 %v10720_v28, %v8030_v40  ;;  %v2162_v31 = vmul.f32 %v10720_v28, %v8015_v1 }
 0x1a3   :  { %v2255_v23 = vadd.f32 %v2127_v4, %v1979_v36  ;;  %v2256_v54 = vadd.f32 %v2128_v16, %v1980_v43  ;;  %v2257_v26 = vadd.f32 %v2129_v5, %v1981_v62  ;;  %v2258_v9 = vadd.f32 %v2130_v18, %v1982_v50  ;;  %v10723_v36 = vld [vmem:[#allocation59_spill] sm:$0xff]  ;;  %v10724_v50 = vld [vmem:[#allocation60_spill] sm:$0xff]  ;;  %v8295_v16 = vld [vmem:[%s10151_s0 + $0x30] sm:$0xff] }
 0x1a4   :  { %v2287_v55 = vadd.f32 %v2159_v48, %v2011_v57  ;;  %v2288_v53 = vadd.f32 %v2160_v45, %v2012_v38  ;;  %v2289_v34 = vadd.f32 %v2161_v7, %v2013_v37  ;;  %v2290_v15 = vadd.f32 %v2162_v31, %v2014_v20  ;;  %v8300_v5 = vld.sshfl [vmem:[%s10151_s0 + $0x38] sm:$0xff pattern:$0x76325410] }
 0x1a5   :  { %v2403_v61 = vmul.f32 %v10721_v47, %v8027_v41  ;;  %v2404_v10 = vmul.f32 %v10721_v47, %v8037_v52  ;;  %v2405_v33 = vmul.f32 %v10721_v47, %v8040_v29  ;;  %v2406_v24 = vmul.f32 %v10721_v47, %v8043_v17  ;;  %10725 = vst [vmem:[#allocation29_spill] sm:$0xff] %v8300_v5  ;;  %v10743_v47 = vld [vmem:[#allocation23_spill] sm:$0xff] }
 0x1a6   :  { %v2435_v13 = vmul.f32 %v10722_v59, %v8027_v41  ;;  %v2436_v44 = vmul.f32 %v10722_v59, %v8037_v52  ;;  %v2437_v3 = vmul.f32 %v10722_v59, %v8040_v29  ;;  %v2438_v30 = vmul.f32 %v10722_v59, %v8043_v17 }
 0x1a7   :  { %v2531_v42 = vadd.f32 %v2403_v61, %v2255_v23  ;;  %v2532_v14 = vadd.f32 %v2404_v10, %v2256_v54  ;;  %v2533_v51 = vadd.f32 %v2405_v33, %v2257_v26  ;;  %v2534_v46 = vadd.f32 %v2406_v24, %v2258_v9  ;;  %v10726_v26 = vld [vmem:[#allocation19_spill] sm:$0xff]  ;;  %v10728_v33 = vld [vmem:[#allocation12_spill] sm:$0xff] }
 0x1a8   :  { %v2563_v35 = vadd.f32 %v2435_v13, %v2287_v55  ;;  %v2564_v49 = vadd.f32 %v2436_v44, %v2288_v53  ;;  %v2565_v27 = vadd.f32 %v2437_v3, %v2289_v34  ;;  %v2566_v19 = vadd.f32 %v2438_v30, %v2290_v15  ;;  %v10727_v34 = vld [vmem:[#allocation9_spill] sm:$0xff]  ;;  %v10729_v13 = vld [vmem:[#allocation10_spill] sm:$0xff] }
 0x1a9   :  { %v2683_v43 = vadd.f32 %v10723_v36, %v2531_v42  ;;  %v2684_v41 = vadd.f32 %v10723_v36, %v2532_v14  ;;  %v2685_v52 = vadd.f32 %v10723_v36, %v2533_v51  ;;  %v2686_v62 = vadd.f32 %v10723_v36, %v2534_v46 }
 0x1aa   :  { %v2715_v57 = vadd.f32 %v10724_v50, %v2563_v35  ;;  %v2716_v38 = vadd.f32 %v10724_v50, %v2564_v49  ;;  %v2717_v37 = vadd.f32 %v10724_v50, %v2565_v27  ;;  %v2718_v20 = vadd.f32 %v10724_v50, %v2566_v19  ;;  %v10732_v49 = vld [vmem:[#allocation14_spill] sm:$0xff] }
 0x1ab   :  { %v2811_v4 = vmax.f32 %v2683_v43, 0.0  ;;  %v2812_v18 = vmax.f32 %v2684_v41, 0.0  ;;  %v2813_v48 = vmax.f32 %v2685_v52, 0.0  ;;  %v2814_v45 = vmax.f32 %v2686_v62, 0.0 }
 0x1ac   :  { %v2843_v7 = vmax.f32 %v2715_v57, 0.0  ;;  %v2844_v31 = vmax.f32 %v2716_v38, 0.0  ;;  %v2845_v23 = vmax.f32 %v2717_v37, 0.0  ;;  %v2846_v54 = vmax.f32 %v2718_v20, 0.0  ;;  %v10735_v38 = vld [vmem:[#allocation71_spill] sm:$0xff]  ;;  %v10736_v20 = vld [vmem:[#allocation77_spill] sm:$0xff] }
 0x1ad   :  { %v146_v9 = vcombine.high %v10726_v26, %v10726_v26  ;;  %v2959_v55 = vadd.f32 %v2812_v18, %v2811_v4  ;;  %v163_v53 = vcombine.high %v8295_v16, %v8295_v16  ;;  %v170_v15 = vrot.slane %v8295_v16, %v10727_v34 }
 0x1ae   :  { %v2960_v61 = vadd.f32 %v2844_v31, %v2843_v7  ;;  %v1022_v24 = vrot.slane %v8295_v16, %v10728_v33  ;;  %v1026_v44 = vrot.slane %v8295_v16, %v10729_v13  ;;  %v8323_v35 = vrot.slane %v8300_v5, %v10728_v33 }
 0x1af   :  { %v8309_v10 = vrot.slane %v146_v9, %v10727_v34  ;;  %v2963_v3 = vadd.f32 %v2959_v55, %v2813_v48  ;;  %v177_v30 = vrot.slane %v163_v53, %v10727_v34  ;;  %v178_v42 = vcombine.high %v170_v15, %v170_v15 }
 0x1b0   :  { %v8317_v14 = vrot.slane %v170_v15, %v10728_v33  ;;  %v2964_v51 = vadd.f32 %v2960_v61, %v2845_v23  ;;  %10731 = vst [vmem:[#allocation31_spill] sm:$0xff] %v8323_v35  ;;  %v8326_v27 = vrot.slane %v170_v15, %v10732_v49  ;;  %v1030_v22 = vrot.slane %v8295_v16, %v10744_v11 }
 0x1b1   :  { %v162_v46 = vcombine.high %v8309_v10, %v8309_v10  ;;  %v2967_v19 = vadd.f32 %v2963_v3, %v2814_v45  ;;  %v179_v43 = vcombine.high %v177_v30, %v177_v30  ;;  %v8329_v41 = vrot.slane %v178_v42, %v10728_v33 }
 0x1b2   :  { %10730 = vst [vmem:[#allocation30_spill] sm:$0xff] %v8317_v14  ;;  %10733 = vst [vmem:[#allocation32_spill] sm:$0xff] %v8326_v27  ;;  %v8332_v52 = vrot.slane %v177_v30, %v10728_v33  ;;  %v2968_v62 = vadd.f32 %v2964_v51, %v2846_v54  ;;  %v405_v37 = vmul.f32 %v8317_v14, %v10735_v38 }
 0x1b3   :  { %v8335_v57 = vrot.slane %v162_v46, %v10728_v33  ;;  %v437_v4 = vmul.f32 %v8317_v14, %v10736_v20  ;;  %v2971_v18 = vmul.f32 0.25, %v2967_v19  ;;  %v8342_v48 = vrot.slane %v179_v43, %v10728_v33 }
 0x1b4   :  { %v406_v45 = vmul.f32 %v8329_v41, %v10735_v38  ;;  %v407_v7 = vmul.f32 %v8332_v52, %v10735_v38  ;;  %v2972_v31 = vmul.f32 0.25, %v2968_v62  ;;  %v438_v9 = vmul.f32 %v8329_v41, %v10736_v20  ;;  %v10741_v62 = vld [vmem:[#allocation70_spill] sm:$0xff] }
 0x1b5   :  { %10734 = vst [vmem:[#allocation33_spill] sm:$0xff] %v8335_v57  ;;  %v404_v23 = vmul.f32 %v8335_v57, %v10735_v38  ;;  %v436_v54 = vmul.f32 %v8335_v57, %v10736_v20  ;;  %v439_v55 = vmul.f32 %v8332_v52, %v10736_v20  ;;  %v8357_v53 = vrot.slane %v162_v46, %v10732_v49 }
 0x1b6   :  { %v8360_v15 = vrot.slane %v178_v42, %v10732_v49  ;;  %v8363_v61 = vrot.slane %v177_v30, %v10732_v49  ;;  %v8365_v3 = vpack.c.bf16 %v2972_v31, %v2971_v18  ;;  %v8368_v51 = vrot.slane %v179_v43, %v10732_v49  ;;  %v10742_v18 = vld [vmem:[#allocation76_spill] sm:$0xff]  ;;  %v4912_v31 = vld [vmem:[%s10160_s9 + $0xd0] sm:$0xff] }
 0x1b7   :  { %10737 = vst [vmem:[#allocation36_spill] sm:$0xff] %v8357_v53  ;;  %v8372_v19 = vrot.slane %v8300_v5, %v10732_v49  ;;  %v676_v34 = vmul.f32 %v8326_v27, %v10741_v62  ;;  %v675_v46 = vmul.f32 %v8357_v53, %v10741_v62  ;;  %v707_v43 = vmul.f32 %v8357_v53, %v10742_v18 }
 0x1b8   :  { %10738 = vst [vmem:[#allocation37_spill] sm:$0xff] %v8365_v3  ;;  %10739 = vst [vmem:[#allocation42_spill] sm:$0xff] %v8368_v51  ;;  %v677_v42 = vmul.f32 %v8360_v15, %v10741_v62  ;;  %v678_v30 = vmul.f32 %v8363_v61, %v10741_v62  ;;  %3271 = vmatprep.subr.bf16.mxu1 %v8365_v3  ;;  %v708_v5 = vmul.f32 %v8326_v27, %v10742_v18 }
 0x1b9   :  { %10740 = vst [vmem:[#allocation43_spill] sm:$0xff] %v8372_v19  ;;  %v709_v50 = vmul.f32 %v8360_v15, %v10742_v18  ;;  %v710_v36 = vmul.f32 %v8363_v61, %v10742_v18  ;;  %v804_v59 = vadd.f32 %v676_v34, %v405_v37  ;;  %3272 = vmatpush1.bf16.msra.mxu1 %v10743_v47 }
 0x1ba   :  { %v803_v28 = vadd.f32 %v675_v46, %v404_v23  ;;  %v805_v2 = vadd.f32 %v677_v42, %v406_v45  ;;  %v806_v8 = vadd.f32 %v678_v30, %v407_v7  ;;  %v835_v32 = vadd.f32 %v707_v43, %v436_v54  ;;  %5050 = vperm.xlu1 %5902, %v4912_v31   ;;  %v10751_v7 = vld [vmem:[#allocation17_spill] sm:$0xff] }
 0x1bb   :  { %v836_v0 = vadd.f32 %v708_v5, %v437_v4  ;;  %v837_v39 = vadd.f32 %v709_v50, %v438_v9  ;;  %v838_v25 = vadd.f32 %v710_v36, %v439_v55  ;;  %v1034_v63 = vrot.slane %v8295_v16, %v10745_v12  ;;  %v10749_v36 = vld [vmem:[#allocation15_spill] sm:$0xff]  ;;  %v10750_v4 = vld [vmem:[#allocation16_spill] sm:$0xff] }
 0x1bc   :  { %v8400_v27 = vrot.slane %v1022_v24, %v10728_v33  ;;  %v8403_v34 = vrot.slane %v1026_v44, %v10728_v33  ;;  %v1582_v37 = vrot.slane %v8295_v16, %v10732_v49  ;;  %v8408_v5 = vrot.slane %v1030_v22, %v10728_v33  ;;  %v10753_v44 = vld [vmem:[#allocation80_spill] sm:$0xff]  ;;  %v10754_v22 = vld [vmem:[#allocation79_spill] sm:$0xff] }
 0x1bd   :  { %v1586_v50 = vrot.slane %v8295_v16, %v10749_v36  ;;  %v1590_v45 = vrot.slane %v8295_v16, %v10750_v4  ;;  %v1594_v23 = vrot.slane %v8295_v16, %v10751_v7  ;;  %v8417_v24 = vrot.slane %v1034_v63, %v10728_v33 }
 0x1be   :  { %10746 = vst [vmem:[#allocation46_spill] sm:$0xff] %v8400_v27  ;;  %10747 = vst [vmem:[#allocation47_spill] sm:$0xff] %v8403_v34  ;;  %v1235_v54 = vmul.f32 %v8400_v27, %v10753_v44  ;;  %v1236_v9 = vmul.f32 %v8403_v34, %v10753_v44  ;;  %v1267_v55 = vmul.f32 %v8400_v27, %v10754_v22 }
 0x1bf   :  { %10748 = vst [vmem:[#allocation48_spill] sm:$0xff] %v8408_v5  ;;  %10752 = vst [vmem:[#allocation49_spill] sm:$0xff] %v8417_v24  ;;  %v1237_v46 = vmul.f32 %v8408_v5, %v10753_v44  ;;  %v1268_v42 = vmul.f32 %v8403_v34, %v10754_v22  ;;  %v1269_v16 = vmul.f32 %v8408_v5, %v10754_v22 }
 0x1c0   :  { %v8432_v63 = vrot.slane %v1582_v37, %v10732_v49  ;;  %v1238_v30 = vmul.f32 %v8417_v24, %v10753_v44  ;;  %v1270_v43 = vmul.f32 %v8417_v24, %v10754_v22  ;;  %v1363_v31 = vadd.f32 %v1235_v54, %v803_v28  ;;  %v10757_v44 = vld [vmem:[#allocation84_spill] sm:$0xff]  ;;  %v10758_v28 = vld [vmem:[#allocation87_spill] sm:$0xff] }
 0x1c1   :  { %v1364_v27 = vadd.f32 %v1236_v9, %v804_v59  ;;  %v1365_v53 = vadd.f32 %v1237_v46, %v805_v2  ;;  %v1395_v14 = vadd.f32 %v1267_v55, %v835_v32  ;;  %v1396_v57 = vadd.f32 %v1268_v42, %v836_v0 }
 0x1c2   :  { %v1397_v7 = vadd.f32 %v1269_v16, %v837_v39  ;;  %v1366_v4 = vadd.f32 %v1238_v30, %v806_v8  ;;  %v1398_v34 = vadd.f32 %v1270_v43, %v838_v25  ;;  %v8439_v36 = vrot.slane %v1586_v50, %v10732_v49 }
 0x1c3   :  { %v8442_v37 = vrot.slane %v1590_v45, %v10732_v49  ;;  %v8445_v5 = vrot.slane %v1594_v23, %v10732_v49  ;;  %v1795_v24 = vmul.f32 %v8432_v63, %v10757_v44  ;;  %v1827_v2 = vmul.f32 %v8432_v63, %v10758_v28 }
 0x1c4   :  { %v2071_v32 = vmul.f32 %v10715_v60, %v8329_v41  ;;  %v1796_v25 = vmul.f32 %v8439_v36, %v10757_v44  ;;  %v1828_v0 = vmul.f32 %v8439_v36, %v10758_v28  ;;  %v2072_v30 = vmul.f32 %v10715_v60, %v8332_v52 }
 0x1c5   :  { %10755 = vst [vmem:[#allocation50_spill] sm:$0xff] %v8442_v37  ;;  %10756 = vst [vmem:[#allocation51_spill] sm:$0xff] %v8445_v5  ;;  %v1797_v39 = vmul.f32 %v8442_v37, %v10757_v44  ;;  %v1829_v8 = vmul.f32 %v8442_v37, %v10758_v28  ;;  %v1798_v59 = vmul.f32 %v8445_v5, %v10757_v44 }
 0x1c6   :  { %v1830_v50 = vmul.f32 %v8445_v5, %v10758_v28  ;;  %v1923_v45 = vadd.f32 %v1795_v24, %v1363_v31  ;;  %v1955_v23 = vadd.f32 %v1827_v2, %v1395_v14  ;;  %v1924_v54 = vadd.f32 %v1796_v25, %v1364_v27 }
 0x1c7   :  { %v1925_v9 = vadd.f32 %v1797_v39, %v1365_v53  ;;  %v1956_v55 = vadd.f32 %v1828_v0, %v1396_v57  ;;  %v1957_v46 = vadd.f32 %v1829_v8, %v1397_v7  ;;  %v1926_v42 = vadd.f32 %v1798_v59, %v1366_v4  ;;  %v10759_v39 = vld [vmem:[#allocation92_spill] sm:$0xff] }
 0x1c8   :  { %v1958_v16 = vadd.f32 %v1830_v50, %v1398_v34  ;;  %v2073_v43 = vmul.f32 %v10715_v60, %v8342_v48  ;;  %v2074_v37 = vmul.f32 %v10715_v60, %v8323_v35  ;;  %v2103_v5 = vmul.f32 %v10716_v21, %v8329_v41 }
 0x1c9   :  { %v2104_v14 = vmul.f32 %v10716_v21, %v8332_v52  ;;  %v2105_v27 = vmul.f32 %v10716_v21, %v8342_v48  ;;  %v2106_v57 = vmul.f32 %v10716_v21, %v8323_v35  ;;  %v2199_v53 = vadd.f32 %v2071_v32, %v1923_v45  ;;  %v10760_v32 = vld [vmem:[#allocation88_spill] sm:$0xff] }
 0x1ca   :  { %v2200_v34 = vadd.f32 %v2072_v30, %v1924_v54  ;;  %v2201_v4 = vadd.f32 %v2073_v43, %v1925_v9  ;;  %v2202_v7 = vadd.f32 %v2074_v37, %v1926_v42  ;;  %v2231_v24 = vadd.f32 %v2103_v5, %v1955_v23 }
 0x1cb   :  { %v2232_v31 = vadd.f32 %v2104_v14, %v1956_v55  ;;  %v2233_v2 = vadd.f32 %v2105_v27, %v1957_v46  ;;  %v2234_v25 = vadd.f32 %v2106_v57, %v1958_v16  ;;  %v2347_v0 = vmul.f32 %v10759_v39, %v8360_v15 }
 0x1cc   :  { %v2348_v8 = vmul.f32 %v10759_v39, %v8363_v61  ;;  %v2349_v59 = vmul.f32 %v10759_v39, %v8368_v51  ;;  %v2350_v50 = vmul.f32 %v10759_v39, %v8372_v19  ;;  %v2379_v45 = vmul.f32 %v10760_v32, %v8360_v15 }
 0x1cd   :  { %v2380_v5 = vmul.f32 %v10760_v32, %v8363_v61  ;;  %v2381_v37 = vmul.f32 %v10760_v32, %v8368_v51  ;;  %v2382_v23 = vmul.f32 %v10760_v32, %v8372_v19  ;;  %v2475_v54 = vadd.f32 %v2347_v0, %v2199_v53 }
 0x1ce   :  { %v2476_v9 = vadd.f32 %v2348_v8, %v2200_v34  ;;  %v2477_v55 = vadd.f32 %v2349_v59, %v2201_v4  ;;  %v2478_v46 = vadd.f32 %v2350_v50, %v2202_v7  ;;  %v2507_v42 = vadd.f32 %v2379_v45, %v2231_v24  ;;  %v5910_v34 = vld [vmem:[%s10155_s4] sm:$0xff]   ;;  %v10761_v45 = vld [vmem:[#allocation21_spill] sm:$0xff] }
 0x1cf   :  { %v2508_v16 = vadd.f32 %v2380_v5, %v2232_v31  ;;  %v2509_v30 = vadd.f32 %v2381_v37, %v2233_v2  ;;  %v2510_v43 = vadd.f32 %v2382_v23, %v2234_v25  ;;  %v2627_v14 = vadd.f32 %v10688_v58, %v2475_v54  ;;  %5574 = vmatmul.mubr.msk.bf16.vlgmr.msra.gmra.mrb[0].mxu0 %vm3175_vm0, %v5910_v34 }
 0x1d0   :  { %v2628_v27 = vadd.f32 %v10688_v58, %v2476_v9  ;;  %v2629_v57 = vadd.f32 %v10688_v58, %v2477_v55  ;;  %v2630_v35 = vadd.f32 %v10688_v58, %v2478_v46  ;;  %v2659_v51 = vadd.f32 %v10689_v56, %v2507_v42  ;;  %5578 = vmatmul.mubr.msk.bf16.vlgmr.msra.gmra.mrb[0].mxu1 %vm3175_vm0, %v5910_v34 }
 0x1d1   :  { %v2660_v19 = vadd.f32 %v10689_v56, %v2508_v16  ;;  %v2661_v53 = vadd.f32 %v10689_v56, %v2509_v30  ;;  %v2662_v4 = vadd.f32 %v10689_v56, %v2510_v43  ;;  %v2755_v7 = vmax.f32 %v2627_v14, 0.0  ;;  %3335 = vmatpush1.bf16.msra.mxu0 %v7911_v6 }
 0x1d2   :  { %v2756_v24 = vmax.f32 %v2628_v27, 0.0  ;;  %v2757_v31 = vmax.f32 %v2629_v57, 0.0  ;;  %v2758_v2 = vmax.f32 %v2630_v35, 0.0  ;;  %v2787_v25 = vmax.f32 %v2659_v51, 0.0  ;;  %3336 = vmatprep.subr.bf16.mxu0 %v8365_v3 }
 0x1d3   :  { %v2788_v0 = vmax.f32 %v2660_v19, 0.0  ;;  %v2789_v8 = vmax.f32 %v2661_v53, 0.0  ;;  %v2790_v59 = vmax.f32 %v2662_v4, 0.0  ;;  %v8508_v5 = vrot.slane %v10761_v45, %v10728_v33 }
 0x1d4   :  { %v3005_v50 = vadd.f32 %v2756_v24, %v2755_v7  ;;  %v8514_v23 = vrot.slane %v8309_v10, %v10728_v33  ;;  %v400_v35 = vmul.f32 %v8030_v40, %v10735_v38  ;;  %v8519_v51 = vmul.f32 0.0, %v10715_v60 }
 0x1d5   :  { %v3006_v37 = vadd.f32 %v2788_v0, %v2787_v25  ;;  %v401_v54 = vmul.f32 %v8015_v1, %v10735_v38  ;;  %v402_v9 = vmul.f32 %v8508_v5, %v10735_v38  ;;  %v432_v55 = vmul.f32 %v8030_v40, %v10736_v20  ;;  %3337 = vmatpush1.bf16.msra.mxu0 %v10743_v47  ;;  %v5912_v47 = vld [vmem:[%s10155_s4 + $0x8] sm:$0xff]  }
 0x1d6   :  { %10762 = vst [vmem:[#allocation53_spill] sm:$0xff] %v8519_v51  ;;  %v3009_v19 = vadd.f32 %v3005_v50, %v2757_v31  ;;  %v403_v42 = vmul.f32 %v8514_v23, %v10735_v38  ;;  %v433_v16 = vmul.f32 %v8015_v1, %v10736_v20  ;;  %v434_v30 = vmul.f32 %v8508_v5, %v10736_v20 }
 0x1d7   :  { %v3010_v46 = vadd.f32 %v3006_v37, %v2789_v8  ;;  %v435_v43 = vmul.f32 %v8514_v23, %v10736_v20  ;;  %v8539_v14 = vrot.slane %v10761_v45, %v10732_v49  ;;  %v8543_v27 = vrot.slane %v8309_v10, %v10732_v49 }
 0x1d8   :  { %v3013_v6 = vadd.f32 %v3009_v19, %v2758_v2  ;;  %v10763_v57 = vmov 0   ;;  %v671_v34 = vmul.f32 %v8040_v29, %v10741_v62  ;;  %v672_v4 = vmul.f32 %v8043_v17, %v10741_v62 }
 0x1d9   :  { %3230 = vmatprep.mubr.bf16.mxu0 %v10763_v57  ;;  %v3014_v53 = vadd.f32 %v3010_v46, %v2790_v59  ;;  %v703_v7 = vmul.f32 %v8040_v29, %v10742_v18  ;;  %3303 = vmatprep.mubr.bf16.mxu1 %v10763_v57  ;;  %v673_v31 = vmul.f32 %v8539_v14, %v10741_v62  ;;  %v4917_v46 = vld [vmem:[%s10160_s9 + $0xf8] sm:$0xff] }
 0x1da   :  { %v3017_v24 = vmul.f32 0.25, %v3013_v6  ;;  %v674_v10 = vmul.f32 %v8543_v27, %v10741_v62  ;;  %v704_v2 = vmul.f32 %v8043_v17, %v10742_v18  ;;  %v705_v0 = vmul.f32 %v8539_v14, %v10742_v18  ;;  %v8570_v6 = vpop.permute.xlu0 %3122  ;;  %5075 = vperm.xlu0 %5901, %v4917_v46   ;;  %5575 = vmatmul.mubr.msk.bf16.gmra.mrb[4].mxu0 %vm3175_vm0, %v5912_v47 }
 0x1db   :  { %v3018_v25 = vmul.f32 0.25, %v3014_v53  ;;  %v706_v8 = vmul.f32 %v8543_v27, %v10742_v18  ;;  %v799_v59 = vadd.f32 %v671_v34, %v400_v35  ;;  %v800_v50 = vadd.f32 %v672_v4, %v401_v54  ;;  %10764 = vst [vmem:[#allocation54_spill] sm:$0xff] %v8570_v6  ;;  %v10767_v34 = vld [vmem:[#allocation16_spill] sm:$0xff]  ;;  %5579 = vmatmul.mubr.msk.bf16.gmra.mrb[4].mxu1 %vm3175_vm0, %v5912_v47 }
 0x1dc   :  { %v801_v45 = vadd.f32 %v673_v31, %v402_v9  ;;  %v802_v37 = vadd.f32 %v674_v10, %v403_v42  ;;  %v831_v19 = vadd.f32 %v703_v7, %v432_v55  ;;  %v832_v51 = vadd.f32 %v704_v2, %v433_v16  ;;  %v3758_v42 = vld [vmem:[%s10158_s7 + $0x150] sm:$0xff]  ;;  %3240 = vmatprep.mubr.bf16.mxu0 %v10763_v57 }
 0x1dd   :  { %v8572_v53 = vpack.c.bf16 %v3018_v25, %v3017_v24  ;;  %v833_v3 = vadd.f32 %v705_v0, %v434_v30  ;;  %v834_v18 = vadd.f32 %v706_v8, %v435_v43  ;;  %v1006_v35 = vrot.slane %v10726_v26, %v10728_v33  ;;  %v10766_v30 = vld [vmem:[#allocation15_spill] sm:$0xff]  ;;  %v10768_v7 = vld [vmem:[#allocation17_spill] sm:$0xff]  ;;  %3992 = vperm.xlu1 %5902, %v3758_v42  }
 0x1de   :  { %v1010_v54 = vrot.slane %v10726_v26, %v10729_v13  ;;  %v1014_v9 = vrot.slane %v10726_v26, %v10744_v11  ;;  %v1018_v55 = vrot.slane %v10726_v26, %v10745_v12  ;;  %v1566_v16 = vrot.slane %v10726_v26, %v10732_v49  ;;  %3313 = vmatprep.mubr.bf16.mxu1 %v10763_v57 }
 0x1df   :  { %10765 = vst [vmem:[#allocation39_spill] sm:$0xff] %v8572_v53  ;;  %3407 = vmatprep.subr.bf16.mxu1 %v8572_v53  ;;  %v1570_v43 = vrot.slane %v10726_v26, %v10766_v30  ;;  %v1574_v4 = vrot.slane %v10726_v26, %v10767_v34  ;;  %v1578_v24 = vrot.slane %v10726_v26, %v10768_v7 }
 0x1e0   :  { %v8596_v31 = vrot.slane %v1006_v35, %v10728_v33  ;;  %v8599_v10 = vrot.slane %v1010_v54, %v10728_v33  ;;  %v8602_v2 = vrot.slane %v1014_v9, %v10728_v33  ;;  %v8605_v25 = vrot.slane %v1018_v55, %v10728_v33  ;;  %v10769_v35 = vld [vmem:[#allocation80_spill] sm:$0xff] }
 0x1e1   :  { %v8609_v0 = vrot.slane %v1566_v16, %v10732_v49  ;;  %v8612_v8 = vrot.slane %v1570_v43, %v10732_v49  ;;  %v8615_v26 = vrot.slane %v1574_v4, %v10732_v49  ;;  %v8618_v46 = vrot.slane %v1578_v24, %v10732_v49 }
 0x1e2   :  { %v1231_v54 = vmul.f32 %v8596_v31, %v10769_v35  ;;  %v1232_v9 = vmul.f32 %v8599_v10, %v10769_v35  ;;  %v1233_v47 = vmul.f32 %v8602_v2, %v10769_v35  ;;  %v1234_v55 = vmul.f32 %v8605_v25, %v10769_v35 }
 0x1e3   :  { %v1263_v16 = vmul.f32 %v8596_v31, %v10754_v22  ;;  %v1264_v42 = vmul.f32 %v8599_v10, %v10754_v22  ;;  %v1265_v43 = vmul.f32 %v8602_v2, %v10754_v22  ;;  %v1266_v4 = vmul.f32 %v8605_v25, %v10754_v22 }
 0x1e4   :  { %v1359_v24 = vadd.f32 %v1231_v54, %v799_v59  ;;  %v1360_v6 = vadd.f32 %v1232_v9, %v800_v50  ;;  %v1361_v53 = vadd.f32 %v1233_v47, %v801_v45  ;;  %v1362_v35 = vadd.f32 %v1234_v55, %v802_v37 }
 0x1e5   :  { %v1391_v7 = vadd.f32 %v1263_v16, %v831_v19  ;;  %v1392_v34 = vadd.f32 %v1264_v42, %v832_v51  ;;  %v1393_v30 = vadd.f32 %v1265_v43, %v833_v3  ;;  %v1394_v12 = vadd.f32 %v1266_v4, %v834_v18  ;;  %v10770_v43 = vld [vmem:[#allocation33_spill] sm:$0xff] }
 0x1e6   :  { %v1791_v11 = vmul.f32 %v8609_v0, %v10757_v44  ;;  %v1792_v13 = vmul.f32 %v8612_v8, %v10757_v44  ;;  %v1793_v62 = vmul.f32 %v8615_v26, %v10757_v44  ;;  %v1794_v22 = vmul.f32 %v8618_v46, %v10757_v44  ;;  %v10771_v44 = vld [vmem:[#allocation30_spill] sm:$0xff] }
 0x1e7   :  { %v1823_v59 = vmul.f32 %v8609_v0, %v10758_v28  ;;  %v1824_v51 = vmul.f32 %v8612_v8, %v10758_v28  ;;  %v1825_v3 = vmul.f32 %v8615_v26, %v10758_v28  ;;  %v1826_v18 = vmul.f32 %v8618_v46, %v10758_v28 }
 0x1e8   :  { %v1919_v50 = vadd.f32 %v1791_v11, %v1359_v24  ;;  %v1920_v45 = vadd.f32 %v1792_v13, %v1360_v6  ;;  %v1921_v37 = vadd.f32 %v1793_v62, %v1361_v53  ;;  %v1922_v19 = vadd.f32 %v1794_v22, %v1362_v35 }
 0x1e9   :  { %v1951_v54 = vadd.f32 %v1823_v59, %v1391_v7  ;;  %v1952_v9 = vadd.f32 %v1824_v51, %v1392_v34  ;;  %v1953_v47 = vadd.f32 %v1825_v3, %v1393_v30  ;;  %v1954_v55 = vadd.f32 %v1826_v18, %v1394_v12  ;;  %v10772_v3 = vld [vmem:[#allocation36_spill] sm:$0xff] }
 0x1ea   :  { %v2067_v16 = vmul.f32 %v10715_v60, %v8508_v5  ;;  %v2068_v42 = vmul.f32 %v10715_v60, %v8514_v23  ;;  %v2069_v4 = vmul.f32 %v10715_v60, %v10770_v43  ;;  %v2070_v28 = vmul.f32 %v10715_v60, %v10771_v44  ;;  %v10773_v60 = vld [vmem:[#allocation32_spill] sm:$0xff] }
 0x1eb   :  { %v2099_v11 = vmul.f32 %v10716_v21, %v8508_v5  ;;  %v2100_v13 = vmul.f32 %v10716_v21, %v8514_v23  ;;  %v2101_v12 = vmul.f32 %v10716_v21, %v10770_v43  ;;  %v2102_v62 = vmul.f32 %v10716_v21, %v10771_v44 }
 0x1ec   :  { %v2195_v22 = vadd.f32 %v2067_v16, %v1919_v50  ;;  %v2196_v6 = vadd.f32 %v2068_v42, %v1920_v45  ;;  %v2197_v53 = vadd.f32 %v2069_v4, %v1921_v37  ;;  %v2198_v30 = vadd.f32 %v2070_v28, %v1922_v19 }
 0x1ed   :  { %v2227_v34 = vadd.f32 %v2099_v11, %v1951_v54  ;;  %v2228_v7 = vadd.f32 %v2100_v13, %v1952_v9  ;;  %v2229_v35 = vadd.f32 %v2101_v12, %v1953_v47  ;;  %v2230_v24 = vadd.f32 %v2102_v62, %v1954_v55 }
 0x1ee   :  { %v2343_v59 = vmul.f32 %v10759_v39, %v8539_v14  ;;  %v2344_v51 = vmul.f32 %v10759_v39, %v8543_v27  ;;  %v2345_v18 = vmul.f32 %v10759_v39, %v10772_v3  ;;  %v2346_v21 = vmul.f32 %v10759_v39, %v10773_v60 }
 0x1ef   :  { %v2375_v50 = vmul.f32 %v10760_v32, %v8539_v14  ;;  %v2376_v28 = vmul.f32 %v10760_v32, %v8543_v27  ;;  %v2377_v45 = vmul.f32 %v10760_v32, %v10772_v3  ;;  %v2378_v37 = vmul.f32 %v10760_v32, %v10773_v60 }
 0x1f0   :  { %v2471_v19 = vadd.f32 %v2343_v59, %v2195_v22  ;;  %v2472_v54 = vadd.f32 %v2344_v51, %v2196_v6  ;;  %v2473_v9 = vadd.f32 %v2345_v18, %v2197_v53  ;;  %v2474_v47 = vadd.f32 %v2346_v21, %v2198_v30  ;;  %v10774_v18 = vld [vmem:[#allocation81_spill] sm:$0xff] }
 0x1f1   :  { %v2503_v55 = vadd.f32 %v2375_v50, %v2227_v34  ;;  %v2504_v16 = vadd.f32 %v2376_v28, %v2228_v7  ;;  %v2505_v42 = vadd.f32 %v2377_v45, %v2229_v35  ;;  %v2506_v4 = vadd.f32 %v2378_v37, %v2230_v24  ;;  %v8700_v37 = vpop.permute.xlu0 %3132 }
 0x1f2   :  { %v2623_v11 = vadd.f32 %v10688_v58, %v2471_v19  ;;  %v2624_v13 = vadd.f32 %v10688_v58, %v2472_v54  ;;  %v2625_v12 = vadd.f32 %v10688_v58, %v2473_v9  ;;  %v2626_v62 = vadd.f32 %v10688_v58, %v2474_v47  ;;  %10775 = vst [vmem:[#allocation38_spill] sm:$0xff] %v8700_v37 }
 0x1f3   :  { %v2655_v39 = vadd.f32 %v10689_v56, %v2503_v55  ;;  %v2656_v32 = vadd.f32 %v10689_v56, %v2504_v16  ;;  %v2657_v22 = vadd.f32 %v10689_v56, %v2505_v42  ;;  %v2658_v21 = vadd.f32 %v10689_v56, %v2506_v4  ;;  %v10777_v42 = vld [vmem:[#allocation83_spill] sm:$0xff] }
 0x1f4   :  { %v2751_v6 = vmax.f32 %v2623_v11, 0.0  ;;  %v2752_v53 = vmax.f32 %v2624_v13, 0.0  ;;  %v2753_v30 = vmax.f32 %v2625_v12, 0.0  ;;  %v2754_v34 = vmax.f32 %v2626_v62, 0.0  ;;  %v3763_v11 = vld [vmem:[%s10158_s7 + $0x178] sm:$0xff] }
 0x1f5   :  { %v2783_v7 = vmax.f32 %v2655_v39, 0.0  ;;  %v2784_v35 = vmax.f32 %v2656_v32, 0.0  ;;  %v2785_v24 = vmax.f32 %v2657_v22, 0.0  ;;  %v2786_v59 = vmax.f32 %v2658_v21, 0.0  ;;  %v10776_v39 = vld [vmem:[#allocation78_spill] sm:$0xff]  ;;  %4017 = vperm.xlu0 %5901, %v3763_v11  }
 0x1f6   :  { %v2981_v51 = vadd.f32 %v2752_v53, %v2751_v6  ;;  %v468_v50 = vmul.f32 %v10770_v43, %v10774_v18  ;;  %v469_v28 = vmul.f32 %v10771_v44, %v10774_v18  ;;  %v470_v45 = vmul.f32 %v8329_v41, %v10774_v18  ;;  %v4896_v21 = vld [vmem:[%s10160_s9 + $0x50] sm:$0xff] }
 0x1f7   :  { %v2982_v19 = vadd.f32 %v2784_v35, %v2783_v7  ;;  %v471_v54 = vmul.f32 %v8332_v52, %v10774_v18  ;;  %v500_v32 = vmul.f32 %v10770_v43, %v10776_v39  ;;  %v501_v9 = vmul.f32 %v10771_v44, %v10776_v39  ;;  %v8729_v6 = vld [vmem:[%s10155_s4 + $0x10] sm:$0xff]   ;;  %4970 = vperm.xlu1 %5902, %v4896_v21   ;;  %v8747_v21 = vpop.permute.xlu0 %3142 }
 0x1f8   :  { %v2985_v47 = vadd.f32 %v2981_v51, %v2753_v30  ;;  %v502_v55 = vmul.f32 %v8329_v41, %v10776_v39  ;;  %v503_v16 = vmul.f32 %v8332_v52, %v10776_v39  ;;  %v739_v4 = vmul.f32 %v10772_v3, %v10777_v42  ;;  %10778 = vst [vmem:[#allocation44_spill] sm:$0xff] %v8729_v6  ;;  %v10779_v30 = vld [vmem:[#allocation85_spill] sm:$0xff]  ;;  %v4901_v51 = vld [vmem:[%s10160_s9 + $0x78] sm:$0xff] }
 0x1f9   :  { %v2986_v13 = vadd.f32 %v2982_v19, %v2785_v24  ;;  %v740_v12 = vmul.f32 %v10773_v60, %v10777_v42  ;;  %v741_v62 = vmul.f32 %v8360_v15, %v10777_v42  ;;  %v742_v22 = vmul.f32 %v8363_v61, %v10777_v42  ;;  %5576 = vmatmul.mubr.msk.bf16.gmra.mrb[8].mxu0 %vm3175_vm0, %v8729_v6 }
 0x1fa   :  { %v2989_v53 = vadd.f32 %v2985_v47, %v2754_v34  ;;  %v771_v7 = vmul.f32 %v10772_v3, %v10779_v30  ;;  %v772_v35 = vmul.f32 %v10773_v60, %v10779_v30  ;;  %v773_v24 = vmul.f32 %v8360_v15, %v10779_v30  ;;  %5580 = vmatmul.mubr.msk.bf16.gmra.mrb[8].mxu1 %vm3175_vm0, %v8729_v6 }
 0x1fb   :  { %v2990_v19 = vadd.f32 %v2986_v13, %v2786_v59  ;;  %v774_v11 = vmul.f32 %v8363_v61, %v10779_v30  ;;  %v867_v37 = vadd.f32 %v739_v4, %v468_v50  ;;  %v868_v34 = vadd.f32 %v740_v12, %v469_v28  ;;  %3250 = vmatprep.mubr.bf16.mxu0 %v10763_v57  ;;  %v3776_v50 = vld [vmem:[%s10158_s7 + $0x1e0] sm:$0xff]  ;;  %v10781_v28 = vld [vmem:[#allocation89_spill] sm:$0xff] }
 0x1fc   :  { %v2993_v47 = vmul.f32 0.25, %v2989_v53  ;;  %v869_v56 = vadd.f32 %v741_v62, %v470_v45  ;;  %v870_v58 = vadd.f32 %v742_v22, %v471_v54  ;;  %v899_v49 = vadd.f32 %v771_v7, %v500_v32  ;;  %10780 = vst [vmem:[#allocation45_spill] sm:$0xff] %v8747_v21  ;;  %4995 = vperm.xlu0 %5901, %v4901_v51   ;;  %v10782_v45 = vld [vmem:[#allocation46_spill] sm:$0xff]  ;;  %v10783_v32 = vld [vmem:[#allocation47_spill] sm:$0xff]  ;;  %v10784_v12 = vld [vmem:[#allocation48_spill] sm:$0xff] }
 0x1fd   :  { %v2994_v59 = vmul.f32 0.25, %v2990_v19  ;;  %v900_v13 = vadd.f32 %v772_v35, %v501_v9  ;;  %v901_v33 = vadd.f32 %v773_v24, %v502_v55  ;;  %v902_v20 = vadd.f32 %v774_v11, %v503_v16  ;;  %3323 = vmatprep.mubr.bf16.mxu1 %v10763_v57  ;;  %v10785_v9 = vld [vmem:[#allocation49_spill] sm:$0xff]  ;;  %4082 = vperm.xlu1 %5902, %v3776_v50   ;;  %v10787_v22 = vld [vmem:[#allocation82_spill] sm:$0xff] }
 0x1fe   :  { %v1299_v54 = vmul.f32 %v10782_v45, %v10781_v28  ;;  %v1300_v4 = vmul.f32 %v10783_v32, %v10781_v28  ;;  %v1301_v62 = vmul.f32 %v10784_v12, %v10781_v28  ;;  %v1302_v55 = vmul.f32 %v10785_v9, %v10781_v28 }
 0x1ff   :  { %v8761_v16 = vpack.c.bf16 %v2994_v59, %v2993_v47  ;;  %v1331_v53 = vmul.f32 %v10782_v45, %v10787_v22  ;;  %v1332_v7 = vmul.f32 %v10783_v32, %v10787_v22  ;;  %v1333_v35 = vmul.f32 %v10784_v12, %v10787_v22  ;;  %v4914_v45 = vld [vmem:[%s10160_s9 + $0xe0] sm:$0xff]  ;;  %v8778_v32 = vld [vmem:[%s10155_s4 + $0x18] sm:$0xff]  }
 0x200   :  { %v1334_v24 = vmul.f32 %v10785_v9, %v10787_v22  ;;  %v1427_v51 = vadd.f32 %v1299_v54, %v867_v37  ;;  %v1428_v19 = vadd.f32 %v1300_v4, %v868_v34  ;;  %v1429_v11 = vadd.f32 %v1301_v62, %v869_v56  ;;  %10788 = vst [vmem:[#allocation63_spill] sm:$0xff] %v8778_v32  ;;  %v10789_v9 = vld [vmem:[#allocation86_spill] sm:$0xff]  ;;  %v10793_v62 = vld [vmem:[#allocation28_spill] sm:$0xff] }
 0x201   :  { %10786 = vst [vmem:[#allocation61_spill] sm:$0xff] %v8761_v16  ;;  %3408 = vmatpush1.bf16.msra.mxu1 %v8761_v16  ;;  %v1430_v50 = vadd.f32 %v1302_v55, %v870_v58  ;;  %v1459_v47 = vadd.f32 %v1331_v53, %v899_v49  ;;  %v1460_v59 = vadd.f32 %v1332_v7, %v900_v13  ;;  %v10790_v58 = vld [vmem:[#allocation50_spill] sm:$0xff]  ;;  %v10792_v13 = vld [vmem:[#allocation24_spill] sm:$0xff] }
 0x202   :  { %v1461_v21 = vadd.f32 %v1333_v35, %v901_v33  ;;  %v1462_v12 = vadd.f32 %v1334_v24, %v902_v20  ;;  %v1859_v37 = vmul.f32 %v8432_v63, %v10789_v9  ;;  %v1860_v56 = vmul.f32 %v8439_v36, %v10789_v9  ;;  %3338 = vmatprep.subr.bf16.mxu0 %v8761_v16  ;;  %v10791_v33 = vld [vmem:[#allocation51_spill] sm:$0xff] }
 0x203   :  { %v1861_v49 = vmul.f32 %v10790_v58, %v10789_v9  ;;  %v1862_v34 = vmul.f32 %v10791_v33, %v10789_v9  ;;  %v1891_v54 = vmul.f32 %v8432_v63, %v10792_v13  ;;  %v1892_v20 = vmul.f32 %v8439_v36, %v10792_v13  ;;  %3339 = vmatpush1.bf16.msra.mxu0 %v10793_v62  ;;  %v3760_v36 = vld [vmem:[%s10158_s7 + $0x160] sm:$0xff] }
 0x204   :  { %v1893_v4 = vmul.f32 %v10790_v58, %v10792_v13  ;;  %v1894_v55 = vmul.f32 %v10791_v33, %v10792_v13  ;;  %v1987_v53 = vadd.f32 %v1859_v37, %v1427_v51  ;;  %v1988_v7 = vadd.f32 %v1860_v56, %v1428_v19  ;;  %5060 = vperm.xlu1 %5902, %v4914_v45   ;;  %v10794_v58 = vld [vmem:[#allocation26_spill] sm:$0xff] }
 0x205   :  { %v1989_v35 = vadd.f32 %v1861_v49, %v1429_v11  ;;  %v1990_v24 = vadd.f32 %v1862_v34, %v1430_v50  ;;  %v2019_v6 = vadd.f32 %v1891_v54, %v1459_v47  ;;  %v2020_v16 = vadd.f32 %v1892_v20, %v1460_v59  ;;  %5577 = vmatmul.mubr.msk.bf16.gmra.mrb[12].mxu0 %vm3175_vm0, %v8778_v32  ;;  %v10796_v50 = vld [vmem:[#allocation27_spill] sm:$0xff] }
 0x206   :  { %v2021_v38 = vadd.f32 %v1893_v4, %v1461_v21  ;;  %v2022_v63 = vadd.f32 %v1894_v55, %v1462_v12  ;;  %v2135_v62 = vmul.f32 %v10794_v58, %v8329_v41  ;;  %v2136_v51 = vmul.f32 %v10794_v58, %v8332_v52  ;;  %5581 = vmatmul.mubr.msk.bf16.gmra.mrb[12].mxu1 %vm3175_vm0, %v8778_v32  ;;  %v10795_v21 = vld [vmem:[#allocation31_spill] sm:$0xff]  ;;  %v8845_v32 = vpop.permute.xlu1 %3117 }
 0x207   :  { %v2137_v19 = vmul.f32 %v10794_v58, %v8342_v48  ;;  %v2138_v11 = vmul.f32 %v10794_v58, %v10795_v21  ;;  %v2167_v47 = vmul.f32 %v10796_v50, %v8329_v41  ;;  %v2168_v59 = vmul.f32 %v10796_v50, %v8332_v52  ;;  %3366 = vmatprep.mubr.bf16.mxu0 %v10763_v57  ;;  %v4898_v41 = vld [vmem:[%s10160_s9 + $0x60] sm:$0xff] }
 0x208   :  { %v2169_v45 = vmul.f32 %v10796_v50, %v8342_v48  ;;  %v2170_v12 = vmul.f32 %v10796_v50, %v10795_v21  ;;  %v2263_v37 = vadd.f32 %v2135_v62, %v1987_v53  ;;  %v2264_v56 = vadd.f32 %v2136_v51, %v1988_v7  ;;  %4002 = vperm.xlu1 %5902, %v3760_v36   ;;  %v10797_v4 = vld [vmem:[#allocation91_spill] sm:$0xff]  ;;  %v10798_v7 = vld [vmem:[#allocation42_spill] sm:$0xff] }
 0x209   :  { %v2265_v49 = vadd.f32 %v2137_v19, %v1989_v35  ;;  %v2266_v33 = vadd.f32 %v2138_v11, %v1990_v24  ;;  %v2295_v34 = vadd.f32 %v2167_v47, %v2019_v6  ;;  %v2296_v54 = vadd.f32 %v2168_v59, %v2020_v16  ;;  %3439 = vmatprep.mubr.bf16.mxu1 %v10763_v57  ;;  %v10799_v24 = vld [vmem:[#allocation43_spill] sm:$0xff] }
 0x20a   :  { %v2297_v20 = vadd.f32 %v2169_v45, %v2021_v38  ;;  %v2298_v52 = vadd.f32 %v2170_v12, %v2022_v63  ;;  %v2411_v55 = vmul.f32 %v10797_v4, %v8360_v15  ;;  %v2412_v53 = vmul.f32 %v10797_v4, %v8363_v61  ;;  %v10800_v38 = vld [vmem:[#allocation20_spill] sm:$0xff]  ;;  %10801 = vst [vmem:[#allocation64_spill] sm:$0xff] %v8845_v32  ;;  %v10802_v57 = vld [vmem:[#allocation59_spill] sm:$0xff] }
 0x20b   :  { %v2413_v35 = vmul.f32 %v10797_v4, %v10798_v7  ;;  %v2414_v6 = vmul.f32 %v10797_v4, %v10799_v24  ;;  %v2443_v16 = vmul.f32 %v10800_v38, %v8360_v15  ;;  %v2444_v36 = vmul.f32 %v10800_v38, %v8363_v61  ;;  %v3778_v15 = vld [vmem:[%s10158_s7 + $0x1f0] sm:$0xff] }
 0x20c   :  { %v2445_v63 = vmul.f32 %v10800_v38, %v10798_v7  ;;  %v2446_v62 = vmul.f32 %v10800_v38, %v10799_v24  ;;  %v2539_v51 = vadd.f32 %v2411_v55, %v2263_v37  ;;  %v2540_v19 = vadd.f32 %v2412_v53, %v2264_v56  ;;  %4980 = vperm.xlu1 %5902, %v4898_v41  }
 0x20d   :  { %v2541_v11 = vadd.f32 %v2413_v35, %v2265_v49  ;;  %v2542_v47 = vadd.f32 %v2414_v6, %v2266_v33  ;;  %v2571_v59 = vadd.f32 %v2443_v16, %v2295_v34  ;;  %v2572_v45 = vadd.f32 %v2444_v36, %v2296_v54  ;;  %v10803_v49 = vld [vmem:[#allocation60_spill] sm:$0xff]  ;;  %v4916_v36 = vld [vmem:[%s10160_s9 + $0xf0] sm:$0xff] }
 0x20e   :  { %v2573_v12 = vadd.f32 %v2445_v63, %v2297_v20  ;;  %v2574_v61 = vadd.f32 %v2446_v62, %v2298_v52  ;;  %v2691_v7 = vadd.f32 %v10802_v57, %v2539_v51  ;;  %v2692_v21 = vadd.f32 %v10802_v57, %v2540_v19 }
 0x20f   :  { %v2693_v37 = vadd.f32 %v10802_v57, %v2541_v11  ;;  %v2694_v56 = vadd.f32 %v10802_v57, %v2542_v47  ;;  %v2723_v33 = vadd.f32 %v10803_v49, %v2571_v59  ;;  %v2724_v34 = vadd.f32 %v10803_v49, %v2572_v45  ;;  %v8868_v59 = vpop.permute.xlu1 %3127 }
 0x210   :  { %v2725_v54 = vadd.f32 %v10803_v49, %v2573_v12  ;;  %v2726_v20 = vadd.f32 %v10803_v49, %v2574_v61  ;;  %v2819_v41 = vmax.f32 %v2691_v7, 0.0  ;;  %v2820_v55 = vmax.f32 %v2692_v21, 0.0  ;;  %4092 = vperm.xlu1 %5902, %v3778_v15   ;;  %10804 = vst [vmem:[#allocation65_spill] sm:$0xff] %v8868_v59 }
 0x211   :  { %v2821_v53 = vmax.f32 %v2693_v37, 0.0  ;;  %v2822_v52 = vmax.f32 %v2694_v56, 0.0  ;;  %v2851_v35 = vmax.f32 %v2723_v33, 0.0  ;;  %v2852_v6 = vmax.f32 %v2724_v34, 0.0 }
 0x212   :  { %v2853_v16 = vmax.f32 %v2725_v54, 0.0  ;;  %v2854_v63 = vmax.f32 %v2726_v20, 0.0  ;;  %v3007_v62 = vadd.f32 %v2820_v55, %v2819_v41  ;;  %v464_v51 = vmul.f32 %v8030_v40, %v10774_v18 }
 0x213   :  { %v465_v19 = vmul.f32 %v8015_v1, %v10774_v18  ;;  %v3008_v7 = vadd.f32 %v2852_v6, %v2851_v35  ;;  %v466_v21 = vmul.f32 %v8508_v5, %v10774_v18  ;;  %v467_v11 = vmul.f32 %v8514_v23, %v10774_v18 }
 0x214   :  { %v496_v47 = vmul.f32 %v8030_v40, %v10776_v39  ;;  %v3011_v45 = vadd.f32 %v3007_v62, %v2821_v53  ;;  %v497_v12 = vmul.f32 %v8015_v1, %v10776_v39  ;;  %v498_v15 = vmul.f32 %v8508_v5, %v10776_v39  ;;  %5070 = vperm.xlu1 %5902, %v4916_v36   ;;  %v3762_v1 = vld [vmem:[%s10158_s7 + $0x170] sm:$0xff] }
 0x215   :  { %v499_v61 = vmul.f32 %v8514_v23, %v10776_v39  ;;  %v3012_v37 = vadd.f32 %v3008_v7, %v2853_v16  ;;  %v735_v56 = vmul.f32 %v8040_v29, %v10777_v42  ;;  %v736_v40 = vmul.f32 %v8043_v17, %v10777_v42 }
 0x216   :  { %v737_v33 = vmul.f32 %v8539_v14, %v10777_v42  ;;  %v3015_v34 = vadd.f32 %v3011_v45, %v2822_v52  ;;  %v738_v54 = vmul.f32 %v8543_v27, %v10777_v42  ;;  %v767_v20 = vmul.f32 %v8040_v29, %v10779_v30 }
 0x217   :  { %v768_v41 = vmul.f32 %v8043_v17, %v10779_v30  ;;  %v3016_v55 = vadd.f32 %v3012_v37, %v2854_v63  ;;  %v769_v53 = vmul.f32 %v8539_v14, %v10779_v30  ;;  %v770_v35 = vmul.f32 %v8543_v27, %v10779_v30  ;;  %v4900_v17 = vld [vmem:[%s10160_s9 + $0x70] sm:$0xff]  ;;  %v8898_v63 = vpop.permute.xlu1 %3137 }
 0x218   :  { %v863_v6 = vadd.f32 %v735_v56, %v464_v51  ;;  %v3019_v16 = vmul.f32 0.25, %v3015_v34  ;;  %v864_v36 = vadd.f32 %v736_v40, %v465_v19  ;;  %v865_v52 = vadd.f32 %v737_v33, %v466_v21  ;;  %4012 = vperm.xlu1 %5902, %v3762_v1   ;;  %10805 = vst [vmem:[#allocation66_spill] sm:$0xff] %v8898_v63  ;;  %v10829_v63 = vld [vmem:[#allocation84_spill] sm:$0xff] }
 0x219   :  { %v866_v62 = vadd.f32 %v738_v54, %v467_v11  ;;  %v3020_v7 = vmul.f32 0.25, %v3016_v55  ;;  %v895_v45 = vadd.f32 %v767_v20, %v496_v47  ;;  %v896_v59 = vadd.f32 %v768_v41, %v497_v12  ;;  %v5480_v20 = vld [vmem:[#allocation4] sm:$0x1] }
 0x21a   :  { %v897_v29 = vadd.f32 %v769_v53, %v498_v15  ;;  %v898_v37 = vadd.f32 %v770_v35, %v499_v61  ;;  %v1295_v32 = vmul.f32 %v8596_v31, %v10781_v28  ;;  %v1296_v51 = vmul.f32 %v8599_v10, %v10781_v28 }
 0x21b   :  { %v1297_v19 = vmul.f32 %v8602_v2, %v10781_v28  ;;  %v8906_v21 = vpack.c.bf16 %v3020_v7, %v3019_v16  ;;  %v1298_v11 = vmul.f32 %v8605_v25, %v10781_v28  ;;  %v1327_v47 = vmul.f32 %v8596_v31, %v10787_v22  ;;  %v8931_v53 = vpop.permute.xlu1 %3147 }
 0x21c   :  { %v1328_v12 = vmul.f32 %v8599_v10, %v10787_v22  ;;  %v1329_v15 = vmul.f32 %v8602_v2, %v10787_v22  ;;  %v1330_v61 = vmul.f32 %v8605_v25, %v10787_v22  ;;  %v1423_v56 = vadd.f32 %v1295_v32, %v863_v6  ;;  %4990 = vperm.xlu1 %5902, %v4900_v17  }
 0x21d   :  { %10806 = vst [vmem:[#allocation67_spill] sm:$0xff] %v8906_v21  ;;  %v1424_v40 = vadd.f32 %v1296_v51, %v864_v36  ;;  %3409 = vmatprep.subr.bf16.mxu1 %v8906_v21  ;;  %v1425_v33 = vadd.f32 %v1297_v19, %v865_v52  ;;  %v1426_v1 = vadd.f32 %v1298_v11, %v866_v62  ;;  %10807 = vst [vmem:[#allocation68_spill] sm:$0xff] %v8931_v53 }
 0x21e   :  { %v1455_v34 = vadd.f32 %v1327_v47, %v895_v45  ;;  %v1456_v54 = vadd.f32 %v1328_v12, %v896_v59  ;;  %v1457_v31 = vadd.f32 %v1329_v15, %v897_v29  ;;  %v1458_v41 = vadd.f32 %v1330_v61, %v898_v37 }
 0x21f   :  { %v1855_v10 = vmul.f32 %v8609_v0, %v10789_v9  ;;  %v1856_v2 = vmul.f32 %v8612_v8, %v10789_v9  ;;  %v1857_v25 = vmul.f32 %v8615_v26, %v10789_v9  ;;  %v1858_v32 = vmul.f32 %v8618_v46, %v10789_v9 }
 0x220   :  { %v1887_v55 = vmul.f32 %v8609_v0, %v10792_v13  ;;  %v1888_v59 = vmul.f32 %v8612_v8, %v10792_v13  ;;  %v1889_v35 = vmul.f32 %v8615_v26, %v10792_v13  ;;  %v1890_v6 = vmul.f32 %v8618_v46, %v10792_v13  ;;  %5483 = vperm.xlu1 %5902, %v5480_v20  }
 0x221   :  { %v1983_v16 = vadd.f32 %v1855_v10, %v1423_v56  ;;  %v1984_v36 = vadd.f32 %v1856_v2, %v1424_v40  ;;  %v1985_v52 = vadd.f32 %v1857_v25, %v1425_v33  ;;  %v1986_v62 = vadd.f32 %v1858_v32, %v1426_v1 }
 0x222   :  { %v2015_v7 = vadd.f32 %v1887_v55, %v1455_v34  ;;  %v2016_v45 = vadd.f32 %v1888_v59, %v1456_v54  ;;  %v2017_v29 = vadd.f32 %v1889_v35, %v1457_v31  ;;  %v2018_v0 = vadd.f32 %v1890_v6, %v1458_v41 }
 0x223   :  { %v2131_v8 = vmul.f32 %v10794_v58, %v8508_v5  ;;  %v2132_v17 = vmul.f32 %v10794_v58, %v8514_v23  ;;  %v2133_v26 = vmul.f32 %v10794_v58, %v10770_v43  ;;  %v2134_v46 = vmul.f32 %v10794_v58, %v10771_v44 }
 0x224   :  { %v2163_v37 = vmul.f32 %v10796_v50, %v8508_v5  ;;  %v2164_v51 = vmul.f32 %v10796_v50, %v8514_v23  ;;  %v2165_v19 = vmul.f32 %v10796_v50, %v10770_v43  ;;  %v2166_v11 = vmul.f32 %v10796_v50, %v10771_v44 }
 0x225   :  { %v2259_v47 = vadd.f32 %v2131_v8, %v1983_v16  ;;  %v2260_v12 = vadd.f32 %v2132_v17, %v1984_v36  ;;  %v2261_v15 = vadd.f32 %v2133_v26, %v1985_v52  ;;  %v2262_v61 = vadd.f32 %v2134_v46, %v1986_v62 }
 0x226   :  { %v2291_v56 = vadd.f32 %v2163_v37, %v2015_v7  ;;  %v2292_v40 = vadd.f32 %v2164_v51, %v2016_v45  ;;  %v2293_v33 = vadd.f32 %v2165_v19, %v2017_v29  ;;  %v2294_v1 = vadd.f32 %v2166_v11, %v2018_v0  ;;  %v8980_v37 = vld [vmem:[%s10151_s0 + $0x38] sm:$0xff]  ;;  %v10808_v11 = vld [vmem:[#allocation29_spill] sm:$0xff] }
 0x227   :  { %v2407_v5 = vmul.f32 %v10797_v4, %v8539_v14  ;;  %v2408_v23 = vmul.f32 %v10797_v4, %v8543_v27  ;;  %v2409_v43 = vmul.f32 %v10797_v4, %v10772_v3  ;;  %v2410_v44 = vmul.f32 %v10797_v4, %v10773_v60 }
 0x228   :  { %v2439_v34 = vmul.f32 %v10800_v38, %v8539_v14  ;;  %v2440_v54 = vmul.f32 %v10800_v38, %v8543_v27  ;;  %v2441_v20 = vmul.f32 %v10800_v38, %v10772_v3  ;;  %v2442_v31 = vmul.f32 %v10800_v38, %v10773_v60 }
 0x229   :  { %v2535_v41 = vadd.f32 %v2407_v5, %v2259_v47  ;;  %v2536_v10 = vadd.f32 %v2408_v23, %v2260_v12  ;;  %v2537_v2 = vadd.f32 %v2409_v43, %v2261_v15  ;;  %v2538_v25 = vadd.f32 %v2410_v44, %v2262_v61  ;;  %v10809_v12 = vld [vmem:[#allocation71_spill] sm:$0xff]  ;;  %v10812_v5 = vld [vmem:[#allocation77_spill] sm:$0xff] }
 0x22a   :  { %v2567_v32 = vadd.f32 %v2439_v34, %v2291_v56  ;;  %v2568_v55 = vadd.f32 %v2440_v54, %v2292_v40  ;;  %v2569_v59 = vadd.f32 %v2441_v20, %v2293_v33  ;;  %v2570_v35 = vadd.f32 %v2442_v31, %v2294_v1  ;;  %v10810_v61 = vld [vmem:[#allocation31_spill] sm:$0xff]  ;;  %v10811_v33 = vld [vmem:[#allocation9_spill] sm:$0xff]  ;;  %v10813_v34 = vld [vmem:[#allocation12_spill] sm:$0xff] }
 0x22b   :  { %v2687_v6 = vadd.f32 %v10802_v57, %v2535_v41  ;;  %v2688_v14 = vadd.f32 %v10802_v57, %v2536_v10  ;;  %v2689_v27 = vadd.f32 %v10802_v57, %v2537_v2  ;;  %v2690_v16 = vadd.f32 %v10802_v57, %v2538_v25  ;;  %v10814_v20 = vld [vmem:[#allocation14_spill] sm:$0xff] }
 0x22c   :  { %v2719_v3 = vadd.f32 %v10803_v49, %v2567_v32  ;;  %v2720_v60 = vadd.f32 %v10803_v49, %v2568_v55  ;;  %v2721_v36 = vadd.f32 %v10803_v49, %v2569_v59  ;;  %v2722_v52 = vadd.f32 %v10803_v49, %v2570_v35  ;;  %v10815_v41 = vld [vmem:[#allocation70_spill] sm:$0xff] }
 0x22d   :  { %v2815_v62 = vmax.f32 %v2687_v6, 0.0  ;;  %v2816_v7 = vmax.f32 %v2688_v14, 0.0  ;;  %v2817_v45 = vmax.f32 %v2689_v27, 0.0  ;;  %v2818_v29 = vmax.f32 %v2690_v16, 0.0  ;;  %v10816_v10 = vld [vmem:[#allocation42_spill] sm:$0xff] }
 0x22e   :  { %v2847_v0 = vmax.f32 %v2719_v3, 0.0  ;;  %v2848_v8 = vmax.f32 %v2720_v60, 0.0  ;;  %v2849_v17 = vmax.f32 %v2721_v36, 0.0  ;;  %v2850_v26 = vmax.f32 %v2722_v52, 0.0 }
 0x22f   :  { %v2983_v46 = vadd.f32 %v2816_v7, %v2815_v62  ;;  %v180_v51 = vcombine.high %v8980_v37, %v8980_v37  ;;  %v195_v47 = vcombine.high %v10808_v11, %v10808_v11  ;;  %v408_v15 = vmul.f32 %v8342_v48, %v10809_v12  ;;  %v10817_v7 = vld [vmem:[#allocation76_spill] sm:$0xff] }
 0x230   :  { %v2984_v19 = vadd.f32 %v2848_v8, %v2847_v0  ;;  %v409_v56 = vmul.f32 %v10810_v61, %v10809_v12  ;;  %v440_v23 = vmul.f32 %v8342_v48, %v10812_v5  ;;  %v441_v43 = vmul.f32 %v10810_v61, %v10812_v5 }
 0x231   :  { %v2987_v40 = vadd.f32 %v2983_v46, %v2817_v45  ;;  %v194_v1 = vrot.slane %v180_v51, %v10811_v33  ;;  %v8996_v54 = vrot.slane %v195_v47, %v10813_v34  ;;  %v8999_v31 = vrot.slane %v195_v47, %v10814_v20 }
 0x232   :  { %v2988_v44 = vadd.f32 %v2984_v19, %v2849_v17  ;;  %v679_v2 = vmul.f32 %v10816_v10, %v10815_v41  ;;  %v680_v27 = vmul.f32 %v10799_v24, %v10815_v41  ;;  %v711_v45 = vmul.f32 %v10816_v10, %v10817_v7 }
 0x233   :  { %v2991_v25 = vadd.f32 %v2987_v40, %v2818_v29  ;;  %v9003_v32 = vcombine.high %v194_v1, %v194_v1  ;;  %v9006_v55 = vrot.slane %v194_v1, %v10813_v34  ;;  %v9009_v59 = vrot.slane %v194_v1, %v10814_v20  ;;  %v10818_v1 = vld [vmem:[#allocation10_spill] sm:$0xff] }
 0x234   :  { %v2992_v35 = vadd.f32 %v2988_v44, %v2850_v26  ;;  %v410_v6 = vmul.f32 %v8996_v54, %v10809_v12  ;;  %v442_v14 = vmul.f32 %v8996_v54, %v10812_v5  ;;  %v681_v36 = vmul.f32 %v8999_v31, %v10815_v41  ;;  %v10819_v44 = vld [vmem:[#allocation11_spill] sm:$0xff] }
 0x235   :  { %v2995_v16 = vmul.f32 0.25, %v2991_v25  ;;  %v411_v3 = vmul.f32 %v9006_v55, %v10809_v12  ;;  %v443_v60 = vmul.f32 %v9006_v55, %v10812_v5  ;;  %v682_v62 = vmul.f32 %v9009_v59, %v10815_v41  ;;  %v10820_v25 = vld [vmem:[#allocation13_spill] sm:$0xff] }
 0x236   :  { %v2996_v52 = vmul.f32 0.25, %v2992_v35  ;;  %v712_v29 = vmul.f32 %v10799_v24, %v10817_v7  ;;  %v713_v0 = vmul.f32 %v8999_v31, %v10817_v7  ;;  %v714_v8 = vmul.f32 %v9009_v59, %v10817_v7  ;;  %v10822_v35 = vld [vmem:[#allocation16_spill] sm:$0xff] }
 0x237   :  { %v807_v17 = vadd.f32 %v679_v2, %v408_v15  ;;  %v808_v26 = vadd.f32 %v680_v27, %v409_v56  ;;  %v809_v51 = vadd.f32 %v681_v36, %v410_v6  ;;  %v810_v19 = vadd.f32 %v682_v62, %v411_v3  ;;  %v10825_v62 = vld [vmem:[#allocation80_spill] sm:$0xff] }
 0x238   :  { %v2998_v46 = vpack.c.bf16 %v2996_v52, %v2995_v16  ;;  %v839_v11 = vadd.f32 %v711_v45, %v440_v23  ;;  %v840_v47 = vadd.f32 %v712_v29, %v441_v43  ;;  %v841_v12 = vadd.f32 %v713_v0, %v442_v14  ;;  %v10821_v43 = vld [vmem:[#allocation15_spill] sm:$0xff]  ;;  %v10823_v14 = vld [vmem:[#allocation17_spill] sm:$0xff] }
 0x239   :  { %v842_v40 = vadd.f32 %v714_v8, %v443_v60  ;;  %v1038_v33 = vrot.slane %v8980_v37, %v10813_v34  ;;  %v1042_v5 = vrot.slane %v8980_v37, %v10818_v1  ;;  %v1046_v41 = vrot.slane %v8980_v37, %v10819_v44  ;;  %v10824_v52 = vld [vmem:[#allocation37_spill] sm:$0xff]  ;;  %v10826_v45 = vld [vmem:[#allocation79_spill] sm:$0xff] }
 0x23a   :  { %3410 = vmatpush1.bf16.msra.mxu1 %v2998_v46  ;;  %v1050_v15 = vrot.slane %v8980_v37, %v10820_v25  ;;  %v1598_v56 = vrot.slane %v8980_v37, %v10814_v20  ;;  %v1602_v2 = vrot.slane %v8980_v37, %v10821_v43  ;;  %v1606_v6 = vrot.slane %v8980_v37, %v10822_v35  ;;  %v10827_v8 = vld [vmem:[#allocation39_spill] sm:$0xff] }
 0x23b   :  { %v9044_v23 = vrot.slane %v1038_v33, %v10813_v34  ;;  %v1610_v27 = vrot.slane %v8980_v37, %v10823_v14  ;;  %3340 = vmatprep.subr.bf16.mxu0 %v2998_v46  ;;  %v9053_v16 = vrot.slane %v1042_v5, %v10813_v34  ;;  %v9056_v3 = vrot.slane %v1046_v41, %v10813_v34  ;;  %v10828_v14 = vld [vmem:[#allocation61_spill] sm:$0xff] }
 0x23c   :  { %v9059_v60 = vrot.slane %v1050_v15, %v10813_v34  ;;  %v9062_v36 = vrot.slane %v1598_v56, %v10814_v20  ;;  %3341 = vmatpush1.bf16.msra.mxu0 %v10824_v52  ;;  %v9070_v29 = vrot.slane %v1602_v2, %v10814_v20  ;;  %v9073_v0 = vrot.slane %v1606_v6, %v10814_v20 }
 0x23d   :  { %v1239_v7 = vmul.f32 %v9044_v23, %v10825_v62  ;;  %v1271_v37 = vmul.f32 %v9044_v23, %v10826_v45  ;;  %3342 = vmatprep.subr.bf16.mxu0 %v10827_v8  ;;  %v1240_v33 = vmul.f32 %v9053_v16, %v10825_v62  ;;  %v1241_v1 = vmul.f32 %v9056_v3, %v10825_v62 }
 0x23e   :  { %v1242_v5 = vmul.f32 %v9059_v60, %v10825_v62  ;;  %v1272_v44 = vmul.f32 %v9053_v16, %v10826_v45  ;;  %v1273_v41 = vmul.f32 %v9056_v3, %v10826_v45  ;;  %v1274_v25 = vmul.f32 %v9059_v60, %v10826_v45 }
 0x23f   :  { %v1367_v15 = vadd.f32 %v1239_v7, %v807_v17  ;;  %v1399_v56 = vadd.f32 %v1271_v37, %v839_v11  ;;  %v1368_v43 = vadd.f32 %v1240_v33, %v808_v26  ;;  %v1369_v2 = vadd.f32 %v1241_v1, %v809_v51  ;;  %v10830_v51 = vld [vmem:[#allocation87_spill] sm:$0xff] }
 0x240   :  { %v1370_v35 = vadd.f32 %v1242_v5, %v810_v19  ;;  %v1400_v6 = vadd.f32 %v1272_v44, %v840_v47  ;;  %3343 = vmatpush1.bf16.msra.mxu0 %v10828_v14  ;;  %v1401_v52 = vadd.f32 %v1273_v41, %v841_v12  ;;  %v1402_v53 = vadd.f32 %v1274_v25, %v842_v40  ;;  %v10832_v25 = vld [vmem:[#allocation90_spill] sm:$0xff] }
 0x241   :  { %v9090_v62 = vrot.slane %v1610_v27, %v10814_v20  ;;  %v1799_v49 = vmul.f32 %v9062_v36, %v10829_v63  ;;  %3344 = vmatprep.subr.bf16.mxu0 %v8906_v21  ;;  %v1800_v17 = vmul.f32 %v9070_v29, %v10829_v63  ;;  %v1801_v26 = vmul.f32 %v9073_v0, %v10829_v63 }
 0x242   :  { %v1831_v19 = vmul.f32 %v9062_v36, %v10830_v51  ;;  %v1832_v11 = vmul.f32 %v9070_v29, %v10830_v51  ;;  %v1833_v12 = vmul.f32 %v9073_v0, %v10830_v51  ;;  %v9111_v41 = vrot.slane %v9003_v32, %v10813_v34 }
 0x243   :  { %v1802_v47 = vmul.f32 %v9090_v62, %v10829_v63  ;;  %v1834_v40 = vmul.f32 %v9090_v62, %v10830_v51  ;;  %v1927_v27 = vadd.f32 %v1799_v49, %v1367_v15  ;;  %v1928_v7 = vadd.f32 %v1800_v17, %v1368_v43  ;;  %v10833_v15 = vld [vmem:[#allocation22_spill] sm:$0xff] }
 0x244   :  { %v1929_v45 = vadd.f32 %v1801_v26, %v1369_v2  ;;  %v1959_v37 = vadd.f32 %v1831_v19, %v1399_v56  ;;  %v1960_v33 = vadd.f32 %v1832_v11, %v1400_v6  ;;  %3345 = vmatpush1.bf16.msra.mxu0 %v2998_v46  ;;  %v1961_v5 = vadd.f32 %v1833_v12, %v1401_v52  ;;  %v9131_v52 = vld [vmem:[%s10155_s4] sm:$0xff]  }
 0x245   :  { %v1930_v1 = vadd.f32 %v1802_v47, %v1370_v35  ;;  %v1962_v44 = vadd.f32 %v1834_v40, %v1402_v53  ;;  %v10831_v63 = vmov 0   ;;  %v2075_v14 = vmul.f32 %v10832_v25, %v8996_v54  ;;  %v10834_v35 = vld [vmem:[#allocation53_spill] sm:$0xff]  ;;  %10835 = vst [vmem:[#allocation69_spill] sm:$0xff] %v9131_v52 }
 0x246   :  { %4485 = vmatprep.subr.bf16.mxu0 %v10831_v63  ;;  %v2076_v49 = vmul.f32 %v10832_v25, %v9006_v55  ;;  %v2107_v56 = vmul.f32 %v10833_v15, %v8996_v54  ;;  %v2108_v46 = vmul.f32 %v10833_v15, %v9006_v55  ;;  %v2077_v53 = vmul.f32 %v9111_v41, %v10832_v25 }
 0x247   :  { %v2109_v43 = vmul.f32 %v9111_v41, %v10833_v15  ;;  %v2110_v2 = vmul.f32 0.0, %v10833_v15  ;;  %v2206_v6 = vadd.f32 %v10834_v35, %v1930_v1  ;;  %5582 = vmatmul.mubr.msk.bf16.vlgmr.msra.gmra.mrb[16].mxu0 %vm3175_vm0, %v9131_v52  ;;  %v2203_v17 = vadd.f32 %v2075_v14, %v1927_v27  ;;  %v10836_v1 = vld [vmem:[#allocation92_spill] sm:$0xff]  ;;  %v10839_v52 = vld [vmem:[#allocation58_spill] sm:$0xff] }
 0x248   :  { %v2204_v26 = vadd.f32 %v2076_v49, %v1928_v7  ;;  %v2235_v51 = vadd.f32 %v2107_v56, %v1959_v37  ;;  %v2236_v19 = vadd.f32 %v2108_v46, %v1960_v33  ;;  %3376 = vmatprep.mubr.bf16.mxu0 %v10831_v63  ;;  %v2205_v11 = vadd.f32 %v2077_v53, %v1929_v45  ;;  %v10837_v7 = vld [vmem:[#allocation88_spill] sm:$0xff] }
 0x249   :  { %v2237_v47 = vadd.f32 %v2109_v43, %v1961_v5  ;;  %v2238_v12 = vadd.f32 %v2110_v2, %v1962_v44  ;;  %v9138_v40 = vrot.slane %v9003_v32, %v10814_v20  ;;  %v2351_v25 = vmul.f32 %v10836_v1, %v8999_v31  ;;  %v10838_v2 = vld [vmem:[#allocation25_spill] sm:$0xff] }
 0x24a   :  { %v2352_v15 = vmul.f32 %v10836_v1, %v9009_v59  ;;  %v2354_v27 = vmul.f32 0.0, %v10836_v1  ;;  %v2383_v37 = vmul.f32 %v10837_v7, %v8999_v31  ;;  %v2384_v33 = vmul.f32 %v10837_v7, %v9009_v59 }
 0x24b   :  { %v2353_v45 = vmul.f32 %v9138_v40, %v10836_v1  ;;  %v2385_v20 = vmul.f32 %v9138_v40, %v10837_v7  ;;  %v2386_v32 = vmul.f32 0.0, %v10837_v7  ;;  %v2479_v5 = vadd.f32 %v2351_v25, %v2203_v17 }
 0x24c   :  { %v2480_v44 = vadd.f32 %v2352_v15, %v2204_v26  ;;  %v2482_v14 = vadd.f32 %v2354_v27, %v2206_v6  ;;  %v2511_v49 = vadd.f32 %v2383_v37, %v2235_v51  ;;  %v2512_v46 = vadd.f32 %v2384_v33, %v2236_v19  ;;  %v9165_v26 = vld [vmem:[%s10155_s4 + $0x8] sm:$0xff]  }
 0x24d   :  { %v2481_v56 = vadd.f32 %v2353_v45, %v2205_v11  ;;  %v2513_v53 = vadd.f32 %v2385_v20, %v2237_v47  ;;  %v2514_v43 = vadd.f32 %v2386_v32, %v2238_v12  ;;  %v2631_v35 = vadd.f32 %v10838_v2, %v2479_v5 }
 0x24e   :  { %v2632_v1 = vadd.f32 %v10838_v2, %v2480_v44  ;;  %v2634_v34 = vadd.f32 %v10838_v2, %v2482_v14  ;;  %v2663_v21 = vadd.f32 %v10839_v52, %v2511_v49  ;;  %v2664_v7 = vadd.f32 %v10839_v52, %v2512_v46 }
 0x24f   :  { %v2633_v57 = vadd.f32 %v10838_v2, %v2481_v56  ;;  %v2665_v17 = vadd.f32 %v10839_v52, %v2513_v53  ;;  %v2666_v6 = vadd.f32 %v10839_v52, %v2514_v43  ;;  %5583 = vmatmul.mubr.msk.bf16.gmra.mrb[20].mxu0 %vm3175_vm0, %v9165_v26  ;;  %v2759_v51 = vmax.f32 %v2631_v35, 0.0 }
 0x250   :  { %v2760_v19 = vmax.f32 %v2632_v1, 0.0  ;;  %v2762_v11 = vmax.f32 %v2634_v34, 0.0  ;;  %v2791_v47 = vmax.f32 %v2663_v21, 0.0  ;;  %3386 = vmatprep.mubr.bf16.mxu0 %v10831_v63  ;;  %v2792_v25 = vmax.f32 %v2664_v7, 0.0  ;;  %v10840_v7 = vld [vmem:[#allocation44_spill] sm:$0xff] }
 0x251   :  { %v2761_v12 = vmax.f32 %v2633_v57, 0.0  ;;  %v2793_v15 = vmax.f32 %v2665_v17, 0.0  ;;  %v2794_v27 = vmax.f32 %v2666_v6, 0.0  ;;  %v472_v52 = vmul.f32 %v8342_v48, %v10774_v18 }
 0x252   :  { %v3029_v37 = vadd.f32 %v2760_v19, %v2759_v51  ;;  %v473_v45 = vmul.f32 %v10810_v61, %v10774_v18  ;;  %v474_v33 = vmul.f32 %v8996_v54, %v10774_v18  ;;  %v3030_v20 = vadd.f32 %v2792_v25, %v2791_v47 }
 0x253   :  { %v475_v21 = vmul.f32 %v9006_v55, %v10774_v18  ;;  %v504_v57 = vmul.f32 %v8342_v48, %v10776_v39  ;;  %v505_v34 = vmul.f32 %v10810_v61, %v10776_v39  ;;  %v506_v5 = vmul.f32 %v8996_v54, %v10776_v39 }
 0x254   :  { %v3033_v32 = vadd.f32 %v3029_v37, %v2761_v12  ;;  %v507_v44 = vmul.f32 %v9006_v55, %v10776_v39  ;;  %v743_v14 = vmul.f32 %v10816_v10, %v10777_v42  ;;  %v3034_v49 = vadd.f32 %v3030_v20, %v2793_v15 }
 0x255   :  { %v744_v18 = vmul.f32 %v10799_v24, %v10777_v42  ;;  %v745_v48 = vmul.f32 %v8999_v31, %v10777_v42  ;;  %v746_v61 = vmul.f32 %v9009_v59, %v10777_v42  ;;  %v775_v46 = vmul.f32 %v10816_v10, %v10779_v30 }
 0x256   :  { %v3037_v56 = vadd.f32 %v3033_v32, %v2762_v11  ;;  %v776_v39 = vmul.f32 %v10799_v24, %v10779_v30  ;;  %v777_v53 = vmul.f32 %v8999_v31, %v10779_v30  ;;  %v3038_v43 = vadd.f32 %v3034_v49, %v2794_v27 }
 0x257   :  { %v778_v2 = vmul.f32 %v9009_v59, %v10779_v30  ;;  %v871_v35 = vadd.f32 %v743_v14, %v472_v52  ;;  %v872_v1 = vadd.f32 %v744_v18, %v473_v45  ;;  %5584 = vmatmul.mubr.msk.bf16.gmra.mrb[24].mxu0 %vm3175_vm0, %v10840_v7  ;;  %v873_v17 = vadd.f32 %v745_v48, %v474_v33  ;;  %v10841_v14 = vld [vmem:[#allocation63_spill] sm:$0xff] }
 0x258   :  { %v3041_v42 = vmul.f32 0.25, %v3037_v56  ;;  %v874_v6 = vadd.f32 %v746_v61, %v475_v21  ;;  %v903_v51 = vadd.f32 %v775_v46, %v504_v57  ;;  %3396 = vmatprep.mubr.bf16.mxu0 %v10831_v63  ;;  %v3042_v10 = vmul.f32 0.25, %v3038_v43 }
 0x259   :  { %v904_v24 = vadd.f32 %v776_v39, %v505_v34  ;;  %v905_v19 = vadd.f32 %v777_v53, %v506_v5  ;;  %v906_v11 = vadd.f32 %v778_v2, %v507_v44  ;;  %v1303_v47 = vmul.f32 %v9044_v23, %v10781_v28 }
 0x25a   :  { %v1304_v30 = vmul.f32 %v9053_v16, %v10781_v28  ;;  %v1305_v12 = vmul.f32 %v9056_v3, %v10781_v28  ;;  %v1306_v25 = vmul.f32 %v9059_v60, %v10781_v28  ;;  %v9213_v15 = vpack.c.bf16 %v3042_v10, %v3041_v42 }
 0x25b   :  { %v1335_v27 = vmul.f32 %v9044_v23, %v10787_v22  ;;  %v1336_v37 = vmul.f32 %v9053_v16, %v10787_v22  ;;  %v1337_v52 = vmul.f32 %v9056_v3, %v10787_v22  ;;  %v1338_v45 = vmul.f32 %v9059_v60, %v10787_v22 }
 0x25c   :  { %v1431_v33 = vadd.f32 %v1303_v47, %v871_v35  ;;  %v1432_v20 = vadd.f32 %v1304_v30, %v872_v1  ;;  %v1433_v21 = vadd.f32 %v1305_v12, %v873_v17  ;;  %3411 = vmatprep.subr.bf16.mxu1 %v9213_v15  ;;  %v1434_v28 = vadd.f32 %v1306_v25, %v874_v6 }
 0x25d   :  { %v1463_v57 = vadd.f32 %v1335_v27, %v903_v51  ;;  %v1464_v34 = vadd.f32 %v1336_v37, %v904_v24  ;;  %v1465_v32 = vadd.f32 %v1337_v52, %v905_v19  ;;  %3412 = vmatpush1.bf16.msra.mxu1 %v10827_v8  ;;  %v1466_v23 = vadd.f32 %v1338_v45, %v906_v11 }
 0x25e   :  { %v1863_v16 = vmul.f32 %v9062_v36, %v10789_v9  ;;  %v1864_v3 = vmul.f32 %v9070_v29, %v10789_v9  ;;  %v1865_v22 = vmul.f32 %v9073_v0, %v10789_v9  ;;  %v1866_v60 = vmul.f32 %v9090_v62, %v10789_v9 }
 0x25f   :  { %v1895_v5 = vmul.f32 %v9062_v36, %v10792_v13  ;;  %v1896_v44 = vmul.f32 %v9070_v29, %v10792_v13  ;;  %v1897_v8 = vmul.f32 %v9073_v0, %v10792_v13  ;;  %5585 = vmatmul.mubr.msk.bf16.gmra.mrb[28].mxu0 %vm3175_vm0, %v10841_v14  ;;  %v1898_v49 = vmul.f32 %v9090_v62, %v10792_v13 }
 0x260   :  { %v1991_v18 = vadd.f32 %v1863_v16, %v1431_v33  ;;  %v1992_v48 = vadd.f32 %v1864_v3, %v1432_v20  ;;  %v1993_v61 = vadd.f32 %v1865_v22, %v1433_v21  ;;  %v1994_v56 = vadd.f32 %v1866_v60, %v1434_v28 }
 0x261   :  { %v2023_v9 = vadd.f32 %v1895_v5, %v1463_v57  ;;  %v2024_v46 = vadd.f32 %v1896_v44, %v1464_v34  ;;  %v2025_v39 = vadd.f32 %v1897_v8, %v1465_v32  ;;  %v2026_v36 = vadd.f32 %v1898_v49, %v1466_v23 }
 0x262   :  { %v2139_v29 = vmul.f32 %v10794_v58, %v8996_v54  ;;  %v2140_v0 = vmul.f32 %v10794_v58, %v9006_v55  ;;  %v2141_v53 = vmul.f32 %v9111_v41, %v10794_v58  ;;  %v2142_v43 = vmul.f32 0.0, %v10794_v58 }
 0x263   :  { %v2171_v13 = vmul.f32 %v10796_v50, %v8996_v54  ;;  %v2172_v62 = vmul.f32 %v10796_v50, %v9006_v55  ;;  %v2173_v2 = vmul.f32 %v9111_v41, %v10796_v50  ;;  %v2174_v35 = vmul.f32 0.0, %v10796_v50 }
 0x264   :  { %v2267_v1 = vadd.f32 %v2139_v29, %v1991_v18  ;;  %v2268_v7 = vadd.f32 %v2140_v0, %v1992_v48  ;;  %v2269_v42 = vadd.f32 %v2141_v53, %v1993_v61  ;;  %v2270_v17 = vadd.f32 %v2142_v43, %v1994_v56  ;;  %v10845_v29 = vld [vmem:[#allocation69_spill] sm:$0xff]  ;;  %v10846_v43 = vld [vmem:[#allocation64_spill] sm:$0xff] }
 0x265   :  { %v2299_v6 = vadd.f32 %v2171_v13, %v2023_v9  ;;  %v2300_v51 = vadd.f32 %v2172_v62, %v2024_v46  ;;  %v2301_v10 = vadd.f32 %v2173_v2, %v2025_v39  ;;  %v2302_v24 = vadd.f32 %v2174_v35, %v2026_v36  ;;  %v10844_v36 = vld [vmem:[#allocation67_spill] sm:$0xff]  ;;  %v6064_v0 = vld [vmem:[%s10155_s4 + $0x10] sm:$0xff]  }
 0x266   :  { %v2415_v58 = vmul.f32 %v10797_v4, %v8999_v31  ;;  %v2416_v54 = vmul.f32 %v10797_v4, %v9009_v59  ;;  %v2417_v55 = vmul.f32 %v9138_v40, %v10797_v4  ;;  %v2418_v41 = vmul.f32 0.0, %v10797_v4  ;;  %v10842_v4 = vld [vmem:[#allocation59_spill] sm:$0xff] }
 0x267   :  { %v2447_v50 = vmul.f32 %v10800_v38, %v8999_v31  ;;  %v2448_v19 = vmul.f32 %v10800_v38, %v9009_v59  ;;  %v2449_v11 = vmul.f32 %v9138_v40, %v10800_v38  ;;  %v2450_v47 = vmul.f32 0.0, %v10800_v38  ;;  %v10843_v59 = vld [vmem:[#allocation60_spill] sm:$0xff] }
 0x268   :  { %v2543_v30 = vadd.f32 %v2415_v58, %v2267_v1  ;;  %v2544_v12 = vadd.f32 %v2416_v54, %v2268_v7  ;;  %v2545_v25 = vadd.f32 %v2417_v55, %v2269_v42  ;;  %v2546_v27 = vadd.f32 %v2418_v41, %v2270_v17  ;;  %v10847_v17 = vld [vmem:[#allocation54_spill] sm:$0xff] }
 0x269   :  { %v2575_v37 = vadd.f32 %v2447_v50, %v2299_v6  ;;  %v2576_v52 = vadd.f32 %v2448_v19, %v2300_v51  ;;  %v2577_v45 = vadd.f32 %v2449_v11, %v2301_v10  ;;  %v2578_v33 = vadd.f32 %v2450_v47, %v2302_v24 }
 0x26a   :  { %v2695_v20 = vadd.f32 %v10842_v4, %v2543_v30  ;;  %v2696_v31 = vadd.f32 %v10842_v4, %v2544_v12  ;;  %v2697_v21 = vadd.f32 %v10842_v4, %v2545_v25  ;;  %v2698_v57 = vadd.f32 %v10842_v4, %v2546_v27 }
 0x26b   :  { %v2727_v28 = vadd.f32 %v10843_v59, %v2575_v37  ;;  %v2728_v40 = vadd.f32 %v10843_v59, %v2576_v52  ;;  %v2729_v38 = vadd.f32 %v10843_v59, %v2577_v45  ;;  %v2730_v23 = vadd.f32 %v10843_v59, %v2578_v33  ;;  %v10848_v33 = vld [vmem:[#allocation65_spill] sm:$0xff] }
 0x26c   :  { %v2823_v34 = vmax.f32 %v2695_v20, 0.0  ;;  %v2824_v32 = vmax.f32 %v2696_v31, 0.0  ;;  %v2825_v22 = vmax.f32 %v2697_v21, 0.0  ;;  %v2826_v8 = vmax.f32 %v2698_v57, 0.0 }
 0x26d   :  { %v2855_v16 = vmax.f32 %v2727_v28, 0.0  ;;  %v2856_v3 = vmax.f32 %v2728_v40, 0.0  ;;  %v2857_v5 = vmax.f32 %v2729_v38, 0.0  ;;  %v2858_v18 = vmax.f32 %v2730_v23, 0.0 }
 0x26e   :  { %v3031_v60 = vadd.f32 %v2824_v32, %v2823_v34 }
 0x26f   :  { %v3032_v44 = vadd.f32 %v2856_v3, %v2855_v16  ;;  %v10849_v16 = vld [vmem:[#allocation38_spill] sm:$0xff] }
 0x270   :  { %v3035_v49 = vadd.f32 %v3031_v60, %v2825_v22 }
 0x271   :  { %v3036_v48 = vadd.f32 %v3032_v44, %v2857_v5 }
 0x272   :  { %v3039_v61 = vadd.f32 %v3035_v49, %v2826_v8 }
 0x273   :  { %v3040_v56 = vadd.f32 %v3036_v48, %v2858_v18 }
 0x274   :  { %v3043_v9 = vmul.f32 0.25, %v3039_v61 }
 0x275   :  { %v3044_v46 = vmul.f32 0.25, %v3040_v56 }
 0x277   :  { %v3046_v39 = vpack.c.bf16 %v3044_v46, %v3043_v9 }
 0x279   :  { %3413 = vmatprep.subr.bf16.mxu1 %v3046_v39 }
 0x27a   :  { %3414 = vmatpush1.bf16.msra.mxu1 %v10844_v36 }
 0x27b   :  { %3415 = vmatprep.subr.bf16.mxu1 %v10831_v63 }
 0x27e   :  { %3416 = vmatpush1.bf16.msra.mxu1 %v9213_v15 }
 0x27f   :  { %3417 = vmatprep.subr.bf16.mxu1 %v10831_v63 }
 0x282   :  { %3418 = vmatpush1.bf16.msra.mxu1 %v3046_v39 }
 0x283   :  { %5853 = vmatprep.subr.bf16.mxu1 %v10831_v63 }
 0x285   :  { %5586 = vmatmul.mubr.msk.bf16.vlgmr.msra.gmra.mrb[16].mxu1 %vm3175_vm0, %v10845_v29 }
 0x286   :  { %3449 = vmatprep.mubr.bf16.mxu1 %v10831_v63 }
 0x28d   :  { %5587 = vmatmul.mubr.msk.bf16.gmra.mrb[20].mxu1 %vm3175_vm0, %v9165_v26 }
 0x28e   :  { %3459 = vmatprep.mubr.bf16.mxu1 %v10831_v63 }
 0x295   :  { %5588 = vmatmul.mubr.msk.bf16.gmra.mrb[24].mxu1 %vm3175_vm0, %v6064_v0 }
 0x296   :  { %3469 = vmatprep.mubr.bf16.mxu1 %v10831_v63 }
 0x29d   :  { %5589 = vmatmul.mubr.msk.bf16.gmra.mrb[28].mxu1 %vm3175_vm0, %v10841_v14 }
 0x2a2   :  { %v3222_v15 = vpop.f32.mrb[0].mxu0 }
 0x2a3   :  { %v3295_v53 = vpop.f32.mrb[0].mxu1  ;;  %v3223_v13 = vadd.f32 %v3222_v15, %v10846_v43  ;;  %v3224_v62 = vpop.f32.mrb[1].mxu0 }
 0x2a4   :  { %v3297_v2 = vpop.f32.mrb[1].mxu1  ;;  %v3296_v26 = vadd.f32 %v3295_v53, %v10846_v43  ;;  %v3225_v35 = vadd.f32 %v3224_v62, %v10846_v43  ;;  %v3226_v1 = vpop.f32.mrb[2].mxu0 }
 0x2a5   :  { %v3299_v7 = vpop.f32.mrb[2].mxu1  ;;  %v3480_v42 = vmax.f32 %v3223_v13, 0.0  ;;  %v3227_v6 = vadd.f32 %v3226_v1, %v10847_v17  ;;  %v3228_v51 = vpop.f32.mrb[3].mxu0  ;;  %v3298_v14 = vadd.f32 %v3297_v2, %v10846_v43 }
 0x2a6   :  { %v3301_v10 = vpop.f32.mrb[3].mxu1  ;;  %v3481_v24 = vmax.f32 %v3225_v35, 0.0  ;;  %v3300_v58 = vadd.f32 %v3299_v7, %v10847_v17  ;;  %v3229_v54 = vadd.f32 %v3228_v51, %v10847_v17  ;;  %v3482_v41 = vmax.f32 %v3296_v26, 0.0  ;;  %v10850_v7 = vld [vmem:[#allocation66_spill] sm:$0xff] }
 0x2a7   :  { %v3488_v55 = vmax.f32 %v3227_v6, 0.0  ;;  %v3302_v11 = vadd.f32 %v3301_v10, %v10847_v17  ;;  %v3483_v47 = vmax.f32 %v3298_v14, 0.0 }
 0x2a8   :  { %v3544_v50 = vadd.f32 %v3481_v24, %v3480_v42  ;;  %v3489_v19 = vmax.f32 %v3229_v54, 0.0  ;;  %v3490_v12 = vmax.f32 %v3300_v58, 0.0 }
 0x2a9   :  { %v3491_v52 = vmax.f32 %v3302_v11, 0.0 }
 0x2aa   :  { %v3552_v30 = vadd.f32 %v3544_v50, %v3482_v41  ;;  %v3545_v25 = vadd.f32 %v3489_v19, %v3488_v55  ;;  %v10851_v55 = vld [vmem:[#allocation45_spill] sm:$0xff] }
 0x2ac   :  { %v3560_v37 = vadd.f32 %v3552_v30, %v3483_v47  ;;  %v3553_v45 = vadd.f32 %v3545_v25, %v3490_v12 }
 0x2ad   :  { %v3232_v27 = vpop.f32.mrb[4].mxu0 }
 0x2ae   :  { %v3233_v4 = vadd.f32 %v3232_v27, %v10848_v33  ;;  %v3234_v20 = vpop.f32.mrb[5].mxu0  ;;  %v3305_v31 = vpop.f32.mrb[4].mxu1  ;;  %v3561_v28 = vadd.f32 %v3553_v45, %v3491_v52  ;;  %v3568_v5 = vmul.f32 0.25, %v3560_v37 }
 0x2af   :  { %v3235_v21 = vadd.f32 %v3234_v20, %v10848_v33  ;;  %v3236_v59 = vpop.f32.mrb[6].mxu0  ;;  %v3306_v38 = vadd.f32 %v3305_v31, %v10848_v33  ;;  %v3307_v57 = vpop.f32.mrb[5].mxu1 }
 0x2b0   :  { %v3496_v40 = vmax.f32 %v3233_v4, 0.0  ;;  %v3238_v34 = vpop.f32.mrb[7].mxu0  ;;  %v3308_v23 = vadd.f32 %v3307_v57, %v10848_v33  ;;  %v3237_v3 = vadd.f32 %v3236_v59, %v10849_v16  ;;  %v3309_v22 = vpop.f32.mrb[6].mxu1  ;;  %v3569_v44 = vmul.f32 0.25, %v3561_v28 }
 0x2b1   :  { %v3497_v32 = vmax.f32 %v3235_v21, 0.0  ;;  %v3239_v60 = vadd.f32 %v3238_v34, %v10849_v16  ;;  %v3310_v8 = vadd.f32 %v3309_v22, %v10849_v16  ;;  %v3311_v49 = vpop.f32.mrb[7].mxu1  ;;  %v3498_v18 = vmax.f32 %v3306_v38, 0.0  ;;  %v9325_v28 = vpop.permute.xlu0 %3152 }
 0x2b2   :  { %v3504_v61 = vmax.f32 %v3237_v3, 0.0  ;;  %v3576_v9 = vpack.c.bf16 %v3569_v44, %v3568_v5  ;;  %v3312_v46 = vadd.f32 %v3311_v49, %v10849_v16  ;;  %v3499_v39 = vmax.f32 %v3308_v23, 0.0 }
 0x2b3   :  { %v3546_v48 = vadd.f32 %v3497_v32, %v3496_v40  ;;  %v3505_v56 = vmax.f32 %v3239_v60, 0.0  ;;  %v3506_v29 = vmax.f32 %v3310_v8, 0.0  ;;  %v10852_v32 = vld [vmem:[#allocation68_spill] sm:$0xff] }
 0x2b4   :  { %4486 = vmatpush1.bf16.msra.mxu0 %v3576_v9  ;;  %5865 = vmatpush1.bf16.msra.mxu1 %v3576_v9  ;;  %v3507_v53 = vmax.f32 %v3312_v46, 0.0 }
 0x2b5   :  { %v3554_v36 = vadd.f32 %v3546_v48, %v3498_v18  ;;  %v3547_v0 = vadd.f32 %v3505_v56, %v3504_v61  ;;  %4487 = vmatprep.subr.bf16.mxu0 %v10831_v63  ;;  %5854 = vmatprep.subr.bf16.mxu1 %v10831_v63 }
 0x2b7   :  { %v3562_v15 = vadd.f32 %v3554_v36, %v3499_v39  ;;  %v3555_v13 = vadd.f32 %v3547_v0, %v3506_v29 }
 0x2b9   :  { %v3563_v62 = vadd.f32 %v3555_v13, %v3507_v53  ;;  %v3570_v2 = vmul.f32 0.25, %v3562_v15 }
 0x2bb   :  { %v3571_v26 = vmul.f32 0.25, %v3563_v62 }
 0x2bd   :  { %v3577_v35 = vpack.c.bf16 %v3571_v26, %v3570_v2 }
 0x2bf   :  { %4488 = vmatpush1.bf16.msra.mxu0 %v3577_v35  ;;  %5866 = vmatpush1.bf16.msra.mxu1 %v3577_v35 }
 0x2c0   :  { %4489 = vmatprep.subr.bf16.mxu0 %v10831_v63  ;;  %5855 = vmatprep.subr.bf16.mxu1 %v10831_v63 }
 0x2cc   :  { %v3242_v1 = vpop.f32.mrb[8].mxu0 }
 0x2cd   :  { %v3243_v42 = vadd.f32 %v3242_v1, %v10850_v7  ;;  %v3315_v6 = vpop.f32.mrb[8].mxu1  ;;  %v3244_v51 = vpop.f32.mrb[9].mxu0 }
 0x2ce   :  { %v3316_v10 = vadd.f32 %v3315_v6, %v10850_v7  ;;  %v3245_v24 = vadd.f32 %v3244_v51, %v10850_v7  ;;  %v3317_v14 = vpop.f32.mrb[9].mxu1  ;;  %v3246_v58 = vpop.f32.mrb[10].mxu0 }
 0x2cf   :  { %v3512_v54 = vmax.f32 %v3243_v42, 0.0  ;;  %v3247_v41 = vadd.f32 %v3246_v58, %v10851_v55  ;;  %v3319_v50 = vpop.f32.mrb[10].mxu1  ;;  %v3248_v19 = vpop.f32.mrb[11].mxu0  ;;  %v3318_v47 = vadd.f32 %v3317_v14, %v10850_v7 }
 0x2d0   :  { %v3513_v11 = vmax.f32 %v3245_v24, 0.0  ;;  %v3320_v30 = vadd.f32 %v3319_v50, %v10851_v55  ;;  %v3249_v12 = vadd.f32 %v3248_v19, %v10851_v55  ;;  %v3321_v25 = vpop.f32.mrb[11].mxu1  ;;  %v3514_v37 = vmax.f32 %v3316_v10, 0.0  ;;  %v5917_v19 = vld [vmem:[%s10157_s6 + $0x4] ss:$8 sps:$4 sm:$0xff]  }
 0x2d1   :  { %v3520_v27 = vmax.f32 %v3247_v41, 0.0  ;;  %v3322_v4 = vadd.f32 %v3321_v25, %v10851_v55  ;;  %v3515_v20 = vmax.f32 %v3318_v47, 0.0  ;;  %5654 = vmatprep.mubr.msk.bf16.mxu0 %vm4388_vm1, %v5917_v19 }
 0x2d2   :  { %v3548_v52 = vadd.f32 %v3513_v11, %v3512_v54  ;;  %v3521_v45 = vmax.f32 %v3249_v12, 0.0  ;;  %v3522_v21 = vmax.f32 %v3320_v30, 0.0  ;;  %v5920_v11 = vld [vmem:[%s10157_s6 + $0x194] ss:$8 sps:$4 sm:$0xff]  }
 0x2d3   :  { %v3523_v38 = vmax.f32 %v3322_v4, 0.0  ;;  %5679 = vmatprep.mubr.msk.bf16.mxu1 %vm4388_vm1, %v5920_v11 }
 0x2d4   :  { %v3556_v31 = vadd.f32 %v3548_v52, %v3514_v37  ;;  %v3549_v59 = vadd.f32 %v3521_v45, %v3520_v27 }
 0x2d6   :  { %v3564_v40 = vadd.f32 %v3556_v31, %v3515_v20  ;;  %v3557_v57 = vadd.f32 %v3549_v59, %v3522_v21 }
 0x2d8   :  { %v3252_v34 = vpop.f32.mrb[12].mxu0  ;;  %v3565_v60 = vadd.f32 %v3557_v57, %v3523_v38  ;;  %v3572_v9 = vmul.f32 0.25, %v3564_v40 }
 0x2d9   :  { %v3253_v23 = vadd.f32 %v3252_v34, %v10852_v32  ;;  %v3325_v3 = vpop.f32.mrb[12].mxu1  ;;  %v3254_v22 = vpop.f32.mrb[13].mxu0 }
 0x2da   :  { %v3326_v5 = vadd.f32 %v3325_v3, %v10852_v32  ;;  %v3255_v44 = vadd.f32 %v3254_v22, %v10852_v32  ;;  %v3327_v8 = vpop.f32.mrb[13].mxu1  ;;  %v3256_v49 = vpop.f32.mrb[14].mxu0  ;;  %v3573_v46 = vmul.f32 0.25, %v3565_v60 }
 0x2db   :  { %v3528_v18 = vmax.f32 %v3253_v23, 0.0  ;;  %v3257_v48 = vadd.f32 %v3256_v49, %v9325_v28  ;;  %v3329_v61 = vpop.f32.mrb[14].mxu1  ;;  %v3258_v56 = vpop.f32.mrb[15].mxu0  ;;  %v3328_v36 = vadd.f32 %v3327_v8, %v10852_v32 }
 0x2dc   :  { %v3529_v39 = vmax.f32 %v3255_v44, 0.0  ;;  %v3331_v29 = vpop.f32.mrb[15].mxu1  ;;  %v3330_v15 = vadd.f32 %v3329_v61, %v9325_v28  ;;  %v3259_v53 = vadd.f32 %v3258_v56, %v9325_v28  ;;  %v3578_v13 = vpack.c.bf16 %v3573_v46, %v3572_v9 }
 0x2dd   :  { %v3536_v0 = vmax.f32 %v3257_v48, 0.0  ;;  %v3530_v62 = vmax.f32 %v3326_v5, 0.0  ;;  %v3332_v35 = vadd.f32 %v3331_v29, %v9325_v28  ;;  %v3531_v1 = vmax.f32 %v3328_v36, 0.0 }
 0x2de   :  { %v3550_v2 = vadd.f32 %v3529_v39, %v3528_v18  ;;  %v3537_v26 = vmax.f32 %v3259_v53, 0.0  ;;  %4490 = vmatpush1.bf16.msra.mxu0 %v3578_v13  ;;  %5867 = vmatpush1.bf16.msra.mxu1 %v3578_v13  ;;  %v3538_v6 = vmax.f32 %v3330_v15, 0.0 }
 0x2df   :  { %4491 = vmatprep.subr.bf16.mxu0 %v10831_v63  ;;  %5856 = vmatprep.subr.bf16.mxu1 %v10831_v63  ;;  %v3539_v24 = vmax.f32 %v3332_v35, 0.0 }
 0x2e0   :  { %v3558_v42 = vadd.f32 %v3550_v2, %v3530_v62  ;;  %v3551_v51 = vadd.f32 %v3537_v26, %v3536_v0 }
 0x2e2   :  { %v3566_v10 = vadd.f32 %v3558_v42, %v3531_v1  ;;  %v3559_v14 = vadd.f32 %v3551_v51, %v3538_v6 }
 0x2e4   :  { %v3567_v58 = vadd.f32 %v3559_v14, %v3539_v24  ;;  %v3574_v54 = vmul.f32 0.25, %v3566_v10 }
 0x2e6   :  { %v3575_v41 = vmul.f32 0.25, %v3567_v58 }
 0x2e8   :  { %v3579_v50 = vpack.c.bf16 %v3575_v41, %v3574_v54 }
 0x2ea   :  { %4492 = vmatpush1.bf16.msra.mxu0 %v3579_v50  ;;  %5868 = vmatpush1.bf16.msra.mxu1 %v3579_v50 }
 0x2eb   :  { %4493 = vmatprep.subr.bf16.mxu0 %v10831_v63  ;;  %5857 = vmatprep.subr.bf16.mxu1 %v10831_v63 }
 0x31a   :  { %v3368_v47 = vpop.f32.mrb[16].mxu0 }
 0x31b   :  { %v3369_v30 = vadd.f32 %v3368_v47, %v10846_v43  ;;  %v3370_v12 = vpop.f32.mrb[17].mxu0 }
 0x31c   :  { %v3371_v25 = vadd.f32 %v3370_v12, %v10846_v43  ;;  %v3372_v27 = vpop.f32.mrb[18].mxu0 }
 0x31d   :  { %v3484_v37 = vmax.f32 %v3369_v30, 0.0  ;;  %v3373_v52 = vadd.f32 %v3372_v27, %v10847_v17  ;;  %v3374_v45 = vpop.f32.mrb[19].mxu0 }
 0x31e   :  { %v3485_v4 = vmax.f32 %v3371_v25, 0.0  ;;  %v3375_v20 = vadd.f32 %v3374_v45, %v10847_v17 }
 0x31f   :  { %v3492_v31 = vmax.f32 %v3373_v52, 0.0 }
 0x320   :  { %v3584_v21 = vadd.f32 %v3485_v4, %v3484_v37  ;;  %v3493_v59 = vmax.f32 %v3375_v20, 0.0 }
 0x322   :  { %v3585_v40 = vadd.f32 %v3493_v59, %v3492_v31  ;;  %v3378_v38 = vpop.f32.mrb[20].mxu0 }
 0x323   :  { %v3379_v57 = vadd.f32 %v3378_v38, %v10848_v33  ;;  %v3380_v34 = vpop.f32.mrb[21].mxu0 }
 0x324   :  { %v3381_v23 = vadd.f32 %v3380_v34, %v10848_v33  ;;  %v3382_v3 = vpop.f32.mrb[22].mxu0 }
 0x325   :  { %v3500_v22 = vmax.f32 %v3379_v57, 0.0  ;;  %v3383_v60 = vadd.f32 %v3382_v3, %v10849_v16  ;;  %v3384_v5 = vpop.f32.mrb[23].mxu0 }
 0x326   :  { %v3501_v44 = vmax.f32 %v3381_v23, 0.0  ;;  %v3385_v8 = vadd.f32 %v3384_v5, %v10849_v16 }
 0x327   :  { %v3508_v49 = vmax.f32 %v3383_v60, 0.0 }
 0x328   :  { %v3586_v18 = vadd.f32 %v3501_v44, %v3500_v22  ;;  %v3509_v48 = vmax.f32 %v3385_v8, 0.0 }
 0x32a   :  { %v3587_v61 = vadd.f32 %v3509_v48, %v3508_v49  ;;  %v3388_v56 = vpop.f32.mrb[24].mxu0 }
 0x32b   :  { %v3389_v9 = vadd.f32 %v3388_v56, %v10850_v7  ;;  %v3390_v46 = vpop.f32.mrb[25].mxu0 }
 0x32c   :  { %v3391_v39 = vadd.f32 %v3390_v46, %v10850_v7  ;;  %v3392_v36 = vpop.f32.mrb[26].mxu0 }
 0x32d   :  { %v3516_v29 = vmax.f32 %v3389_v9, 0.0  ;;  %v3393_v0 = vadd.f32 %v3392_v36, %v10851_v55  ;;  %v3394_v15 = vpop.f32.mrb[27].mxu0 }
 0x32e   :  { %v3517_v53 = vmax.f32 %v3391_v39, 0.0  ;;  %v3395_v13 = vadd.f32 %v3394_v15, %v10851_v55 }
 0x32f   :  { %v3524_v62 = vmax.f32 %v3393_v0, 0.0 }
 0x330   :  { %v9359_v2 = vadd.f32 %v3517_v53, %v3516_v29  ;;  %v3525_v26 = vmax.f32 %v3395_v13, 0.0 }
 0x332   :  { %v9361_v35 = vadd.f32 %v3525_v26, %v3524_v62  ;;  %v3398_v1 = vpop.f32.mrb[28].mxu0 }
 0x333   :  { %v3399_v42 = vadd.f32 %v3398_v1, %v10852_v32  ;;  %v3400_v6 = vpop.f32.mrb[29].mxu0 }
 0x334   :  { %v3401_v51 = vadd.f32 %v3400_v6, %v10852_v32  ;;  %v3402_v10 = vpop.f32.mrb[30].mxu0 }
 0x335   :  { %v3532_v24 = vmax.f32 %v3399_v42, 0.0  ;;  %v3403_v14 = vadd.f32 %v3402_v10, %v9325_v28  ;;  %v3404_v58 = vpop.f32.mrb[31].mxu0 }
 0x336   :  { %v3533_v54 = vmax.f32 %v3401_v51, 0.0  ;;  %v3405_v41 = vadd.f32 %v3404_v58, %v9325_v28 }
 0x337   :  { %v3540_v50 = vmax.f32 %v3403_v14, 0.0 }
 0x338   :  { %v9367_v19 = vadd.f32 %v3533_v54, %v3532_v24  ;;  %v3541_v11 = vmax.f32 %v3405_v41, 0.0 }
 0x33a   :  { %v9369_v47 = vadd.f32 %v3541_v11, %v3540_v50 }
 0x358   :  { %v3441_v30 = vpop.f32.mrb[16].mxu1 }
 0x359   :  { %v3442_v12 = vadd.f32 %v3441_v30, %v10846_v43  ;;  %v3443_v25 = vpop.f32.mrb[17].mxu1 }
 0x35a   :  { %v3444_v27 = vadd.f32 %v3443_v25, %v10846_v43  ;;  %v3445_v37 = vpop.f32.mrb[18].mxu1 }
 0x35b   :  { %v3486_v52 = vmax.f32 %v3442_v12, 0.0  ;;  %v3446_v45 = vadd.f32 %v3445_v37, %v10847_v17  ;;  %v3447_v4 = vpop.f32.mrb[19].mxu1 }
 0x35c   :  { %v3448_v20 = vadd.f32 %v3447_v4, %v10847_v17  ;;  %v3487_v31 = vmax.f32 %v3444_v27, 0.0 }
 0x35d   :  { %v3592_v59 = vadd.f32 %v3584_v21, %v3486_v52  ;;  %v3494_v38 = vmax.f32 %v3446_v45, 0.0 }
 0x35e   :  { %v3495_v34 = vmax.f32 %v3448_v20, 0.0 }
 0x35f   :  { %v3600_v57 = vadd.f32 %v3592_v59, %v3487_v31  ;;  %v3593_v23 = vadd.f32 %v3585_v40, %v3494_v38 }
 0x360   :  { %v3451_v3 = vpop.f32.mrb[20].mxu1 }
 0x361   :  { %v3601_v22 = vadd.f32 %v3593_v23, %v3495_v34  ;;  %v3452_v60 = vadd.f32 %v3451_v3, %v10848_v33  ;;  %v3453_v5 = vpop.f32.mrb[21].mxu1  ;;  %v3608_v8 = vmul.f32 0.25, %v3600_v57 }
 0x362   :  { %v3454_v43 = vadd.f32 %v3453_v5, %v10848_v33  ;;  %v3455_v44 = vpop.f32.mrb[22].mxu1 }
 0x363   :  { %v3609_v49 = vmul.f32 0.25, %v3601_v22  ;;  %v3502_v48 = vmax.f32 %v3452_v60, 0.0  ;;  %v3456_v56 = vadd.f32 %v3455_v44, %v10849_v16  ;;  %v3457_v17 = vpop.f32.mrb[23].mxu1  ;;  %v3626_v22 = vld [vmem:[%s10152_s1 + $0x10] sm:$0xff]  ;;  %v3627_v60 = vld [vmem:[%s10152_s1 + $0x18] sm:$0xff]  ;;  %v3629_v44 = vld [vmem:[%s10152_s1 + $0x28] sm:$0xff] }
 0x364   :  { %v3458_v21 = vadd.f32 %v3457_v17, %v10849_v16  ;;  %v3503_v46 = vmax.f32 %v3454_v43, 0.0  ;;  %v3633_v5 = vpack.c.bf16 %v3627_v60, %v3626_v22  ;;  %v3628_v43 = vld [vmem:[%s10152_s1 + $0x20] sm:$0xff]  ;;  %v9621_v22 = vpop.permute.xlu1 %3862  ;;  %v6001_v60 = vld [vmem:[%s10157_s6 + $0x150] ss:$8 sps:$4 sm:$0xff]  }
 0x365   :  { %v3616_v9 = vpack.c.bf16 %v3609_v49, %v3608_v8  ;;  %v3594_v39 = vadd.f32 %v3586_v18, %v3502_v48  ;;  %v3510_v40 = vmax.f32 %v3456_v56, 0.0  ;;  %v3634_v8 = vpack.c.bf16 %v3629_v44, %v3628_v43  ;;  %v3630_v49 = vld [vmem:[%s10152_s1 + $0x30] sm:$0xff]  ;;  %v3631_v48 = vld [vmem:[%s10152_s1 + $0x38] sm:$0xff]  ;;  %v5915_v17 = vld [vmem:[%s10157_s6] ss:$8 sps:$4 sm:$0xff]   ;;  %v9629_v43 = vpop.permute.xlu0 %3867 }
 0x366   :  { %v3511_v29 = vmax.f32 %v3458_v21, 0.0  ;;  %v3635_v56 = vpack.c.bf16 %v3631_v48, %v3630_v49  ;;  %v5918_v21 = vld [vmem:[%s10157_s6 + $0x190] ss:$8 sps:$4 sm:$0xff]   ;;  %v6005_v49 = vld [vmem:[%s10157_s6 + $0x174] ss:$8 sps:$4 sm:$0xff]  }
 0x367   :  { %v3602_v36 = vadd.f32 %v3594_v39, %v3503_v46  ;;  %v3595_v0 = vadd.f32 %v3587_v61, %v3510_v40  ;;  %4494 = vmatpush1.bf16.msra.mxu0 %v3616_v9  ;;  %5869 = vmatpush1.bf16.msra.mxu1 %v3616_v9  ;;  %v5921_v9 = vld [vmem:[%s10157_s6 + $0x14] ss:$8 sps:$4 sm:$0xff]   ;;  %v5923_v46 = vld [vmem:[%s10157_s6 + $0x1a4] ss:$8 sps:$4 sm:$0xff]   ;;  %v5926_v39 = vld [vmem:[%s10157_s6 + $0x1a0] ss:$8 sps:$4 sm:$0xff]  }
 0x368   :  { %v3461_v15 = vpop.f32.mrb[24].mxu1  ;;  %4495 = vmatprep.subr.bf16.mxu0 %v10831_v63  ;;  %5858 = vmatprep.subr.bf16.mxu1 %v10831_v63  ;;  %v5927_v40 = vld [vmem:[%s10157_s6 + $0x24] ss:$8 sps:$4 sm:$0xff]   ;;  %v3783_v44 = vpop.permute.xlu1 %3782 }
 0x369   :  { %v3603_v33 = vadd.f32 %v3595_v0, %v3511_v29  ;;  %v3462_v53 = vadd.f32 %v3461_v15, %v10850_v7  ;;  %v3463_v13 = vpop.f32.mrb[25].mxu1  ;;  %v3610_v26 = vmul.f32 0.25, %v3602_v36  ;;  %v5929_v36 = vld [vmem:[%s10157_s6 + $0x1b4] ss:$8 sps:$4 sm:$0xff]   ;;  %v5931_v29 = vld [vmem:[%s10157_s6 + $0x20] ss:$8 sps:$4 sm:$0xff]   ;;  %v3788_v48 = vpop.permute.xlu0 %3787 }
 0x36a   :  { %v3464_v16 = vadd.f32 %v3463_v13, %v10850_v7  ;;  %v3465_v62 = vpop.f32.mrb[26].mxu1  ;;  %v5932_v0 = vld [vmem:[%s10157_s6 + $0x1b0] ss:$8 sps:$4 sm:$0xff]   ;;  %v5933_v15 = vld [vmem:[%s10157_s6 + $0x34] ss:$8 sps:$4 sm:$0xff]  }
 0x36b   :  { %v3611_v18 = vmul.f32 0.25, %v3603_v33  ;;  %v3518_v1 = vmax.f32 %v3462_v53, 0.0  ;;  %v3466_v42 = vadd.f32 %v3465_v62, %v10851_v55  ;;  %v3467_v61 = vpop.f32.mrb[27].mxu1  ;;  %v5935_v33 = vld [vmem:[%s10157_s6 + $0x1c4] ss:$8 sps:$4 sm:$0xff]  }
 0x36c   :  { %v3468_v6 = vadd.f32 %v3467_v61, %v10851_v55  ;;  %v3519_v10 = vmax.f32 %v3464_v16, 0.0  ;;  %v5937_v53 = vld [vmem:[%s10157_s6 + $0x30] ss:$8 sps:$4 sm:$0xff]   ;;  %v5938_v13 = vld [vmem:[%s10157_s6 + $0x1c0] ss:$8 sps:$4 sm:$0xff]  }
 0x36d   :  { %v3617_v51 = vpack.c.bf16 %v3611_v18, %v3610_v26  ;;  %v3596_v24 = vadd.f32 %v9359_v2, %v3518_v1  ;;  %v3526_v14 = vmax.f32 %v3466_v42, 0.0  ;;  %v5939_v16 = vld [vmem:[%s10157_s6 + $0x44] ss:$8 sps:$4 sm:$0xff]   ;;  %v5941_v62 = vld [vmem:[%s10157_s6 + $0x1d4] ss:$8 sps:$4 sm:$0xff]  }
 0x36e   :  { %v3527_v54 = vmax.f32 %v3468_v6, 0.0  ;;  %v5943_v26 = vld [vmem:[%s10157_s6 + $0x40] ss:$8 sps:$4 sm:$0xff]   ;;  %v5944_v18 = vld [vmem:[%s10157_s6 + $0x1d0] ss:$8 sps:$4 sm:$0xff]  }
 0x36f   :  { %v3604_v58 = vadd.f32 %v3596_v24, %v3519_v10  ;;  %v3597_v41 = vadd.f32 %v9361_v35, %v3526_v14  ;;  %4496 = vmatpush1.bf16.msra.mxu0 %v3617_v51  ;;  %5870 = vmatpush1.bf16.msra.mxu1 %v3617_v51  ;;  %v5945_v1 = vld [vmem:[%s10157_s6 + $0x54] ss:$8 sps:$4 sm:$0xff]   ;;  %v5947_v42 = vld [vmem:[%s10157_s6 + $0x1e4] ss:$8 sps:$4 sm:$0xff]   ;;  %v5949_v61 = vld [vmem:[%s10157_s6 + $0x50] ss:$8 sps:$4 sm:$0xff]  }
 0x370   :  { %v3471_v7 = vpop.f32.mrb[28].mxu1  ;;  %4497 = vmatprep.subr.bf16.mxu0 %v10831_v63  ;;  %5859 = vmatprep.subr.bf16.mxu1 %v10831_v63  ;;  %v5950_v6 = vld [vmem:[%s10157_s6 + $0x1e0] ss:$8 sps:$4 sm:$0xff]   ;;  %v5951_v51 = vld [vmem:[%s10157_s6 + $0x64] ss:$8 sps:$4 sm:$0xff]  }
 0x371   :  { %v3605_v50 = vadd.f32 %v3597_v41, %v3527_v54  ;;  %v3472_v11 = vadd.f32 %v3471_v7, %v10852_v32  ;;  %v3473_v55 = vpop.f32.mrb[29].mxu1  ;;  %v3612_v2 = vmul.f32 0.25, %v3604_v58  ;;  %v5953_v10 = vld [vmem:[%s10157_s6 + $0x1f4] ss:$8 sps:$4 sm:$0xff]   ;;  %v5955_v24 = vld [vmem:[%s10157_s6 + $0x60] ss:$8 sps:$4 sm:$0xff]  }
 0x372   :  { %v3474_v30 = vadd.f32 %v3473_v55, %v10852_v32  ;;  %v3475_v12 = vpop.f32.mrb[30].mxu1  ;;  %v5956_v14 = vld [vmem:[%s10157_s6 + $0x1f0] ss:$8 sps:$4 sm:$0xff]   ;;  %v5957_v58 = vld [vmem:[%s10157_s6 + $0x74] ss:$8 sps:$4 sm:$0xff]  }
 0x373   :  { %v3613_v25 = vmul.f32 0.25, %v3605_v50  ;;  %v3534_v27 = vmax.f32 %v3472_v11, 0.0  ;;  %v3476_v37 = vadd.f32 %v3475_v12, %v9325_v28  ;;  %v3477_v35 = vpop.f32.mrb[31].mxu1  ;;  %v5959_v54 = vld [vmem:[%s10157_s6 + $0x70] ss:$8 sps:$4 sm:$0xff]  }
 0x374   :  { %v3478_v52 = vadd.f32 %v3477_v35, %v9325_v28  ;;  %v3535_v4 = vmax.f32 %v3474_v30, 0.0  ;;  %v3624_v28 = vld [vmem:[%s10152_s1] sm:$0xff]  ;;  %v5963_v50 = vld [vmem:[%s10157_s6 + $0x94] ss:$8 sps:$4 sm:$0xff]   ;;  %v5965_v11 = vld [vmem:[%s10157_s6 + $0x90] ss:$8 sps:$4 sm:$0xff]  }
 0x375   :  { %v3618_v45 = vpack.c.bf16 %v3613_v25, %v3612_v2  ;;  %v3598_v20 = vadd.f32 %v9367_v19, %v3534_v27  ;;  %v3542_v31 = vmax.f32 %v3476_v37, 0.0  ;;  %v3625_v19 = vld [vmem:[%s10152_s1 + $0x8] sm:$0xff]  ;;  %v5969_v12 = vld [vmem:[%s10157_s6 + $0xb4] ss:$8 sps:$4 sm:$0xff]   ;;  %v5971_v2 = vld [vmem:[%s10157_s6 + $0xb0] ss:$8 sps:$4 sm:$0xff]  }
 0x376   :  { %v3543_v38 = vmax.f32 %v3478_v52, 0.0  ;;  %v5960_v41 = vld [vmem:[%s10157_s6 + $0x84] ss:$8 sps:$4 sm:$0xff]   ;;  %v5962_v7 = vld [vmem:[%s10157_s6 + $0x80] ss:$8 sps:$4 sm:$0xff]  }
 0x377   :  { %v3606_v59 = vadd.f32 %v3598_v20, %v3535_v4  ;;  %v3599_v57 = vadd.f32 %v9369_v47, %v3542_v31  ;;  %4498 = vmatpush1.bf16.msra.mxu0 %v3618_v45  ;;  %5871 = vmatpush1.bf16.msra.mxu1 %v3618_v45  ;;  %v3632_v47 = vpack.c.bf16 %v3625_v19, %v3624_v28  ;;  %v5966_v55 = vld [vmem:[%s10157_s6 + $0xa4] ss:$8 sps:$4 sm:$0xff]   ;;  %v5968_v30 = vld [vmem:[%s10157_s6 + $0xa0] ss:$8 sps:$4 sm:$0xff]   ;;  %v5975_v37 = vld [vmem:[%s10157_s6 + $0xd4] ss:$8 sps:$4 sm:$0xff]  }
 0x378   :  { %4499 = vmatprep.subr.bf16.mxu0 %v10831_v63  ;;  %5860 = vmatprep.subr.bf16.mxu1 %v10831_v63  ;;  %v5972_v25 = vld [vmem:[%s10157_s6 + $0xc4] ss:$8 sps:$4 sm:$0xff]   ;;  %v5974_v27 = vld [vmem:[%s10157_s6 + $0xc0] ss:$8 sps:$4 sm:$0xff]   ;;  %v5977_v35 = vld [vmem:[%s10157_s6 + $0xd0] ss:$8 sps:$4 sm:$0xff]  }
 0x379   :  { %v3607_v32 = vadd.f32 %v3599_v57, %v3543_v38  ;;  %v3614_v34 = vmul.f32 0.25, %v3606_v59  ;;  %v5978_v52 = vld [vmem:[%s10157_s6 + $0xe4] ss:$8 sps:$4 sm:$0xff]   ;;  %v5980_v45 = vld [vmem:[%s10157_s6 + $0xe0] ss:$8 sps:$4 sm:$0xff]  }
 0x37a   :  { %v5981_v4 = vld [vmem:[%s10157_s6 + $0xf4] ss:$8 sps:$4 sm:$0xff]   ;;  %v5983_v20 = vld [vmem:[%s10157_s6 + $0xf0] ss:$8 sps:$4 sm:$0xff]   ;;  %v5984_v31 = vld [vmem:[%s10157_s6 + $0x104] ss:$8 sps:$4 sm:$0xff]  }
 0x37b   :  { %v3615_v23 = vmul.f32 0.25, %v3607_v32  ;;  %v5986_v59 = vld [vmem:[%s10157_s6 + $0x100] ss:$8 sps:$4 sm:$0xff]   ;;  %v5987_v38 = vld [vmem:[%s10157_s6 + $0x114] ss:$8 sps:$4 sm:$0xff]  }
 0x37c   :  { %v5989_v57 = vld [vmem:[%s10157_s6 + $0x110] ss:$8 sps:$4 sm:$0xff]   ;;  %v5990_v32 = vld [vmem:[%s10157_s6 + $0x124] ss:$8 sps:$4 sm:$0xff]  }
 0x37d   :  { %v3619_v3 = vpack.c.bf16 %v3615_v23, %v3614_v34  ;;  %v5992_v34 = vld [vmem:[%s10157_s6 + $0x120] ss:$8 sps:$4 sm:$0xff]   ;;  %v5993_v23 = vld [vmem:[%s10157_s6 + $0x134] ss:$8 sps:$4 sm:$0xff]   ;;  %v5995_v28 = vld [vmem:[%s10157_s6 + $0x130] ss:$8 sps:$4 sm:$0xff]  }
 0x37e   :  { %v5996_v19 = vld [vmem:[%s10157_s6 + $0x144] ss:$8 sps:$4 sm:$0xff]  }
 0x37f   :  { %4500 = vmatpush1.bf16.msra.mxu0 %v3619_v3  ;;  %5872 = vmatpush1.bf16.msra.mxu1 %v3619_v3  ;;  %v5998_v3 = vld [vmem:[%s10157_s6 + $0x140] ss:$8 sps:$4 sm:$0xff]  }
 0x380   :  { %4501 = vmatprep.subr.bf16.mxu0 %v10831_v63  ;;  %5861 = vmatprep.subr.bf16.mxu1 %v10831_v63 }
 0x383   :  { %4502 = vmatpush1.bf16.msra.mxu0 %v3632_v47  ;;  %5873 = vmatpush1.bf16.msra.mxu1 %v3632_v47  ;;  %v5999_v47 = vld [vmem:[%s10157_s6 + $0x154] ss:$8 sps:$4 sm:$0xff]  }
 0x384   :  { %4503 = vmatprep.subr.bf16.mxu0 %v10831_v63  ;;  %5862 = vmatprep.subr.bf16.mxu1 %v10831_v63 }
 0x387   :  { %4504 = vmatpush1.bf16.msra.mxu0 %v3633_v5  ;;  %5874 = vmatpush1.bf16.msra.mxu1 %v3633_v5  ;;  %v6002_v5 = vld [vmem:[%s10157_s6 + $0x164] ss:$8 sps:$4 sm:$0xff]  }
 0x388   :  { %4505 = vmatprep.subr.bf16.mxu0 %v10831_v63  ;;  %5863 = vmatprep.subr.bf16.mxu1 %v10831_v63 }
 0x38b   :  { %4506 = vmatpush1.bf16.msra.mxu0 %v3634_v8  ;;  %5875 = vmatpush1.bf16.msra.mxu1 %v3634_v8  ;;  %v6004_v8 = vld [vmem:[%s10157_s6 + $0x160] ss:$8 sps:$4 sm:$0xff]  }
 0x38c   :  { %4507 = vmatprep.subr.bf16.mxu0 %v10831_v63  ;;  %5864 = vmatprep.subr.bf16.mxu1 %v10831_v63  ;;  %v5925_v63 = vld [vmem:[%s10157_s6 + $0x10] ss:$8 sps:$4 sm:$0xff]  }
 0x38f   :  { %4508 = vmatpush1.bf16.msra.mxu0 %v3635_v56  ;;  %5876 = vmatpush1.bf16.msra.mxu1 %v3635_v56  ;;  %v9638_v56 = vpop.permute.xlu1 %3872 }
 0x392   :  { %4518 = vmatmul.mubr.bf16.vlgmr.msra.gmra.mrb[32].mxu0 %v5915_v17  ;;  %4718 = vmatmul.mubr.bf16.vlgmr.msra.gmra.mrb[32].mxu1 %v5918_v21  ;;  %v9641_v17 = vpop.permute.xlu0 %3877 }
 0x393   :  { %5655 = vmatprep.mubr.msk.bf16.mxu0 %vm4388_vm1, %v5921_v9  ;;  %5680 = vmatprep.mubr.msk.bf16.mxu1 %vm4388_vm1, %v5923_v46  ;;  %v3793_v21 = vpop.permute.xlu1 %3792  ;;  %v6007_v9 = vld [vmem:[%s10157_s6 + $0x170] ss:$8 sps:$4 sm:$0xff]   ;;  %v6008_v46 = vld [vmem:[%s10157_s6 + $0x184] ss:$8 sps:$4 sm:$0xff]  }
 0x39a   :  { %4526 = vmatmul.mubr.bf16.gmra.mrb[36].mxu0 %v5925_v63  ;;  %4726 = vmatmul.mubr.bf16.gmra.mrb[36].mxu1 %v5926_v39  ;;  %v3798_v63 = vpop.permute.xlu0 %3797  ;;  %v9650_v39 = vpop.permute.xlu1 %3882 }
 0x39b   :  { %5656 = vmatprep.mubr.msk.bf16.mxu0 %vm4388_vm1, %v5927_v40  ;;  %5681 = vmatprep.mubr.msk.bf16.mxu1 %vm4388_vm1, %v5929_v36  ;;  %v6010_v40 = vld [vmem:[%s10157_s6 + $0x180] ss:$8 sps:$4 sm:$0xff]  }
 0x39e   :  { %v9655_v36 = vpop.permute.xlu0 %3887 }
 0x3a2   :  { %4534 = vmatmul.mubr.bf16.gmra.mrb[40].mxu0 %v5931_v29  ;;  %4734 = vmatmul.mubr.bf16.gmra.mrb[40].mxu1 %v5932_v0  ;;  %v3803_v29 = vpop.permute.xlu1 %3802  ;;  %v3808_v0 = vpop.permute.xlu0 %3807 }
 0x3a3   :  { %5657 = vmatprep.mubr.msk.bf16.mxu0 %vm4388_vm1, %v5933_v15  ;;  %5682 = vmatprep.mubr.msk.bf16.mxu1 %vm4388_vm1, %v5935_v33 }
 0x3a6   :  { %v9657_v15 = vpop.permute.xlu1 %3892  ;;  %v9659_v33 = vpop.permute.xlu0 %3897 }
 0x3aa   :  { %4542 = vmatmul.mubr.bf16.gmra.mrb[44].mxu0 %v5937_v53  ;;  %4742 = vmatmul.mubr.bf16.gmra.mrb[44].mxu1 %v5938_v13  ;;  %v3813_v53 = vpop.permute.xlu1 %3812  ;;  %v3818_v13 = vpop.permute.xlu0 %3817 }
 0x3ab   :  { %5658 = vmatprep.mubr.msk.bf16.mxu0 %vm4388_vm1, %v5939_v16  ;;  %5683 = vmatprep.mubr.msk.bf16.mxu1 %vm4388_vm1, %v5941_v62 }
 0x3ae   :  { %v9661_v16 = vpop.permute.xlu1 %3902 }
 0x3b2   :  { %4550 = vmatmul.mubr.bf16.gmra.mrb[48].mxu0 %v5943_v26  ;;  %4750 = vmatmul.mubr.bf16.gmra.mrb[48].mxu1 %v5944_v18 }
 0x3b3   :  { %5659 = vmatprep.mubr.msk.bf16.mxu0 %vm4388_vm1, %v5945_v1  ;;  %5684 = vmatprep.mubr.msk.bf16.mxu1 %vm4388_vm1, %v5947_v42 }
 0x3ba   :  { %4558 = vmatmul.mubr.bf16.gmra.mrb[52].mxu0 %v5949_v61  ;;  %4758 = vmatmul.mubr.bf16.gmra.mrb[52].mxu1 %v5950_v6 }
 0x3bb   :  { %5660 = vmatprep.mubr.msk.bf16.mxu0 %vm4388_vm1, %v5951_v51  ;;  %5685 = vmatprep.mubr.msk.bf16.mxu1 %vm4388_vm1, %v5953_v10 }
 0x3c2   :  { %4566 = vmatmul.mubr.bf16.gmra.mrb[56].mxu0 %v5955_v24  ;;  %4766 = vmatmul.mubr.bf16.gmra.mrb[56].mxu1 %v5956_v14 }
 0x3c3   :  { %5661 = vmatprep.mubr.msk.bf16.mxu0 %vm4388_vm1, %v5957_v58 }
 0x3ca   :  { %4574 = vmatmul.mubr.bf16.gmra.mrb[60].mxu0 %v5959_v54  ;;  %v6013_v54 = vld [vmem:[%s10159_s8 + $0x4] ss:$8 sps:$4 sm:$0xff]  }
 0x3cb   :  { %5662 = vmatprep.mubr.msk.bf16.mxu0 %vm4388_vm1, %v5960_v41  ;;  %v9670_v41 = vpop.permute.xlu0 %3907  ;;  %5270 = vmatprep.mubr.bf16.mxu1 %v6013_v54 }
 0x3d2   :  { %4582 = vmatmul.mubr.bf16.gmra.mrb[64].mxu0 %v5962_v7  ;;  %v3823_v7 = vpop.permute.xlu1 %3822 }
 0x3d3   :  { %5663 = vmatprep.mubr.msk.bf16.mxu0 %vm4388_vm1, %v5963_v50 }
 0x3da   :  { %4590 = vmatmul.mubr.bf16.gmra.mrb[68].mxu0 %v5965_v11 }
 0x3db   :  { %5664 = vmatprep.mubr.msk.bf16.mxu0 %vm4388_vm1, %v5966_v55 }
 0x3e2   :  { %4598 = vmatmul.mubr.bf16.gmra.mrb[72].mxu0 %v5968_v30 }
 0x3e3   :  { %5665 = vmatprep.mubr.msk.bf16.mxu0 %vm4388_vm1, %v5969_v12 }
 0x3ea   :  { %4606 = vmatmul.mubr.bf16.gmra.mrb[76].mxu0 %v5971_v2 }
 0x3eb   :  { %5666 = vmatprep.mubr.msk.bf16.mxu0 %vm4388_vm1, %v5972_v25 }
 0x3f2   :  { %4614 = vmatmul.mubr.bf16.gmra.mrb[80].mxu0 %v5974_v27 }
 0x3f3   :  { %5667 = vmatprep.mubr.msk.bf16.mxu0 %vm4388_vm1, %v5975_v37 }
 0x3fa   :  { %4622 = vmatmul.mubr.bf16.gmra.mrb[84].mxu0 %v5977_v35 }
 0x3fb   :  { %5668 = vmatprep.mubr.msk.bf16.mxu0 %vm4388_vm1, %v5978_v52 }
 0x402   :  { %4630 = vmatmul.mubr.bf16.gmra.mrb[88].mxu0 %v5980_v45 }
 0x403   :  { %5669 = vmatprep.mubr.msk.bf16.mxu0 %vm4388_vm1, %v5981_v4 }
 0x40a   :  { %4638 = vmatmul.mubr.bf16.gmra.mrb[92].mxu0 %v5983_v20  ;;  %v3828_v20 = vpop.permute.xlu0 %3827 }
 0x40b   :  { %5670 = vmatprep.mubr.msk.bf16.mxu0 %vm4388_vm1, %v5984_v31  ;;  %v9678_v31 = vpop.permute.xlu1 %3912 }
 0x412   :  { %4646 = vmatmul.mubr.bf16.gmra.mrb[96].mxu0 %v5986_v59 }
 0x413   :  { %5671 = vmatprep.mubr.msk.bf16.mxu0 %vm4388_vm1, %v5987_v38 }
 0x41a   :  { %4654 = vmatmul.mubr.bf16.gmra.mrb[100].mxu0 %v5989_v57 }
 0x41b   :  { %5672 = vmatprep.mubr.msk.bf16.mxu0 %vm4388_vm1, %v5990_v32 }
 0x422   :  { %4662 = vmatmul.mubr.bf16.gmra.mrb[104].mxu0 %v5992_v34 }
 0x423   :  { %5673 = vmatprep.mubr.msk.bf16.mxu0 %vm4388_vm1, %v5993_v23 }
 0x42a   :  { %4670 = vmatmul.mubr.bf16.gmra.mrb[108].mxu0 %v5995_v28 }
 0x42b   :  { %5674 = vmatprep.mubr.msk.bf16.mxu0 %vm4388_vm1, %v5996_v19 }
 0x432   :  { %4678 = vmatmul.mubr.bf16.gmra.mrb[112].mxu0 %v5998_v3 }
 0x433   :  { %5675 = vmatprep.mubr.msk.bf16.mxu0 %vm4388_vm1, %v5999_v47 }
 0x43a   :  { %4686 = vmatmul.mubr.bf16.gmra.mrb[116].mxu0 %v6001_v60 }
 0x43b   :  { %5676 = vmatprep.mubr.msk.bf16.mxu0 %vm4388_vm1, %v6002_v5 }
 0x442   :  { %4694 = vmatmul.mubr.bf16.gmra.mrb[120].mxu0 %v6004_v8  ;;  %v9686_v8 = vpop.permute.xlu0 %3917 }
 0x443   :  { %5677 = vmatprep.mubr.msk.bf16.mxu0 %vm4388_vm1, %v6005_v49  ;;  %v3833_v49 = vpop.permute.xlu1 %3832 }
 0x44a   :  { %4702 = vmatmul.mubr.bf16.gmra.mrb[124].mxu0 %v6007_v9 }
 0x44b   :  { %5678 = vmatprep.mubr.msk.bf16.mxu0 %vm4388_vm1, %v6008_v46 }
 0x452   :  { %4710 = vmatmul.mubr.bf16.gmra.mrb[128].mxu0 %v6010_v40 }
 0x465   :  { %v4519_v62 = vpop.f32.mrb[32].mxu0  ;;  %v9663_v26 = vpop.f32.mrb[32].mxu1 }
 0x466   :  { %v4520_v18 = vadd.f32 %v4519_v62, %v3783_v44  ;;  %v4521_v1 = vpop.f32.mrb[33].mxu0  ;;  %v4721_v42 = vpop.f32.mrb[33].mxu1 }
 0x467   :  { %v4522_v61 = vpop.f32.mrb[34].mxu0  ;;  %v9665_v6 = vpop.f32.mrb[34].mxu1 }
 0x468   :  { %v4523_v51 = vadd.f32 %v4522_v61, %v3788_v48  ;;  %v4524_v10 = vpop.f32.mrb[35].mxu0  ;;  %v4724_v24 = vpop.f32.mrb[35].mxu1  ;;  %v4774_v14 = vmax.f32 %v4520_v18, 0.0 }
 0x469   :  { %v9694_v10 = vpop.permute.xlu1 %3922 }
 0x46a   :  { %v4775_v58 = vmax.f32 %v4523_v51, 0.0  ;;  %v3838_v51 = vpop.permute.xlu0 %3837 }
 0x46c   :  { %v9672_v50 = vpack.c.bf16 %v4775_v58, %v4774_v14 }
 0x46d   :  { %v4527_v11 = vpop.f32.mrb[36].mxu0  ;;  %v9674_v55 = vpop.f32.mrb[36].mxu1 }
 0x46e   :  { %v4528_v30 = vadd.f32 %v4527_v11, %v3793_v21  ;;  %v4529_v12 = vpop.f32.mrb[37].mxu0  ;;  %v4729_v2 = vpop.f32.mrb[37].mxu1 }
 0x46f   :  { %v4530_v25 = vpop.f32.mrb[38].mxu0  ;;  %v9676_v27 = vpop.f32.mrb[38].mxu1 }
 0x470   :  { %10853 = vst [vmem:[#allocation35_spill] sm:$0xff] %v9676_v27  ;;  %v4531_v37 = vadd.f32 %v4530_v25, %v3798_v63  ;;  %v4532_v35 = vpop.f32.mrb[39].mxu0  ;;  %v4732_v52 = vpop.f32.mrb[39].mxu1  ;;  %v4776_v45 = vmax.f32 %v4528_v30, 0.0 }
 0x471   :  { %v9702_v52 = vpop.permute.xlu0 %3927 }
 0x472   :  { %v4777_v4 = vmax.f32 %v4531_v37, 0.0 }
 0x474   :  { %v9680_v59 = vpack.c.bf16 %v4777_v4, %v4776_v45  ;;  %v3843_v45 = vpop.permute.xlu1 %3842 }
 0x475   :  { %v4535_v38 = vpop.f32.mrb[40].mxu0  ;;  %v9682_v57 = vpop.f32.mrb[40].mxu1 }
 0x476   :  { %10854 = vst [vmem:[#allocation34_spill] sm:$0xff] %v9682_v57  ;;  %v4536_v32 = vadd.f32 %v4535_v38, %v3803_v29  ;;  %v4537_v34 = vpop.f32.mrb[41].mxu0  ;;  %v4737_v23 = vpop.f32.mrb[41].mxu1 }
 0x477   :  { %v4538_v28 = vpop.f32.mrb[42].mxu0  ;;  %v9684_v19 = vpop.f32.mrb[42].mxu1 }
 0x478   :  { %10855 = vst [vmem:[#allocation40_spill] sm:$0xff] %v9684_v19  ;;  %v4539_v3 = vadd.f32 %v4538_v28, %v3808_v0  ;;  %v4540_v47 = vpop.f32.mrb[43].mxu0  ;;  %v4740_v60 = vpop.f32.mrb[43].mxu1  ;;  %v4778_v5 = vmax.f32 %v4536_v32, 0.0 }
 0x47a   :  { %v4779_v44 = vmax.f32 %v4539_v3, 0.0 }
 0x47c   :  { %v9688_v48 = vpack.c.bf16 %v4779_v44, %v4778_v5 }
 0x47d   :  { %v4543_v21 = vpop.f32.mrb[44].mxu0  ;;  %v9690_v9 = vpop.f32.mrb[44].mxu1 }
 0x47e   :  { %10856 = vst [vmem:[#allocation41_spill] sm:$0xff] %v9690_v9  ;;  %v4544_v46 = vadd.f32 %v4543_v21, %v3813_v53  ;;  %v4545_v63 = vpop.f32.mrb[45].mxu0  ;;  %v4745_v40 = vpop.f32.mrb[45].mxu1 }
 0x47f   :  { %v4546_v29 = vpop.f32.mrb[46].mxu0  ;;  %v9692_v62 = vpop.f32.mrb[46].mxu1 }
 0x480   :  { %10857 = vst [vmem:[#allocation72_spill] sm:$0xff] %v9692_v62  ;;  %v4547_v18 = vadd.f32 %v4546_v29, %v3818_v13  ;;  %v4548_v0 = vpop.f32.mrb[47].mxu0  ;;  %v4748_v1 = vpop.f32.mrb[47].mxu1  ;;  %v4780_v42 = vmax.f32 %v4544_v46, 0.0 }
 0x481   :  { %v3848_v21 = vpop.permute.xlu0 %3847  ;;  %v9710_v46 = vpop.permute.xlu1 %3932 }
 0x482   :  { %v4781_v61 = vmax.f32 %v4547_v18, 0.0 }
 0x484   :  { %v9696_v24 = vpack.c.bf16 %v4781_v61, %v4780_v42 }
 0x485   :  { %v4551_v14 = vpop.f32.mrb[48].mxu0  ;;  %v9698_v58 = vpop.f32.mrb[48].mxu1 }
 0x486   :  { %10858 = vst [vmem:[#allocation73_spill] sm:$0xff] %v9698_v58  ;;  %v4552_v54 = vadd.f32 %v4551_v14, %v3823_v7  ;;  %v4553_v53 = vpop.f32.mrb[49].mxu0  ;;  %v4753_v11 = vpop.f32.mrb[49].mxu1 }
 0x487   :  { %v4554_v30 = vpop.f32.mrb[50].mxu0  ;;  %v9700_v12 = vpop.f32.mrb[50].mxu1 }
 0x488   :  { %10859 = vst [vmem:[#allocation56_spill] sm:$0xff] %v9700_v12  ;;  %v4555_v2 = vadd.f32 %v4554_v30, %v3828_v20  ;;  %v4556_v13 = vpop.f32.mrb[51].mxu0  ;;  %v4756_v25 = vpop.f32.mrb[51].mxu1  ;;  %v4782_v37 = vmax.f32 %v4552_v54, 0.0 }
 0x489   :  { %v9718_v54 = vpop.permute.xlu0 %3937 }
 0x48a   :  { %v4783_v35 = vmax.f32 %v4555_v2, 0.0  ;;  %v3853_v2 = vpop.permute.xlu1 %3852 }
 0x48c   :  { %v9704_v4 = vpack.c.bf16 %v4783_v35, %v4782_v37 }
 0x48d   :  { %v4559_v38 = vpop.f32.mrb[52].mxu0  ;;  %v9706_v32 = vpop.f32.mrb[52].mxu1 }
 0x48e   :  { %10860 = vst [vmem:[#allocation52_spill] sm:$0xff] %v9706_v32  ;;  %v4560_v34 = vadd.f32 %v4559_v38, %v3833_v49  ;;  %v4561_v7 = vpop.f32.mrb[53].mxu0  ;;  %v4761_v23 = vpop.f32.mrb[53].mxu1 }
 0x48f   :  { %v4562_v28 = vpop.f32.mrb[54].mxu0  ;;  %v9708_v3 = vpop.f32.mrb[54].mxu1 }
 0x490   :  { %10861 = vst [vmem:[#allocation57_spill] sm:$0xff] %v9708_v3  ;;  %v4563_v47 = vadd.f32 %v4562_v28, %v3838_v51  ;;  %v4564_v20 = vpop.f32.mrb[55].mxu0  ;;  %v4764_v60 = vpop.f32.mrb[55].mxu1  ;;  %v4784_v5 = vmax.f32 %v4560_v34, 0.0 }
 0x491   :  { %v3858_v35 = vpop.permute.xlu0 %3857 }
 0x492   :  { %v4785_v44 = vmax.f32 %v4563_v47, 0.0 }
 0x494   :  { %v9712_v63 = vpack.c.bf16 %v4785_v44, %v4784_v5 }
 0x495   :  { %v4567_v40 = vpop.f32.mrb[56].mxu0  ;;  %v9714_v29 = vpop.f32.mrb[56].mxu1 }
 0x496   :  { %10862 = vst [vmem:[#allocation55_spill] sm:$0xff] %v9714_v29  ;;  %v4568_v18 = vadd.f32 %v4567_v40, %v3843_v45  ;;  %v4569_v49 = vpop.f32.mrb[57].mxu0  ;;  %v4769_v0 = vpop.f32.mrb[57].mxu1 }
 0x497   :  { %v4570_v1 = vpop.f32.mrb[58].mxu0  ;;  %v9716_v42 = vpop.f32.mrb[58].mxu1 }
 0x498   :  { %10863 = vst [vmem:[#allocation74_spill] sm:$0xff] %v9716_v42  ;;  %v4571_v61 = vadd.f32 %v4570_v1, %v3848_v21  ;;  %v4572_v51 = vpop.f32.mrb[59].mxu0  ;;  %v4772_v14 = vpop.f32.mrb[59].mxu1  ;;  %v4786_v53 = vmax.f32 %v4568_v18, 0.0 }
 0x49a   :  { %v4787_v11 = vmax.f32 %v4571_v61, 0.0 }
 0x49c   :  { %v9720_v30 = vpack.c.bf16 %v4787_v11, %v4786_v53 }
 0x49d   :  { %v4575_v13 = vpop.f32.mrb[60].mxu0 }
 0x49e   :  { %v4576_v25 = vadd.f32 %v4575_v13, %v3853_v2  ;;  %v4577_v37 = vpop.f32.mrb[61].mxu0 }
 0x49f   :  { %v4578_v45 = vpop.f32.mrb[62].mxu0 }
 0x4a0   :  { %v4579_v38 = vadd.f32 %v4578_v45, %v3858_v35  ;;  %v4580_v34 = vpop.f32.mrb[63].mxu0  ;;  %v4788_v7 = vmax.f32 %v4576_v25, 0.0 }
 0x4a2   :  { %v4789_v23 = vmax.f32 %v4579_v38, 0.0 }
 0x4a4   :  { %v9722_v28 = vpack.c.bf16 %v4789_v23, %v4788_v7 }
 0x4a5   :  { %v4583_v47 = vpop.f32.mrb[64].mxu0 }
 0x4a6   :  { %v4584_v20 = vadd.f32 %v4583_v47, %v9621_v22  ;;  %v4585_v60 = vpop.f32.mrb[65].mxu0 }
 0x4a7   :  { %v4586_v5 = vpop.f32.mrb[66].mxu0 }
 0x4a8   :  { %v4587_v44 = vadd.f32 %v4586_v5, %v9629_v43  ;;  %v4588_v21 = vpop.f32.mrb[67].mxu0  ;;  %v4790_v40 = vmax.f32 %v4584_v20, 0.0 }
 0x4aa   :  { %v4791_v18 = vmax.f32 %v4587_v44, 0.0 }
 0x4ac   :  { %v4878_v49 = vpack.c.bf16 %v4791_v18, %v4790_v40 }
 0x4ad   :  { %v4591_v0 = vpop.f32.mrb[68].mxu0 }
 0x4ae   :  { %v4592_v1 = vadd.f32 %v4591_v0, %v9638_v56  ;;  %v4593_v61 = vpop.f32.mrb[69].mxu0  ;;  %5719 = vmatprep.subr.bf16.mxu1 %v4878_v49 }
 0x4af   :  { %v4594_v51 = vpop.f32.mrb[70].mxu0  ;;  %5720 = vmatpush3.bf16.msra.mxu1 %v9672_v50 }
 0x4b0   :  { %v4595_v14 = vadd.f32 %v4594_v51, %v9641_v17  ;;  %v4596_v53 = vpop.f32.mrb[71].mxu0  ;;  %v4792_v22 = vmax.f32 %v4592_v1, 0.0 }
 0x4b2   :  { %v4793_v11 = vmax.f32 %v4595_v14, 0.0 }
 0x4b4   :  { %v4879_v2 = vpack.c.bf16 %v4793_v11, %v4792_v22 }
 0x4b5   :  { %v4599_v13 = vpop.f32.mrb[72].mxu0 }
 0x4b6   :  { %v4600_v43 = vadd.f32 %v4599_v13, %v9650_v39  ;;  %v4601_v25 = vpop.f32.mrb[73].mxu0  ;;  %5721 = vmatprep.subr.bf16.mxu1 %v4879_v2 }
 0x4b7   :  { %v4602_v37 = vpop.f32.mrb[74].mxu0  ;;  %5722 = vmatpush3.bf16.msra.mxu1 %v9680_v59 }
 0x4b8   :  { %v4603_v56 = vadd.f32 %v4602_v37, %v9655_v36  ;;  %v4604_v35 = vpop.f32.mrb[75].mxu0  ;;  %v4794_v45 = vmax.f32 %v4600_v43, 0.0 }
 0x4ba   :  { %v4795_v38 = vmax.f32 %v4603_v56, 0.0 }
 0x4bc   :  { %v4880_v50 = vpack.c.bf16 %v4795_v38, %v4794_v45 }
 0x4bd   :  { %v4607_v34 = vpop.f32.mrb[76].mxu0 }
 0x4be   :  { %v4608_v17 = vadd.f32 %v4607_v34, %v9657_v15  ;;  %v4609_v7 = vpop.f32.mrb[77].mxu0  ;;  %5723 = vmatprep.subr.bf16.mxu1 %v4880_v50 }
 0x4bf   :  { %v4610_v23 = vpop.f32.mrb[78].mxu0  ;;  %5724 = vmatpush3.bf16.msra.mxu1 %v9688_v48 }
 0x4c0   :  { %v4611_v39 = vadd.f32 %v4610_v23, %v9659_v33  ;;  %v4612_v47 = vpop.f32.mrb[79].mxu0  ;;  %v4796_v20 = vmax.f32 %v4608_v17, 0.0  ;;  %v6011_v17 = vld [vmem:[%s10159_s8] ss:$8 sps:$4 sm:$0xff]  }
 0x4c2   :  { %v4797_v60 = vmax.f32 %v4611_v39, 0.0  ;;  %v6016_v39 = vld [vmem:[%s10159_s8 + $0x10] ss:$8 sps:$4 sm:$0xff]  }
 0x4c4   :  { %v4881_v59 = vpack.c.bf16 %v4797_v60, %v4796_v20 }
 0x4c5   :  { %v4615_v5 = vpop.f32.mrb[80].mxu0 }
 0x4c6   :  { %v4616_v36 = vadd.f32 %v4615_v5, %v9661_v16  ;;  %v4617_v44 = vpop.f32.mrb[81].mxu0  ;;  %5725 = vmatprep.subr.bf16.mxu1 %v4881_v59  ;;  %v6019_v5 = vld [vmem:[%s10159_s8 + $0x20] ss:$8 sps:$4 sm:$0xff]  }
 0x4c7   :  { %v4618_v21 = vpop.f32.mrb[82].mxu0  ;;  %5726 = vmatpush3.bf16.msra.mxu1 %v9696_v24  ;;  %v6020_v44 = vld [vmem:[%s10159_s8 + $0x34] ss:$8 sps:$4 sm:$0xff]  }
 0x4c8   :  { %v4619_v15 = vadd.f32 %v4618_v21, %v9670_v41  ;;  %v4620_v40 = vpop.f32.mrb[83].mxu0  ;;  %v4798_v18 = vmax.f32 %v4616_v36, 0.0 }
 0x4ca   :  { %v4799_v49 = vmax.f32 %v4619_v15, 0.0 }
 0x4cc   :  { %v4882_v48 = vpack.c.bf16 %v4799_v49, %v4798_v18  ;;  %v6022_v18 = vld [vmem:[%s10159_s8 + $0x30] ss:$8 sps:$4 sm:$0xff]  }
 0x4cd   :  { %v4623_v0 = vpop.f32.mrb[84].mxu0 }
 0x4ce   :  { %v4624_v33 = vadd.f32 %v4623_v0, %v9678_v31  ;;  %v4625_v1 = vpop.f32.mrb[85].mxu0  ;;  %5727 = vmatprep.subr.bf16.mxu1 %v4882_v48  ;;  %v6023_v48 = vld [vmem:[%s10159_s8 + $0x44] ss:$8 sps:$4 sm:$0xff]  }
 0x4cf   :  { %v4626_v61 = vpop.f32.mrb[86].mxu0  ;;  %5728 = vmatpush3.bf16.msra.mxu1 %v9704_v4 }
 0x4d0   :  { %v4627_v16 = vadd.f32 %v4626_v61, %v9686_v8  ;;  %v4628_v51 = vpop.f32.mrb[87].mxu0  ;;  %v4800_v14 = vmax.f32 %v4624_v33, 0.0  ;;  %v6025_v61 = vld [vmem:[%s10159_s8 + $0x40] ss:$8 sps:$4 sm:$0xff]  }
 0x4d1   :  { %v6026_v51 = vld [vmem:[%s10159_s8 + $0x54] ss:$8 sps:$4 sm:$0xff]  }
 0x4d2   :  { %v4801_v53 = vmax.f32 %v4627_v16, 0.0 }
 0x4d4   :  { %v4883_v24 = vpack.c.bf16 %v4801_v53, %v4800_v14 }
 0x4d5   :  { %v4631_v22 = vpop.f32.mrb[88].mxu0 }
 0x4d6   :  { %v4632_v41 = vadd.f32 %v4631_v22, %v9694_v10  ;;  %v4633_v11 = vpop.f32.mrb[89].mxu0  ;;  %5729 = vmatprep.subr.bf16.mxu1 %v4883_v24  ;;  %v6028_v22 = vld [vmem:[%s10159_s8 + $0x50] ss:$8 sps:$4 sm:$0xff]  }
 0x4d7   :  { %v4634_v2 = vpop.f32.mrb[90].mxu0  ;;  %5730 = vmatpush3.bf16.msra.mxu1 %v9712_v63  ;;  %v6029_v11 = vld [vmem:[%s10159_s8 + $0x64] ss:$8 sps:$4 sm:$0xff]  }
 0x4d8   :  { %v4635_v31 = vadd.f32 %v4634_v2, %v9702_v52  ;;  %v4636_v13 = vpop.f32.mrb[91].mxu0  ;;  %v4802_v43 = vmax.f32 %v4632_v41, 0.0 }
 0x4da   :  { %v4803_v25 = vmax.f32 %v4635_v31, 0.0 }
 0x4dc   :  { %v4884_v4 = vpack.c.bf16 %v4803_v25, %v4802_v43  ;;  %v6031_v43 = vld [vmem:[%s10159_s8 + $0x60] ss:$8 sps:$4 sm:$0xff]  }
 0x4dd   :  { %v4639_v37 = vpop.f32.mrb[92].mxu0 }
 0x4de   :  { %v4640_v8 = vadd.f32 %v4639_v37, %v9710_v46  ;;  %v4641_v56 = vpop.f32.mrb[93].mxu0  ;;  %5731 = vmatprep.subr.bf16.mxu1 %v4884_v4  ;;  %v6032_v4 = vld [vmem:[%s10159_s8 + $0x74] ss:$8 sps:$4 sm:$0xff]  }
 0x4df   :  { %v4642_v35 = vpop.f32.mrb[94].mxu0  ;;  %5732 = vmatpush3.bf16.msra.mxu1 %v9720_v30 }
 0x4e0   :  { %v4643_v10 = vadd.f32 %v4642_v35, %v9718_v54  ;;  %v4644_v45 = vpop.f32.mrb[95].mxu0  ;;  %v4804_v38 = vmax.f32 %v4640_v8, 0.0  ;;  %v6014_v54 = vld [vmem:[%s10159_s8 + $0x14] ss:$8 sps:$4 sm:$0xff]   ;;  %v6034_v35 = vld [vmem:[%s10159_s8 + $0x70] ss:$8 sps:$4 sm:$0xff]  }
 0x4e1   :  { %v6035_v45 = vld [vmem:[%s10159_s8 + $0x84] ss:$8 sps:$4 sm:$0xff]  }
 0x4e2   :  { %v4805_v50 = vmax.f32 %v4643_v10, 0.0 }
 0x4e4   :  { %v4885_v63 = vpack.c.bf16 %v4805_v50, %v4804_v38  ;;  %v4023_v50 = vpop.permute.xlu1 %4022 }
 0x4e5   :  { %v9747_v34 = vpop.f32.mrb[96].mxu0 }
 0x4e6   :  { %v4649_v52 = vpop.f32.mrb[97].mxu0  ;;  %5733 = vmatprep.subr.bf16.mxu1 %v4885_v63 }
 0x4e7   :  { %v9752_v46 = vpop.f32.mrb[98].mxu0  ;;  %5734 = vmatpush3.bf16.msra.mxu1 %v9722_v28  ;;  %v6017_v28 = vld [vmem:[%s10159_s8 + $0x24] ss:$8 sps:$4 sm:$0xff]  }
 0x4e8   :  { %v4652_v30 = vpop.f32.mrb[99].mxu0 }
 0x4e9   :  { %v4028_v30 = vpop.permute.xlu0 %4027 }
 0x4ea   :  { %5271 = vmatmul.mubr.bf16.vlgmr.msra.gmra.mrb[60].mxu1 %v6011_v17 }
 0x4eb   :  { %5278 = vmatprep.mubr.bf16.mxu1 %v6014_v54  ;;  %v6037_v54 = vld [vmem:[%s10159_s8 + $0x80] ss:$8 sps:$4 sm:$0xff]  }
 0x4ed   :  { %v9758_v7 = vpop.f32.mrb[100].mxu0 }
 0x4ee   :  { %v4657_v23 = vpop.f32.mrb[101].mxu0 }
 0x4ef   :  { %v9763_v47 = vpop.f32.mrb[102].mxu0 }
 0x4f0   :  { %v4660_v20 = vpop.f32.mrb[103].mxu0 }
 0x4f2   :  { %5279 = vmatmul.mubr.bf16.gmra.mrb[64].mxu1 %v6016_v39  ;;  %v6038_v39 = vld [vmem:[%s10159_s8 + $0x94] ss:$8 sps:$4 sm:$0xff]  }
 0x4f3   :  { %5286 = vmatprep.mubr.bf16.mxu1 %v6017_v28 }
 0x4f5   :  { %v9768_v60 = vpop.f32.mrb[104].mxu0 }
 0x4f6   :  { %v4665_v59 = vpop.f32.mrb[105].mxu0 }
 0x4f7   :  { %v9773_v36 = vpop.f32.mrb[106].mxu0  ;;  %v6040_v59 = vld [vmem:[%s10159_s8 + $0x90] ss:$8 sps:$4 sm:$0xff]  }
 0x4f8   :  { %v4668_v21 = vpop.f32.mrb[107].mxu0 }
 0x4f9   :  { %v6044_v21 = vld [vmem:[%s10159_s8 + $0xb4] ss:$8 sps:$4 sm:$0xff]  }
 0x4fa   :  { %5287 = vmatmul.mubr.bf16.gmra.mrb[68].mxu1 %v6019_v5  ;;  %v6041_v5 = vld [vmem:[%s10159_s8 + $0xa4] ss:$8 sps:$4 sm:$0xff]  }
 0x4fb   :  { %5294 = vmatprep.mubr.bf16.mxu1 %v6020_v44  ;;  %v6043_v44 = vld [vmem:[%s10159_s8 + $0xa0] ss:$8 sps:$4 sm:$0xff]  }
 0x4fd   :  { %v9778_v15 = vpop.f32.mrb[108].mxu0 }
 0x4fe   :  { %v4673_v40 = vpop.f32.mrb[109].mxu0 }
 0x4ff   :  { %v9783_v49 = vpop.f32.mrb[110].mxu0  ;;  %v6046_v40 = vld [vmem:[%s10159_s8 + $0xb0] ss:$8 sps:$4 sm:$0xff]  }
 0x500   :  { %v4676_v0 = vpop.f32.mrb[111].mxu0 }
 0x501   :  { %v9858_v0 = vpop.permute.xlu0 %5005 }
 0x502   :  { %5295 = vmatmul.mubr.bf16.gmra.mrb[72].mxu1 %v6022_v18  ;;  %v6047_v18 = vld [vmem:[%s10159_s8 + $0xc4] ss:$8 sps:$4 sm:$0xff]  }
 0x503   :  { %5302 = vmatprep.mubr.bf16.mxu1 %v6023_v48  ;;  %v9856_v48 = vpop.permute.xlu1 %5000 }
 0x505   :  { %v9788_v33 = vpop.f32.mrb[112].mxu0 }
 0x506   :  { %v4681_v1 = vpop.f32.mrb[113].mxu0 }
 0x507   :  { %v9793_v16 = vpop.f32.mrb[114].mxu0  ;;  %v6049_v1 = vld [vmem:[%s10159_s8 + $0xc0] ss:$8 sps:$4 sm:$0xff]  }
 0x508   :  { %v4684_v14 = vpop.f32.mrb[115].mxu0 }
 0x509   :  { %v3948_v14 = vpop.permute.xlu0 %3947 }
 0x50a   :  { %5303 = vmatmul.mubr.bf16.gmra.mrb[76].mxu1 %v6025_v61  ;;  %v6050_v61 = vld [vmem:[%s10159_s8 + $0xd4] ss:$8 sps:$4 sm:$0xff]   ;;  %v4651_v57 = vadd.f32 %v9752_v46, %v3948_v14  ;;  %v6098_v46 = vmov 1966171168  }
 0x50b   :  { %5310 = vmatprep.mubr.bf16.mxu1 %v6026_v51  ;;  %v3943_v51 = vpop.permute.xlu1 %3942  ;;  %v5500_v14 = vunpack.c.l.s4 %v6098_v46 }
 0x50d   :  { %v9798_v53 = vpop.f32.mrb[116].mxu0 }
 0x50e   :  { %v4689_v24 = vpop.f32.mrb[117].mxu0 }
 0x50f   :  { %v9803_v41 = vpop.f32.mrb[118].mxu0  ;;  %v6052_v24 = vld [vmem:[%s10159_s8 + $0xd0] ss:$8 sps:$4 sm:$0xff]  }
 0x510   :  { %v4692_v2 = vpop.f32.mrb[119].mxu0 }
 0x511   :  { %v4926_v2 = vpop.permute.xlu0 %4925 }
 0x512   :  { %5311 = vmatmul.mubr.bf16.gmra.mrb[80].mxu1 %v6028_v22  ;;  %v6053_v22 = vld [vmem:[%s10159_s8 + $0xe4] ss:$8 sps:$4 sm:$0xff]  }
 0x513   :  { %5318 = vmatprep.mubr.bf16.mxu1 %v6029_v11  ;;  %v4921_v11 = vpop.permute.xlu1 %4920 }
 0x515   :  { %v9808_v31 = vpop.f32.mrb[120].mxu0 }
 0x516   :  { %v4697_v13 = vpop.f32.mrb[121].mxu0 }
 0x517   :  { %v9813_v25 = vpop.f32.mrb[122].mxu0  ;;  %v9872_v13 = vpop.permute.xlu1 %4032 }
 0x518   :  { %v4700_v37 = vpop.f32.mrb[123].mxu0 }
 0x519   :  { %v9880_v37 = vpop.permute.xlu0 %4037 }
 0x51a   :  { %5319 = vmatmul.mubr.bf16.gmra.mrb[84].mxu1 %v6031_v43  ;;  %v6055_v43 = vld [vmem:[%s10159_s8 + $0xe0] ss:$8 sps:$4 sm:$0xff]  }
 0x51b   :  { %5326 = vmatprep.mubr.bf16.mxu1 %v6032_v4  ;;  %v6056_v4 = vld [vmem:[%s10159_s8 + $0xf4] ss:$8 sps:$4 sm:$0xff]  }
 0x51d   :  { %v9818_v8 = vpop.f32.mrb[124].mxu0 }
 0x51e   :  { %v4705_v56 = vpop.f32.mrb[125].mxu0 }
 0x51f   :  { %v9823_v10 = vpop.f32.mrb[126].mxu0  ;;  %v9882_v56 = vpop.permute.xlu1 %5010 }
 0x520   :  { %v4708_v38 = vpop.f32.mrb[127].mxu0 }
 0x522   :  { %5327 = vmatmul.mubr.bf16.gmra.mrb[88].mxu1 %v6034_v35  ;;  %v9884_v35 = vpop.permute.xlu0 %5015 }
 0x523   :  { %5334 = vmatprep.mubr.bf16.mxu1 %v6035_v45  ;;  %v6058_v45 = vld [vmem:[%s10159_s8 + $0xf0] ss:$8 sps:$4 sm:$0xff]   ;;  %v3953_v38 = vpop.permute.xlu1 %3952 }
 0x525   :  { %v4711_v63 = vpop.f32.mrb[128].mxu0 }
 0x526   :  { %v9828_v52 = vadd.f32 %v4711_v63, %v4023_v50  ;;  %v4713_v17 = vpop.f32.mrb[129].mxu0  ;;  %v3958_v50 = vpop.permute.xlu0 %3957 }
 0x527   :  { %v4714_v23 = vpop.f32.mrb[130].mxu0  ;;  %v4931_v63 = vpop.permute.xlu1 %4930 }
 0x528   :  { %v9836_v28 = vadd.f32 %v4714_v23, %v4028_v30  ;;  %v4716_v20 = vpop.f32.mrb[131].mxu0 }
 0x52a   :  { %5335 = vmatmul.mubr.bf16.gmra.mrb[92].mxu1 %v6037_v54  ;;  %v9889_v17 = vpop.permute.xlu0 %4935 }
 0x52b   :  { %5342 = vmatprep.mubr.bf16.mxu1 %v6038_v39  ;;  %v9891_v54 = vpop.permute.xlu1 %4042 }
 0x52e   :  { %v9893_v30 = vpop.permute.xlu0 %4047 }
 0x52f   :  { %10864 = vst [vmem:[#allocation75_spill] sm:$0xff] %v9893_v30  ;;  %v9895_v23 = vpop.permute.xlu1 %5020 }
 0x530   :  { %10865 = vst [vmem:[#allocation62_spill] sm:$0xff] %v9895_v23 }
 0x532   :  { %5343 = vmatmul.mubr.bf16.gmra.mrb[96].mxu1 %v6040_v59  ;;  %v9897_v39 = vpop.permute.xlu0 %5025 }
 0x533   :  { %5350 = vmatprep.mubr.bf16.mxu1 %v6041_v5  ;;  %10866 = vst [vmem:[#allocation18_spill] sm:$0xff] %v9897_v39  ;;  %v9899_v20 = vpop.permute.xlu1 %3962 }
 0x536   :  { %v9901_v59 = vpop.permute.xlu0 %3967 }
 0x537   :  { %v9903_v5 = vpop.permute.xlu1 %4940 }
 0x53a   :  { %5351 = vmatmul.mubr.bf16.gmra.mrb[100].mxu1 %v6043_v44  ;;  %v9905_v44 = vpop.permute.xlu0 %4945 }
 0x53b   :  { %5358 = vmatprep.mubr.bf16.mxu1 %v6044_v21  ;;  %v9907_v21 = vpop.permute.xlu1 %4052 }
 0x53c   :  { %10867 = vst [vmem:[#allocation19_spill] sm:$0xff] %v9907_v21 }
 0x542   :  { %5359 = vmatmul.mubr.bf16.gmra.mrb[104].mxu1 %v6046_v40  ;;  %v9909_v40 = vpop.permute.xlu0 %4057 }
 0x543   :  { %5366 = vmatprep.mubr.bf16.mxu1 %v6047_v18  ;;  %10868 = vst [vmem:[#allocation23_spill] sm:$0xff] %v9909_v40  ;;  %v9911_v18 = vpop.permute.xlu1 %5030 }
 0x544   :  { %10869 = vst [vmem:[#allocation21_spill] sm:$0xff] %v9911_v18 }
 0x54a   :  { %5367 = vmatmul.mubr.bf16.gmra.mrb[108].mxu1 %v6049_v1  ;;  %v9913_v1 = vpop.permute.xlu0 %5035 }
 0x54b   :  { %5374 = vmatprep.mubr.bf16.mxu1 %v6050_v61  ;;  %10870 = vst [vmem:[#allocation33_spill] sm:$0xff] %v9913_v1  ;;  %v9915_v61 = vpop.permute.xlu1 %3972 }
 0x552   :  { %5375 = vmatmul.mubr.bf16.gmra.mrb[112].mxu1 %v6052_v24  ;;  %v9917_v24 = vpop.permute.xlu0 %3977 }
 0x553   :  { %5382 = vmatprep.mubr.bf16.mxu1 %v6053_v22  ;;  %v9919_v22 = vpop.permute.xlu1 %4950 }
 0x55a   :  { %5383 = vmatmul.mubr.bf16.gmra.mrb[116].mxu1 %v6055_v43  ;;  %v9921_v43 = vpop.permute.xlu0 %4955 }
 0x55b   :  { %5390 = vmatprep.mubr.bf16.mxu1 %v6056_v4  ;;  %v9923_v4 = vpop.permute.xlu1 %4062 }
 0x55c   :  { %10871 = vst [vmem:[#allocation30_spill] sm:$0xff] %v9923_v4 }
 0x55f   :  { %v9927_v42 = vpop.permute.xlu1 %5040 }
 0x560   :  { %10873 = vst [vmem:[#allocation32_spill] sm:$0xff] %v9927_v42 }
 0x562   :  { %5391 = vmatmul.mubr.bf16.gmra.mrb[120].mxu1 %v6058_v45  ;;  %v9925_v45 = vpop.permute.xlu0 %4067 }
 0x563   :  { %10872 = vst [vmem:[#allocation36_spill] sm:$0xff] %v9925_v45  ;;  %v9931_v3 = vpop.permute.xlu1 %3982 }
 0x566   :  { %v9929_v29 = vpop.permute.xlu0 %5045 }
 0x567   :  { %10874 = vst [vmem:[#allocation81_spill] sm:$0xff] %v9929_v29  ;;  %v9935_v12 = vpop.permute.xlu1 %4960  ;;  %v4648_v29 = vadd.f32 %v9747_v34, %v3943_v51  ;;  %v4807_v34 = vmax.f32 %v4651_v57, 0.0 }
 0x56a   :  { %v9933_v32 = vpop.permute.xlu0 %3987 }
 0x56b   :  { %v9939_v62 = vpop.permute.xlu1 %4072 }
 0x56c   :  { %10875 = vst [vmem:[#allocation78_spill] sm:$0xff] %v9939_v62  ;;  %v4806_v62 = vmax.f32 %v4648_v29, 0.0 }
 0x56e   :  { %v9937_v58 = vpop.permute.xlu0 %4965 }
 0x56f   :  { %v9943_v1 = vpop.permute.xlu1 %5050 }
 0x570   :  { %10877 = vst [vmem:[#allocation85_spill] sm:$0xff] %v9943_v1 }
 0x572   :  { %v9941_v9 = vpop.permute.xlu0 %4077 }
 0x573   :  { %10876 = vst [vmem:[#allocation83_spill] sm:$0xff] %v9941_v9  ;;  %v9949_v23 = vpop.permute.xlu1 %3992 }
 0x576   :  { %v9945_v45 = vpop.permute.xlu0 %5055 }
 0x577   :  { %10878 = vst [vmem:[#allocation89_spill] sm:$0xff] %v9945_v45  ;;  %v9956_v45 = vld.sshfl [vmem:[%s10161_s10] sm:$0x11 pattern:$0x75316420]  ;;  %s6099_s10 = smov [#allocation5]  }
 0x578   :  { %s5562_s5 = sshll.u32 %s6099_s10, 4  ;;  %s5563_s5 = int_to_ptr.vmem [resolvable:$true] %s5562_s5 }
 0x579   :  { %s6067_s9 = scalar_lea.vmem %s5563_s5, 16  ;;  %s6071_s14 = scalar_lea.vmem %s5563_s5, 32 }
 0x57a   :  { %v9951_v30 = vpop.permute.xlu0 %3997  ;;  %p6068_p0 = scmp.ne.s32.totalorder %s5563_s5, %s6067_s9  ;;  %p6072_p1 = scmp.lt.s32.totalorder %s5563_s5, %s5563_s5 }
 0x57b   :  { %p6073_p2 = scmp.lt.s32.totalorder %s6071_s14, %s6067_s9 }
 0x57d   :  { %p6074_p3 = por %p6073_p2, %p6072_p1 }
 0x57f   :  { %p6075_p4 = pnand %p6074_p3, %p6068_p0 }
 0x5bd   :  { %v5735_v4 = vpop.f32.mrb[60].mxu1 }
 0x5be   :  { %v5736_v42 = vpop.f32.mrb[61].mxu1 }
 0x5bf   :  { %v5737_v18 = vadd.f32 %v5736_v42, %v5735_v4  ;;  %v5738_v19 = vpop.f32.mrb[62].mxu1 }
 0x5c0   :  { %v5739_v40 = vpop.f32.mrb[63].mxu1 }
 0x5c1   :  { %v5273_v21 = vadd.f32 %v5737_v18, %v4921_v11  ;;  %v5740_v39 = vadd.f32 %v5739_v40, %v5738_v19  ;;  %v4656_v19 = vadd.f32 %v9758_v7, %v3953_v38  ;;  %v5501_v40 = vunpack.c.0.s8 %v5500_v14  ;;  %v9965_v18 = vpop.permute.xlu1 %4970  ;;  %v10879_v7 = vld [vmem:[#allocation8_spill] sm:$0xff] }
 0x5c3   :  { %v5399_v27 = vmax.f32 %v5273_v21, 0.0  ;;  %v5276_v9 = vadd.f32 %v5740_v39, %v4926_v2  ;;  %v5498_v21 = vcombine.high %v9956_v45, %v9956_v45  ;;  %v9971_v38 = vsub.s32 %v5501_v40, %v10879_v7 }
 0x5c5   :  { %v9958_v42 = vadd.f32 %v5399_v27, %v4806_v62  ;;  %v5400_v51 = vmax.f32 %v5276_v9, 0.0  ;;  %v5741_v4 = vpop.f32.mrb[64].mxu1  ;;  %v4659_v27 = vadd.f32 %v9763_v47, %v3958_v50  ;;  %v5512_v47 = vrot.slane %v5498_v21, %v9971_v38 }
 0x5c6   :  { %v5742_v11 = vpop.f32.mrb[65].mxu1  ;;  %v4667_v21 = vadd.f32 %v9773_v36, %v9901_v59  ;;  %v4672_v59 = vadd.f32 %v9778_v15, %v9915_v61 }
 0x5c7   :  { %v9961_v29 = vadd.f32 %v5400_v51, %v4807_v34  ;;  %v5743_v2 = vadd.f32 %v5742_v11, %v5741_v4  ;;  %v5744_v39 = vpop.f32.mrb[66].mxu1  ;;  %v9973_v34 = vpop.permute.xlu0 %4975  ;;  %v4808_v51 = vmax.f32 %v4656_v19, 0.0  ;;  %v4809_v50 = vmax.f32 %v4659_v27, 0.0  ;;  %5547 = vmatprep.mubr.bf16.mxu1 %v5512_v47 }
 0x5c8   :  { %v5745_v57 = vpop.f32.mrb[67].mxu1  ;;  %v4664_v19 = vadd.f32 %v9768_v60, %v9899_v20 }
 0x5c9   :  { %v5281_v62 = vadd.f32 %v5743_v2, %v4931_v63  ;;  %v5746_v46 = vadd.f32 %v5745_v57, %v5744_v39  ;;  %v9981_v2 = vpop.permute.xlu1 %4082 }
 0x5cb   :  { %v5401_v4 = vmax.f32 %v5281_v62, 0.0  ;;  %v5284_v11 = vadd.f32 %v5746_v46, %v9889_v17  ;;  %v9987_v62 = vpop.permute.xlu0 %4087 }
 0x5cd   :  { %v9979_v1 = vadd.f32 %v5401_v4, %v4808_v51  ;;  %v5402_v9 = vmax.f32 %v5284_v11, 0.0  ;;  %v5747_v63 = vpop.f32.mrb[68].mxu1  ;;  %v4810_v4 = vmax.f32 %v4664_v19, 0.0  ;;  %v9995_v20 = vpop.permute.xlu1 %5060 }
 0x5ce   :  { %v5748_v39 = vpop.f32.mrb[69].mxu1 }
 0x5cf   :  { %v9985_v40 = vadd.f32 %v5402_v9, %v4809_v50  ;;  %v5749_v17 = vadd.f32 %v5748_v39, %v5747_v63  ;;  %v5750_v57 = vpop.f32.mrb[70].mxu1  ;;  %v4811_v9 = vmax.f32 %v4667_v21, 0.0  ;;  %v9999_v39 = vpop.permute.xlu0 %5065 }
 0x5d0   :  { %v5751_v46 = vpop.f32.mrb[71].mxu1 }
 0x5d1   :  { %v5464_v27 = vpack.c.bf16 %v9985_v40, %v9979_v1  ;;  %v5289_v7 = vadd.f32 %v5749_v17, %v9903_v5  ;;  %v5752_v51 = vadd.f32 %v5751_v46, %v5750_v57 }
 0x5d3   :  { %v5403_v11 = vmax.f32 %v5289_v7, 0.0  ;;  %v5292_v60 = vadd.f32 %v5752_v51, %v9905_v44  ;;  %v4675_v44 = vadd.f32 %v9783_v49, %v9917_v24  ;;  %v4003_v7 = vpop.permute.xlu1 %4002  ;;  %v4812_v51 = vmax.f32 %v4672_v59, 0.0  ;;  %v4008_v15 = vpop.permute.xlu0 %4007 }
 0x5d4   :  { %v4680_v49 = vadd.f32 %v9788_v33, %v9931_v3  ;;  %v4683_v59 = vadd.f32 %v9793_v16, %v9933_v32  ;;  %v4688_v32 = vadd.f32 %v9798_v53, %v9949_v23 }
 0x5d5   :  { %v9997_v47 = vadd.f32 %v5403_v11, %v4810_v4  ;;  %v5404_v50 = vmax.f32 %v5292_v60, 0.0  ;;  %v5753_v63 = vpop.f32.mrb[72].mxu1  ;;  %v4813_v61 = vmax.f32 %v4675_v44, 0.0 }
 0x5d6   :  { %v5754_v36 = vpop.f32.mrb[73].mxu1  ;;  %v4815_v33 = vmax.f32 %v4683_v59, 0.0 }
 0x5d7   :  { %v10003_v14 = vadd.f32 %v5404_v50, %v4811_v9  ;;  %v5755_v5 = vadd.f32 %v5754_v36, %v5753_v63  ;;  %v5756_v19 = vpop.f32.mrb[74].mxu1 }
 0x5d8   :  { %v5757_v17 = vpop.f32.mrb[75].mxu1 }
 0x5d9   :  { %v5465_v57 = vpack.c.bf16 %v10003_v14, %v9997_v47  ;;  %v5297_v46 = vadd.f32 %v5755_v5, %v9919_v22  ;;  %v5758_v21 = vadd.f32 %v5757_v17, %v5756_v19  ;;  %v4981_v5 = vpop.permute.xlu1 %4980 }
 0x5db   :  { %v5405_v4 = vmax.f32 %v5297_v46, 0.0  ;;  %v5300_v11 = vadd.f32 %v5758_v21, %v9921_v43  ;;  %v4986_v46 = vpop.permute.xlu0 %4985  ;;  %v4814_v21 = vmax.f32 %v4680_v49, 0.0 }
 0x5dd   :  { %v10011_v60 = vadd.f32 %v5405_v4, %v4812_v51  ;;  %v5406_v9 = vmax.f32 %v5300_v11, 0.0  ;;  %v5759_v50 = vpop.f32.mrb[76].mxu1 }
 0x5de   :  { %v5760_v63 = vpop.f32.mrb[77].mxu1 }
 0x5df   :  { %v10015_v24 = vadd.f32 %v5406_v9, %v4813_v61  ;;  %v5761_v36 = vadd.f32 %v5760_v63, %v5759_v50  ;;  %v5762_v22 = vpop.f32.mrb[78].mxu1  ;;  %v10025_v9 = vpop.permute.xlu1 %4092 }
 0x5e0   :  { %v5763_v19 = vpop.f32.mrb[79].mxu1 }
 0x5e1   :  { %v5466_v43 = vpack.c.bf16 %v10015_v24, %v10011_v60  ;;  %v5305_v17 = vadd.f32 %v5761_v36, %v9935_v12  ;;  %v5764_v44 = vadd.f32 %v5763_v19, %v5762_v22  ;;  %v10031_v36 = vpop.permute.xlu0 %4097 }
 0x5e3   :  { %v5407_v51 = vmax.f32 %v5305_v17, 0.0  ;;  %v5308_v3 = vadd.f32 %v5764_v44, %v9937_v58  ;;  %v4691_v58 = vadd.f32 %v9803_v41, %v9951_v30  ;;  %v4816_v17 = vmax.f32 %v4688_v32, 0.0  ;;  %v10039_v23 = vpop.permute.xlu1 %5070 }
 0x5e4   :  { %v4696_v30 = vadd.f32 %v9808_v31, %v4003_v7 }
 0x5e5   :  { %v10023_v4 = vadd.f32 %v5407_v51, %v4814_v21  ;;  %v5408_v11 = vmax.f32 %v5308_v3, 0.0  ;;  %v5765_v61 = vpop.f32.mrb[80].mxu1  ;;  %v4817_v21 = vmax.f32 %v4691_v58, 0.0 }
 0x5e6   :  { %v5766_v50 = vpop.f32.mrb[81].mxu1 }
 0x5e7   :  { %v10029_v16 = vadd.f32 %v5408_v11, %v4815_v33  ;;  %v5767_v12 = vadd.f32 %v5766_v50, %v5765_v61  ;;  %v5768_v63 = vpop.f32.mrb[82].mxu1  ;;  %v10043_v11 = vpop.permute.xlu0 %5075 }
 0x5e8   :  { %v5769_v49 = vpop.f32.mrb[83].mxu1  ;;  %v4013_v58 = vpop.permute.xlu1 %4012 }
 0x5e9   :  { %v5313_v19 = vadd.f32 %v5767_v12, %v9965_v18  ;;  %v5770_v59 = vadd.f32 %v5769_v49, %v5768_v63  ;;  %v4699_v12 = vadd.f32 %v9813_v25, %v4008_v15 }
 0x5eb   :  { %v5409_v44 = vmax.f32 %v5313_v19, 0.0  ;;  %v5316_v53 = vadd.f32 %v5770_v59, %v9973_v34  ;;  %v4818_v19 = vmax.f32 %v4696_v30, 0.0 }
 0x5ed   :  { %v10041_v51 = vadd.f32 %v5409_v44, %v4816_v17  ;;  %v5410_v3 = vmax.f32 %v5316_v53, 0.0  ;;  %v5771_v33 = vpop.f32.mrb[84].mxu1  ;;  %v4018_v44 = vpop.permute.xlu0 %4017  ;;  %v4819_v53 = vmax.f32 %v4699_v12, 0.0 }
 0x5ee   :  { %v5772_v41 = vpop.f32.mrb[85].mxu1 }
 0x5ef   :  { %v10046_v61 = vadd.f32 %v5410_v3, %v4817_v21  ;;  %v5773_v18 = vadd.f32 %v5772_v41, %v5771_v33  ;;  %v5774_v50 = vpop.f32.mrb[86].mxu1  ;;  %v4704_v3 = vadd.f32 %v9818_v8, %v4013_v58  ;;  %v4991_v41 = vpop.permute.xlu1 %4990 }
 0x5f0   :  { %v5775_v32 = vpop.f32.mrb[87].mxu1 }
 0x5f1   :  { %v5468_v34 = vpack.c.bf16 %v10046_v61, %v10041_v51  ;;  %v5321_v63 = vadd.f32 %v5773_v18, %v4981_v5  ;;  %v5776_v49 = vadd.f32 %v5775_v32, %v5774_v50  ;;  %v4707_v18 = vadd.f32 %v9823_v10, %v4018_v44  ;;  %v4996_v32 = vpop.permute.xlu0 %4995 }
 0x5f2   :  { %v4820_v12 = vmax.f32 %v4704_v3, 0.0  ;;  %v4822_v3 = vmax.f32 %v9828_v52, 0.0 }
 0x5f3   :  { %v5411_v59 = vmax.f32 %v5321_v63, 0.0  ;;  %v5324_v17 = vadd.f32 %v5776_v49, %v4986_v46 }
 0x5f5   :  { %v10051_v22 = vadd.f32 %v5411_v59, %v4818_v19  ;;  %v5412_v31 = vmax.f32 %v5324_v17, 0.0  ;;  %v5777_v7 = vpop.f32.mrb[88].mxu1  ;;  %v4821_v19 = vmax.f32 %v4707_v18, 0.0 }
 0x5f6   :  { %v5778_v21 = vpop.f32.mrb[89].mxu1 }
 0x5f7   :  { %v10054_v33 = vadd.f32 %v5412_v31, %v4819_v53  ;;  %v5779_v25 = vadd.f32 %v5778_v21, %v5777_v7  ;;  %v5780_v15 = vpop.f32.mrb[90].mxu1 }
 0x5f8   :  { %v5781_v5 = vpop.f32.mrb[91].mxu1 }
 0x5f9   :  { %v5469_v46 = vpack.c.bf16 %v10054_v33, %v10051_v22  ;;  %v5329_v30 = vadd.f32 %v5779_v25, %v4991_v41  ;;  %v5782_v50 = vadd.f32 %v5781_v5, %v5780_v15  ;;  %v4823_v5 = vmax.f32 %v9836_v28, 0.0  ;;  %v10909_v22 = vld [vmem:[#allocation12_spill] sm:$0xff] }
 0x5fb   :  { %v5413_v63 = vmax.f32 %v5329_v30, 0.0  ;;  %v5332_v49 = vadd.f32 %v5782_v50, %v4996_v32 }
 0x5fd   :  { %v10059_v59 = vadd.f32 %v5413_v63, %v4820_v12  ;;  %v5414_v8 = vmax.f32 %v5332_v49, 0.0  ;;  %v5783_v58 = vpop.f32.mrb[92].mxu1  ;;  %v4720_v12 = vadd.f32 %v9663_v26, %v9872_v13 }
 0x5fe   :  { %v5784_v17 = vpop.f32.mrb[93].mxu1 }
 0x5ff   :  { %v10061_v53 = vadd.f32 %v5414_v8, %v4821_v19  ;;  %v5785_v31 = vadd.f32 %v5784_v17, %v5783_v58  ;;  %v5786_v7 = vpop.f32.mrb[94].mxu1  ;;  %v4824_v17 = vmax.f32 %v4720_v12, 0.0  ;;  %v10884_v12 = vld [vmem:[#allocation18_spill] sm:$0xff] }
 0x600   :  { %v5787_v10 = vpop.f32.mrb[95].mxu1 }
 0x601   :  { %v5470_v44 = vpack.c.bf16 %v10061_v53, %v10059_v59  ;;  %v5337_v21 = vadd.f32 %v5785_v31, %v9856_v48  ;;  %v5788_v25 = vadd.f32 %v5787_v10, %v5786_v7  ;;  %v4723_v48 = vadd.f32 %v9665_v6, %v9880_v37 }
 0x602   :  { %v10880_v7 = vpack.c.bf16 %v9961_v29, %v9958_v42  ;;  %v4728_v6 = vadd.f32 %v9674_v55, %v9891_v54 }
 0x603   :  { %v5415_v15 = vmax.f32 %v5337_v21, 0.0  ;;  %v5340_v41 = vadd.f32 %v5788_v25, %v9858_v0  ;;  %v4825_v26 = vmax.f32 %v4723_v48, 0.0  ;;  %v10885_v48 = vld [vmem:[#allocation19_spill] sm:$0xff] }
 0x604   :  { %v4826_v29 = vmax.f32 %v4728_v6, 0.0  ;;  %v10890_v6 = vld [vmem:[#allocation33_spill] sm:$0xff] }
 0x605   :  { %v5447_v18 = vadd.f32 %v5415_v15, %v4822_v3  ;;  %v5416_v30 = vmax.f32 %v5340_v41, 0.0  ;;  %v5789_v50 = vpop.f32.mrb[96].mxu1  ;;  %v10881_v41 = vld [vmem:[#allocation75_spill] sm:$0xff] }
 0x606   :  { %v5790_v32 = vpop.f32.mrb[97].mxu1 }
 0x607   :  { %v5448_v63 = vadd.f32 %v5416_v30, %v4823_v5  ;;  %v5791_v49 = vadd.f32 %v5790_v32, %v5789_v50  ;;  %v5792_v19 = vpop.f32.mrb[98].mxu1  ;;  %v10882_v5 = vld [vmem:[#allocation35_spill] sm:$0xff] }
 0x608   :  { %v5793_v8 = vpop.f32.mrb[99].mxu1 }
 0x609   :  { %v5345_v52 = vadd.f32 %v5791_v49, %v9882_v56  ;;  %v5794_v58 = vadd.f32 %v5793_v8, %v5792_v19  ;;  %v5471_v0 = vpack.c.bf16 %v5448_v63, %v5447_v18  ;;  %v10883_v18 = vld [vmem:[#allocation62_spill] sm:$0xff] }
 0x60b   :  { %v5417_v28 = vmax.f32 %v5345_v52, 0.0  ;;  %v5348_v31 = vadd.f32 %v5794_v58, %v9884_v35  ;;  %5831 = vmatprep.subr.bf16.mxu1 %v5471_v0  ;;  %v4731_v35 = vadd.f32 %v10882_v5, %v10881_v41  ;;  %v10886_v52 = vld [vmem:[#allocation34_spill] sm:$0xff] }
 0x60c   :  { %5832 = vmatpush3.bf16.msra.mxu1 %v10880_v7  ;;  %v4736_v58 = vadd.f32 %v10886_v52, %v10885_v48  ;;  %v10887_v7 = vld [vmem:[#allocation23_spill] sm:$0xff] }
 0x60d   :  { %v5449_v13 = vadd.f32 %v5417_v28, %v4824_v17  ;;  %v5418_v10 = vmax.f32 %v5348_v31, 0.0  ;;  %v5795_v21 = vpop.f32.mrb[100].mxu1  ;;  %v4827_v55 = vmax.f32 %v4731_v35, 0.0  ;;  %v10891_v35 = vld [vmem:[#allocation30_spill] sm:$0xff] }
 0x60e   :  { %v5796_v25 = vpop.f32.mrb[101].mxu1  ;;  %v4828_v40 = vmax.f32 %v4736_v58, 0.0 }
 0x60f   :  { %v5450_v37 = vadd.f32 %v5418_v10, %v4825_v26  ;;  %v5797_v56 = vadd.f32 %v5796_v25, %v5795_v21  ;;  %v5798_v3 = vpop.f32.mrb[102].mxu1  ;;  %v10888_v26 = vld [vmem:[#allocation40_spill] sm:$0xff]  ;;  %v10889_v10 = vld [vmem:[#allocation21_spill] sm:$0xff] }
 0x610   :  { %v5799_v15 = vpop.f32.mrb[103].mxu1 }
 0x611   :  { %v5353_v30 = vadd.f32 %v5797_v56, %v10883_v18  ;;  %v5800_v50 = vadd.f32 %v5799_v15, %v5798_v3  ;;  %v5472_v42 = vpack.c.bf16 %v5450_v37, %v5449_v13  ;;  %v4739_v13 = vadd.f32 %v10888_v26, %v10887_v7  ;;  %v10892_v18 = vld [vmem:[#allocation41_spill] sm:$0xff] }
 0x612   :  { %v10898_v7 = vld [vmem:[#allocation73_spill] sm:$0xff] }
 0x613   :  { %v5419_v32 = vmax.f32 %v5353_v30, 0.0  ;;  %v5356_v63 = vadd.f32 %v5800_v50, %v10884_v12  ;;  %5833 = vmatprep.subr.bf16.mxu1 %v5472_v42  ;;  %v4829_v56 = vmax.f32 %v4739_v13, 0.0  ;;  %v4744_v30 = vadd.f32 %v10892_v18, %v10891_v35  ;;  %v10893_v12 = vld [vmem:[#allocation36_spill] sm:$0xff] }
 0x614   :  { %5834 = vmatpush3.bf16.msra.mxu1 %v5464_v27 }
 0x615   :  { %v5451_v54 = vadd.f32 %v5419_v32, %v4826_v29  ;;  %v5420_v49 = vmax.f32 %v5356_v63, 0.0  ;;  %v5801_v19 = vpop.f32.mrb[104].mxu1  ;;  %v10894_v63 = vld [vmem:[#allocation72_spill] sm:$0xff]  ;;  %v4830_v47 = vmax.f32 %v4744_v30, 0.0 }
 0x616   :  { %v5802_v8 = vpop.f32.mrb[105].mxu1 }
 0x617   :  { %v5452_v0 = vadd.f32 %v5420_v49, %v4827_v55  ;;  %v5803_v17 = vadd.f32 %v5802_v8, %v5801_v19  ;;  %v5804_v28 = vpop.f32.mrb[106].mxu1  ;;  %v4747_v55 = vadd.f32 %v10894_v63, %v10893_v12  ;;  %v10896_v8 = vld [vmem:[#allocation81_spill] sm:$0xff] }
 0x618   :  { %v5805_v31 = vpop.f32.mrb[107].mxu1 }
 0x619   :  { %v5361_v21 = vadd.f32 %v5803_v17, %v10889_v10  ;;  %v5806_v25 = vadd.f32 %v5805_v31, %v5804_v28  ;;  %v5473_v1 = vpack.c.bf16 %v5452_v0, %v5451_v54  ;;  %v10895_v54 = vld [vmem:[#allocation32_spill] sm:$0xff]  ;;  %v4831_v52 = vmax.f32 %v4747_v55, 0.0  ;;  %v10897_v31 = vld [vmem:[#allocation78_spill] sm:$0xff] }
 0x61a   :  { %v4752_v26 = vadd.f32 %v10898_v7, %v10897_v31  ;;  %v10907_v7 = vld [vmem:[#allocation74_spill] sm:$0xff] }
 0x61b   :  { %v5421_v27 = vmax.f32 %v5361_v21, 0.0  ;;  %v5364_v37 = vadd.f32 %v5806_v25, %v10890_v6  ;;  %5835 = vmatprep.subr.bf16.mxu1 %v5473_v1  ;;  %v10899_v1 = vld [vmem:[#allocation83_spill] sm:$0xff]  ;;  %v10901_v6 = vld [vmem:[#allocation85_spill] sm:$0xff] }
 0x61c   :  { %5836 = vmatpush3.bf16.msra.mxu1 %v5465_v57  ;;  %v4832_v24 = vmax.f32 %v4752_v26, 0.0 }
 0x61d   :  { %v5453_v3 = vadd.f32 %v5421_v27, %v4828_v40  ;;  %v5422_v15 = vmax.f32 %v5364_v37, 0.0  ;;  %v5807_v41 = vpop.f32.mrb[108].mxu1  ;;  %v10900_v40 = vld [vmem:[#allocation56_spill] sm:$0xff] }
 0x61e   :  { %v5808_v5 = vpop.f32.mrb[109].mxu1  ;;  %v4755_v27 = vadd.f32 %v10900_v40, %v10899_v1 }
 0x61f   :  { %v5454_v50 = vadd.f32 %v5422_v15, %v4829_v56  ;;  %v5809_v42 = vadd.f32 %v5808_v5, %v5807_v41  ;;  %v5810_v29 = vpop.f32.mrb[110].mxu1  ;;  %v10903_v41 = vpack.c.bf16 %v10029_v16, %v10023_v4 }
 0x620   :  { %v5811_v32 = vpop.f32.mrb[111].mxu1  ;;  %v4833_v5 = vmax.f32 %v4755_v27, 0.0 }
 0x621   :  { %v5369_v49 = vadd.f32 %v5809_v42, %v10895_v54  ;;  %v5812_v19 = vadd.f32 %v5811_v32, %v5810_v29  ;;  %v5474_v14 = vpack.c.bf16 %v5454_v50, %v5453_v3  ;;  %v10902_v3 = vld [vmem:[#allocation89_spill] sm:$0xff]  ;;  %v10904_v42 = vld [vmem:[#allocation52_spill] sm:$0xff] }
 0x622   :  { %v4760_v29 = vadd.f32 %v10904_v42, %v9981_v2  ;;  %v10905_v54 = vld [vmem:[#allocation57_spill] sm:$0xff] }
 0x623   :  { %v5423_v57 = vmax.f32 %v5369_v49, 0.0  ;;  %v5372_v48 = vadd.f32 %v5812_v19, %v10896_v8  ;;  %5837 = vmatprep.subr.bf16.mxu1 %v5474_v14  ;;  %v4763_v49 = vadd.f32 %v10905_v54, %v9987_v62  ;;  %v10906_v62 = vld [vmem:[#allocation55_spill] sm:$0xff] }
 0x624   :  { %5838 = vmatpush3.bf16.msra.mxu1 %v5466_v43  ;;  %v4834_v16 = vmax.f32 %v4760_v29, 0.0 }
 0x625   :  { %v5455_v58 = vadd.f32 %v5423_v57, %v4830_v47  ;;  %v5424_v0 = vmax.f32 %v5372_v48, 0.0  ;;  %v5813_v17 = vpop.f32.mrb[112].mxu1  ;;  %v4835_v2 = vmax.f32 %v4763_v49, 0.0 }
 0x626   :  { %v5814_v28 = vpop.f32.mrb[113].mxu1 }
 0x627   :  { %v5456_v13 = vadd.f32 %v5424_v0, %v4831_v52  ;;  %v5815_v10 = vadd.f32 %v5814_v28, %v5813_v17  ;;  %v5816_v21 = vpop.f32.mrb[114].mxu1  ;;  %v4768_v0 = vadd.f32 %v10906_v62, %v10025_v9 }
 0x628   :  { %v5817_v25 = vpop.f32.mrb[115].mxu1 }
 0x629   :  { %v5377_v37 = vadd.f32 %v5815_v10, %v10901_v6  ;;  %v5818_v56 = vadd.f32 %v5817_v25, %v5816_v21  ;;  %v5475_v60 = vpack.c.bf16 %v5456_v13, %v5455_v58  ;;  %v4836_v61 = vmax.f32 %v4768_v0, 0.0 }
 0x62b   :  { %v5425_v43 = vmax.f32 %v5377_v37, 0.0  ;;  %v5380_v15 = vadd.f32 %v5818_v56, %v10902_v3  ;;  %5839 = vmatprep.subr.bf16.mxu1 %v5475_v60 }
 0x62c   :  { %5840 = vmatpush3.bf16.msra.mxu1 %v10903_v41 }
 0x62d   :  { %v5457_v35 = vadd.f32 %v5425_v43, %v4832_v24  ;;  %v5426_v18 = vmax.f32 %v5380_v15, 0.0  ;;  %v5819_v30 = vpop.f32.mrb[116].mxu1 }
 0x62e   :  { %v5820_v50 = vpop.f32.mrb[117].mxu1 }
 0x62f   :  { %v5458_v32 = vadd.f32 %v5426_v18, %v4833_v5  ;;  %v5821_v12 = vadd.f32 %v5820_v50, %v5819_v30  ;;  %v5822_v63 = vpop.f32.mrb[118].mxu1 }
 0x630   :  { %v5823_v55 = vpop.f32.mrb[119].mxu1 }
 0x631   :  { %v5385_v19 = vadd.f32 %v5821_v12, %v9995_v20  ;;  %v5824_v14 = vadd.f32 %v5823_v55, %v5822_v63  ;;  %v5476_v4 = vpack.c.bf16 %v5458_v32, %v5457_v35 }
 0x633   :  { %v5427_v47 = vmax.f32 %v5385_v19, 0.0  ;;  %v5388_v57 = vadd.f32 %v5824_v14, %v9999_v39  ;;  %5841 = vmatprep.subr.bf16.mxu1 %v5476_v4  ;;  %v4771_v39 = vadd.f32 %v10907_v7, %v10031_v36  ;;  %v10908_v36 = vrot.slane %v9956_v45, %v9971_v38 }
 0x634   :  { %5842 = vmatpush3.bf16.msra.mxu1 %v5468_v34 }
 0x635   :  { %v5459_v8 = vadd.f32 %v5427_v47, %v4834_v16  ;;  %v5428_v48 = vmax.f32 %v5388_v57, 0.0  ;;  %v5825_v52 = vpop.f32.mrb[120].mxu1  ;;  %v4837_v9 = vmax.f32 %v4771_v39, 0.0 }
 0x636   :  { %v5826_v58 = vpop.f32.mrb[121].mxu1 }
 0x637   :  { %v5460_v20 = vadd.f32 %v5428_v48, %v4835_v2  ;;  %v5827_v17 = vadd.f32 %v5826_v58, %v5825_v52  ;;  %v5828_v28 = vpop.f32.mrb[122].mxu1 }
 0x638   :  { %v5829_v31 = vpop.f32.mrb[123].mxu1 }
 0x639   :  { %v5393_v26 = vadd.f32 %v5827_v17, %v10039_v23  ;;  %v5830_v13 = vadd.f32 %v5829_v31, %v5828_v28  ;;  %v5477_v51 = vpack.c.bf16 %v5460_v20, %v5459_v8  ;;  %v5484_v23 = vpop.permute.xlu1 %5483 }
 0x63a   :  { %v5489_v33 = vrot.slane %v5484_v23, %v10909_v22 }
 0x63b   :  { %v5429_v34 = vmax.f32 %v5393_v26, 0.0  ;;  %v5396_v10 = vadd.f32 %v5830_v13, %v10043_v11  ;;  %5843 = vmatprep.subr.bf16.mxu1 %v5477_v51 }
 0x63c   :  { %5844 = vmatpush3.bf16.msra.mxu1 %v5469_v46 }
 0x63d   :  { %v5461_v21 = vadd.f32 %v5429_v34, %v4836_v61  ;;  %v5430_v25 = vmax.f32 %v5396_v10, 0.0 }
 0x63f   :  { %v5462_v1 = vadd.f32 %v5430_v25, %v4837_v9 }
 0x641   :  { %v5478_v40 = vpack.c.bf16 %v5462_v1, %v5461_v21 }
 0x643   :  { %5845 = vmatprep.subr.bf16.mxu1 %v5478_v40 }
 0x644   :  { %5846 = vmatpush3.bf16.msra.mxu1 %v5470_v44 }
 0x647   :  { %5548 = vmatmul.mubr.bf16.vlgmr.msra.gmra.mrb[124].mxu1 %v10908_v36 }
 0x71a   :  { %v5847_v11 = vpop.f32.mrb[124].mxu1 }
 0x71b   :  { %v5848_v27 = vpop.f32.mrb[125].mxu1 }
 0x71c   :  { %v5849_v46 = vadd.f32 %v5848_v27, %v5847_v11  ;;  %v5850_v6 = vpop.f32.mrb[126].mxu1 }
 0x71d   :  { %v5851_v37 = vpop.f32.mrb[127].mxu1 }
 0x71e   :  { %v5550_v56 = vadd.f32 %v5849_v46, %v5489_v33 }
 0x720   :  { %5555 = vst [vmem:[#allocation5] sm:$0x1] %v5550_v56 }
 0x721   :  { %6078 = shalt.err (!%p6075_p4)
}
 0x722   :  { %s6079_s16 = scalar_lea.hbm %s10163_s12, 16 }
 0x723   :  { %p6080_p5 = scmp.ne.s32.totalorder %s10163_s12, %s6079_s16  ;;  %p6083_p6 = scmp.lt.u32.totalorder %s6079_s16, %s10163_s12 }
 0x725   :  { %p6085_p7 = pnand %p6083_p6, %p6080_p5 }
 0x727   :  { %6088 = shalt.err (!%p6085_p7)
}
 0x728   :  { %5565 = dma.vmem_to_hbm [thread:$0]  %s5563_s5, 16, %s10163_s12, [#allocation6]  }
 0x729   :  { %6089 = dma.done.wait [#allocation6], 16  }
 0x72a   :  { %6090 = vsyncadd [#allocation6], 4294967280 }
 0x72b   :  { %5569 = vsyncpa [#allocation6], 1 }

</bundles_post_ra>
